<compile_context>
chip_gen: v5e
topology: v5e:2x2
jax: 0.10.0
libtpu: 0.0.40
codegen_flags: <defaults>
</compile_context>

<pallas_src>
import numpy as np
import jax
import jax.numpy as jnp
from jax import lax
from jax.experimental import pallas as pl
from jax.experimental.pallas import tpu as pltpu


# ----------------------------- helpers ---------------------------------------
def _round_up(x, m):
    return ((x + m - 1) // m) * m


# Kernel gate layout: dest slot k holds PyTorch gate block _GATE_SRC[k].
# PyTorch order is (i, f, g, o); kernel order is (i, f, o, g) so the three
# sigmoid gates form one contiguous lane-aligned slab.
_GATE_SRC = (0, 1, 3, 2)


def _pad_gate_cols(w_t, H, H_pad):
    """(in_dim, 4H) -> (in_dim, 4H_pad): gate block for dest slot k starts at the
    lane-aligned offset k*H_pad; padded columns are zero."""
    out = jnp.zeros((w_t.shape[0], 4 * H_pad), w_t.dtype)
    for k, src in enumerate(_GATE_SRC):
        out = out.at[:, k * H_pad:k * H_pad + H].set(w_t[:, src * H:(src + 1) * H])
    return out


def _pad_rows(w, rows_pad):
    return jnp.zeros((rows_pad, w.shape[1]), w.dtype).at[:w.shape[0]].set(w)


def packed_indices(lengths, batch_size):
    """pack_padded_sequence ordering (batch_first=True, lengths sorted descending)."""
    lengths = np.asarray(lengths)
    max_len = int(lengths.max())
    b_idx, t_idx = [], []
    for t in range(max_len):
        for b in range(batch_size):
            if lengths[b] > t:
                b_idx.append(b)
                t_idx.append(t)
    return np.array(b_idx, np.int32), np.array(t_idx, np.int32)


# ----------------------------- kernel A: fused multi-layer LSTM ----------------
def make_lstm_kernel(num_layers, T, B_pad, H_pad):
    """Whole-sequence multi-layer LSTM in one invocation.

    refs layout:
      inputs : emb(T*B_pad, E) bf16,
               per layer: Wx^T(in_l, 4H_pad) bf16, Wh^T(H_pad, 4H_pad) bf16,
                          bias(1, 4H_pad) f32  (= b_ih + b_hh)
      output : hall(T*B_pad, H_pad) bf16   (last layer's hiddens, all timesteps)
      scratch: xproj(T*B_pad, 4H_pad) f32  (hoisted input projection)
    """

    def kernel(*refs):
        emb_ref = refs[0]
        hall_ref = refs[1 + 3 * num_layers]
        xproj = refs[2 + 3 * num_layers]

        for l in range(num_layers):
            wx_ref = refs[1 + 3 * l]   # (in_l, 4H_pad)   bf16
            wh_ref = refs[2 + 3 * l]   # (H_pad, 4H_pad)  bf16
            b_ref = refs[3 + 3 * l]    # (1, 4H_pad)      f32

            # (1) Hoisted input projection for ALL timesteps: one MXU matmul.
            #     For l > 0 the input is the previous layer's bf16 hidden slab.
            # TODO(synk): for long sequences on v7x (64 MiB VMEM), chunk the time
            # axis here (or store xproj in bf16) instead of one full-T f32 slab.
            xin = emb_ref[...] if l == 0 else hall_ref[...]
            xproj[...] = (jnp.dot(xin, wx_ref[...],
                                  preferred_element_type=jnp.float32)
                          + b_ref[...])

            # (2) Recurrence: only h @ W_hh^T stays inside the time loop.
            # TODO(synk): keep W_hh resident in MXU weight staging across the loop
            # via pltpu.matmul_push_rhs/matmul_acc_lhs/matmul_pop (split across
            # staging slots since 4*H_pad > MXU width) to avoid re-streaming the
            # RHS on every step of this latency-bound chain.
            h0 = jnp.zeros((B_pad, H_pad), jnp.bfloat16)
            c0 = jnp.zeros((B_pad, H_pad), jnp.float32)

            def step(t, carry):
                h, c = carry                                  # h bf16, c f32
                row = pl.multiple_of(t * B_pad, 8)            # sublane-aligned
                gates = (xproj[pl.ds(row, B_pad), :]
                         + jnp.dot(h, wh_ref[...],
                                   preferred_element_type=jnp.float32))
                # One sigmoid over the contiguous (i, f, o) slab, one tanh for g.
                sig = jax.nn.sigmoid(gates[:, 0:3 * H_pad])
                i_g = sig[:, 0 * H_pad:1 * H_pad]
                f_g = sig[:, 1 * H_pad:2 * H_pad]
                o_g = sig[:, 2 * H_pad:3 * H_pad]
                g_g = jnp.tanh(gates[:, 3 * H_pad:4 * H_pad])
                c_new = f_g * c + i_g * g_g                   # f32 cell state
                h_new = (o_g * jnp.tanh(c_new)).astype(jnp.bfloat16)
                hall_ref[pl.ds(row, B_pad), :] = h_new
                return h_new, c_new

            lax.fori_loop(0, T, step, (h0, c0), unroll=True)

    return kernel


def lstm_all_layers(emb_flat, layer_params, T, B_pad, H_pad):
    """emb_flat: (T*B_pad, E) bf16. Returns (T*B_pad, H_pad) bf16 hidden slab."""
    inputs = [emb_flat]
    for (wx_t, wh_t, bias) in layer_params:
        inputs.extend([wx_t, wh_t, bias])

    vmem = pl.BlockSpec(memory_space=pltpu.MemorySpace.VMEM)  # whole array in VMEM

    # VMEM budget from actual buffer sizes (inputs + output + scratch) + headroom.
    nbytes = sum(int(np.prod(a.shape)) * a.dtype.itemsize for a in inputs)
    nbytes += T * B_pad * H_pad * 2           # hall output (bf16)
    nbytes += T * B_pad * 4 * H_pad * 4       # xproj scratch (f32)
    vmem_limit = int(min(max(4 * nbytes + (8 << 20), 16 << 20), 96 << 20))

    return pl.pallas_call(
        make_lstm_kernel(len(layer_params), T, B_pad, H_pad),
        out_shape=jax.ShapeDtypeStruct((T * B_pad, H_pad), jnp.bfloat16),
        in_specs=[vmem] * len(inputs),
        out_specs=vmem,
        scratch_shapes=[pltpu.VMEM((T * B_pad, 4 * H_pad), jnp.float32)],
        compiler_params=pltpu.CompilerParams(vmem_limit_bytes=vmem_limit),
    )(*inputs)


# ----------------------------- kernel B: packed-row vocab projection -----------
def _linear_kernel(h_ref, w_ref, b_ref, o_ref):
    o_ref[...] = (jnp.dot(h_ref[...], w_ref[...],
                          preferred_element_type=jnp.float32)
                  + b_ref[...])


def packed_vocab_projection(h_packed, wlin_t, blin, tm, tn):
    """h_packed: (N_pad, H_pad) bf16, wlin_t: (H_pad, V_pad) bf16, blin: (1, V_pad) f32.
    Tiled (row-tile, V-tile) projection; both grid axes are 'parallel' so v7x's
    two TensorCores can split the FLOP-dominant phase."""
    n_pad, h_pad = h_packed.shape
    v_pad = wlin_t.shape[1]
    grid = (n_pad // tm, v_pad // tn)

    blk_bytes = 2 * (tm * h_pad * 2 + h_pad * tn * 2 + tn * 4 + tm * tn * 4)  # double-buffered
    vmem_limit = int(min(max(4 * blk_bytes + (8 << 20), 16 << 20), 96 << 20))

    return pl.pallas_call(
        _linear_kernel,
        out_shape=jax.ShapeDtypeStruct((n_pad, v_pad), jnp.float32),
        grid=grid,
        in_specs=[pl.BlockSpec((tm, h_pad), lambda i, j: (i, 0)),
                  pl.BlockSpec((h_pad, tn), lambda i, j: (0, j)),
                  pl.BlockSpec((1, tn), lambda i, j: (0, j))],
        out_specs=pl.BlockSpec((tm, tn), lambda i, j: (i, j)),
        compiler_params=pltpu.CompilerParams(
            dimension_semantics=("parallel", "parallel"),
            vmem_limit_bytes=vmem_limit),
    )(h_packed, wlin_t, blin)


# ----------------------------- parameter packing ------------------------------
def prepare_kernel_params(params, H, H_pad, V_pad):
    layers = []
    for li, (w_ih, w_hh, b_ih, b_hh) in enumerate(params['lstm_raw']):
        wx_t = _pad_gate_cols(w_ih.T, H, H_pad)                        # (in_l, 4H_pad)
        if li > 0:
            wx_t = _pad_rows(wx_t, H_pad)                              # in_l == H -> H_pad
        wh_t = _pad_rows(_pad_gate_cols(w_hh.T, H, H_pad), H_pad)      # (H_pad, 4H_pad)
        bias = _pad_gate_cols((b_ih + b_hh)[None, :], H, H_pad)        # (1, 4H_pad)
        layers.append((wx_t.astype(jnp.bfloat16),
                       wh_t.astype(jnp.bfloat16),
                       bias.astype(jnp.float32)))
    wlin_t = _pad_rows(params['lin_w'].T, H_pad)                       # (H_pad, V)
    wlin_t = jnp.pad(wlin_t, ((0, 0), (0, V_pad - wlin_t.shape[1])))
    blin = jnp.pad(params['lin_b'][None, :],
                   ((0, 0), (0, V_pad - params['lin_b'].shape[0])))
    return {'layers': layers,
            'wlin_t': wlin_t.astype(jnp.bfloat16),
            'blin': blin.astype(jnp.float32)}


# ----------------------------- full forward -----------------------------------
def decoder_rnn_forward(params, features, adj, captions, lengths, hidden_size):
    B = features.shape[0]
    V = params['embed'].shape[0]
    H_pad = _round_up(hidden_size, 128)   # lane-aligned gates / hidden
    V_pad = _round_up(V, 128)             # lane-dense projection output
    B_pad = _round_up(B, 8)               # sublane-aligned batch

    # --- encoder: external module in the original; synthetic deterministic
    #     graph encoder producing token ids (B, N_nodes). (plain-JAX glue)
    # TODO(synk): real encoder module is external to DecoderRNN; stand-in only.
    enc_logits = jnp.einsum('bij,bjf,fv->biv', adj, features, params['enc_w'])
    enc_ids = jnp.argmax(enc_logits, axis=-1).astype(jnp.int32)

    # --- embedding lookups (padding_idx=0 row is zero): XLA gather (glue)
    enc_emb = jnp.take(params['embed'], enc_ids, axis=0)                      # (B, N, E)
    cap_emb = jnp.take(params['embed'], captions.astype(jnp.int32), axis=0)   # (B, Tc, E)
    emb = jnp.concatenate([enc_emb, cap_emb], axis=1)                         # (B, T, E)
    T = emb.shape[1]
    E = emb.shape[-1]

    # --- time-major layout, batch padded to a sublane multiple, bf16 MXU operands
    emb_tbe = jnp.transpose(emb, (1, 0, 2))                                   # (T, B, E)
    emb_tbe = jnp.pad(emb_tbe, ((0, 0), (0, B_pad - B), (0, 0))).astype(jnp.bfloat16)
    emb_flat = emb_tbe.reshape(T * B_pad, E)

    kparams = prepare_kernel_params(params, hidden_size, H_pad, V_pad)

    # --- kernel A: fused multi-layer LSTM over the whole sequence
    hall = lstm_all_layers(emb_flat, kparams['layers'], T, B_pad, H_pad)      # (T*B_pad, H_pad) bf16
    # NOTE: rows for padded batch indices (B..B_pad-1) hold garbage and must not
    # be read; they are excluded by the packed-row gather below.

    # --- pack_padded_sequence row selection + compaction (cheap wrapper gather)
    #     so the vocab projection only touches the n_packed rows we return.
    b_idx, t_idx = packed_indices(lengths, B)
    n_packed = int(b_idx.shape[0])
    rows = jnp.asarray(t_idx.astype(np.int64) * B_pad + b_idx, jnp.int32)
    tm = 128 if n_packed >= 128 else _round_up(n_packed, 8)
    n_pad = _round_up(n_packed, tm)
    h_packed = jnp.take(hall, rows, axis=0)                                   # (n_packed, H_pad)
    h_packed = jnp.pad(h_packed, ((0, n_pad - n_packed), (0, 0)))

    tn = 512 if V_pad % 512 == 0 else (256 if V_pad % 256 == 0 else 128)

    # --- kernel B: tiled vocab projection on packed rows only
    out = packed_vocab_projection(h_packed, kparams['wlin_t'], kparams['blin'], tm, tn)
    return out[:n_packed, :V]                                                 # (N_packed, V) f32


# ----------------------------- pure-JAX reference ------------------------------
def lstm_ref(emb_bte, lstm_raw, H):
    """Same numerics as the kernel: bf16 MXU operands, f32 accumulation / cell."""
    x = emb_bte
    B = x.shape[0]
    for (w_ih, w_hh, b_ih, b_hh) in lstm_raw:
        wih_t = w_ih.T.astype(jnp.bfloat16)
        whh_t = w_hh.T.astype(jnp.bfloat16)
        bias = (b_ih + b_hh)[None, :]

        def step(carry, xt, wih_t=wih_t, whh_t=whh_t, bias=bias):
            h, c = carry
            gates = (jnp.dot(xt.astype(jnp.bfloat16), wih_t, preferred_element_type=jnp.float32)
                     + jnp.dot(h.astype(jnp.bfloat16), whh_t, preferred_element_type=jnp.float32)
                     + bias)
            i = jax.nn.sigmoid(gates[:, :H])
            f = jax.nn.sigmoid(gates[:, H:2 * H])
            g = jnp.tanh(gates[:, 2 * H:3 * H])
            o = jax.nn.sigmoid(gates[:, 3 * H:])
            c = f * c + i * g
            h = o * jnp.tanh(c)
            return (h, c), h

        carry0 = (jnp.zeros((B, H), jnp.float32), jnp.zeros((B, H), jnp.float32))
        _, ys = jax.lax.scan(step, carry0, jnp.transpose(x, (1, 0, 2)))
        x = jnp.transpose(ys, (1, 0, 2))
    return x


# ----------------------------- main --------------------------------------------
if __name__ == "__main__":
    B, N_NODES, F_IN = 4, 4, 16      # features: (B, N_nodes, F), adj: (B, N_nodes, N_nodes)
    T_CAP = 8                        # padded caption length
    E, H, L, V = 32, 32, 2, 128      # embed, hidden, num_layers, vocab
    T_TOTAL = N_NODES + T_CAP

    key = jax.random.PRNGKey(0)
    ks = jax.random.split(key, 16)

    # --- deterministic parameter init (shapes per the module's __init__) ---
    embed_w = 0.1 * jax.random.normal(ks[0], (V, E), jnp.float32)
    embed_w = embed_w.at[0].set(0.0)                       # padding_idx=0 -> zero row

    scale = 1.0 / np.sqrt(H)
    lstm_raw = []
    for l in range(L):
        in_l = E if l == 0 else H
        w_ih = jax.random.uniform(ks[1 + 4 * l], (4 * H, in_l), jnp.float32, -scale, scale)
        w_hh = jax.random.uniform(ks[2 + 4 * l], (4 * H, H), jnp.float32, -scale, scale)
        b_ih = jax.random.uniform(ks[3 + 4 * l], (4 * H,), jnp.float32, -scale, scale)
        b_hh = jax.random.uniform(ks[4 + 4 * l], (4 * H,), jnp.float32, -scale, scale)
        lstm_raw.append((w_ih, w_hh, b_ih, b_hh))

    lin_w = jax.random.uniform(ks[9], (V, H), jnp.float32, -scale, scale)
    lin_b = jax.random.uniform(ks[10], (V,), jnp.float32, -scale, scale)

    params = {
        'embed': embed_w,
        'lstm_raw': lstm_raw,
        'lin_w': lin_w,
        'lin_b': lin_b,
        'enc_w': 0.1 * jax.random.normal(ks[11], (F_IN, V), jnp.float32),  # synthetic encoder
    }

    # --- deterministic example inputs ---
    features = jax.random.normal(ks[12], (B, N_NODES, F_IN), jnp.float32)
    adj = jax.random.uniform(ks[13], (B, N_NODES, N_NODES), jnp.float32)
    captions = jax.random.randint(ks[14], (B, T_CAP), 1, V).astype(jnp.int32)
    lengths = [12, 10, 9, 7]         # sorted descending, as pack_padded_sequence requires
    cap_np = np.array(captions)
    for b in range(B):
        cap_np[b, max(lengths[b] - N_NODES, 0):] = 0
    captions = jnp.asarray(cap_np)

    out = decoder_rnn_forward(params, features, adj, captions, lengths, H)
    out = jax.block_until_ready(out)
    n_packed = int(np.sum(lengths))
    assert out.shape == (n_packed, V), out.shape

    # --- sanity check against a pure-JAX reference of the same forward ---------
    enc_ids = jnp.argmax(jnp.einsum('bij,bjf,fv->biv', adj, features, params['enc_w']), -1)
    emb = jnp.concatenate([jnp.take(embed_w, enc_ids, axis=0),
                           jnp.take(embed_w, captions, axis=0)], axis=1)
    ref_h = lstm_ref(emb, lstm_raw, H)
    b_idx, t_idx = packed_indices(lengths, B)
    ref_out = (jnp.dot(ref_h[b_idx, t_idx].astype(jnp.bfloat16),
                       lin_w.T.astype(jnp.bfloat16),
                       preferred_element_type=jnp.float32)
               + lin_b[None, :])
    # Kernel and reference use identical bf16-operand / f32-accumulate numerics;
    # residual differences are transcendental implementations and add ordering.
    np.testing.assert_allclose(np.array(out), np.array(ref_out), rtol=1e-2, atol=1e-3)

    print("KERNEL_OK")
</pallas_src>

<mosaic_0001>
module attributes {stable_mosaic.version = 11 : i64} {
  func.func @kernel(%arg0: memref<96x32xbf16, #tpu.memory_space<vmem>>, %arg1: memref<32x512xbf16, #tpu.memory_space<vmem>>, %arg2: memref<128x512xbf16, #tpu.memory_space<vmem>>, %arg3: memref<1x512xf32, #tpu.memory_space<vmem>>, %arg4: memref<128x512xbf16, #tpu.memory_space<vmem>>, %arg5: memref<128x512xbf16, #tpu.memory_space<vmem>>, %arg6: memref<1x512xf32, #tpu.memory_space<vmem>>, %arg7: memref<96x128xbf16, #tpu.memory_space<vmem>>, %arg8: memref<96x512xf32, #tpu.memory_space<vmem>>) attributes {dimension_semantics = [], scalar_prefetch = 0 : i64, scratch_operands = 1 : i64, tpu.core_type = #tpu.core_type<tc>} {
    %c0 = arith.constant 0 : index
    %c0_0 = arith.constant 0 : index
    %0 = vector.load %arg0[%c0, %c0_0] : memref<96x32xbf16, #tpu.memory_space<vmem>>, vector<96x32xbf16>
    %c0_1 = arith.constant 0 : index
    %c0_2 = arith.constant 0 : index
    %1 = vector.load %arg1[%c0_1, %c0_2] : memref<32x512xbf16, #tpu.memory_space<vmem>>, vector<32x512xbf16>
    %cst = arith.constant dense<0.000000e+00> : vector<96x512xf32>
    %2 = tpu.matmul %0, %1, %cst {dimension_numbers = #tpu.dot_dimension_numbers<[1], [0], [0], [1], [0, 0, 1, 1], [], []>} : vector<96x32xbf16>, vector<32x512xbf16>, vector<96x512xf32> -> vector<96x512xf32>
    %c0_3 = arith.constant 0 : index
    %c0_4 = arith.constant 0 : index
    %3 = vector.load %arg3[%c0_3, %c0_4] : memref<1x512xf32, #tpu.memory_space<vmem>>, vector<1x512xf32>
    %4 = vector.broadcast %3 : vector<1x512xf32> to vector<96x512xf32>
    %5 = arith.addf %2, %4 : vector<96x512xf32>
    %c0_5 = arith.constant 0 : index
    %c0_6 = arith.constant 0 : index
    %6 = vector.load %arg8[%c0_5, %c0_6] : memref<96x512xf32, #tpu.memory_space<vmem>>, vector<96x512xf32>
    tpu.vector_store %arg8[%c0_5, %c0_6], %5 {strides = array<i32>} : memref<96x512xf32, #tpu.memory_space<vmem>>, vector<96x512xf32>,
    %cst_7 = arith.constant 0.000000e+00 : bf16
    %7 = vector.broadcast %cst_7 : bf16 to vector<8x128xbf16>
    %cst_8 = arith.constant 0.000000e+00 : f32
    %8 = vector.broadcast %cst_8 : f32 to vector<8x128xf32>
    %c0_i32 = arith.constant 0 : i32
    %c8_i32 = arith.constant 8 : i32
    %9 = arith.muli %c0_i32, %c8_i32 : i32
    %10 = tpu.assume_multiple %9, 8 : i32
    %11 = arith.index_cast %10 : i32 to index
    %c0_9 = arith.constant 0 : index
    %12 = vector.load %arg8[%11, %c0_9] : memref<96x512xf32, #tpu.memory_space<vmem>>, vector<8x512xf32>
    %c0_10 = arith.constant 0 : index
    %c0_11 = arith.constant 0 : index
    %13 = vector.load %arg2[%c0_10, %c0_11] : memref<128x512xbf16, #tpu.memory_space<vmem>>, vector<128x512xbf16>
    %cst_12 = arith.constant dense<0.000000e+00> : vector<8x512xf32>
    %14 = tpu.matmul %7, %13, %cst_12 {dimension_numbers = #tpu.dot_dimension_numbers<[1], [0], [0], [1], [0, 0, 1, 1], [], []>} : vector<8x128xbf16>, vector<128x512xbf16>, vector<8x512xf32> -> vector<8x512xf32>
    %15 = arith.addf %12, %14 : vector<8x512xf32>
    %16 = vector.extract_strided_slice %15 {offsets = [0, 0], sizes = [8, 384], strides = [1, 1]} : vector<8x512xf32> to vector<8x384xf32>
    %17 = arith.negf %16 : vector<8x384xf32>
    %18 = math.exp %17 : vector<8x384xf32>
    %cst_13 = arith.constant 1.000000e+00 : f32
    %19 = vector.broadcast %cst_13 : f32 to vector<8x384xf32>
    %20 = arith.addf %19, %18 : vector<8x384xf32>
    %21 = arith.divf %19, %20 : vector<8x384xf32>
    %22 = vector.extract_strided_slice %21 {offsets = [0, 0], sizes = [8, 128], strides = [1, 1]} : vector<8x384xf32> to vector<8x128xf32>
    %23 = vector.extract_strided_slice %21 {offsets = [0, 128], sizes = [8, 128], strides = [1, 1]} : vector<8x384xf32> to vector<8x128xf32>
    %24 = vector.extract_strided_slice %21 {offsets = [0, 256], sizes = [8, 128], strides = [1, 1]} : vector<8x384xf32> to vector<8x128xf32>
    %25 = vector.extract_strided_slice %15 {offsets = [0, 384], sizes = [8, 128], strides = [1, 1]} : vector<8x512xf32> to vector<8x128xf32>
    %26 = math.tanh %25 : vector<8x128xf32>
    %27 = arith.mulf %23, %8 : vector<8x128xf32>
    %28 = arith.mulf %22, %26 : vector<8x128xf32>
    %29 = arith.addf %27, %28 : vector<8x128xf32>
    %30 = math.tanh %29 : vector<8x128xf32>
    %31 = arith.mulf %24, %30 : vector<8x128xf32>
    %32 = arith.truncf %31 : vector<8x128xf32> to vector<8x128xbf16>
    %33 = arith.index_cast %10 : i32 to index
    %c0_14 = arith.constant 0 : index
    %34 = vector.load %arg7[%33, %c0_14] : memref<96x128xbf16, #tpu.memory_space<vmem>>, vector<8x128xbf16>
    tpu.vector_store %arg7[%33, %c0_14], %32 {strides = array<i32>} : memref<96x128xbf16, #tpu.memory_space<vmem>>, vector<8x128xbf16>,
    %c1_i32 = arith.constant 1 : i32
    %c8_i32_15 = arith.constant 8 : i32
    %35 = arith.muli %c1_i32, %c8_i32_15 : i32
    %36 = tpu.assume_multiple %35, 8 : i32
    %37 = arith.index_cast %36 : i32 to index
    %c0_16 = arith.constant 0 : index
    %38 = vector.load %arg8[%37, %c0_16] : memref<96x512xf32, #tpu.memory_space<vmem>>, vector<8x512xf32>
    %c0_17 = arith.constant 0 : index
    %c0_18 = arith.constant 0 : index
    %39 = vector.load %arg2[%c0_17, %c0_18] : memref<128x512xbf16, #tpu.memory_space<vmem>>, vector<128x512xbf16>
    %cst_19 = arith.constant dense<0.000000e+00> : vector<8x512xf32>
    %40 = tpu.matmul %32, %39, %cst_19 {dimension_numbers = #tpu.dot_dimension_numbers<[1], [0], [0], [1], [0, 0, 1, 1], [], []>} : vector<8x128xbf16>, vector<128x512xbf16>, vector<8x512xf32> -> vector<8x512xf32>
    %41 = arith.addf %38, %40 : vector<8x512xf32>
    %42 = vector.extract_strided_slice %41 {offsets = [0, 0], sizes = [8, 384], strides = [1, 1]} : vector<8x512xf32> to vector<8x384xf32>
    %43 = arith.negf %42 : vector<8x384xf32>
    %44 = math.exp %43 : vector<8x384xf32>
    %cst_20 = arith.constant 1.000000e+00 : f32
    %45 = vector.broadcast %cst_20 : f32 to vector<8x384xf32>
    %46 = arith.addf %45, %44 : vector<8x384xf32>
    %47 = arith.divf %45, %46 : vector<8x384xf32>
    %48 = vector.extract_strided_slice %47 {offsets = [0, 0], sizes = [8, 128], strides = [1, 1]} : vector<8x384xf32> to vector<8x128xf32>
    %49 = vector.extract_strided_slice %47 {offsets = [0, 128], sizes = [8, 128], strides = [1, 1]} : vector<8x384xf32> to vector<8x128xf32>
    %50 = vector.extract_strided_slice %47 {offsets = [0, 256], sizes = [8, 128], strides = [1, 1]} : vector<8x384xf32> to vector<8x128xf32>
    %51 = vector.extract_strided_slice %41 {offsets = [0, 384], sizes = [8, 128], strides = [1, 1]} : vector<8x512xf32> to vector<8x128xf32>
    %52 = math.tanh %51 : vector<8x128xf32>
    %53 = arith.mulf %49, %29 : vector<8x128xf32>
    %54 = arith.mulf %48, %52 : vector<8x128xf32>
    %55 = arith.addf %53, %54 : vector<8x128xf32>
    %56 = math.tanh %55 : vector<8x128xf32>
    %57 = arith.mulf %50, %56 : vector<8x128xf32>
    %58 = arith.truncf %57 : vector<8x128xf32> to vector<8x128xbf16>
    %59 = arith.index_cast %36 : i32 to index
    %c0_21 = arith.constant 0 : index
    %60 = vector.load %arg7[%59, %c0_21] : memref<96x128xbf16, #tpu.memory_space<vmem>>, vector<8x128xbf16>
    tpu.vector_store %arg7[%59, %c0_21], %58 {strides = array<i32>} : memref<96x128xbf16, #tpu.memory_space<vmem>>, vector<8x128xbf16>,
    %c2_i32 = arith.constant 2 : i32
    %c8_i32_22 = arith.constant 8 : i32
    %61 = arith.muli %c2_i32, %c8_i32_22 : i32
    %62 = tpu.assume_multiple %61, 8 : i32
    %63 = arith.index_cast %62 : i32 to index
    %c0_23 = arith.constant 0 : index
    %64 = vector.load %arg8[%63, %c0_23] : memref<96x512xf32, #tpu.memory_space<vmem>>, vector<8x512xf32>
    %c0_24 = arith.constant 0 : index
    %c0_25 = arith.constant 0 : index
    %65 = vector.load %arg2[%c0_24, %c0_25] : memref<128x512xbf16, #tpu.memory_space<vmem>>, vector<128x512xbf16>
    %cst_26 = arith.constant dense<0.000000e+00> : vector<8x512xf32>
    %66 = tpu.matmul %58, %65, %cst_26 {dimension_numbers = #tpu.dot_dimension_numbers<[1], [0], [0], [1], [0, 0, 1, 1], [], []>} : vector<8x128xbf16>, vector<128x512xbf16>, vector<8x512xf32> -> vector<8x512xf32>
    %67 = arith.addf %64, %66 : vector<8x512xf32>
    %68 = vector.extract_strided_slice %67 {offsets = [0, 0], sizes = [8, 384], strides = [1, 1]} : vector<8x512xf32> to vector<8x384xf32>
    %69 = arith.negf %68 : vector<8x384xf32>
    %70 = math.exp %69 : vector<8x384xf32>
    %cst_27 = arith.constant 1.000000e+00 : f32
    %71 = vector.broadcast %cst_27 : f32 to vector<8x384xf32>
    %72 = arith.addf %71, %70 : vector<8x384xf32>
    %73 = arith.divf %71, %72 : vector<8x384xf32>
    %74 = vector.extract_strided_slice %73 {offsets = [0, 0], sizes = [8, 128], strides = [1, 1]} : vector<8x384xf32> to vector<8x128xf32>
    %75 = vector.extract_strided_slice %73 {offsets = [0, 128], sizes = [8, 128], strides = [1, 1]} : vector<8x384xf32> to vector<8x128xf32>
    %76 = vector.extract_strided_slice %73 {offsets = [0, 256], sizes = [8, 128], strides = [1, 1]} : vector<8x384xf32> to vector<8x128xf32>
    %77 = vector.extract_strided_slice %67 {offsets = [0, 384], sizes = [8, 128], strides = [1, 1]} : vector<8x512xf32> to vector<8x128xf32>
    %78 = math.tanh %77 : vector<8x128xf32>
    %79 = arith.mulf %75, %55 : vector<8x128xf32>
    %80 = arith.mulf %74, %78 : vector<8x128xf32>
    %81 = arith.addf %79, %80 : vector<8x128xf32>
    %82 = math.tanh %81 : vector<8x128xf32>
    %83 = arith.mulf %76, %82 : vector<8x128xf32>
    %84 = arith.truncf %83 : vector<8x128xf32> to vector<8x128xbf16>
    %85 = arith.index_cast %62 : i32 to index
    %c0_28 = arith.constant 0 : index
    %86 = vector.load %arg7[%85, %c0_28] : memref<96x128xbf16, #tpu.memory_space<vmem>>, vector<8x128xbf16>
    tpu.vector_store %arg7[%85, %c0_28], %84 {strides = array<i32>} : memref<96x128xbf16, #tpu.memory_space<vmem>>, vector<8x128xbf16>,
    %c3_i32 = arith.constant 3 : i32
    %c8_i32_29 = arith.constant 8 : i32
    %87 = arith.muli %c3_i32, %c8_i32_29 : i32
    %88 = tpu.assume_multiple %87, 8 : i32
    %89 = arith.index_cast %88 : i32 to index
    %c0_30 = arith.constant 0 : index
    %90 = vector.load %arg8[%89, %c0_30] : memref<96x512xf32, #tpu.memory_space<vmem>>, vector<8x512xf32>
    %c0_31 = arith.constant 0 : index
    %c0_32 = arith.constant 0 : index
    %91 = vector.load %arg2[%c0_31, %c0_32] : memref<128x512xbf16, #tpu.memory_space<vmem>>, vector<128x512xbf16>
    %cst_33 = arith.constant dense<0.000000e+00> : vector<8x512xf32>
    %92 = tpu.matmul %84, %91, %cst_33 {dimension_numbers = #tpu.dot_dimension_numbers<[1], [0], [0], [1], [0, 0, 1, 1], [], []>} : vector<8x128xbf16>, vector<128x512xbf16>, vector<8x512xf32> -> vector<8x512xf32>
    %93 = arith.addf %90, %92 : vector<8x512xf32>
    %94 = vector.extract_strided_slice %93 {offsets = [0, 0], sizes = [8, 384], strides = [1, 1]} : vector<8x512xf32> to vector<8x384xf32>
    %95 = arith.negf %94 : vector<8x384xf32>
    %96 = math.exp %95 : vector<8x384xf32>
    %cst_34 = arith.constant 1.000000e+00 : f32
    %97 = vector.broadcast %cst_34 : f32 to vector<8x384xf32>
    %98 = arith.addf %97, %96 : vector<8x384xf32>
    %99 = arith.divf %97, %98 : vector<8x384xf32>
    %100 = vector.extract_strided_slice %99 {offsets = [0, 0], sizes = [8, 128], strides = [1, 1]} : vector<8x384xf32> to vector<8x128xf32>
    %101 = vector.extract_strided_slice %99 {offsets = [0, 128], sizes = [8, 128], strides = [1, 1]} : vector<8x384xf32> to vector<8x128xf32>
    %102 = vector.extract_strided_slice %99 {offsets = [0, 256], sizes = [8, 128], strides = [1, 1]} : vector<8x384xf32> to vector<8x128xf32>
    %103 = vector.extract_strided_slice %93 {offsets = [0, 384], sizes = [8, 128], strides = [1, 1]} : vector<8x512xf32> to vector<8x128xf32>
    %104 = math.tanh %103 : vector<8x128xf32>
    %105 = arith.mulf %101, %81 : vector<8x128xf32>
    %106 = arith.mulf %100, %104 : vector<8x128xf32>
    %107 = arith.addf %105, %106 : vector<8x128xf32>
    %108 = math.tanh %107 : vector<8x128xf32>
    %109 = arith.mulf %102, %108 : vector<8x128xf32>
    %110 = arith.truncf %109 : vector<8x128xf32> to vector<8x128xbf16>
    %111 = arith.index_cast %88 : i32 to index
    %c0_35 = arith.constant 0 : index
    %112 = vector.load %arg7[%111, %c0_35] : memref<96x128xbf16, #tpu.memory_space<vmem>>, vector<8x128xbf16>
    tpu.vector_store %arg7[%111, %c0_35], %110 {strides = array<i32>} : memref<96x128xbf16, #tpu.memory_space<vmem>>, vector<8x128xbf16>,
    %c4_i32 = arith.constant 4 : i32
    %c8_i32_36 = arith.constant 8 : i32
    %113 = arith.muli %c4_i32, %c8_i32_36 : i32
    %114 = tpu.assume_multiple %113, 8 : i32
    %115 = arith.index_cast %114 : i32 to index
    %c0_37 = arith.constant 0 : index
    %116 = vector.load %arg8[%115, %c0_37] : memref<96x512xf32, #tpu.memory_space<vmem>>, vector<8x512xf32>
    %c0_38 = arith.constant 0 : index
    %c0_39 = arith.constant 0 : index
    %117 = vector.load %arg2[%c0_38, %c0_39] : memref<128x512xbf16, #tpu.memory_space<vmem>>, vector<128x512xbf16>
    %cst_40 = arith.constant dense<0.000000e+00> : vector<8x512xf32>
    %118 = tpu.matmul %110, %117, %cst_40 {dimension_numbers = #tpu.dot_dimension_numbers<[1], [0], [0], [1], [0, 0, 1, 1], [], []>} : vector<8x128xbf16>, vector<128x512xbf16>, vector<8x512xf32> -> vector<8x512xf32>
    %119 = arith.addf %116, %118 : vector<8x512xf32>
    %120 = vector.extract_strided_slice %119 {offsets = [0, 0], sizes = [8, 384], strides = [1, 1]} : vector<8x512xf32> to vector<8x384xf32>
    %121 = arith.negf %120 : vector<8x384xf32>
    %122 = math.exp %121 : vector<8x384xf32>
    %cst_41 = arith.constant 1.000000e+00 : f32
    %123 = vector.broadcast %cst_41 : f32 to vector<8x384xf32>
    %124 = arith.addf %123, %122 : vector<8x384xf32>
    %125 = arith.divf %123, %124 : vector<8x384xf32>
    %126 = vector.extract_strided_slice %125 {offsets = [0, 0], sizes = [8, 128], strides = [1, 1]} : vector<8x384xf32> to vector<8x128xf32>
    %127 = vector.extract_strided_slice %125 {offsets = [0, 128], sizes = [8, 128], strides = [1, 1]} : vector<8x384xf32> to vector<8x128xf32>
    %128 = vector.extract_strided_slice %125 {offsets = [0, 256], sizes = [8, 128], strides = [1, 1]} : vector<8x384xf32> to vector<8x128xf32>
    %129 = vector.extract_strided_slice %119 {offsets = [0, 384], sizes = [8, 128], strides = [1, 1]} : vector<8x512xf32> to vector<8x128xf32>
    %130 = math.tanh %129 : vector<8x128xf32>
    %131 = arith.mulf %127, %107 : vector<8x128xf32>
    %132 = arith.mulf %126, %130 : vector<8x128xf32>
    %133 = arith.addf %131, %132 : vector<8x128xf32>
    %134 = math.tanh %133 : vector<8x128xf32>
    %135 = arith.mulf %128, %134 : vector<8x128xf32>
    %136 = arith.truncf %135 : vector<8x128xf32> to vector<8x128xbf16>
    %137 = arith.index_cast %114 : i32 to index
    %c0_42 = arith.constant 0 : index
    %138 = vector.load %arg7[%137, %c0_42] : memref<96x128xbf16, #tpu.memory_space<vmem>>, vector<8x128xbf16>
    tpu.vector_store %arg7[%137, %c0_42], %136 {strides = array<i32>} : memref<96x128xbf16, #tpu.memory_space<vmem>>, vector<8x128xbf16>,
    %c5_i32 = arith.constant 5 : i32
    %c8_i32_43 = arith.constant 8 : i32
    %139 = arith.muli %c5_i32, %c8_i32_43 : i32
    %140 = tpu.assume_multiple %139, 8 : i32
    %141 = arith.index_cast %140 : i32 to index
    %c0_44 = arith.constant 0 : index
    %142 = vector.load %arg8[%141, %c0_44] : memref<96x512xf32, #tpu.memory_space<vmem>>, vector<8x512xf32>
    %c0_45 = arith.constant 0 : index
    %c0_46 = arith.constant 0 : index
    %143 = vector.load %arg2[%c0_45, %c0_46] : memref<128x512xbf16, #tpu.memory_space<vmem>>, vector<128x512xbf16>
    %cst_47 = arith.constant dense<0.000000e+00> : vector<8x512xf32>
    %144 = tpu.matmul %136, %143, %cst_47 {dimension_numbers = #tpu.dot_dimension_numbers<[1], [0], [0], [1], [0, 0, 1, 1], [], []>} : vector<8x128xbf16>, vector<128x512xbf16>, vector<8x512xf32> -> vector<8x512xf32>
    %145 = arith.addf %142, %144 : vector<8x512xf32>
    %146 = vector.extract_strided_slice %145 {offsets = [0, 0], sizes = [8, 384], strides = [1, 1]} : vector<8x512xf32> to vector<8x384xf32>
    %147 = arith.negf %146 : vector<8x384xf32>
    %148 = math.exp %147 : vector<8x384xf32>
    %cst_48 = arith.constant 1.000000e+00 : f32
    %149 = vector.broadcast %cst_48 : f32 to vector<8x384xf32>
    %150 = arith.addf %149, %148 : vector<8x384xf32>
    %151 = arith.divf %149, %150 : vector<8x384xf32>
    %152 = vector.extract_strided_slice %151 {offsets = [0, 0], sizes = [8, 128], strides = [1, 1]} : vector<8x384xf32> to vector<8x128xf32>
    %153 = vector.extract_strided_slice %151 {offsets = [0, 128], sizes = [8, 128], strides = [1, 1]} : vector<8x384xf32> to vector<8x128xf32>
    %154 = vector.extract_strided_slice %151 {offsets = [0, 256], sizes = [8, 128], strides = [1, 1]} : vector<8x384xf32> to vector<8x128xf32>
    %155 = vector.extract_strided_slice %145 {offsets = [0, 384], sizes = [8, 128], strides = [1, 1]} : vector<8x512xf32> to vector<8x128xf32>
    %156 = math.tanh %155 : vector<8x128xf32>
    %157 = arith.mulf %153, %133 : vector<8x128xf32>
    %158 = arith.mulf %152, %156 : vector<8x128xf32>
    %159 = arith.addf %157, %158 : vector<8x128xf32>
    %160 = math.tanh %159 : vector<8x128xf32>
    %161 = arith.mulf %154, %160 : vector<8x128xf32>
    %162 = arith.truncf %161 : vector<8x128xf32> to vector<8x128xbf16>
    %163 = arith.index_cast %140 : i32 to index
    %c0_49 = arith.constant 0 : index
    %164 = vector.load %arg7[%163, %c0_49] : memref<96x128xbf16, #tpu.memory_space<vmem>>, vector<8x128xbf16>
    tpu.vector_store %arg7[%163, %c0_49], %162 {strides = array<i32>} : memref<96x128xbf16, #tpu.memory_space<vmem>>, vector<8x128xbf16>,
    %c6_i32 = arith.constant 6 : i32
    %c8_i32_50 = arith.constant 8 : i32
    %165 = arith.muli %c6_i32, %c8_i32_50 : i32
    %166 = tpu.assume_multiple %165, 8 : i32
    %167 = arith.index_cast %166 : i32 to index
    %c0_51 = arith.constant 0 : index
    %168 = vector.load %arg8[%167, %c0_51] : memref<96x512xf32, #tpu.memory_space<vmem>>, vector<8x512xf32>
    %c0_52 = arith.constant 0 : index
    %c0_53 = arith.constant 0 : index
    %169 = vector.load %arg2[%c0_52, %c0_53] : memref<128x512xbf16, #tpu.memory_space<vmem>>, vector<128x512xbf16>
    %cst_54 = arith.constant dense<0.000000e+00> : vector<8x512xf32>
    %170 = tpu.matmul %162, %169, %cst_54 {dimension_numbers = #tpu.dot_dimension_numbers<[1], [0], [0], [1], [0, 0, 1, 1], [], []>} : vector<8x128xbf16>, vector<128x512xbf16>, vector<8x512xf32> -> vector<8x512xf32>
    %171 = arith.addf %168, %170 : vector<8x512xf32>
    %172 = vector.extract_strided_slice %171 {offsets = [0, 0], sizes = [8, 384], strides = [1, 1]} : vector<8x512xf32> to vector<8x384xf32>
    %173 = arith.negf %172 : vector<8x384xf32>
    %174 = math.exp %173 : vector<8x384xf32>
    %cst_55 = arith.constant 1.000000e+00 : f32
    %175 = vector.broadcast %cst_55 : f32 to vector<8x384xf32>
    %176 = arith.addf %175, %174 : vector<8x384xf32>
    %177 = arith.divf %175, %176 : vector<8x384xf32>
    %178 = vector.extract_strided_slice %177 {offsets = [0, 0], sizes = [8, 128], strides = [1, 1]} : vector<8x384xf32> to vector<8x128xf32>
    %179 = vector.extract_strided_slice %177 {offsets = [0, 128], sizes = [8, 128], strides = [1, 1]} : vector<8x384xf32> to vector<8x128xf32>
    %180 = vector.extract_strided_slice %177 {offsets = [0, 256], sizes = [8, 128], strides = [1, 1]} : vector<8x384xf32> to vector<8x128xf32>
    %181 = vector.extract_strided_slice %171 {offsets = [0, 384], sizes = [8, 128], strides = [1, 1]} : vector<8x512xf32> to vector<8x128xf32>
    %182 = math.tanh %181 : vector<8x128xf32>
    %183 = arith.mulf %179, %159 : vector<8x128xf32>
    %184 = arith.mulf %178, %182 : vector<8x128xf32>
    %185 = arith.addf %183, %184 : vector<8x128xf32>
    %186 = math.tanh %185 : vector<8x128xf32>
    %187 = arith.mulf %180, %186 : vector<8x128xf32>
    %188 = arith.truncf %187 : vector<8x128xf32> to vector<8x128xbf16>
    %189 = arith.index_cast %166 : i32 to index
    %c0_56 = arith.constant 0 : index
    %190 = vector.load %arg7[%189, %c0_56] : memref<96x128xbf16, #tpu.memory_space<vmem>>, vector<8x128xbf16>
    tpu.vector_store %arg7[%189, %c0_56], %188 {strides = array<i32>} : memref<96x128xbf16, #tpu.memory_space<vmem>>, vector<8x128xbf16>,
    %c7_i32 = arith.constant 7 : i32
    %c8_i32_57 = arith.constant 8 : i32
    %191 = arith.muli %c7_i32, %c8_i32_57 : i32
    %192 = tpu.assume_multiple %191, 8 : i32
    %193 = arith.index_cast %192 : i32 to index
    %c0_58 = arith.constant 0 : index
    %194 = vector.load %arg8[%193, %c0_58] : memref<96x512xf32, #tpu.memory_space<vmem>>, vector<8x512xf32>
    %c0_59 = arith.constant 0 : index
    %c0_60 = arith.constant 0 : index
    %195 = vector.load %arg2[%c0_59, %c0_60] : memref<128x512xbf16, #tpu.memory_space<vmem>>, vector<128x512xbf16>
    %cst_61 = arith.constant dense<0.000000e+00> : vector<8x512xf32>
    %196 = tpu.matmul %188, %195, %cst_61 {dimension_numbers = #tpu.dot_dimension_numbers<[1], [0], [0], [1], [0, 0, 1, 1], [], []>} : vector<8x128xbf16>, vector<128x512xbf16>, vector<8x512xf32> -> vector<8x512xf32>
    %197 = arith.addf %194, %196 : vector<8x512xf32>
    %198 = vector.extract_strided_slice %197 {offsets = [0, 0], sizes = [8, 384], strides = [1, 1]} : vector<8x512xf32> to vector<8x384xf32>
    %199 = arith.negf %198 : vector<8x384xf32>
    %200 = math.exp %199 : vector<8x384xf32>
    %cst_62 = arith.constant 1.000000e+00 : f32
    %201 = vector.broadcast %cst_62 : f32 to vector<8x384xf32>
    %202 = arith.addf %201, %200 : vector<8x384xf32>
    %203 = arith.divf %201, %202 : vector<8x384xf32>
    %204 = vector.extract_strided_slice %203 {offsets = [0, 0], sizes = [8, 128], strides = [1, 1]} : vector<8x384xf32> to vector<8x128xf32>
    %205 = vector.extract_strided_slice %203 {offsets = [0, 128], sizes = [8, 128], strides = [1, 1]} : vector<8x384xf32> to vector<8x128xf32>
    %206 = vector.extract_strided_slice %203 {offsets = [0, 256], sizes = [8, 128], strides = [1, 1]} : vector<8x384xf32> to vector<8x128xf32>
    %207 = vector.extract_strided_slice %197 {offsets = [0, 384], sizes = [8, 128], strides = [1, 1]} : vector<8x512xf32> to vector<8x128xf32>
    %208 = math.tanh %207 : vector<8x128xf32>
    %209 = arith.mulf %205, %185 : vector<8x128xf32>
    %210 = arith.mulf %204, %208 : vector<8x128xf32>
    %211 = arith.addf %209, %210 : vector<8x128xf32>
    %212 = math.tanh %211 : vector<8x128xf32>
    %213 = arith.mulf %206, %212 : vector<8x128xf32>
    %214 = arith.truncf %213 : vector<8x128xf32> to vector<8x128xbf16>
    %215 = arith.index_cast %192 : i32 to index
    %c0_63 = arith.constant 0 : index
    %216 = vector.load %arg7[%215, %c0_63] : memref<96x128xbf16, #tpu.memory_space<vmem>>, vector<8x128xbf16>
    tpu.vector_store %arg7[%215, %c0_63], %214 {strides = array<i32>} : memref<96x128xbf16, #tpu.memory_space<vmem>>, vector<8x128xbf16>,
    %c8_i32_64 = arith.constant 8 : i32
    %c8_i32_65 = arith.constant 8 : i32
    %217 = arith.muli %c8_i32_64, %c8_i32_65 : i32
    %218 = tpu.assume_multiple %217, 8 : i32
    %219 = arith.index_cast %218 : i32 to index
    %c0_66 = arith.constant 0 : index
    %220 = vector.load %arg8[%219, %c0_66] : memref<96x512xf32, #tpu.memory_space<vmem>>, vector<8x512xf32>
    %c0_67 = arith.constant 0 : index
    %c0_68 = arith.constant 0 : index
    %221 = vector.load %arg2[%c0_67, %c0_68] : memref<128x512xbf16, #tpu.memory_space<vmem>>, vector<128x512xbf16>
    %cst_69 = arith.constant dense<0.000000e+00> : vector<8x512xf32>
    %222 = tpu.matmul %214, %221, %cst_69 {dimension_numbers = #tpu.dot_dimension_numbers<[1], [0], [0], [1], [0, 0, 1, 1], [], []>} : vector<8x128xbf16>, vector<128x512xbf16>, vector<8x512xf32> -> vector<8x512xf32>
    %223 = arith.addf %220, %222 : vector<8x512xf32>
    %224 = vector.extract_strided_slice %223 {offsets = [0, 0], sizes = [8, 384], strides = [1, 1]} : vector<8x512xf32> to vector<8x384xf32>
    %225 = arith.negf %224 : vector<8x384xf32>
    %226 = math.exp %225 : vector<8x384xf32>
    %cst_70 = arith.constant 1.000000e+00 : f32
    %227 = vector.broadcast %cst_70 : f32 to vector<8x384xf32>
    %228 = arith.addf %227, %226 : vector<8x384xf32>
    %229 = arith.divf %227, %228 : vector<8x384xf32>
    %230 = vector.extract_strided_slice %229 {offsets = [0, 0], sizes = [8, 128], strides = [1, 1]} : vector<8x384xf32> to vector<8x128xf32>
    %231 = vector.extract_strided_slice %229 {offsets = [0, 128], sizes = [8, 128], strides = [1, 1]} : vector<8x384xf32> to vector<8x128xf32>
    %232 = vector.extract_strided_slice %229 {offsets = [0, 256], sizes = [8, 128], strides = [1, 1]} : vector<8x384xf32> to vector<8x128xf32>
    %233 = vector.extract_strided_slice %223 {offsets = [0, 384], sizes = [8, 128], strides = [1, 1]} : vector<8x512xf32> to vector<8x128xf32>
    %234 = math.tanh %233 : vector<8x128xf32>
    %235 = arith.mulf %231, %211 : vector<8x128xf32>
    %236 = arith.mulf %230, %234 : vector<8x128xf32>
    %237 = arith.addf %235, %236 : vector<8x128xf32>
    %238 = math.tanh %237 : vector<8x128xf32>
    %239 = arith.mulf %232, %238 : vector<8x128xf32>
    %240 = arith.truncf %239 : vector<8x128xf32> to vector<8x128xbf16>
    %241 = arith.index_cast %218 : i32 to index
    %c0_71 = arith.constant 0 : index
    %242 = vector.load %arg7[%241, %c0_71] : memref<96x128xbf16, #tpu.memory_space<vmem>>, vector<8x128xbf16>
    tpu.vector_store %arg7[%241, %c0_71], %240 {strides = array<i32>} : memref<96x128xbf16, #tpu.memory_space<vmem>>, vector<8x128xbf16>,
    %c9_i32 = arith.constant 9 : i32
    %c8_i32_72 = arith.constant 8 : i32
    %243 = arith.muli %c9_i32, %c8_i32_72 : i32
    %244 = tpu.assume_multiple %243, 8 : i32
    %245 = arith.index_cast %244 : i32 to index
    %c0_73 = arith.constant 0 : index
    %246 = vector.load %arg8[%245, %c0_73] : memref<96x512xf32, #tpu.memory_space<vmem>>, vector<8x512xf32>
    %c0_74 = arith.constant 0 : index
    %c0_75 = arith.constant 0 : index
    %247 = vector.load %arg2[%c0_74, %c0_75] : memref<128x512xbf16, #tpu.memory_space<vmem>>, vector<128x512xbf16>
    %cst_76 = arith.constant dense<0.000000e+00> : vector<8x512xf32>
    %248 = tpu.matmul %240, %247, %cst_76 {dimension_numbers = #tpu.dot_dimension_numbers<[1], [0], [0], [1], [0, 0, 1, 1], [], []>} : vector<8x128xbf16>, vector<128x512xbf16>, vector<8x512xf32> -> vector<8x512xf32>
    %249 = arith.addf %246, %248 : vector<8x512xf32>
    %250 = vector.extract_strided_slice %249 {offsets = [0, 0], sizes = [8, 384], strides = [1, 1]} : vector<8x512xf32> to vector<8x384xf32>
    %251 = arith.negf %250 : vector<8x384xf32>
    %252 = math.exp %251 : vector<8x384xf32>
    %cst_77 = arith.constant 1.000000e+00 : f32
    %253 = vector.broadcast %cst_77 : f32 to vector<8x384xf32>
    %254 = arith.addf %253, %252 : vector<8x384xf32>
    %255 = arith.divf %253, %254 : vector<8x384xf32>
    %256 = vector.extract_strided_slice %255 {offsets = [0, 0], sizes = [8, 128], strides = [1, 1]} : vector<8x384xf32> to vector<8x128xf32>
    %257 = vector.extract_strided_slice %255 {offsets = [0, 128], sizes = [8, 128], strides = [1, 1]} : vector<8x384xf32> to vector<8x128xf32>
    %258 = vector.extract_strided_slice %255 {offsets = [0, 256], sizes = [8, 128], strides = [1, 1]} : vector<8x384xf32> to vector<8x128xf32>
    %259 = vector.extract_strided_slice %249 {offsets = [0, 384], sizes = [8, 128], strides = [1, 1]} : vector<8x512xf32> to vector<8x128xf32>
    %260 = math.tanh %259 : vector<8x128xf32>
    %261 = arith.mulf %257, %237 : vector<8x128xf32>
    %262 = arith.mulf %256, %260 : vector<8x128xf32>
    %263 = arith.addf %261, %262 : vector<8x128xf32>
    %264 = math.tanh %263 : vector<8x128xf32>
    %265 = arith.mulf %258, %264 : vector<8x128xf32>
    %266 = arith.truncf %265 : vector<8x128xf32> to vector<8x128xbf16>
    %267 = arith.index_cast %244 : i32 to index
    %c0_78 = arith.constant 0 : index
    %268 = vector.load %arg7[%267, %c0_78] : memref<96x128xbf16, #tpu.memory_space<vmem>>, vector<8x128xbf16>
    tpu.vector_store %arg7[%267, %c0_78], %266 {strides = array<i32>} : memref<96x128xbf16, #tpu.memory_space<vmem>>, vector<8x128xbf16>,
    %c10_i32 = arith.constant 10 : i32
    %c8_i32_79 = arith.constant 8 : i32
    %269 = arith.muli %c10_i32, %c8_i32_79 : i32
    %270 = tpu.assume_multiple %269, 8 : i32
    %271 = arith.index_cast %270 : i32 to index
    %c0_80 = arith.constant 0 : index
    %272 = vector.load %arg8[%271, %c0_80] : memref<96x512xf32, #tpu.memory_space<vmem>>, vector<8x512xf32>
    %c0_81 = arith.constant 0 : index
    %c0_82 = arith.constant 0 : index
    %273 = vector.load %arg2[%c0_81, %c0_82] : memref<128x512xbf16, #tpu.memory_space<vmem>>, vector<128x512xbf16>
    %cst_83 = arith.constant dense<0.000000e+00> : vector<8x512xf32>
    %274 = tpu.matmul %266, %273, %cst_83 {dimension_numbers = #tpu.dot_dimension_numbers<[1], [0], [0], [1], [0, 0, 1, 1], [], []>} : vector<8x128xbf16>, vector<128x512xbf16>, vector<8x512xf32> -> vector<8x512xf32>
    %275 = arith.addf %272, %274 : vector<8x512xf32>
    %276 = vector.extract_strided_slice %275 {offsets = [0, 0], sizes = [8, 384], strides = [1, 1]} : vector<8x512xf32> to vector<8x384xf32>
    %277 = arith.negf %276 : vector<8x384xf32>
    %278 = math.exp %277 : vector<8x384xf32>
    %cst_84 = arith.constant 1.000000e+00 : f32
    %279 = vector.broadcast %cst_84 : f32 to vector<8x384xf32>
    %280 = arith.addf %279, %278 : vector<8x384xf32>
    %281 = arith.divf %279, %280 : vector<8x384xf32>
    %282 = vector.extract_strided_slice %281 {offsets = [0, 0], sizes = [8, 128], strides = [1, 1]} : vector<8x384xf32> to vector<8x128xf32>
    %283 = vector.extract_strided_slice %281 {offsets = [0, 128], sizes = [8, 128], strides = [1, 1]} : vector<8x384xf32> to vector<8x128xf32>
    %284 = vector.extract_strided_slice %281 {offsets = [0, 256], sizes = [8, 128], strides = [1, 1]} : vector<8x384xf32> to vector<8x128xf32>
    %285 = vector.extract_strided_slice %275 {offsets = [0, 384], sizes = [8, 128], strides = [1, 1]} : vector<8x512xf32> to vector<8x128xf32>
    %286 = math.tanh %285 : vector<8x128xf32>
    %287 = arith.mulf %283, %263 : vector<8x128xf32>
    %288 = arith.mulf %282, %286 : vector<8x128xf32>
    %289 = arith.addf %287, %288 : vector<8x128xf32>
    %290 = math.tanh %289 : vector<8x128xf32>
    %291 = arith.mulf %284, %290 : vector<8x128xf32>
    %292 = arith.truncf %291 : vector<8x128xf32> to vector<8x128xbf16>
    %293 = arith.index_cast %270 : i32 to index
    %c0_85 = arith.constant 0 : index
    %294 = vector.load %arg7[%293, %c0_85] : memref<96x128xbf16, #tpu.memory_space<vmem>>, vector<8x128xbf16>
    tpu.vector_store %arg7[%293, %c0_85], %292 {strides = array<i32>} : memref<96x128xbf16, #tpu.memory_space<vmem>>, vector<8x128xbf16>,
    %c11_i32 = arith.constant 11 : i32
    %c8_i32_86 = arith.constant 8 : i32
    %295 = arith.muli %c11_i32, %c8_i32_86 : i32
    %296 = tpu.assume_multiple %295, 8 : i32
    %297 = arith.index_cast %296 : i32 to index
    %c0_87 = arith.constant 0 : index
    %298 = vector.load %arg8[%297, %c0_87] : memref<96x512xf32, #tpu.memory_space<vmem>>, vector<8x512xf32>
    %c0_88 = arith.constant 0 : index
    %c0_89 = arith.constant 0 : index
    %299 = vector.load %arg2[%c0_88, %c0_89] : memref<128x512xbf16, #tpu.memory_space<vmem>>, vector<128x512xbf16>
    %cst_90 = arith.constant dense<0.000000e+00> : vector<8x512xf32>
    %300 = tpu.matmul %292, %299, %cst_90 {dimension_numbers = #tpu.dot_dimension_numbers<[1], [0], [0], [1], [0, 0, 1, 1], [], []>} : vector<8x128xbf16>, vector<128x512xbf16>, vector<8x512xf32> -> vector<8x512xf32>
    %301 = arith.addf %298, %300 : vector<8x512xf32>
    %302 = vector.extract_strided_slice %301 {offsets = [0, 0], sizes = [8, 384], strides = [1, 1]} : vector<8x512xf32> to vector<8x384xf32>
    %303 = arith.negf %302 : vector<8x384xf32>
    %304 = math.exp %303 : vector<8x384xf32>
    %cst_91 = arith.constant 1.000000e+00 : f32
    %305 = vector.broadcast %cst_91 : f32 to vector<8x384xf32>
    %306 = arith.addf %305, %304 : vector<8x384xf32>
    %307 = arith.divf %305, %306 : vector<8x384xf32>
    %308 = vector.extract_strided_slice %307 {offsets = [0, 0], sizes = [8, 128], strides = [1, 1]} : vector<8x384xf32> to vector<8x128xf32>
    %309 = vector.extract_strided_slice %307 {offsets = [0, 128], sizes = [8, 128], strides = [1, 1]} : vector<8x384xf32> to vector<8x128xf32>
    %310 = vector.extract_strided_slice %307 {offsets = [0, 256], sizes = [8, 128], strides = [1, 1]} : vector<8x384xf32> to vector<8x128xf32>
    %311 = vector.extract_strided_slice %301 {offsets = [0, 384], sizes = [8, 128], strides = [1, 1]} : vector<8x512xf32> to vector<8x128xf32>
    %312 = math.tanh %311 : vector<8x128xf32>
    %313 = arith.mulf %309, %289 : vector<8x128xf32>
    %314 = arith.mulf %308, %312 : vector<8x128xf32>
    %315 = arith.addf %313, %314 : vector<8x128xf32>
    %316 = math.tanh %315 : vector<8x128xf32>
    %317 = arith.mulf %310, %316 : vector<8x128xf32>
    %318 = arith.truncf %317 : vector<8x128xf32> to vector<8x128xbf16>
    %319 = arith.index_cast %296 : i32 to index
    %c0_92 = arith.constant 0 : index
    %320 = vector.load %arg7[%319, %c0_92] : memref<96x128xbf16, #tpu.memory_space<vmem>>, vector<8x128xbf16>
    tpu.vector_store %arg7[%319, %c0_92], %318 {strides = array<i32>} : memref<96x128xbf16, #tpu.memory_space<vmem>>, vector<8x128xbf16>,
    %c12_i32 = arith.constant 12 : i32
    %c0_93 = arith.constant 0 : index
    %c0_94 = arith.constant 0 : index
    %321 = vector.load %arg7[%c0_93, %c0_94] : memref<96x128xbf16, #tpu.memory_space<vmem>>, vector<96x128xbf16>
    %c0_95 = arith.constant 0 : index
    %c0_96 = arith.constant 0 : index
    %322 = vector.load %arg4[%c0_95, %c0_96] : memref<128x512xbf16, #tpu.memory_space<vmem>>, vector<128x512xbf16>
    %cst_97 = arith.constant dense<0.000000e+00> : vector<96x512xf32>
    %323 = tpu.matmul %321, %322, %cst_97 {dimension_numbers = #tpu.dot_dimension_numbers<[1], [0], [0], [1], [0, 0, 1, 1], [], []>} : vector<96x128xbf16>, vector<128x512xbf16>, vector<96x512xf32> -> vector<96x512xf32>
    %c0_98 = arith.constant 0 : index
    %c0_99 = arith.constant 0 : index
    %324 = vector.load %arg6[%c0_98, %c0_99] : memref<1x512xf32, #tpu.memory_space<vmem>>, vector<1x512xf32>
    %325 = vector.broadcast %324 : vector<1x512xf32> to vector<96x512xf32>
    %326 = arith.addf %323, %325 : vector<96x512xf32>
    %c0_100 = arith.constant 0 : index
    %c0_101 = arith.constant 0 : index
    %327 = vector.load %arg8[%c0_100, %c0_101] : memref<96x512xf32, #tpu.memory_space<vmem>>, vector<96x512xf32>
    tpu.vector_store %arg8[%c0_100, %c0_101], %326 {strides = array<i32>} : memref<96x512xf32, #tpu.memory_space<vmem>>, vector<96x512xf32>,
    %cst_102 = arith.constant 0.000000e+00 : bf16
    %328 = vector.broadcast %cst_102 : bf16 to vector<8x128xbf16>
    %cst_103 = arith.constant 0.000000e+00 : f32
    %329 = vector.broadcast %cst_103 : f32 to vector<8x128xf32>
    %c0_i32_104 = arith.constant 0 : i32
    %c8_i32_105 = arith.constant 8 : i32
    %330 = arith.muli %c0_i32_104, %c8_i32_105 : i32
    %331 = tpu.assume_multiple %330, 8 : i32
    %332 = arith.index_cast %331 : i32 to index
    %c0_106 = arith.constant 0 : index
    %333 = vector.load %arg8[%332, %c0_106] : memref<96x512xf32, #tpu.memory_space<vmem>>, vector<8x512xf32>
    %c0_107 = arith.constant 0 : index
    %c0_108 = arith.constant 0 : index
    %334 = vector.load %arg5[%c0_107, %c0_108] : memref<128x512xbf16, #tpu.memory_space<vmem>>, vector<128x512xbf16>
    %cst_109 = arith.constant dense<0.000000e+00> : vector<8x512xf32>
    %335 = tpu.matmul %328, %334, %cst_109 {dimension_numbers = #tpu.dot_dimension_numbers<[1], [0], [0], [1], [0, 0, 1, 1], [], []>} : vector<8x128xbf16>, vector<128x512xbf16>, vector<8x512xf32> -> vector<8x512xf32>
    %336 = arith.addf %333, %335 : vector<8x512xf32>
    %337 = vector.extract_strided_slice %336 {offsets = [0, 0], sizes = [8, 384], strides = [1, 1]} : vector<8x512xf32> to vector<8x384xf32>
    %338 = arith.negf %337 : vector<8x384xf32>
    %339 = math.exp %338 : vector<8x384xf32>
    %cst_110 = arith.constant 1.000000e+00 : f32
    %340 = vector.broadcast %cst_110 : f32 to vector<8x384xf32>
    %341 = arith.addf %340, %339 : vector<8x384xf32>
    %342 = arith.divf %340, %341 : vector<8x384xf32>
    %343 = vector.extract_strided_slice %342 {offsets = [0, 0], sizes = [8, 128], strides = [1, 1]} : vector<8x384xf32> to vector<8x128xf32>
    %344 = vector.extract_strided_slice %342 {offsets = [0, 128], sizes = [8, 128], strides = [1, 1]} : vector<8x384xf32> to vector<8x128xf32>
    %345 = vector.extract_strided_slice %342 {offsets = [0, 256], sizes = [8, 128], strides = [1, 1]} : vector<8x384xf32> to vector<8x128xf32>
    %346 = vector.extract_strided_slice %336 {offsets = [0, 384], sizes = [8, 128], strides = [1, 1]} : vector<8x512xf32> to vector<8x128xf32>
    %347 = math.tanh %346 : vector<8x128xf32>
    %348 = arith.mulf %344, %329 : vector<8x128xf32>
    %349 = arith.mulf %343, %347 : vector<8x128xf32>
    %350 = arith.addf %348, %349 : vector<8x128xf32>
    %351 = math.tanh %350 : vector<8x128xf32>
    %352 = arith.mulf %345, %351 : vector<8x128xf32>
    %353 = arith.truncf %352 : vector<8x128xf32> to vector<8x128xbf16>
    %354 = arith.index_cast %331 : i32 to index
    %c0_111 = arith.constant 0 : index
    %355 = vector.load %arg7[%354, %c0_111] : memref<96x128xbf16, #tpu.memory_space<vmem>>, vector<8x128xbf16>
    tpu.vector_store %arg7[%354, %c0_111], %353 {strides = array<i32>} : memref<96x128xbf16, #tpu.memory_space<vmem>>, vector<8x128xbf16>,
    %c1_i32_112 = arith.constant 1 : i32
    %c8_i32_113 = arith.constant 8 : i32
    %356 = arith.muli %c1_i32_112, %c8_i32_113 : i32
    %357 = tpu.assume_multiple %356, 8 : i32
    %358 = arith.index_cast %357 : i32 to index
    %c0_114 = arith.constant 0 : index
    %359 = vector.load %arg8[%358, %c0_114] : memref<96x512xf32, #tpu.memory_space<vmem>>, vector<8x512xf32>
    %c0_115 = arith.constant 0 : index
    %c0_116 = arith.constant 0 : index
    %360 = vector.load %arg5[%c0_115, %c0_116] : memref<128x512xbf16, #tpu.memory_space<vmem>>, vector<128x512xbf16>
    %cst_117 = arith.constant dense<0.000000e+00> : vector<8x512xf32>
    %361 = tpu.matmul %353, %360, %cst_117 {dimension_numbers = #tpu.dot_dimension_numbers<[1], [0], [0], [1], [0, 0, 1, 1], [], []>} : vector<8x128xbf16>, vector<128x512xbf16>, vector<8x512xf32> -> vector<8x512xf32>
    %362 = arith.addf %359, %361 : vector<8x512xf32>
    %363 = vector.extract_strided_slice %362 {offsets = [0, 0], sizes = [8, 384], strides = [1, 1]} : vector<8x512xf32> to vector<8x384xf32>
    %364 = arith.negf %363 : vector<8x384xf32>
    %365 = math.exp %364 : vector<8x384xf32>
    %cst_118 = arith.constant 1.000000e+00 : f32
    %366 = vector.broadcast %cst_118 : f32 to vector<8x384xf32>
    %367 = arith.addf %366, %365 : vector<8x384xf32>
    %368 = arith.divf %366, %367 : vector<8x384xf32>
    %369 = vector.extract_strided_slice %368 {offsets = [0, 0], sizes = [8, 128], strides = [1, 1]} : vector<8x384xf32> to vector<8x128xf32>
    %370 = vector.extract_strided_slice %368 {offsets = [0, 128], sizes = [8, 128], strides = [1, 1]} : vector<8x384xf32> to vector<8x128xf32>
    %371 = vector.extract_strided_slice %368 {offsets = [0, 256], sizes = [8, 128], strides = [1, 1]} : vector<8x384xf32> to vector<8x128xf32>
    %372 = vector.extract_strided_slice %362 {offsets = [0, 384], sizes = [8, 128], strides = [1, 1]} : vector<8x512xf32> to vector<8x128xf32>
    %373 = math.tanh %372 : vector<8x128xf32>
    %374 = arith.mulf %370, %350 : vector<8x128xf32>
    %375 = arith.mulf %369, %373 : vector<8x128xf32>
    %376 = arith.addf %374, %375 : vector<8x128xf32>
    %377 = math.tanh %376 : vector<8x128xf32>
    %378 = arith.mulf %371, %377 : vector<8x128xf32>
    %379 = arith.truncf %378 : vector<8x128xf32> to vector<8x128xbf16>
    %380 = arith.index_cast %357 : i32 to index
    %c0_119 = arith.constant 0 : index
    %381 = vector.load %arg7[%380, %c0_119] : memref<96x128xbf16, #tpu.memory_space<vmem>>, vector<8x128xbf16>
    tpu.vector_store %arg7[%380, %c0_119], %379 {strides = array<i32>} : memref<96x128xbf16, #tpu.memory_space<vmem>>, vector<8x128xbf16>,
    %c2_i32_120 = arith.constant 2 : i32
    %c8_i32_121 = arith.constant 8 : i32
    %382 = arith.muli %c2_i32_120, %c8_i32_121 : i32
    %383 = tpu.assume_multiple %382, 8 : i32
    %384 = arith.index_cast %383 : i32 to index
    %c0_122 = arith.constant 0 : index
    %385 = vector.load %arg8[%384, %c0_122] : memref<96x512xf32, #tpu.memory_space<vmem>>, vector<8x512xf32>
    %c0_123 = arith.constant 0 : index
    %c0_124 = arith.constant 0 : index
    %386 = vector.load %arg5[%c0_123, %c0_124] : memref<128x512xbf16, #tpu.memory_space<vmem>>, vector<128x512xbf16>
    %cst_125 = arith.constant dense<0.000000e+00> : vector<8x512xf32>
    %387 = tpu.matmul %379, %386, %cst_125 {dimension_numbers = #tpu.dot_dimension_numbers<[1], [0], [0], [1], [0, 0, 1, 1], [], []>} : vector<8x128xbf16>, vector<128x512xbf16>, vector<8x512xf32> -> vector<8x512xf32>
    %388 = arith.addf %385, %387 : vector<8x512xf32>
    %389 = vector.extract_strided_slice %388 {offsets = [0, 0], sizes = [8, 384], strides = [1, 1]} : vector<8x512xf32> to vector<8x384xf32>
    %390 = arith.negf %389 : vector<8x384xf32>
    %391 = math.exp %390 : vector<8x384xf32>
    %cst_126 = arith.constant 1.000000e+00 : f32
    %392 = vector.broadcast %cst_126 : f32 to vector<8x384xf32>
    %393 = arith.addf %392, %391 : vector<8x384xf32>
    %394 = arith.divf %392, %393 : vector<8x384xf32>
    %395 = vector.extract_strided_slice %394 {offsets = [0, 0], sizes = [8, 128], strides = [1, 1]} : vector<8x384xf32> to vector<8x128xf32>
    %396 = vector.extract_strided_slice %394 {offsets = [0, 128], sizes = [8, 128], strides = [1, 1]} : vector<8x384xf32> to vector<8x128xf32>
    %397 = vector.extract_strided_slice %394 {offsets = [0, 256], sizes = [8, 128], strides = [1, 1]} : vector<8x384xf32> to vector<8x128xf32>
    %398 = vector.extract_strided_slice %388 {offsets = [0, 384], sizes = [8, 128], strides = [1, 1]} : vector<8x512xf32> to vector<8x128xf32>
    %399 = math.tanh %398 : vector<8x128xf32>
    %400 = arith.mulf %396, %376 : vector<8x128xf32>
    %401 = arith.mulf %395, %399 : vector<8x128xf32>
    %402 = arith.addf %400, %401 : vector<8x128xf32>
    %403 = math.tanh %402 : vector<8x128xf32>
    %404 = arith.mulf %397, %403 : vector<8x128xf32>
    %405 = arith.truncf %404 : vector<8x128xf32> to vector<8x128xbf16>
    %406 = arith.index_cast %383 : i32 to index
    %c0_127 = arith.constant 0 : index
    %407 = vector.load %arg7[%406, %c0_127] : memref<96x128xbf16, #tpu.memory_space<vmem>>, vector<8x128xbf16>
    tpu.vector_store %arg7[%406, %c0_127], %405 {strides = array<i32>} : memref<96x128xbf16, #tpu.memory_space<vmem>>, vector<8x128xbf16>,
    %c3_i32_128 = arith.constant 3 : i32
    %c8_i32_129 = arith.constant 8 : i32
    %408 = arith.muli %c3_i32_128, %c8_i32_129 : i32
    %409 = tpu.assume_multiple %408, 8 : i32
    %410 = arith.index_cast %409 : i32 to index
    %c0_130 = arith.constant 0 : index
    %411 = vector.load %arg8[%410, %c0_130] : memref<96x512xf32, #tpu.memory_space<vmem>>, vector<8x512xf32>
    %c0_131 = arith.constant 0 : index
    %c0_132 = arith.constant 0 : index
    %412 = vector.load %arg5[%c0_131, %c0_132] : memref<128x512xbf16, #tpu.memory_space<vmem>>, vector<128x512xbf16>
    %cst_133 = arith.constant dense<0.000000e+00> : vector<8x512xf32>
    %413 = tpu.matmul %405, %412, %cst_133 {dimension_numbers = #tpu.dot_dimension_numbers<[1], [0], [0], [1], [0, 0, 1, 1], [], []>} : vector<8x128xbf16>, vector<128x512xbf16>, vector<8x512xf32> -> vector<8x512xf32>
    %414 = arith.addf %411, %413 : vector<8x512xf32>
    %415 = vector.extract_strided_slice %414 {offsets = [0, 0], sizes = [8, 384], strides = [1, 1]} : vector<8x512xf32> to vector<8x384xf32>
    %416 = arith.negf %415 : vector<8x384xf32>
    %417 = math.exp %416 : vector<8x384xf32>
    %cst_134 = arith.constant 1.000000e+00 : f32
    %418 = vector.broadcast %cst_134 : f32 to vector<8x384xf32>
    %419 = arith.addf %418, %417 : vector<8x384xf32>
    %420 = arith.divf %418, %419 : vector<8x384xf32>
    %421 = vector.extract_strided_slice %420 {offsets = [0, 0], sizes = [8, 128], strides = [1, 1]} : vector<8x384xf32> to vector<8x128xf32>
    %422 = vector.extract_strided_slice %420 {offsets = [0, 128], sizes = [8, 128], strides = [1, 1]} : vector<8x384xf32> to vector<8x128xf32>
    %423 = vector.extract_strided_slice %420 {offsets = [0, 256], sizes = [8, 128], strides = [1, 1]} : vector<8x384xf32> to vector<8x128xf32>
    %424 = vector.extract_strided_slice %414 {offsets = [0, 384], sizes = [8, 128], strides = [1, 1]} : vector<8x512xf32> to vector<8x128xf32>
    %425 = math.tanh %424 : vector<8x128xf32>
    %426 = arith.mulf %422, %402 : vector<8x128xf32>
    %427 = arith.mulf %421, %425 : vector<8x128xf32>
    %428 = arith.addf %426, %427 : vector<8x128xf32>
    %429 = math.tanh %428 : vector<8x128xf32>
    %430 = arith.mulf %423, %429 : vector<8x128xf32>
    %431 = arith.truncf %430 : vector<8x128xf32> to vector<8x128xbf16>
    %432 = arith.index_cast %409 : i32 to index
    %c0_135 = arith.constant 0 : index
    %433 = vector.load %arg7[%432, %c0_135] : memref<96x128xbf16, #tpu.memory_space<vmem>>, vector<8x128xbf16>
    tpu.vector_store %arg7[%432, %c0_135], %431 {strides = array<i32>} : memref<96x128xbf16, #tpu.memory_space<vmem>>, vector<8x128xbf16>,
    %c4_i32_136 = arith.constant 4 : i32
    %c8_i32_137 = arith.constant 8 : i32
    %434 = arith.muli %c4_i32_136, %c8_i32_137 : i32
    %435 = tpu.assume_multiple %434, 8 : i32
    %436 = arith.index_cast %435 : i32 to index
    %c0_138 = arith.constant 0 : index
    %437 = vector.load %arg8[%436, %c0_138] : memref<96x512xf32, #tpu.memory_space<vmem>>, vector<8x512xf32>
    %c0_139 = arith.constant 0 : index
    %c0_140 = arith.constant 0 : index
    %438 = vector.load %arg5[%c0_139, %c0_140] : memref<128x512xbf16, #tpu.memory_space<vmem>>, vector<128x512xbf16>
    %cst_141 = arith.constant dense<0.000000e+00> : vector<8x512xf32>
    %439 = tpu.matmul %431, %438, %cst_141 {dimension_numbers = #tpu.dot_dimension_numbers<[1], [0], [0], [1], [0, 0, 1, 1], [], []>} : vector<8x128xbf16>, vector<128x512xbf16>, vector<8x512xf32> -> vector<8x512xf32>
    %440 = arith.addf %437, %439 : vector<8x512xf32>
    %441 = vector.extract_strided_slice %440 {offsets = [0, 0], sizes = [8, 384], strides = [1, 1]} : vector<8x512xf32> to vector<8x384xf32>
    %442 = arith.negf %441 : vector<8x384xf32>
    %443 = math.exp %442 : vector<8x384xf32>
    %cst_142 = arith.constant 1.000000e+00 : f32
    %444 = vector.broadcast %cst_142 : f32 to vector<8x384xf32>
    %445 = arith.addf %444, %443 : vector<8x384xf32>
    %446 = arith.divf %444, %445 : vector<8x384xf32>
    %447 = vector.extract_strided_slice %446 {offsets = [0, 0], sizes = [8, 128], strides = [1, 1]} : vector<8x384xf32> to vector<8x128xf32>
    %448 = vector.extract_strided_slice %446 {offsets = [0, 128], sizes = [8, 128], strides = [1, 1]} : vector<8x384xf32> to vector<8x128xf32>
    %449 = vector.extract_strided_slice %446 {offsets = [0, 256], sizes = [8, 128], strides = [1, 1]} : vector<8x384xf32> to vector<8x128xf32>
    %450 = vector.extract_strided_slice %440 {offsets = [0, 384], sizes = [8, 128], strides = [1, 1]} : vector<8x512xf32> to vector<8x128xf32>
    %451 = math.tanh %450 : vector<8x128xf32>
    %452 = arith.mulf %448, %428 : vector<8x128xf32>
    %453 = arith.mulf %447, %451 : vector<8x128xf32>
    %454 = arith.addf %452, %453 : vector<8x128xf32>
    %455 = math.tanh %454 : vector<8x128xf32>
    %456 = arith.mulf %449, %455 : vector<8x128xf32>
    %457 = arith.truncf %456 : vector<8x128xf32> to vector<8x128xbf16>
    %458 = arith.index_cast %435 : i32 to index
    %c0_143 = arith.constant 0 : index
    %459 = vector.load %arg7[%458, %c0_143] : memref<96x128xbf16, #tpu.memory_space<vmem>>, vector<8x128xbf16>
    tpu.vector_store %arg7[%458, %c0_143], %457 {strides = array<i32>} : memref<96x128xbf16, #tpu.memory_space<vmem>>, vector<8x128xbf16>,
    %c5_i32_144 = arith.constant 5 : i32
    %c8_i32_145 = arith.constant 8 : i32
    %460 = arith.muli %c5_i32_144, %c8_i32_145 : i32
    %461 = tpu.assume_multiple %460, 8 : i32
    %462 = arith.index_cast %461 : i32 to index
    %c0_146 = arith.constant 0 : index
    %463 = vector.load %arg8[%462, %c0_146] : memref<96x512xf32, #tpu.memory_space<vmem>>, vector<8x512xf32>
    %c0_147 = arith.constant 0 : index
    %c0_148 = arith.constant 0 : index
    %464 = vector.load %arg5[%c0_147, %c0_148] : memref<128x512xbf16, #tpu.memory_space<vmem>>, vector<128x512xbf16>
    %cst_149 = arith.constant dense<0.000000e+00> : vector<8x512xf32>
    %465 = tpu.matmul %457, %464, %cst_149 {dimension_numbers = #tpu.dot_dimension_numbers<[1], [0], [0], [1], [0, 0, 1, 1], [], []>} : vector<8x128xbf16>, vector<128x512xbf16>, vector<8x512xf32> -> vector<8x512xf32>
    %466 = arith.addf %463, %465 : vector<8x512xf32>
    %467 = vector.extract_strided_slice %466 {offsets = [0, 0], sizes = [8, 384], strides = [1, 1]} : vector<8x512xf32> to vector<8x384xf32>
    %468 = arith.negf %467 : vector<8x384xf32>
    %469 = math.exp %468 : vector<8x384xf32>
    %cst_150 = arith.constant 1.000000e+00 : f32
    %470 = vector.broadcast %cst_150 : f32 to vector<8x384xf32>
    %471 = arith.addf %470, %469 : vector<8x384xf32>
    %472 = arith.divf %470, %471 : vector<8x384xf32>
    %473 = vector.extract_strided_slice %472 {offsets = [0, 0], sizes = [8, 128], strides = [1, 1]} : vector<8x384xf32> to vector<8x128xf32>
    %474 = vector.extract_strided_slice %472 {offsets = [0, 128], sizes = [8, 128], strides = [1, 1]} : vector<8x384xf32> to vector<8x128xf32>
    %475 = vector.extract_strided_slice %472 {offsets = [0, 256], sizes = [8, 128], strides = [1, 1]} : vector<8x384xf32> to vector<8x128xf32>
    %476 = vector.extract_strided_slice %466 {offsets = [0, 384], sizes = [8, 128], strides = [1, 1]} : vector<8x512xf32> to vector<8x128xf32>
    %477 = math.tanh %476 : vector<8x128xf32>
    %478 = arith.mulf %474, %454 : vector<8x128xf32>
    %479 = arith.mulf %473, %477 : vector<8x128xf32>
    %480 = arith.addf %478, %479 : vector<8x128xf32>
    %481 = math.tanh %480 : vector<8x128xf32>
    %482 = arith.mulf %475, %481 : vector<8x128xf32>
    %483 = arith.truncf %482 : vector<8x128xf32> to vector<8x128xbf16>
    %484 = arith.index_cast %461 : i32 to index
    %c0_151 = arith.constant 0 : index
    %485 = vector.load %arg7[%484, %c0_151] : memref<96x128xbf16, #tpu.memory_space<vmem>>, vector<8x128xbf16>
    tpu.vector_store %arg7[%484, %c0_151], %483 {strides = array<i32>} : memref<96x128xbf16, #tpu.memory_space<vmem>>, vector<8x128xbf16>,
    %c6_i32_152 = arith.constant 6 : i32
    %c8_i32_153 = arith.constant 8 : i32
    %486 = arith.muli %c6_i32_152, %c8_i32_153 : i32
    %487 = tpu.assume_multiple %486, 8 : i32
    %488 = arith.index_cast %487 : i32 to index
    %c0_154 = arith.constant 0 : index
    %489 = vector.load %arg8[%488, %c0_154] : memref<96x512xf32, #tpu.memory_space<vmem>>, vector<8x512xf32>
    %c0_155 = arith.constant 0 : index
    %c0_156 = arith.constant 0 : index
    %490 = vector.load %arg5[%c0_155, %c0_156] : memref<128x512xbf16, #tpu.memory_space<vmem>>, vector<128x512xbf16>
    %cst_157 = arith.constant dense<0.000000e+00> : vector<8x512xf32>
    %491 = tpu.matmul %483, %490, %cst_157 {dimension_numbers = #tpu.dot_dimension_numbers<[1], [0], [0], [1], [0, 0, 1, 1], [], []>} : vector<8x128xbf16>, vector<128x512xbf16>, vector<8x512xf32> -> vector<8x512xf32>
    %492 = arith.addf %489, %491 : vector<8x512xf32>
    %493 = vector.extract_strided_slice %492 {offsets = [0, 0], sizes = [8, 384], strides = [1, 1]} : vector<8x512xf32> to vector<8x384xf32>
    %494 = arith.negf %493 : vector<8x384xf32>
    %495 = math.exp %494 : vector<8x384xf32>
    %cst_158 = arith.constant 1.000000e+00 : f32
    %496 = vector.broadcast %cst_158 : f32 to vector<8x384xf32>
    %497 = arith.addf %496, %495 : vector<8x384xf32>
    %498 = arith.divf %496, %497 : vector<8x384xf32>
    %499 = vector.extract_strided_slice %498 {offsets = [0, 0], sizes = [8, 128], strides = [1, 1]} : vector<8x384xf32> to vector<8x128xf32>
    %500 = vector.extract_strided_slice %498 {offsets = [0, 128], sizes = [8, 128], strides = [1, 1]} : vector<8x384xf32> to vector<8x128xf32>
    %501 = vector.extract_strided_slice %498 {offsets = [0, 256], sizes = [8, 128], strides = [1, 1]} : vector<8x384xf32> to vector<8x128xf32>
    %502 = vector.extract_strided_slice %492 {offsets = [0, 384], sizes = [8, 128], strides = [1, 1]} : vector<8x512xf32> to vector<8x128xf32>
    %503 = math.tanh %502 : vector<8x128xf32>
    %504 = arith.mulf %500, %480 : vector<8x128xf32>
    %505 = arith.mulf %499, %503 : vector<8x128xf32>
    %506 = arith.addf %504, %505 : vector<8x128xf32>
    %507 = math.tanh %506 : vector<8x128xf32>
    %508 = arith.mulf %501, %507 : vector<8x128xf32>
    %509 = arith.truncf %508 : vector<8x128xf32> to vector<8x128xbf16>
    %510 = arith.index_cast %487 : i32 to index
    %c0_159 = arith.constant 0 : index
    %511 = vector.load %arg7[%510, %c0_159] : memref<96x128xbf16, #tpu.memory_space<vmem>>, vector<8x128xbf16>
    tpu.vector_store %arg7[%510, %c0_159], %509 {strides = array<i32>} : memref<96x128xbf16, #tpu.memory_space<vmem>>, vector<8x128xbf16>,
    %c7_i32_160 = arith.constant 7 : i32
    %c8_i32_161 = arith.constant 8 : i32
    %512 = arith.muli %c7_i32_160, %c8_i32_161 : i32
    %513 = tpu.assume_multiple %512, 8 : i32
    %514 = arith.index_cast %513 : i32 to index
    %c0_162 = arith.constant 0 : index
    %515 = vector.load %arg8[%514, %c0_162] : memref<96x512xf32, #tpu.memory_space<vmem>>, vector<8x512xf32>
    %c0_163 = arith.constant 0 : index
    %c0_164 = arith.constant 0 : index
    %516 = vector.load %arg5[%c0_163, %c0_164] : memref<128x512xbf16, #tpu.memory_space<vmem>>, vector<128x512xbf16>
    %cst_165 = arith.constant dense<0.000000e+00> : vector<8x512xf32>
    %517 = tpu.matmul %509, %516, %cst_165 {dimension_numbers = #tpu.dot_dimension_numbers<[1], [0], [0], [1], [0, 0, 1, 1], [], []>} : vector<8x128xbf16>, vector<128x512xbf16>, vector<8x512xf32> -> vector<8x512xf32>
    %518 = arith.addf %515, %517 : vector<8x512xf32>
    %519 = vector.extract_strided_slice %518 {offsets = [0, 0], sizes = [8, 384], strides = [1, 1]} : vector<8x512xf32> to vector<8x384xf32>
    %520 = arith.negf %519 : vector<8x384xf32>
    %521 = math.exp %520 : vector<8x384xf32>
    %cst_166 = arith.constant 1.000000e+00 : f32
    %522 = vector.broadcast %cst_166 : f32 to vector<8x384xf32>
    %523 = arith.addf %522, %521 : vector<8x384xf32>
    %524 = arith.divf %522, %523 : vector<8x384xf32>
    %525 = vector.extract_strided_slice %524 {offsets = [0, 0], sizes = [8, 128], strides = [1, 1]} : vector<8x384xf32> to vector<8x128xf32>
    %526 = vector.extract_strided_slice %524 {offsets = [0, 128], sizes = [8, 128], strides = [1, 1]} : vector<8x384xf32> to vector<8x128xf32>
    %527 = vector.extract_strided_slice %524 {offsets = [0, 256], sizes = [8, 128], strides = [1, 1]} : vector<8x384xf32> to vector<8x128xf32>
    %528 = vector.extract_strided_slice %518 {offsets = [0, 384], sizes = [8, 128], strides = [1, 1]} : vector<8x512xf32> to vector<8x128xf32>
    %529 = math.tanh %528 : vector<8x128xf32>
    %530 = arith.mulf %526, %506 : vector<8x128xf32>
    %531 = arith.mulf %525, %529 : vector<8x128xf32>
    %532 = arith.addf %530, %531 : vector<8x128xf32>
    %533 = math.tanh %532 : vector<8x128xf32>
    %534 = arith.mulf %527, %533 : vector<8x128xf32>
    %535 = arith.truncf %534 : vector<8x128xf32> to vector<8x128xbf16>
    %536 = arith.index_cast %513 : i32 to index
    %c0_167 = arith.constant 0 : index
    %537 = vector.load %arg7[%536, %c0_167] : memref<96x128xbf16, #tpu.memory_space<vmem>>, vector<8x128xbf16>
    tpu.vector_store %arg7[%536, %c0_167], %535 {strides = array<i32>} : memref<96x128xbf16, #tpu.memory_space<vmem>>, vector<8x128xbf16>,
    %c8_i32_168 = arith.constant 8 : i32
    %c8_i32_169 = arith.constant 8 : i32
    %538 = arith.muli %c8_i32_168, %c8_i32_169 : i32
    %539 = tpu.assume_multiple %538, 8 : i32
    %540 = arith.index_cast %539 : i32 to index
    %c0_170 = arith.constant 0 : index
    %541 = vector.load %arg8[%540, %c0_170] : memref<96x512xf32, #tpu.memory_space<vmem>>, vector<8x512xf32>
    %c0_171 = arith.constant 0 : index
    %c0_172 = arith.constant 0 : index
    %542 = vector.load %arg5[%c0_171, %c0_172] : memref<128x512xbf16, #tpu.memory_space<vmem>>, vector<128x512xbf16>
    %cst_173 = arith.constant dense<0.000000e+00> : vector<8x512xf32>
    %543 = tpu.matmul %535, %542, %cst_173 {dimension_numbers = #tpu.dot_dimension_numbers<[1], [0], [0], [1], [0, 0, 1, 1], [], []>} : vector<8x128xbf16>, vector<128x512xbf16>, vector<8x512xf32> -> vector<8x512xf32>
    %544 = arith.addf %541, %543 : vector<8x512xf32>
    %545 = vector.extract_strided_slice %544 {offsets = [0, 0], sizes = [8, 384], strides = [1, 1]} : vector<8x512xf32> to vector<8x384xf32>
    %546 = arith.negf %545 : vector<8x384xf32>
    %547 = math.exp %546 : vector<8x384xf32>
    %cst_174 = arith.constant 1.000000e+00 : f32
    %548 = vector.broadcast %cst_174 : f32 to vector<8x384xf32>
    %549 = arith.addf %548, %547 : vector<8x384xf32>
    %550 = arith.divf %548, %549 : vector<8x384xf32>
    %551 = vector.extract_strided_slice %550 {offsets = [0, 0], sizes = [8, 128], strides = [1, 1]} : vector<8x384xf32> to vector<8x128xf32>
    %552 = vector.extract_strided_slice %550 {offsets = [0, 128], sizes = [8, 128], strides = [1, 1]} : vector<8x384xf32> to vector<8x128xf32>
    %553 = vector.extract_strided_slice %550 {offsets = [0, 256], sizes = [8, 128], strides = [1, 1]} : vector<8x384xf32> to vector<8x128xf32>
    %554 = vector.extract_strided_slice %544 {offsets = [0, 384], sizes = [8, 128], strides = [1, 1]} : vector<8x512xf32> to vector<8x128xf32>
    %555 = math.tanh %554 : vector<8x128xf32>
    %556 = arith.mulf %552, %532 : vector<8x128xf32>
    %557 = arith.mulf %551, %555 : vector<8x128xf32>
    %558 = arith.addf %556, %557 : vector<8x128xf32>
    %559 = math.tanh %558 : vector<8x128xf32>
    %560 = arith.mulf %553, %559 : vector<8x128xf32>
    %561 = arith.truncf %560 : vector<8x128xf32> to vector<8x128xbf16>
    %562 = arith.index_cast %539 : i32 to index
    %c0_175 = arith.constant 0 : index
    %563 = vector.load %arg7[%562, %c0_175] : memref<96x128xbf16, #tpu.memory_space<vmem>>, vector<8x128xbf16>
    tpu.vector_store %arg7[%562, %c0_175], %561 {strides = array<i32>} : memref<96x128xbf16, #tpu.memory_space<vmem>>, vector<8x128xbf16>,
    %c9_i32_176 = arith.constant 9 : i32
    %c8_i32_177 = arith.constant 8 : i32
    %564 = arith.muli %c9_i32_176, %c8_i32_177 : i32
    %565 = tpu.assume_multiple %564, 8 : i32
    %566 = arith.index_cast %565 : i32 to index
    %c0_178 = arith.constant 0 : index
    %567 = vector.load %arg8[%566, %c0_178] : memref<96x512xf32, #tpu.memory_space<vmem>>, vector<8x512xf32>
    %c0_179 = arith.constant 0 : index
    %c0_180 = arith.constant 0 : index
    %568 = vector.load %arg5[%c0_179, %c0_180] : memref<128x512xbf16, #tpu.memory_space<vmem>>, vector<128x512xbf16>
    %cst_181 = arith.constant dense<0.000000e+00> : vector<8x512xf32>
    %569 = tpu.matmul %561, %568, %cst_181 {dimension_numbers = #tpu.dot_dimension_numbers<[1], [0], [0], [1], [0, 0, 1, 1], [], []>} : vector<8x128xbf16>, vector<128x512xbf16>, vector<8x512xf32> -> vector<8x512xf32>
    %570 = arith.addf %567, %569 : vector<8x512xf32>
    %571 = vector.extract_strided_slice %570 {offsets = [0, 0], sizes = [8, 384], strides = [1, 1]} : vector<8x512xf32> to vector<8x384xf32>
    %572 = arith.negf %571 : vector<8x384xf32>
    %573 = math.exp %572 : vector<8x384xf32>
    %cst_182 = arith.constant 1.000000e+00 : f32
    %574 = vector.broadcast %cst_182 : f32 to vector<8x384xf32>
    %575 = arith.addf %574, %573 : vector<8x384xf32>
    %576 = arith.divf %574, %575 : vector<8x384xf32>
    %577 = vector.extract_strided_slice %576 {offsets = [0, 0], sizes = [8, 128], strides = [1, 1]} : vector<8x384xf32> to vector<8x128xf32>
    %578 = vector.extract_strided_slice %576 {offsets = [0, 128], sizes = [8, 128], strides = [1, 1]} : vector<8x384xf32> to vector<8x128xf32>
    %579 = vector.extract_strided_slice %576 {offsets = [0, 256], sizes = [8, 128], strides = [1, 1]} : vector<8x384xf32> to vector<8x128xf32>
    %580 = vector.extract_strided_slice %570 {offsets = [0, 384], sizes = [8, 128], strides = [1, 1]} : vector<8x512xf32> to vector<8x128xf32>
    %581 = math.tanh %580 : vector<8x128xf32>
    %582 = arith.mulf %578, %558 : vector<8x128xf32>
    %583 = arith.mulf %577, %581 : vector<8x128xf32>
    %584 = arith.addf %582, %583 : vector<8x128xf32>
    %585 = math.tanh %584 : vector<8x128xf32>
    %586 = arith.mulf %579, %585 : vector<8x128xf32>
    %587 = arith.truncf %586 : vector<8x128xf32> to vector<8x128xbf16>
    %588 = arith.index_cast %565 : i32 to index
    %c0_183 = arith.constant 0 : index
    %589 = vector.load %arg7[%588, %c0_183] : memref<96x128xbf16, #tpu.memory_space<vmem>>, vector<8x128xbf16>
    tpu.vector_store %arg7[%588, %c0_183], %587 {strides = array<i32>} : memref<96x128xbf16, #tpu.memory_space<vmem>>, vector<8x128xbf16>,
    %c10_i32_184 = arith.constant 10 : i32
    %c8_i32_185 = arith.constant 8 : i32
    %590 = arith.muli %c10_i32_184, %c8_i32_185 : i32
    %591 = tpu.assume_multiple %590, 8 : i32
    %592 = arith.index_cast %591 : i32 to index
    %c0_186 = arith.constant 0 : index
    %593 = vector.load %arg8[%592, %c0_186] : memref<96x512xf32, #tpu.memory_space<vmem>>, vector<8x512xf32>
    %c0_187 = arith.constant 0 : index
    %c0_188 = arith.constant 0 : index
    %594 = vector.load %arg5[%c0_187, %c0_188] : memref<128x512xbf16, #tpu.memory_space<vmem>>, vector<128x512xbf16>
    %cst_189 = arith.constant dense<0.000000e+00> : vector<8x512xf32>
    %595 = tpu.matmul %587, %594, %cst_189 {dimension_numbers = #tpu.dot_dimension_numbers<[1], [0], [0], [1], [0, 0, 1, 1], [], []>} : vector<8x128xbf16>, vector<128x512xbf16>, vector<8x512xf32> -> vector<8x512xf32>
    %596 = arith.addf %593, %595 : vector<8x512xf32>
    %597 = vector.extract_strided_slice %596 {offsets = [0, 0], sizes = [8, 384], strides = [1, 1]} : vector<8x512xf32> to vector<8x384xf32>
    %598 = arith.negf %597 : vector<8x384xf32>
    %599 = math.exp %598 : vector<8x384xf32>
    %cst_190 = arith.constant 1.000000e+00 : f32
    %600 = vector.broadcast %cst_190 : f32 to vector<8x384xf32>
    %601 = arith.addf %600, %599 : vector<8x384xf32>
    %602 = arith.divf %600, %601 : vector<8x384xf32>
    %603 = vector.extract_strided_slice %602 {offsets = [0, 0], sizes = [8, 128], strides = [1, 1]} : vector<8x384xf32> to vector<8x128xf32>
    %604 = vector.extract_strided_slice %602 {offsets = [0, 128], sizes = [8, 128], strides = [1, 1]} : vector<8x384xf32> to vector<8x128xf32>
    %605 = vector.extract_strided_slice %602 {offsets = [0, 256], sizes = [8, 128], strides = [1, 1]} : vector<8x384xf32> to vector<8x128xf32>
    %606 = vector.extract_strided_slice %596 {offsets = [0, 384], sizes = [8, 128], strides = [1, 1]} : vector<8x512xf32> to vector<8x128xf32>
    %607 = math.tanh %606 : vector<8x128xf32>
    %608 = arith.mulf %604, %584 : vector<8x128xf32>
    %609 = arith.mulf %603, %607 : vector<8x128xf32>
    %610 = arith.addf %608, %609 : vector<8x128xf32>
    %611 = math.tanh %610 : vector<8x128xf32>
    %612 = arith.mulf %605, %611 : vector<8x128xf32>
    %613 = arith.truncf %612 : vector<8x128xf32> to vector<8x128xbf16>
    %614 = arith.index_cast %591 : i32 to index
    %c0_191 = arith.constant 0 : index
    %615 = vector.load %arg7[%614, %c0_191] : memref<96x128xbf16, #tpu.memory_space<vmem>>, vector<8x128xbf16>
    tpu.vector_store %arg7[%614, %c0_191], %613 {strides = array<i32>} : memref<96x128xbf16, #tpu.memory_space<vmem>>, vector<8x128xbf16>,
    %c11_i32_192 = arith.constant 11 : i32
    %c8_i32_193 = arith.constant 8 : i32
    %616 = arith.muli %c11_i32_192, %c8_i32_193 : i32
    %617 = tpu.assume_multiple %616, 8 : i32
    %618 = arith.index_cast %617 : i32 to index
    %c0_194 = arith.constant 0 : index
    %619 = vector.load %arg8[%618, %c0_194] : memref<96x512xf32, #tpu.memory_space<vmem>>, vector<8x512xf32>
    %c0_195 = arith.constant 0 : index
    %c0_196 = arith.constant 0 : index
    %620 = vector.load %arg5[%c0_195, %c0_196] : memref<128x512xbf16, #tpu.memory_space<vmem>>, vector<128x512xbf16>
    %cst_197 = arith.constant dense<0.000000e+00> : vector<8x512xf32>
    %621 = tpu.matmul %613, %620, %cst_197 {dimension_numbers = #tpu.dot_dimension_numbers<[1], [0], [0], [1], [0, 0, 1, 1], [], []>} : vector<8x128xbf16>, vector<128x512xbf16>, vector<8x512xf32> -> vector<8x512xf32>
    %622 = arith.addf %619, %621 : vector<8x512xf32>
    %623 = vector.extract_strided_slice %622 {offsets = [0, 0], sizes = [8, 384], strides = [1, 1]} : vector<8x512xf32> to vector<8x384xf32>
    %624 = arith.negf %623 : vector<8x384xf32>
    %625 = math.exp %624 : vector<8x384xf32>
    %cst_198 = arith.constant 1.000000e+00 : f32
    %626 = vector.broadcast %cst_198 : f32 to vector<8x384xf32>
    %627 = arith.addf %626, %625 : vector<8x384xf32>
    %628 = arith.divf %626, %627 : vector<8x384xf32>
    %629 = vector.extract_strided_slice %628 {offsets = [0, 0], sizes = [8, 128], strides = [1, 1]} : vector<8x384xf32> to vector<8x128xf32>
    %630 = vector.extract_strided_slice %628 {offsets = [0, 128], sizes = [8, 128], strides = [1, 1]} : vector<8x384xf32> to vector<8x128xf32>
    %631 = vector.extract_strided_slice %628 {offsets = [0, 256], sizes = [8, 128], strides = [1, 1]} : vector<8x384xf32> to vector<8x128xf32>
    %632 = vector.extract_strided_slice %622 {offsets = [0, 384], sizes = [8, 128], strides = [1, 1]} : vector<8x512xf32> to vector<8x128xf32>
    %633 = math.tanh %632 : vector<8x128xf32>
    %634 = arith.mulf %630, %610 : vector<8x128xf32>
    %635 = arith.mulf %629, %633 : vector<8x128xf32>
    %636 = arith.addf %634, %635 : vector<8x128xf32>
    %637 = math.tanh %636 : vector<8x128xf32>
    %638 = arith.mulf %631, %637 : vector<8x128xf32>
    %639 = arith.truncf %638 : vector<8x128xf32> to vector<8x128xbf16>
    %640 = arith.index_cast %617 : i32 to index
    %c0_199 = arith.constant 0 : index
    %641 = vector.load %arg7[%640, %c0_199] : memref<96x128xbf16, #tpu.memory_space<vmem>>, vector<8x128xbf16>
    tpu.vector_store %arg7[%640, %c0_199], %639 {strides = array<i32>} : memref<96x128xbf16, #tpu.memory_space<vmem>>, vector<8x128xbf16>,
    %c12_i32_200 = arith.constant 12 : i32
    return
  }
}

</mosaic_0001>

<bundles_post_ra>
// kernel: tpu_custom_call.1
= control target key start
LH: loop header
LB: loop body
LE: loop exit
PB: predicated region body
PF: predicated region fallthrough
CT: control target
= control target key end

     0   :  { %12 = vsyncpa [#allocation4], 0  ;;  %s14052_s0 = inlined_call_operand.vmem [shape: bf16[96,32], index: 0, kind: input, shape index: {}]   ;;  %s14053_s1 = inlined_call_operand.vmem [shape: bf16[32,512], index: 1, kind: input, shape index: {}]   ;;  %s14054_s2 = inlined_call_operand.hbm [shape: bf16[128,512], index: 2, kind: input, shape index: {}]   ;;  %s14055_s3 = inlined_call_operand.hbm [shape: f32[1,512], index: 3, kind: input, shape index: {}]   ;;  %s14056_s4 = inlined_call_operand.hbm [shape: bf16[128,512], index: 4, kind: input, shape index: {}]   ;;  %s14057_s5 = inlined_call_operand.hbm [shape: bf16[128,512], index: 5, kind: input, shape index: {}]   ;;  %s14058_s6 = inlined_call_operand.vmem [shape: f32[1,512], index: 6, kind: input, shape index: {}]   ;;  %s14059_s7 = inlined_call_operand.hbm [shape: bf16[96,128], index: 7, kind: output, shape index: {}]  }
   0x1   :  { %13 = vsyncpa [#allocation7], 0 }
   0x2   :  { %14 = vsyncpa [#allocation10], 0  ;;  %s38_s26 = sshll.u32 %s14055_s3, 4  ;;  %s39_s26 = int_to_ptr.hbm [resolvable:$true] %s38_s26 }
   0x3   :  { %15 = vsyncpa [#allocation5], 0  ;;  %s13271_s27 = smov [#allocation6]   ;;  %s24_s8 = sshll.u32 %s14054_s2, 4  ;;  %s25_s8 = int_to_ptr.hbm [resolvable:$true] %s24_s8 }
   0x4   :  { %s40_s28 = sshll.u32 %s13271_s27, 4  ;;  %s13272_s9 = smov [#allocation3]   ;;  %s41_s28 = int_to_ptr.vmem [resolvable:$true] %s40_s28 }
   0x5   :  { %43 = dma.hbm_to_vmem [thread:$0]  %s39_s26, 64, %s41_s28, [#allocation7]  }
   0x6   :  { %s26_s10 = sshll.u32 %s13272_s9, 4  ;;  %s13273_s11 = smov 256   ;;  %s27_s10 = int_to_ptr.vmem [resolvable:$true] %s26_s10 }
   0x7   :  { %s13274_s12 = smov 16   ;;  %s48_s3 = sshll.u32 %s14056_s4, 4  ;;  %s49_s3 = int_to_ptr.hbm [resolvable:$true] %s48_s3 }
   0x8   :  { %32 = dma.hbm_to_vmem [thread:$0]  %s25_s8, 4096, %s27_s10, [#allocation4], %s13273_s11, %s13273_s11, %s13274_s12  }
   0x9   :  { %s13275_s15 = smov [#allocation8]   ;;  %s61_s2 = sshll.u32 %s14057_s5, 4  ;;  %s62_s2 = int_to_ptr.hbm [resolvable:$true] %s61_s2 }
   0xa   :  { %s50_s16 = sshll.u32 %s13275_s15, 4  ;;  %s13276_s19 = smov [#allocation9]   ;;  %s51_s16 = int_to_ptr.vmem [resolvable:$true] %s50_s16 }
   0xb   :  { %56 = dma.hbm_to_vmem [thread:$0]  %s49_s3, 4096, %s51_s16, [#allocation7], %s13273_s11, %s13273_s11, %s13274_s12  }
   0xc   :  { %s63_s20 = sshll.u32 %s13276_s19, 4  ;;  %s64_s20 = int_to_ptr.vmem [resolvable:$true] %s63_s20 }
   0xd   :  { %69 = dma.hbm_to_vmem [thread:$0]  %s62_s2, 4096, %s64_s20, [#allocation10], %s13273_s11, %s13273_s11, %s13274_s12  }
   0xe   :  { %13263 = dma.done.wait [#allocation4], 4096  }
   0xf   :  { %13264 = vsyncadd [#allocation4], 4294963200 }
  0x10   :  { %13265 = dma.done.wait [#allocation7], 4160  }
  0x11   :  { %13266 = vsyncadd [#allocation7], 4294963136 }
  0x12   :  { %13267 = dma.done.wait [#allocation10], 4096  }
  0x13   :  { %13268 = vsyncadd [#allocation10], 4294963200  ;;  %v8595_v0 = vld [vmem:[%s14053_s1 + $0x20] sm:$0xf]  ;;  %v11941_v1 = vld [vmem:[%s14053_s1 + $0x2c] sm:$0xf0] }
  0x14   :  { %v11939_v2 = vld [vmem:[%s14053_s1 + $0x24] sm:$0xf]  ;;  %v8596_v3 = vor.u32 %v11941_v1, %v8595_v0  ;;  %v8597_v4 = vld [vmem:[%s14053_s1 + $0x30] sm:$0xf0]  ;;  %v8603_v5 = vld [vmem:[%s14053_s1 + $0x28] sm:$0xf] }
  0x15   :  { %v11942_v6 = vld [vmem:[%s14053_s1 + $0x34] sm:$0xf0]  ;;  %v8600_v7 = vor.u32 %v11939_v2, %v8597_v4  ;;  %v11940_v9 = vld [vmem:[%s14053_s1 + $0x2c] sm:$0xf]  ;;  %v8605_v10 = vld [vmem:[%s14053_s1 + $0x38] sm:$0xf0] }
  0x16   :  { %v8604_v8 = vor.u32 %v11942_v6, %v8603_v5  ;;  %v8579_v11 = vld [vmem:[%s14053_s1] sm:$0xf]  ;;  %214 = vmatpush.bf16.msra.mxu0 %v8596_v3  ;;  %v8608_v12 = vor.u32 %v11940_v9, %v8605_v10  ;;  %v11937_v13 = vld [vmem:[%s14053_s1 + $0xc] sm:$0xf0]  ;;  %v11935_v14 = vld [vmem:[%s14053_s1 + $0x4] sm:$0xf] }
  0x17   :  { %v8581_v15 = vld [vmem:[%s14053_s1 + $0x10] sm:$0xf0]  ;;  %253 = vmatpush.bf16.msra.mxu1 %v8600_v7  ;;  %v8580_v16 = vor.u32 %v11937_v13, %v8579_v11  ;;  %v8587_v18 = vld [vmem:[%s14053_s1 + $0x8] sm:$0xf]  ;;  %v11938_v19 = vld [vmem:[%s14053_s1 + $0x14] sm:$0xf0] }
  0x18   :  { %292 = vmatpush.bf16.msra.mxu2 %v8604_v8  ;;  %v8584_v17 = vor.u32 %v11935_v14, %v8581_v15  ;;  %v11936_v20 = vld [vmem:[%s14053_s1 + $0xc] sm:$0xf]  ;;  %331 = vmatpush.bf16.msra.mxu3 %v8608_v12  ;;  %v8588_v21 = vor.u32 %v11938_v19, %v8587_v18  ;;  %v8589_v22 = vld [vmem:[%s14053_s1 + $0x18] sm:$0xf0]  ;;  %v11929_v23 = vld [vmem:[%s14052_s0] sm:$0xff]  ;;  %vm189_vm0 = vcmask 261120  }
  0x19   :  { %v8747_v24 = vld [vmem:[#allocation3 + $0xe0] sm:$0xf]  ;;  %v8592_v25 = vor.u32 %v11936_v20, %v8589_v22  ;;  %v11973_v26 = vld [vmem:[#allocation3 + $0xec] sm:$0xf0]  ;;  %v11971_v27 = vld [vmem:[#allocation3 + $0xe4] sm:$0xf] }
  0x1a   :  { %v8749_v28 = vld [vmem:[#allocation3 + $0xf0] sm:$0xf0]  ;;  %215 = vmatpush.bf16.msra.mxu0 %v8580_v16  ;;  %v8748_v29 = vor.u32 %v11973_v26, %v8747_v24  ;;  %v8755_v31 = vld [vmem:[#allocation3 + $0xe8] sm:$0xf]  ;;  %v11974_v32 = vld [vmem:[#allocation3 + $0xf4] sm:$0xf0] }
  0x1b   :  { %v8752_v30 = vor.u32 %v11971_v27, %v8749_v28  ;;  %v8731_v33 = vld [vmem:[#allocation3 + $0xc0] sm:$0xf]  ;;  %254 = vmatpush.bf16.msra.mxu1 %v8584_v17  ;;  %v8756_v34 = vor.u32 %v11974_v32, %v8755_v31  ;;  %v11969_v35 = vld [vmem:[#allocation3 + $0xcc] sm:$0xf0]  ;;  %v11967_v36 = vld [vmem:[#allocation3 + $0xc4] sm:$0xf] }
  0x1c   :  { %293 = vmatpush.bf16.msra.mxu2 %v8588_v21  ;;  %v8733_v37 = vld [vmem:[#allocation3 + $0xd0] sm:$0xf0]  ;;  %332 = vmatpush.bf16.msra.mxu3 %v8592_v25  ;;  %v8732_v38 = vor.u32 %v11969_v35, %v8731_v33  ;;  %v11972_v39 = vld [vmem:[#allocation3 + $0xec] sm:$0xf]  ;;  %v8757_v40 = vld [vmem:[#allocation3 + $0xf8] sm:$0xf0] }
  0x1d   :  { %8609 = vmatmul.msk.bf16.vlgmr.msra.gmra.mxu0 %vm189_vm0, %v11929_v23  ;;  %v8736_v41 = vor.u32 %v11967_v36, %v8733_v37  ;;  %v8760_v42 = vor.u32 %v11972_v39, %v8757_v40  ;;  %v8739_v43 = vld [vmem:[#allocation3 + $0xc8] sm:$0xf]  ;;  %v11970_v44 = vld [vmem:[#allocation3 + $0xd4] sm:$0xf0]  ;;  %v8715_v45 = vld [vmem:[#allocation3 + $0xa0] sm:$0xf] }
  0x1e   :  { %611 = vmatpush.bf16.msrb.mxu0 %v8748_v29  ;;  %8615 = vmatmul.msk.bf16.vlgmr.msra.gmra.mxu1 %vm189_vm0, %v11929_v23  ;;  %v11965_v46 = vld [vmem:[#allocation3 + $0xac] sm:$0xf0]  ;;  %v11963_v47 = vld [vmem:[#allocation3 + $0xa4] sm:$0xf]  ;;  %v8717_v48 = vld [vmem:[#allocation3 + $0xb0] sm:$0xf0]  ;;  %v8740_v49 = vor.u32 %v11970_v44, %v8739_v43 }
  0x1f   :  { %624 = vmatpush.bf16.msrb.mxu1 %v8752_v30  ;;  %8621 = vmatmul.msk.bf16.vlgmr.msra.gmra.mxu2 %vm189_vm0, %v11929_v23  ;;  %v11968_v50 = vld [vmem:[#allocation3 + $0xcc] sm:$0xf]  ;;  %v8741_v51 = vld [vmem:[#allocation3 + $0xd8] sm:$0xf0]  ;;  %v8716_v52 = vor.u32 %v11965_v46, %v8715_v45  ;;  %v8723_v54 = vld [vmem:[#allocation3 + $0xa8] sm:$0xf]  ;;  %v8720_v56 = vor.u32 %v11963_v47, %v8717_v48 }
  0x20   :  { %8627 = vmatmul.msk.bf16.vlgmr.msra.gmra.mxu3 %vm189_vm0, %v11929_v23  ;;  %637 = vmatpush.bf16.msrb.mxu2 %v8756_v34  ;;  %v8744_v53 = vor.u32 %v11968_v50, %v8741_v51  ;;  %v11966_v55 = vld [vmem:[#allocation3 + $0xb4] sm:$0xf0]  ;;  %v8699_v57 = vld [vmem:[#allocation3 + $0x80] sm:$0xf]  ;;  %v11961_v58 = vld [vmem:[#allocation3 + $0x8c] sm:$0xf0] }
  0x21   :  { %650 = vmatpush.bf16.msrb.mxu3 %v8760_v42  ;;  %v11959_v59 = vld [vmem:[#allocation3 + $0x84] sm:$0xf]  ;;  %v8701_v60 = vld [vmem:[#allocation3 + $0x90] sm:$0xf0]  ;;  %v11964_v61 = vld [vmem:[#allocation3 + $0xac] sm:$0xf]  ;;  %v8724_v63 = vor.u32 %v11966_v55, %v8723_v54  ;;  %v8700_v0 = vor.u32 %v11961_v58, %v8699_v57 }
  0x22   :  { %612 = vmatpush.bf16.msrb.mxu0 %v8732_v38  ;;  %v8725_v62 = vld [vmem:[#allocation3 + $0xb8] sm:$0xf0]  ;;  %v8707_v2 = vld [vmem:[#allocation3 + $0x88] sm:$0xf]  ;;  %v11962_v3 = vld [vmem:[#allocation3 + $0x94] sm:$0xf0]  ;;  %v8704_v4 = vor.u32 %v11959_v59, %v8701_v60 }
  0x23   :  { %625 = vmatpush.bf16.msrb.mxu1 %v8736_v41  ;;  %v8728_v1 = vor.u32 %v11964_v61, %v8725_v62  ;;  %v8708_v5 = vor.u32 %v11962_v3, %v8707_v2  ;;  %v11930_v6 = vld [vmem:[%s14052_s0 + $0x8] sm:$0xff]  ;;  %v8683_v7 = vld [vmem:[#allocation3 + $0x60] sm:$0xf]  ;;  %v11957_v8 = vld [vmem:[#allocation3 + $0x6c] sm:$0xf0]  ;;  %v14060_v62 = vmov 0  }
  0x24   :  { %638 = vmatpush.bf16.msrb.mxu2 %v8740_v49  ;;  %v11955_v9 = vld [vmem:[#allocation3 + $0x64] sm:$0xf]  ;;  %v8684_v10 = vor.u32 %v11957_v8, %v8683_v7  ;;  %v8685_v11 = vld [vmem:[#allocation3 + $0x70] sm:$0xf0]  ;;  %v11960_v12 = vld [vmem:[#allocation3 + $0x8c] sm:$0xf] }
  0x25   :  { %651 = vmatpush.bf16.msrb.mxu3 %v8744_v53  ;;  %v8709_v13 = vld [vmem:[#allocation3 + $0x98] sm:$0xf0]  ;;  %v8688_v14 = vor.u32 %v11955_v9, %v8685_v11  ;;  %v8691_v16 = vld [vmem:[#allocation3 + $0x68] sm:$0xf]  ;;  %v11958_v17 = vld [vmem:[#allocation3 + $0x74] sm:$0xf0] }
  0x26   :  { %613 = vmatpush.bf16.msrb.mxu0 %v8716_v52  ;;  %v8712_v15 = vor.u32 %v11960_v12, %v8709_v13  ;;  %v8667_v18 = vld [vmem:[#allocation3 + $0x40] sm:$0xf]  ;;  %v8692_v19 = vor.u32 %v11958_v17, %v8691_v16  ;;  %v11953_v20 = vld [vmem:[#allocation3 + $0x4c] sm:$0xf0]  ;;  %v11951_v21 = vld [vmem:[#allocation3 + $0x44] sm:$0xf] }
  0x27   :  { %626 = vmatpush.bf16.msrb.mxu1 %v8720_v56  ;;  %v8669_v22 = vld [vmem:[#allocation3 + $0x50] sm:$0xf0]  ;;  %v8668_v23 = vor.u32 %v11953_v20, %v8667_v18  ;;  %v11956_v25 = vld [vmem:[#allocation3 + $0x6c] sm:$0xf]  ;;  %v8693_v26 = vld [vmem:[#allocation3 + $0x78] sm:$0xf0] }
  0x28   :  { %639 = vmatpush.bf16.msrb.mxu2 %v8724_v63  ;;  %v8672_v24 = vor.u32 %v11951_v21, %v8669_v22  ;;  %v8696_v27 = vor.u32 %v11956_v25, %v8693_v26  ;;  %v11931_v28 = vld [vmem:[%s14052_s0 + $0x10] sm:$0xff]  ;;  %v8675_v29 = vld [vmem:[#allocation3 + $0x48] sm:$0xf]  ;;  %v11954_v30 = vld [vmem:[#allocation3 + $0x54] sm:$0xf0]  ;;  %s8527_s15 = sshll.u32 %s14059_s7, 4  ;;  %s8528_s15 = int_to_ptr.hbm [resolvable:$true] %s8527_s15 }
  0x29   :  { %652 = vmatpush.bf16.msrb.mxu3 %v8728_v1  ;;  %v8651_v31 = vld [vmem:[#allocation3 + $0x20] sm:$0xf]  ;;  %v8676_v32 = vor.u32 %v11954_v30, %v8675_v29  ;;  %v11949_v33 = vld [vmem:[#allocation3 + $0x2c] sm:$0xf0]  ;;  %v11947_v34 = vld [vmem:[#allocation3 + $0x24] sm:$0xf] }
  0x2a   :  { %614 = vmatpush.bf16.msrb.mxu0 %v8700_v0  ;;  %v8653_v35 = vld [vmem:[#allocation3 + $0x30] sm:$0xf0]  ;;  %v8652_v36 = vor.u32 %v11949_v33, %v8651_v31  ;;  %v11952_v38 = vld [vmem:[#allocation3 + $0x4c] sm:$0xf]  ;;  %v8677_v39 = vld [vmem:[#allocation3 + $0x58] sm:$0xf0] }
  0x2b   :  { %627 = vmatpush.bf16.msrb.mxu1 %v8704_v4  ;;  %v8656_v37 = vor.u32 %v11947_v34, %v8653_v35  ;;  %v8659_v40 = vld [vmem:[#allocation3 + $0x28] sm:$0xf]  ;;  %v8680_v41 = vor.u32 %v11952_v38, %v8677_v39  ;;  %v11950_v42 = vld [vmem:[#allocation3 + $0x34] sm:$0xf0]  ;;  %v8635_v45 = vld [vmem:[#allocation3] sm:$0xf] }
  0x2c   :  { %640 = vmatpush.bf16.msrb.mxu2 %v8708_v5  ;;  %v8660_v43 = vor.u32 %v11950_v42, %v8659_v40  ;;  %v11932_v44 = vld [vmem:[%s14052_s0 + $0x18] sm:$0xff]  ;;  %v11945_v46 = vld [vmem:[#allocation3 + $0xc] sm:$0xf0]  ;;  %v11943_v47 = vld [vmem:[#allocation3 + $0x4] sm:$0xf]  ;;  %s13279_s16 = smov 64  }
  0x2d   :  { %8610 = vmatmul.msk.bf16.gmra.mxu0 %vm189_vm0, %v11930_v6  ;;  %653 = vmatpush.bf16.msrb.mxu3 %v8712_v15  ;;  %v8636_v48 = vor.u32 %v11945_v46, %v8635_v45  ;;  %v8637_v49 = vld [vmem:[#allocation3 + $0x10] sm:$0xf0]  ;;  %v11948_v50 = vld [vmem:[#allocation3 + $0x2c] sm:$0xf]  ;;  %v8661_v51 = vld [vmem:[#allocation3 + $0x38] sm:$0xf0] }
  0x2e   :  { %8616 = vmatmul.msk.bf16.gmra.mxu1 %vm189_vm0, %v11930_v6  ;;  %615 = vmatpush.bf16.msrb.mxu0 %v8684_v10  ;;  %v8640_v52 = vor.u32 %v11943_v47, %v8637_v49  ;;  %v8664_v53 = vor.u32 %v11948_v50, %v8661_v51  ;;  %v8643_v54 = vld [vmem:[#allocation3 + $0x8] sm:$0xf]  ;;  %v11946_v55 = vld [vmem:[#allocation3 + $0x14] sm:$0xf0]  ;;  %v11944_v56 = vld [vmem:[#allocation3 + $0xc] sm:$0xf] }
  0x2f   :  { %8622 = vmatmul.msk.bf16.gmra.mxu2 %vm189_vm0, %v11930_v6  ;;  %628 = vmatpush.bf16.msrb.mxu1 %v8688_v14  ;;  %v8644_v57 = vor.u32 %v11946_v55, %v8643_v54  ;;  %v8645_v58 = vld [vmem:[#allocation3 + $0x18] sm:$0xf0]  ;;  %v11933_v60 = vld [vmem:[%s14052_s0 + $0x20] sm:$0xff]  ;;  %v11934_v61 = vld [vmem:[%s14052_s0 + $0x28] sm:$0xff]  ;;  %s13280_s17 = smov 4  }
  0x30   :  { %8628 = vmatmul.msk.bf16.gmra.mxu3 %vm189_vm0, %v11930_v6  ;;  %641 = vmatpush.bf16.msrb.mxu2 %v8692_v19  ;;  %v8648_v59 = vor.u32 %v11944_v56, %v8645_v58  ;;  %v12005_v38 = vld [vmem:[#allocation3 + $0xec] sm:$0xf0]  ;;  %v12003_v39 = vld [vmem:[#allocation3 + $0xe4] sm:$0xf]  ;;  %v8880_v42 = vld [vmem:[#allocation3 + $0xf0] sm:$0xf0] }
  0x31   :  { %654 = vmatpush.bf16.msrb.mxu3 %v8696_v27  ;;  %v8883_v47 = vor.u32 %v12003_v39, %v8880_v42  ;;  %v12004_v49 = vld [vmem:[#allocation3 + $0xec] sm:$0xf]  ;;  %v8888_v50 = vld [vmem:[#allocation3 + $0xf8] sm:$0xf0]  ;;  %v12001_v54 = vld [vmem:[#allocation3 + $0xcc] sm:$0xf0] }
  0x32   :  { %616 = vmatpush.bf16.msrb.mxu0 %v8668_v23  ;;  %v11999_v55 = vld [vmem:[#allocation3 + $0xc4] sm:$0xf]  ;;  %v8870_v58 = vld [vmem:[#allocation3 + $0xc8] sm:$0xf]  ;;  %v13511_v39 = vld [vmem:[#allocation6] sm:$0xf] }
  0x33   :  { %629 = vmatpush.bf16.msrb.mxu1 %v8672_v24 }
  0x34   :  { %642 = vmatpush.bf16.msrb.mxu2 %v8676_v32 }
  0x35   :  { %655 = vmatpush.bf16.msrb.mxu3 %v8680_v41 }
  0x36   :  { %617 = vmatpush.bf16.msrb.mxu0 %v8652_v36 }
  0x37   :  { %630 = vmatpush.bf16.msrb.mxu1 %v8656_v37  ;;  %v8878_v37 = vld [vmem:[#allocation3 + $0xe0] sm:$0xf] }
  0x38   :  { %643 = vmatpush.bf16.msrb.mxu2 %v8660_v43  ;;  %v8879_v41 = vor.u32 %v12005_v38, %v8878_v37  ;;  %v8886_v43 = vld [vmem:[#allocation3 + $0xe8] sm:$0xf]  ;;  %v12000_v37 = vld [vmem:[#allocation3 + $0xcc] sm:$0xf]  ;;  %v8872_v38 = vld [vmem:[#allocation3 + $0xd8] sm:$0xf0] }
  0x39   :  { %656 = vmatpush.bf16.msrb.mxu3 %v8664_v53  ;;  %v8862_v53 = vld [vmem:[#allocation3 + $0xc0] sm:$0xf]  ;;  %v8875_v42 = vor.u32 %v12000_v37, %v8872_v38  ;;  %v11993_v38 = vld [vmem:[#allocation3 + $0x8c] sm:$0xf0] }
  0x3a   :  { %618 = vmatpush.bf16.msrb.mxu0 %v8636_v48  ;;  %v8863_v56 = vor.u32 %v12001_v54, %v8862_v53  ;;  %v8830_v37 = vld [vmem:[#allocation3 + $0x80] sm:$0xf] }
  0x3b   :  { %631 = vmatpush.bf16.msrb.mxu1 %v8640_v52  ;;  %v8891_v52 = vor.u32 %v12004_v49, %v8888_v50  ;;  %v8848_v49 = vld [vmem:[#allocation3 + $0xb0] sm:$0xf0]  ;;  %v8854_v50 = vld [vmem:[#allocation3 + $0xa8] sm:$0xf] }
  0x3c   :  { %644 = vmatpush.bf16.msrb.mxu2 %v8644_v57  ;;  %v8864_v57 = vld [vmem:[#allocation3 + $0xd0] sm:$0xf0] }
  0x3d   :  { %8611 = vmatmul.msk.bf16.gmra.mxu0 %vm189_vm0, %v11931_v28  ;;  %657 = vmatpush.bf16.msrb.mxu3 %v8648_v59  ;;  %v12002_v59 = vld [vmem:[#allocation3 + $0xd4] sm:$0xf0] }
  0x3e   :  { %8617 = vmatmul.msk.bf16.gmra.mxu1 %vm189_vm0, %v11931_v28  ;;  %931 = vmatpush.bf16.msra.mxu0 %v8879_v41  ;;  %v8846_v41 = vld [vmem:[#allocation3 + $0xa0] sm:$0xf] }
  0x3f   :  { %8623 = vmatmul.msk.bf16.gmra.mxu2 %vm189_vm0, %v11931_v28  ;;  %944 = vmatpush.bf16.msra.mxu1 %v8883_v47 }
  0x40   :  { %8629 = vmatmul.msk.bf16.gmra.mxu3 %vm189_vm0, %v11931_v28 }
  0x41   :  { %970 = vmatpush.bf16.msra.mxu3 %v8891_v52  ;;  %v11998_v52 = vld [vmem:[#allocation3 + $0xb4] sm:$0xf0] }
  0x42   :  { %932 = vmatpush.bf16.msra.mxu0 %v8863_v56  ;;  %v11996_v56 = vld [vmem:[#allocation3 + $0xac] sm:$0xf] }
  0x45   :  { %971 = vmatpush.bf16.msra.mxu3 %v8875_v42  ;;  %v11991_v42 = vld [vmem:[#allocation3 + $0x84] sm:$0xf] }
  0x4d   :  { %8612 = vmatmul.msk.bf16.gmra.mxu0 %vm189_vm0, %v11932_v44 }
  0x4e   :  { %8618 = vmatmul.msk.bf16.gmra.mxu1 %vm189_vm0, %v11932_v44 }
  0x4f   :  { %8624 = vmatmul.msk.bf16.gmra.mxu2 %vm189_vm0, %v11932_v44 }
  0x50   :  { %8630 = vmatmul.msk.bf16.gmra.mxu3 %vm189_vm0, %v11932_v44  ;;  %v12006_v44 = vld [vmem:[#allocation3 + $0xf4] sm:$0xf0] }
  0x51   :  { %v8887_v48 = vor.u32 %v12006_v44, %v8886_v43  ;;  %v11997_v43 = vld [vmem:[#allocation3 + $0xac] sm:$0xf0]  ;;  %v11995_v44 = vld [vmem:[#allocation3 + $0xa4] sm:$0xf] }
  0x53   :  { %957 = vmatpush.bf16.msra.mxu2 %v8887_v48  ;;  %v8847_v48 = vor.u32 %v11997_v43, %v8846_v41  ;;  %v8831_v41 = vor.u32 %v11993_v38, %v8830_v37  ;;  %v8832_v43 = vld [vmem:[#allocation3 + $0x90] sm:$0xf0] }
  0x54   :  { %v8816_v38 = vld [vmem:[#allocation3 + $0x70] sm:$0xf0] }
  0x55   :  { %933 = vmatpush.bf16.msra.mxu0 %v8847_v48 }
  0x59   :  { %934 = vmatpush.bf16.msra.mxu0 %v8831_v41 }
  0x5d   :  { %8613 = vmatmul.msk.bf16.gmra.mxu0 %vm189_vm0, %v11933_v60 }
  0x5e   :  { %8619 = vmatmul.msk.bf16.gmra.mxu1 %vm189_vm0, %v11933_v60 }
  0x5f   :  { %8625 = vmatmul.msk.bf16.gmra.mxu2 %vm189_vm0, %v11933_v60 }
  0x60   :  { %8631 = vmatmul.msk.bf16.gmra.mxu3 %vm189_vm0, %v11933_v60  ;;  %v8867_v60 = vor.u32 %v11999_v55, %v8864_v57  ;;  %v8851_v55 = vor.u32 %v11995_v44, %v8848_v49  ;;  %v8855_v57 = vor.u32 %v11998_v52, %v8854_v50  ;;  %v11994_v44 = vld [vmem:[#allocation3 + $0x94] sm:$0xf0]  ;;  %v13525_v49 = vperm.slane %v13511_v39, 1 }
  0x61   :  { %v8835_v50 = vor.u32 %v11991_v42, %v8832_v43  ;;  %v11990_v42 = vld [vmem:[#allocation3 + $0x74] sm:$0xf0] }
  0x62   :  { %945 = vmatpush.bf16.msra.mxu1 %v8867_v60 }
  0x66   :  { %946 = vmatpush.bf16.msra.mxu1 %v8851_v55  ;;  %v8814_v55 = vld [vmem:[#allocation3 + $0x60] sm:$0xf] }
  0x6a   :  { %947 = vmatpush.bf16.msra.mxu1 %v8835_v50  ;;  %v8824_v50 = vld [vmem:[#allocation3 + $0x78] sm:$0xf0] }
  0x6d   :  { %8614 = vmatmul.msk.bf16.gmra.mxu0 %vm189_vm0, %v11934_v61 }
  0x6e   :  { %8620 = vmatmul.msk.bf16.gmra.mxu1 %vm189_vm0, %v11934_v61 }
  0x6f   :  { %8626 = vmatmul.msk.bf16.gmra.mxu2 %vm189_vm0, %v11934_v61 }
  0x70   :  { %8632 = vmatmul.msk.bf16.gmra.mxu3 %vm189_vm0, %v11934_v61  ;;  %v8871_v61 = vor.u32 %v12002_v59, %v8870_v58  ;;  %v8856_v58 = vld [vmem:[#allocation3 + $0xb8] sm:$0xf0]  ;;  %v13520_v59 = vperm.slane %v13511_v39, 0 }
  0x72   :  { %958 = vmatpush.bf16.msra.mxu2 %v8871_v61  ;;  %v8859_v61 = vor.u32 %v11996_v56, %v8856_v58  ;;  %v11987_v56 = vld [vmem:[#allocation3 + $0x64] sm:$0xf] }
  0x74   :  { %972 = vmatpush.bf16.msra.mxu3 %v8859_v61 }
  0x76   :  { %959 = vmatpush.bf16.msra.mxu2 %v8855_v57  ;;  %v11989_v57 = vld [vmem:[#allocation3 + $0x6c] sm:$0xf0] }
  0x77   :  { %v8815_v37 = vor.u32 %v11989_v57, %v8814_v55  ;;  %v8798_v57 = vld [vmem:[#allocation3 + $0x40] sm:$0xf] }
  0x79   :  { %935 = vmatpush.bf16.msra.mxu0 %v8815_v37  ;;  %v8808_v37 = vld [vmem:[#allocation3 + $0x58] sm:$0xf0] }
  0x7d   :  { %619 = vmatmul.bf16.vlgmr.msrb.gmra.mxu0 %v14060_v62 }
  0x7e   :  { %632 = vmatmul.bf16.vlgmr.msrb.gmra.mxu1 %v14060_v62 }
  0x7f   :  { %645 = vmatmul.bf16.vlgmr.msrb.gmra.mxu2 %v14060_v62 }
  0x80   :  { %658 = vmatmul.bf16.vlgmr.msrb.gmra.mxu3 %v14060_v62  ;;  %v8838_v62 = vld [vmem:[#allocation3 + $0x88] sm:$0xf] }
  0x81   :  { %v8839_v52 = vor.u32 %v11994_v44, %v8838_v62  ;;  %v11988_v44 = vld [vmem:[#allocation3 + $0x6c] sm:$0xf] }
  0x83   :  { %960 = vmatpush.bf16.msra.mxu2 %v8839_v52  ;;  %v13536_v52 = vperm.slane %v13511_v39, 2 }
  0x9a   :  { %v13427_v63 = vpop.f32.mrf.mxu0 }
  0x9b   :  { %v13429_v0 = vpop.f32.mrf.mxu1  ;;  %v218_v58 = vadd.f32 %v13427_v63, %v13520_v59 }
  0x9c   :  { %v257_v62 = vadd.f32 %v13429_v0, %v13525_v49  ;;  %v11983_v0 = vld [vmem:[#allocation3 + $0x44] sm:$0xf] }
  0xa2   :  { %v13431_v1 = vpop.f32.mrf.mxu2  ;;  %v13435_v3 = vpop.f32.mrf.mxu0 }
  0xa3   :  { %v13433_v2 = vpop.f32.mrf.mxu3  ;;  %v13437_v4 = vpop.f32.mrf.mxu1 }
  0xaa   :  { %v13439_v5 = vpop.f32.mrf.mxu2  ;;  %v13443_v7 = vpop.f32.mrf.mxu0 }
  0xab   :  { %v13441_v6 = vpop.f32.mrf.mxu3  ;;  %v13445_v8 = vpop.f32.mrf.mxu1 }
  0xb2   :  { %v13447_v9 = vpop.f32.mrf.mxu2  ;;  %v13451_v11 = vpop.f32.mrf.mxu0 }
  0xb3   :  { %v13449_v10 = vpop.f32.mrf.mxu3  ;;  %v13453_v12 = vpop.f32.mrf.mxu1 }
  0xba   :  { %v13455_v13 = vpop.f32.mrf.mxu2  ;;  %v13459_v15 = vpop.f32.mrf.mxu0 }
  0xbb   :  { %v13457_v14 = vpop.f32.mrf.mxu3  ;;  %v13461_v16 = vpop.f32.mrf.mxu1 }
  0xc2   :  { %v13463_v17 = vpop.f32.mrf.mxu2  ;;  %v13467_v19 = vpop.f32.mrf.mxu0 }
  0xc3   :  { %v13465_v18 = vpop.f32.mrf.mxu3  ;;  %v13469_v20 = vpop.f32.mrf.mxu1 }
  0xca   :  { %v13471_v21 = vpop.f32.mrf.mxu2  ;;  %v13475_v23 = vpop.f32.mrf.mxu0 }
  0xcb   :  { %v13473_v22 = vpop.f32.mrf.mxu3  ;;  %v13477_v24 = vpop.f32.mrf.mxu1 }
  0xd2   :  { %v13479_v25 = vpop.f32.mrf.mxu2  ;;  %v13483_v27 = vpop.f32.mrf.mxu0 }
  0xd3   :  { %v13481_v26 = vpop.f32.mrf.mxu3  ;;  %v13485_v28 = vpop.f32.mrf.mxu1 }
  0xda   :  { %v13487_v29 = vpop.f32.mrf.mxu2  ;;  %v13491_v31 = vpop.f32.mrf.mxu0 }
  0xdb   :  { %v13489_v30 = vpop.f32.mrf.mxu3  ;;  %v13493_v32 = vpop.f32.mrf.mxu1 }
  0xe2   :  { %v13495_v33 = vpop.f32.mrf.mxu2  ;;  %v13499_v35 = vpop.f32.mrf.mxu0 }
  0xe3   :  { %v13497_v34 = vpop.f32.mrf.mxu3  ;;  %v13501_v36 = vpop.f32.mrf.mxu1 }
  0xe4   :  { %14062 = vst [vmem:[#allocation16_spill] sm:$0xff] %v13501_v36  ;;  %v8776_v36 = vld [vmem:[#allocation3 + $0x18] sm:$0xf0] }
  0xea   :  { %v13503_v40 = vpop.f32.mrf.mxu2  ;;  %v13507_v46 = vpop.f32.mrf.mxu0 }
  0xeb   :  { %14063 = vst [vmem:[#allocation17_spill] sm:$0xff] %v13503_v40  ;;  %v13505_v45 = vpop.f32.mrf.mxu3  ;;  %v13509_v51 = vpop.f32.mrf.mxu1  ;;  %v11978_v40 = vld [vmem:[#allocation3 + $0x14] sm:$0xf0] }
  0xec   :  { %14064 = vst [vmem:[#allocation18_spill] sm:$0xff] %v13505_v45  ;;  %v11984_v45 = vld [vmem:[#allocation3 + $0x4c] sm:$0xf] }
  0xed   :  { %14065 = vst [vmem:[#allocation19_spill] sm:$0xff] %v13507_v46  ;;  %v11986_v46 = vld [vmem:[#allocation3 + $0x54] sm:$0xf0] }
  0xee   :  { %14066 = vst [vmem:[#allocation20_spill] sm:$0xff] %v13509_v51 }
  0xf2   :  { %v13513_v47 = vpop.f32.mrf.mxu2  ;;  %v13517_v54 = vpop.f32.mrf.mxu0 }
  0xf3   :  { %14067 = vst [vmem:[#allocation21_spill] sm:$0xff] %v13513_v47  ;;  %v13515_v53 = vpop.f32.mrf.mxu3  ;;  %v13522_v60 = vpop.f32.mrf.mxu1  ;;  %v11985_v47 = vld [vmem:[#allocation3 + $0x4c] sm:$0xf0] }
  0xf4   :  { %14068 = vst [vmem:[#allocation22_spill] sm:$0xff] %v13515_v53  ;;  %v8840_v53 = vld [vmem:[#allocation3 + $0x98] sm:$0xf0] }
  0xf5   :  { %14069 = vst [vmem:[#allocation23_spill] sm:$0xff] %v13517_v54  ;;  %v11992_v54 = vld [vmem:[#allocation3 + $0x8c] sm:$0xf] }
  0xf6   :  { %14070 = vst [vmem:[#allocation24_spill] sm:$0xff] %v13522_v60  ;;  %v8843_v48 = vor.u32 %v11992_v54, %v8840_v53  ;;  %v8822_v60 = vld [vmem:[#allocation3 + $0x68] sm:$0xf]  ;;  %v8819_v54 = vor.u32 %v11987_v56, %v8816_v38  ;;  %v8800_v56 = vld [vmem:[#allocation3 + $0x50] sm:$0xf0] }
  0xf7   :  { %v8823_v43 = vor.u32 %v11990_v42, %v8822_v60  ;;  %v8806_v60 = vld [vmem:[#allocation3 + $0x48] sm:$0xf]  ;;  %v8803_v42 = vor.u32 %v11983_v0, %v8800_v56 }
  0xf8   :  { %973 = vmatpush.bf16.msra.mxu3 %v8843_v48  ;;  %v8827_v48 = vor.u32 %v11988_v44, %v8824_v50  ;;  %948 = vmatpush.bf16.msra.mxu1 %v8819_v54  ;;  %v8811_v54 = vor.u32 %v11984_v45, %v8808_v37  ;;  %v8784_v44 = vld [vmem:[#allocation3 + $0x30] sm:$0xf0]  ;;  %v8790_v50 = vld [vmem:[#allocation3 + $0x28] sm:$0xf] }
  0xf9   :  { %961 = vmatpush.bf16.msra.mxu2 %v8823_v43 }
  0xfa   :  { %v13529_v61 = vpop.f32.mrf.mxu2  ;;  %v620_v53 = vpop.f32.mrf.mxu0 }
  0xfb   :  { %14071 = vst [vmem:[#allocation25_spill] sm:$0xff] %v13529_v61  ;;  %v13533_v41 = vpop.f32.mrf.mxu3  ;;  %v663_v63 = vadd.f32 %v620_v53, %v218_v58  ;;  %v633_v61 = vpop.f32.mrf.mxu1  ;;  %v8807_v58 = vor.u32 %v11986_v46, %v8806_v60  ;;  %v8782_v53 = vld [vmem:[#allocation3 + $0x20] sm:$0xf] }
  0xfc   :  { %14072 = vst [vmem:[#allocation26_spill] sm:$0xff] %v13533_v41  ;;  %v664_v55 = vadd.f32 %v633_v61, %v257_v62  ;;  %974 = vmatpush.bf16.msra.mxu3 %v8827_v48  ;;  %v8799_v41 = vor.u32 %v11985_v47, %v8798_v57  ;;  %v11981_v61 = vld [vmem:[#allocation3 + $0x2c] sm:$0xf0]  ;;  %v296_v62 = vadd.f32 %v13431_v1, %v13536_v52  ;;  %v11979_v47 = vld [vmem:[#allocation3 + $0x24] sm:$0xf] }
  0xfd   :  { %v8761_v51 = vmul.f32 -1.442695, %v663_v63  ;;  %949 = vmatpush.bf16.msra.mxu1 %v8803_v42  ;;  %v8783_v43 = vor.u32 %v11981_v61, %v8782_v53  ;;  %962 = vmatpush.bf16.msra.mxu2 %v8807_v58  ;;  %v8787_v48 = vor.u32 %v11979_v47, %v8784_v44  ;;  %v8766_v1 = vld [vmem:[#allocation3] sm:$0xf]  ;;  %v11975_v42 = vld [vmem:[#allocation3 + $0x4] sm:$0xf] }
  0xfe   :  { %v8762_v38 = vmul.f32 -1.442695, %v664_v55  ;;  %936 = vmatpush.bf16.msra.mxu0 %v8799_v41  ;;  %v11982_v55 = vld [vmem:[#allocation3 + $0x34] sm:$0xf0]  ;;  %v8792_v41 = vld [vmem:[#allocation3 + $0x38] sm:$0xf0] }
  0xff   :  { %12759 = vpow2.f32 %v8761_v51  ;;  %v11980_v51 = vld [vmem:[#allocation3 + $0x2c] sm:$0xf]  ;;  %v8791_v56 = vor.u32 %v11982_v55, %v8790_v50  ;;  %v8768_v53 = vld [vmem:[#allocation3 + $0x10] sm:$0xf0]  ;;  %v8774_v61 = vld [vmem:[#allocation3 + $0x8] sm:$0xf] }
 0x100   :  { %12761 = vpow2.f32 %v8762_v38  ;;  %975 = vmatpush.bf16.msra.mxu3 %v8811_v54  ;;  %v8795_v60 = vor.u32 %v11980_v51, %v8792_v41  ;;  %v11977_v38 = vld [vmem:[#allocation3 + $0xc] sm:$0xf0]  ;;  %v8771_v47 = vor.u32 %v11975_v42, %v8768_v53  ;;  %v11976_v44 = vld [vmem:[#allocation3 + $0xc] sm:$0xf] }
 0x101   :  { %v8767_v37 = vor.u32 %v11977_v38, %v8766_v1  ;;  %950 = vmatpush.bf16.msra.mxu1 %v8787_v48  ;;  %963 = vmatpush.bf16.msra.mxu2 %v8791_v56  ;;  %v8779_v55 = vor.u32 %v11976_v44, %v8776_v36 }
 0x102   :  { %v646_v63 = vpop.f32.mrf.mxu2  ;;  %v622_v0 = vpop.f32.mrf.mxu0  ;;  %937 = vmatpush.bf16.msra.mxu0 %v8783_v43  ;;  %v13541_v43 = vperm.slane %v13511_v39, 3 }
 0x103   :  { %v665_v46 = vadd.f32 %v646_v63, %v296_v62  ;;  %v659_v57 = vpop.f32.mrf.mxu3  ;;  %v635_v45 = vpop.f32.mrf.mxu1  ;;  %v8775_v63 = vor.u32 %v11978_v40, %v8774_v61 }
 0x104   :  { %976 = vmatpush.bf16.msra.mxu3 %v8795_v60  ;;  %v335_v40 = vadd.f32 %v13433_v2, %v13541_v43 }
 0x105   :  { %v8763_v58 = vmul.f32 -1.442695, %v665_v46  ;;  %v12760_v62 = vpop.eup %12759  ;;  %951 = vmatpush.bf16.msra.mxu1 %v8771_v47  ;;  %964 = vmatpush.bf16.msra.mxu2 %v8775_v63 }
 0x106   :  { %v12762_v54 = vpop.eup %12761  ;;  %v676_v50 = vadd.f32 1.0, %v12760_v62  ;;  %938 = vmatpush.bf16.msra.mxu0 %v8767_v37  ;;  %v666_v60 = vadd.f32 %v659_v57, %v335_v40 }
 0x107   :  { %12763 = vpow2.f32 %v8763_v58  ;;  %v677_v51 = vadd.f32 1.0, %v12762_v54 }
 0x108   :  { %12765 = vrcp.f32 %v676_v50  ;;  %977 = vmatpush.bf16.msra.mxu3 %v8779_v55  ;;  %v690_v45 = vand.u32 2147483648, %v676_v50  ;;  %v688_v61 = vand.u32 2147483647, %v676_v50  ;;  %vm684_vm3 = vweird.f32 %v676_v50 }
 0x109   :  { %12767 = vrcp.f32 %v677_v51  ;;  %v705_v37 = vand.u32 2147483648, %v677_v51  ;;  %v703_v47 = vand.u32 2147483647, %v677_v51  ;;  %vm699_vm4 = vweird.f32 %v677_v51 }
 0x10a   :  { %v648_v48 = vpop.f32.mrf.mxu2  ;;  %v691_v62 = vor.u32 1.1754944e-38, %v690_v45  ;;  %vm689_vm6 = vcmp.eq.f32.partialorder %v688_v61, 8.507059e+37 }
 0x10b   :  { %v661_v41 = vpop.f32.mrf.mxu3  ;;  %v706_v54 = vor.u32 1.1754944e-38, %v705_v37  ;;  %vm704_vm8 = vcmp.eq.f32.partialorder %v703_v47, 8.507059e+37  ;;  %v9009_v47 = vld [vmem:[#allocation3 + $0xe0] sm:$0xf] }
 0x10d   :  { %v12764_v46 = vpop.eup %12763 }
 0x10e   :  { %v678_v0 = vadd.f32 1.0, %v12764_v46  ;;  %v12766_v56 = vpop.eup %12765 }
 0x10f   :  { %v12768_v36 = vpop.eup %12767  ;;  %v680_v1 = vmul.f32 %v12766_v56, %v676_v50  ;;  %vm685_vm1 = vweird.f32 %v12766_v56 }
 0x110   :  { %12769 = vrcp.f32 %v678_v0  ;;  %v695_v38 = vmul.f32 %v12768_v36, %v677_v51  ;;  %vm700_vm2 = vweird.f32 %v12768_v36  ;;  %vm686_vm5 = vmor %vm684_vm3, %vm685_vm1  ;;  %v720_v51 = vand.u32 2147483648, %v678_v0 }
 0x111   :  { %v681_v39 = vsub.f32 1.0, %v680_v1  ;;  %12771 = vtanh.f32 %v666_v60  ;;  %vm701_vm7 = vmor %vm699_vm4, %vm700_vm2  ;;  %vm714_vm10 = vweird.f32 %v678_v0 }
 0x112   :  { %v696_v42 = vsub.f32 1.0, %v695_v38  ;;  %v721_v37 = vor.u32 1.1754944e-38, %v720_v51  ;;  %v12034_v51 = vld [vmem:[#allocation3 + $0xd4] sm:$0xf0] }
 0x113   :  { %v682_v53 = vmul.f32 %v12766_v56, %v681_v39 }
 0x114   :  { %v697_v58 = vmul.f32 %v12768_v36, %v696_v42 }
 0x115   :  { %v683_v2 = vadd.f32 %v12766_v56, %v682_v53 }
 0x116   :  { %v12770_v44 = vpop.eup %12769  ;;  %v698_v63 = vadd.f32 %v12768_v36, %v697_v58 }
 0x117   :  { %v710_v57 = vmul.f32 %v12770_v44, %v678_v0  ;;  %v687_v55 = vsel %vm686_vm5, %v12766_v56, %v683_v2  ;;  %v12772_v48 = vpop.eup %12771  ;;  %vm715_vm9 = vweird.f32 %v12770_v44  ;;  %v718_v56 = vand.u32 2147483647, %v678_v0  ;;  %v12037_v2 = vld [vmem:[#allocation3 + $0xec] sm:$0xf0]  ;;  %v12038_v0 = vld [vmem:[#allocation3 + $0xf4] sm:$0xf0] }
 0x118   :  { %v692_v46 = vsel %vm689_vm6, %v691_v62, %v687_v55  ;;  %v702_v40 = vsel %vm701_vm7, %v12768_v36, %v698_v63  ;;  %vm716_vm11 = vmor %vm714_vm10, %vm715_vm9  ;;  %v9010_v62 = vor.u32 %v12037_v2, %v9009_v47  ;;  %v9011_v63 = vld [vmem:[#allocation3 + $0xf0] sm:$0xf0]  ;;  %v12027_v47 = vld [vmem:[#allocation3 + $0xa4] sm:$0xf] }
 0x119   :  { %v711_v41 = vsub.f32 1.0, %v710_v57  ;;  %v707_v60 = vsel %vm704_vm8, %v706_v54, %v702_v40  ;;  %v726_v1 = vmul.f32 %v12772_v48, %v692_v46  ;;  %vm719_vm12 = vcmp.eq.f32.partialorder %v718_v56, 8.507059e+37  ;;  %v12035_v57 = vld [vmem:[#allocation3 + $0xe4] sm:$0xf]  ;;  %v9017_v54 = vld [vmem:[#allocation3 + $0xe8] sm:$0xf] }
 0x11a   :  { %v725_v39 = vmul.f32 0.0, %v707_v60  ;;  %v9014_v55 = vor.u32 %v12035_v57, %v9011_v63  ;;  %v12036_v48 = vld [vmem:[#allocation3 + $0xec] sm:$0xf]  ;;  %1252 = vmatpush.bf16.msrb.mxu0 %v9010_v62  ;;  %v8993_v40 = vld [vmem:[#allocation3 + $0xc0] sm:$0xf] }
 0x11b   :  { %v712_v38 = vmul.f32 %v12770_v44, %v711_v41  ;;  %v9019_v41 = vld [vmem:[#allocation3 + $0xf8] sm:$0xf0]  ;;  %v12033_v60 = vld [vmem:[#allocation3 + $0xcc] sm:$0xf0]  ;;  %v8979_v57 = vld [vmem:[#allocation3 + $0xb0] sm:$0xf0] }
 0x11c   :  { %v13545_v42 = vadd.f32 %v726_v1, %v725_v39  ;;  %v9022_v46 = vor.u32 %v12036_v48, %v9019_v41  ;;  %1265 = vmatpush.bf16.msrb.mxu1 %v9014_v55  ;;  %v12031_v1 = vld [vmem:[#allocation3 + $0xc4] sm:$0xf]  ;;  %v8995_v39 = vld [vmem:[#allocation3 + $0xd0] sm:$0xf0]  ;;  %v8985_v62 = vld [vmem:[#allocation3 + $0xa8] sm:$0xf] }
 0x11d   :  { %v713_v50 = vadd.f32 %v12770_v44, %v712_v38  ;;  %v8994_v38 = vor.u32 %v12033_v60, %v8993_v40  ;;  %v8998_v56 = vor.u32 %v12031_v1, %v8995_v39  ;;  %v12030_v63 = vld [vmem:[#allocation3 + $0xb4] sm:$0xf0]  ;;  %v12028_v55 = vld [vmem:[#allocation3 + $0xac] sm:$0xf]  ;;  %v8961_v41 = vld [vmem:[#allocation3 + $0x80] sm:$0xf] }
 0x11e   :  { %12773 = vtanh.f32 %v13545_v42  ;;  %1291 = vmatpush.bf16.msrb.mxu3 %v9022_v46  ;;  %v12025_v46 = vld [vmem:[#allocation3 + $0x8c] sm:$0xf0]  ;;  %v12023_v40 = vld [vmem:[#allocation3 + $0x84] sm:$0xf]  ;;  %v8963_v1 = vld [vmem:[#allocation3 + $0x90] sm:$0xf0] }
 0x11f   :  { %v717_v45 = vsel %vm716_vm11, %v12770_v44, %v713_v50  ;;  %v9018_v44 = vor.u32 %v12038_v0, %v9017_v54  ;;  %v9001_v50 = vld [vmem:[#allocation3 + $0xc8] sm:$0xf]  ;;  %1253 = vmatpush.bf16.msrb.mxu0 %v8994_v38  ;;  %v8982_v54 = vor.u32 %v12027_v47, %v8979_v57  ;;  %v8986_v0 = vor.u32 %v12030_v63, %v8985_v62  ;;  %v12026_v39 = vld [vmem:[#allocation3 + $0x94] sm:$0xf0]  ;;  %v8947_v57 = vld [vmem:[#allocation3 + $0x70] sm:$0xf0] }
 0x120   :  { %v722_v36 = vsel %vm719_vm12, %v721_v37, %v717_v45  ;;  %v9002_v45 = vor.u32 %v12034_v51, %v9001_v50  ;;  %v12032_v37 = vld [vmem:[#allocation3 + $0xcc] sm:$0xf]  ;;  %1266 = vmatpush.bf16.msrb.mxu1 %v8998_v56  ;;  %v8962_v60 = vor.u32 %v12025_v46, %v8961_v41  ;;  %v8969_v38 = vld [vmem:[#allocation3 + $0x88] sm:$0xf]  ;;  %v8966_v50 = vor.u32 %v12023_v40, %v8963_v1  ;;  %v12022_v63 = vld [vmem:[#allocation3 + $0x74] sm:$0xf0] }
 0x121   :  { %1278 = vmatpush.bf16.msrb.mxu2 %v9018_v44  ;;  %v8987_v44 = vld [vmem:[#allocation3 + $0xb8] sm:$0xf0]  ;;  %v8970_v51 = vor.u32 %v12026_v39, %v8969_v38  ;;  %v12024_v56 = vld [vmem:[#allocation3 + $0x8c] sm:$0xf]  ;;  %v259_v47 = vadd.f32 %v13437_v4, %v13525_v49  ;;  %v8953_v62 = vld [vmem:[#allocation3 + $0x68] sm:$0xf] }
 0x122   :  { %v8990_v48 = vor.u32 %v12028_v55, %v8987_v44  ;;  %v8954_v44 = vor.u32 %v12022_v63, %v8953_v62  ;;  %v8955_v41 = vld [vmem:[#allocation3 + $0x78] sm:$0xf0]  ;;  %v12017_v1 = vld [vmem:[#allocation3 + $0x4c] sm:$0xf0]  ;;  %v12015_v4 = vld [vmem:[#allocation3 + $0x44] sm:$0xf] }
 0x123   :  { %v12011_v63 = vld [vmem:[#allocation3 + $0x24] sm:$0xf] }
 0x124   :  { %v12774_v53 = vpop.eup %12773  ;;  %1267 = vmatpush.bf16.msrb.mxu1 %v8982_v54 }
 0x125   :  { %v729_v61 = vmul.f32 %v12774_v53, %v722_v36  ;;  %v9003_v53 = vld [vmem:[#allocation3 + $0xd8] sm:$0xf0]  ;;  %1279 = vmatpush.bf16.msrb.mxu2 %v9002_v45 }
 0x126   :  { %v9006_v36 = vor.u32 %v12032_v37, %v9003_v53  ;;  %v8971_v45 = vld [vmem:[#allocation3 + $0x98] sm:$0xf0]  ;;  %v8945_v53 = vld [vmem:[#allocation3 + $0x60] sm:$0xf] }
 0x127   :  { %v730_v58 = vpack.c.bf16 %v729_v61, %v729_v61  ;;  %v8977_v61 = vld [vmem:[#allocation3 + $0xa0] sm:$0xf]  ;;  %v8974_v37 = vor.u32 %v12024_v56, %v8971_v45  ;;  %v8937_v45 = vld [vmem:[#allocation3 + $0x48] sm:$0xf] }
 0x128   :  { %1292 = vmatpush.bf16.msrb.mxu3 %v9006_v36  ;;  %1268 = vmatpush.bf16.msrb.mxu1 %v8966_v50  ;;  %v12021_v36 = vld [vmem:[#allocation3 + $0x6c] sm:$0xf0] }
 0x129   :  { %731 = vst [vmem:[#allocation11] sm:$0xf] %v730_v58  ;;  %939 = vmatmul.bf16.vlgmr.msra.gmra.mxu0 %v730_v58  ;;  %952 = vmatmul.bf16.vlgmr.msra.gmra.mxu1 %v730_v58 }
 0x12a   :  { %965 = vmatmul.bf16.vlgmr.msra.gmra.mxu2 %v730_v58  ;;  %978 = vmatmul.bf16.vlgmr.msra.gmra.mxu3 %v730_v58  ;;  %v12029_v58 = vld [vmem:[#allocation3 + $0xac] sm:$0xf0] }
 0x12b   :  { %v8978_v2 = vor.u32 %v12029_v58, %v8977_v61  ;;  %1280 = vmatpush.bf16.msrb.mxu2 %v8986_v0  ;;  %v12019_v61 = vld [vmem:[#allocation3 + $0x64] sm:$0xf]  ;;  %v220_v58 = vadd.f32 %v13435_v3, %v13520_v59  ;;  %v8929_v3 = vld [vmem:[#allocation3 + $0x40] sm:$0xf] }
 0x12c   :  { %1293 = vmatpush.bf16.msrb.mxu3 %v8990_v48  ;;  %v8950_v55 = vor.u32 %v12019_v61, %v8947_v57  ;;  %v12020_v48 = vld [vmem:[#allocation3 + $0x6c] sm:$0xf]  ;;  %v8930_v50 = vor.u32 %v12017_v1, %v8929_v3  ;;  %v8939_v61 = vld [vmem:[#allocation3 + $0x58] sm:$0xf0] }
 0x12d   :  { %1254 = vmatpush.bf16.msrb.mxu0 %v8978_v2  ;;  %v8946_v2 = vor.u32 %v12021_v36, %v8945_v53  ;;  %v12016_v53 = vld [vmem:[#allocation3 + $0x4c] sm:$0xf] }
 0x12e   :  { %1269 = vmatpush.bf16.msrb.mxu1 %v8950_v55  ;;  %v8942_v57 = vor.u32 %v12016_v53, %v8939_v61  ;;  %v12008_v61 = vld [vmem:[#allocation3 + $0xc] sm:$0xf] }
 0x12f   :  { %1281 = vmatpush.bf16.msrb.mxu2 %v8970_v51  ;;  %v8931_v51 = vld [vmem:[#allocation3 + $0x50] sm:$0xf0] }
 0x130   :  { %1294 = vmatpush.bf16.msrb.mxu3 %v8974_v37  ;;  %v8934_v56 = vor.u32 %v12015_v4, %v8931_v51  ;;  %v12018_v37 = vld [vmem:[#allocation3 + $0x54] sm:$0xf0] }
 0x131   :  { %1255 = vmatpush.bf16.msrb.mxu0 %v8962_v60  ;;  %v8958_v60 = vor.u32 %v12020_v48, %v8955_v41  ;;  %v8938_v36 = vor.u32 %v12018_v37, %v8937_v45  ;;  %v12014_v41 = vld [vmem:[#allocation3 + $0x34] sm:$0xf0]  ;;  %v8905_v45 = vld [vmem:[#allocation3 + $0x8] sm:$0xf] }
 0x132   :  { %1270 = vmatpush.bf16.msrb.mxu1 %v8934_v56  ;;  %v8899_v56 = vld [vmem:[#allocation3 + $0x10] sm:$0xf0]  ;;  %v12010_v37 = vld [vmem:[#allocation3 + $0x14] sm:$0xf0] }
 0x133   :  { %1282 = vmatpush.bf16.msrb.mxu2 %v8954_v44 }
 0x134   :  { %1295 = vmatpush.bf16.msrb.mxu3 %v8958_v60 }
 0x135   :  { %1256 = vmatpush.bf16.msrb.mxu0 %v8946_v2  ;;  %v298_v2 = vadd.f32 %v13439_v5, %v13536_v52 }
 0x137   :  { %1283 = vmatpush.bf16.msrb.mxu2 %v8938_v36 }
 0x138   :  { %1296 = vmatpush.bf16.msrb.mxu3 %v8942_v57 }
 0x139   :  { %1257 = vmatpush.bf16.msrb.mxu0 %v8930_v50  ;;  %v12007_v50 = vld [vmem:[#allocation3 + $0x4] sm:$0xf] }
 0x13a   :  { %v8902_v36 = vor.u32 %v12007_v50, %v8899_v56 }
 0x1a6   :  { %v940_v54 = vpop.f32.mrf.mxu0  ;;  %v953_v0 = vpop.f32.mrf.mxu1 }
 0x1a7   :  { %v983_v46 = vadd.f32 %v940_v54, %v220_v58  ;;  %v984_v40 = vadd.f32 %v953_v0, %v259_v47  ;;  %v8913_v58 = vld [vmem:[#allocation3 + $0x20] sm:$0xf]  ;;  %v12013_v47 = vld [vmem:[#allocation3 + $0x2c] sm:$0xf0]  ;;  %v8915_v54 = vld [vmem:[#allocation3 + $0x30] sm:$0xf0] }
 0x1a8   :  { %v8914_v62 = vor.u32 %v12013_v47, %v8913_v58  ;;  %v8921_v0 = vld [vmem:[#allocation3 + $0x28] sm:$0xf]  ;;  %v8918_v48 = vor.u32 %v12011_v63, %v8915_v54  ;;  %v8907_v58 = vld [vmem:[#allocation3 + $0x18] sm:$0xf0] }
 0x1a9   :  { %v8892_v38 = vmul.f32 -1.442695, %v983_v46  ;;  %v8893_v39 = vmul.f32 -1.442695, %v984_v40  ;;  %v12012_v46 = vld [vmem:[#allocation3 + $0x2c] sm:$0xf]  ;;  %v8922_v4 = vor.u32 %v12014_v41, %v8921_v0  ;;  %v8910_v54 = vor.u32 %v12008_v61, %v8907_v58 }
 0x1aa   :  { %v8923_v40 = vld [vmem:[#allocation3 + $0x38] sm:$0xf0]  ;;  %1258 = vmatpush.bf16.msrb.mxu0 %v8914_v62  ;;  %1271 = vmatpush.bf16.msrb.mxu1 %v8918_v48  ;;  %v337_v41 = vadd.f32 %v13441_v6, %v13541_v43 }
 0x1ab   :  { %12775 = vpow2.f32 %v8892_v38  ;;  %v8926_v5 = vor.u32 %v12012_v46, %v8923_v40  ;;  %v8897_v38 = vld [vmem:[#allocation3] sm:$0xf]  ;;  %1284 = vmatpush.bf16.msrb.mxu2 %v8922_v4 }
 0x1ac   :  { %12777 = vpow2.f32 %v8893_v39  ;;  %v12009_v39 = vld [vmem:[#allocation3 + $0xc] sm:$0xf0] }
 0x1ad   :  { %v966_v55 = vpop.f32.mrf.mxu2  ;;  %v979_v44 = vpop.f32.mrf.mxu3  ;;  %v8898_v51 = vor.u32 %v12009_v39, %v8897_v38  ;;  %1297 = vmatpush.bf16.msrb.mxu3 %v8926_v5 }
 0x1ae   :  { %v985_v60 = vadd.f32 %v966_v55, %v298_v2  ;;  %v942_v3 = vpop.f32.mrf.mxu0  ;;  %v955_v1 = vpop.f32.mrf.mxu1  ;;  %v8906_v2 = vor.u32 %v12010_v37, %v8905_v45  ;;  %1272 = vmatpush.bf16.msrb.mxu1 %v8902_v36 }
 0x1af   :  { %1259 = vmatpush.bf16.msrb.mxu0 %v8898_v51 }
 0x1b0   :  { %v8894_v53 = vmul.f32 -1.442695, %v985_v60  ;;  %1285 = vmatpush.bf16.msrb.mxu2 %v8906_v2  ;;  %v986_v60 = vadd.f32 %v979_v44, %v337_v41 }
 0x1b1   :  { %v12776_v47 = vpop.eup %12775  ;;  %1298 = vmatpush.bf16.msrb.mxu3 %v8910_v54 }
 0x1b2   :  { %v12778_v63 = vpop.eup %12777  ;;  %v996_v57 = vadd.f32 1.0, %v12776_v47  ;;  %12779 = vpow2.f32 %v8894_v53 }
 0x1b3   :  { %v997_v0 = vadd.f32 1.0, %v12778_v63 }
 0x1b4   :  { %12781 = vrcp.f32 %v996_v57  ;;  %v1010_v39 = vand.u32 2147483648, %v996_v57  ;;  %v1008_v56 = vand.u32 2147483647, %v996_v57  ;;  %vm1004_vm15 = vweird.f32 %v996_v57 }
 0x1b5   :  { %12783 = vrcp.f32 %v997_v0  ;;  %v968_v62 = vpop.f32.mrf.mxu2  ;;  %v981_v55 = vpop.f32.mrf.mxu3  ;;  %v1025_v50 = vand.u32 2147483648, %v997_v0  ;;  %v1023_v37 = vand.u32 2147483647, %v997_v0  ;;  %vm1019_vm0 = vweird.f32 %v997_v0 }
 0x1b6   :  { %v1011_v36 = vor.u32 1.1754944e-38, %v1010_v39  ;;  %vm1009_vm3 = vcmp.eq.f32.partialorder %v1008_v56, 8.507059e+37  ;;  %v12067_v56 = vld [vmem:[#allocation3 + $0xe4] sm:$0xf] }
 0x1b7   :  { %v1026_v58 = vor.u32 1.1754944e-38, %v1025_v50  ;;  %vm1024_vm4 = vcmp.eq.f32.partialorder %v1023_v37, 8.507059e+37  ;;  %v9142_v37 = vld [vmem:[#allocation3 + $0xf0] sm:$0xf0] }
 0x1b8   :  { %v12780_v48 = vpop.eup %12779 }
 0x1b9   :  { %v998_v46 = vadd.f32 1.0, %v12780_v48 }
 0x1ba   :  { %v12782_v40 = vpop.eup %12781 }
 0x1bb   :  { %v12784_v3 = vpop.eup %12783  ;;  %v1000_v1 = vmul.f32 %v12782_v40, %v996_v57  ;;  %12785 = vrcp.f32 %v998_v46  ;;  %vm1005_vm13 = vweird.f32 %v12782_v40  ;;  %vm1034_vm6 = vweird.f32 %v998_v46 }
 0x1bc   :  { %v1015_v4 = vmul.f32 %v12784_v3, %v997_v0  ;;  %12787 = vtanh.f32 %v986_v60  ;;  %vm1020_vm14 = vweird.f32 %v12784_v3  ;;  %vm1006_vm1 = vmor %vm1004_vm15, %vm1005_vm13 }
 0x1bd   :  { %v1001_v5 = vsub.f32 1.0, %v1000_v1  ;;  %vm1021_vm2 = vmor %vm1019_vm0, %vm1020_vm14  ;;  %v1040_v1 = vand.u32 2147483648, %v998_v46 }
 0x1be   :  { %v1016_v38 = vsub.f32 1.0, %v1015_v4 }
 0x1bf   :  { %v1002_v51 = vmul.f32 %v12782_v40, %v1001_v5  ;;  %v1041_v5 = vor.u32 1.1754944e-38, %v1040_v1  ;;  %v9134_v1 = vld [vmem:[#allocation3 + $0xd8] sm:$0xf0] }
 0x1c0   :  { %v1017_v45 = vmul.f32 %v12784_v3, %v1016_v38 }
 0x1c1   :  { %v12786_v53 = vpop.eup %12785  ;;  %v1003_v6 = vadd.f32 %v12782_v40, %v1002_v51  ;;  %v12069_v51 = vld [vmem:[#allocation3 + $0xec] sm:$0xf0] }
 0x1c2   :  { %v1030_v44 = vmul.f32 %v12786_v53, %v998_v46  ;;  %v1018_v61 = vadd.f32 %v12784_v3, %v1017_v45  ;;  %v12788_v2 = vpop.eup %12787  ;;  %vm1035_vm5 = vweird.f32 %v12786_v53 }
 0x1c3   :  { %v1007_v47 = vsel %vm1006_vm1, %v12782_v40, %v1003_v6  ;;  %v1038_v40 = vand.u32 2147483647, %v998_v46  ;;  %vm1036_vm7 = vmor %vm1034_vm6, %vm1035_vm5  ;;  %v9148_v6 = vld [vmem:[#allocation3 + $0xe8] sm:$0xf]  ;;  %v12070_v46 = vld [vmem:[#allocation3 + $0xf4] sm:$0xf0] }
 0x1c4   :  { %v1031_v63 = vsub.f32 1.0, %v1030_v44  ;;  %v1012_v54 = vsel %vm1009_vm3, %v1011_v36, %v1007_v47  ;;  %v1022_v62 = vsel %vm1021_vm2, %v12784_v3, %v1018_v61  ;;  %v9145_v44 = vor.u32 %v12067_v56, %v9142_v37  ;;  %v12068_v36 = vld [vmem:[#allocation3 + $0xec] sm:$0xf]  ;;  %v9150_v61 = vld [vmem:[#allocation3 + $0xf8] sm:$0xf0] }
 0x1c5   :  { %v1027_v55 = vsel %vm1024_vm4, %v1026_v58, %v1022_v62  ;;  %v1046_v48 = vmul.f32 %v12788_v2, %v1012_v54  ;;  %vm1039_vm8 = vcmp.eq.f32.partialorder %v1038_v40, 8.507059e+37  ;;  %v9153_v58 = vor.u32 %v12068_v36, %v9150_v61  ;;  %v9124_v47 = vld [vmem:[#allocation3 + $0xc0] sm:$0xf]  ;;  %v12065_v2 = vld [vmem:[#allocation3 + $0xcc] sm:$0xf0] }
 0x1c6   :  { %v1032_v41 = vmul.f32 %v12786_v53, %v1031_v63  ;;  %v1045_v60 = vmul.f32 %v1027_v55, %v13545_v42  ;;  %v9140_v42 = vld [vmem:[#allocation3 + $0xe0] sm:$0xf]  ;;  %1586 = vmatpush.bf16.msra.mxu1 %v9145_v44  ;;  %v12063_v63 = vld [vmem:[#allocation3 + $0xc4] sm:$0xf]  ;;  %v9125_v54 = vor.u32 %v12065_v2, %v9124_v47  ;;  %v9126_v62 = vld [vmem:[#allocation3 + $0xd0] sm:$0xf0] }
 0x1c7   :  { %v9141_v45 = vor.u32 %v12069_v51, %v9140_v42  ;;  %1612 = vmatpush.bf16.msra.mxu3 %v9153_v58  ;;  %v9132_v55 = vld [vmem:[#allocation3 + $0xc8] sm:$0xf]  ;;  %v12062_v42 = vld [vmem:[#allocation3 + $0xb4] sm:$0xf0]  ;;  %v9118_v37 = vld [vmem:[#allocation3 + $0xb8] sm:$0xf0] }
 0x1c8   :  { %v13557_v57 = vadd.f32 %v1046_v48, %v1045_v60  ;;  %v1033_v0 = vadd.f32 %v12786_v53, %v1032_v41  ;;  %v12066_v48 = vld [vmem:[#allocation3 + $0xd4] sm:$0xf0]  ;;  %v9129_v41 = vor.u32 %v12063_v63, %v9126_v62  ;;  %v12057_v44 = vld [vmem:[#allocation3 + $0x8c] sm:$0xf0]  ;;  %v9094_v61 = vld [vmem:[#allocation3 + $0x90] sm:$0xf0] }
 0x1c9   :  { %1573 = vmatpush.bf16.msra.mxu0 %v9141_v45  ;;  %v9133_v60 = vor.u32 %v12066_v48, %v9132_v55  ;;  %v12060_v45 = vld [vmem:[#allocation3 + $0xac] sm:$0xf]  ;;  %v9100_v58 = vld [vmem:[#allocation3 + $0x88] sm:$0xf]  ;;  %v12058_v47 = vld [vmem:[#allocation3 + $0x94] sm:$0xf0] }
 0x1ca   :  { %12789 = vtanh.f32 %v13557_v57  ;;  %v1037_v4 = vsel %vm1036_vm7, %v12786_v53, %v1033_v0  ;;  %v9149_v53 = vor.u32 %v12070_v46, %v9148_v6  ;;  %v12064_v0 = vld [vmem:[#allocation3 + $0xcc] sm:$0xf]  ;;  %1587 = vmatpush.bf16.msra.mxu1 %v9129_v41  ;;  %v9121_v6 = vor.u32 %v12060_v45, %v9118_v37  ;;  %v9092_v46 = vld [vmem:[#allocation3 + $0x80] sm:$0xf]  ;;  %v9102_v62 = vld [vmem:[#allocation3 + $0x98] sm:$0xf0] }
 0x1cb   :  { %v1042_v38 = vsel %vm1039_vm8, %v1041_v5, %v1037_v4  ;;  %v9137_v40 = vor.u32 %v12064_v0, %v9134_v1  ;;  %v9108_v4 = vld [vmem:[#allocation3 + $0xa0] sm:$0xf]  ;;  %v12061_v5 = vld [vmem:[#allocation3 + $0xac] sm:$0xf0]  ;;  %v9093_v36 = vor.u32 %v12057_v44, %v9092_v46  ;;  %v9101_v63 = vor.u32 %v12058_v47, %v9100_v58  ;;  %v9068_v47 = vld [vmem:[#allocation3 + $0x48] sm:$0xf] }
 0x1cc   :  { %1599 = vmatpush.bf16.msra.mxu2 %v9149_v53  ;;  %v12055_v53 = vld [vmem:[#allocation3 + $0x84] sm:$0xf]  ;;  %v9076_v48 = vld [vmem:[#allocation3 + $0x60] sm:$0xf]  ;;  %v12053_v41 = vld [vmem:[#allocation3 + $0x6c] sm:$0xf0]  ;;  %v223_v0 = vadd.f32 %v13443_v7, %v13520_v59  ;;  %v262_v1 = vadd.f32 %v13445_v8, %v13525_v49 }
 0x1cd   :  { %1574 = vmatpush.bf16.msra.mxu0 %v9125_v54  ;;  %1613 = vmatpush.bf16.msra.mxu3 %v9137_v40  ;;  %v9097_v2 = vor.u32 %v12055_v53, %v9094_v61  ;;  %v12056_v54 = vld [vmem:[#allocation3 + $0x8c] sm:$0xf]  ;;  %v9077_v40 = vor.u32 %v12053_v41, %v9076_v48  ;;  %v9060_v7 = vld [vmem:[#allocation3 + $0x40] sm:$0xf]  ;;  %v12049_v46 = vld [vmem:[#allocation3 + $0x4c] sm:$0xf0]  ;;  %v301_v41 = vadd.f32 %v13447_v9, %v13536_v52 }
 0x1ce   :  { %v9105_v55 = vor.u32 %v12056_v54, %v9102_v62  ;;  %v12047_v8 = vld [vmem:[#allocation3 + $0x44] sm:$0xf]  ;;  %v9062_v61 = vld [vmem:[#allocation3 + $0x50] sm:$0xf0]  ;;  %v9070_v62 = vld [vmem:[#allocation3 + $0x58] sm:$0xf0] }
 0x1cf   :  { %v9065_v58 = vor.u32 %v12047_v8, %v9062_v61  ;;  %v12045_v48 = vld [vmem:[#allocation3 + $0x2c] sm:$0xf0] }
 0x1d0   :  { %v12790_v3 = vpop.eup %12789  ;;  %1600 = vmatpush.bf16.msra.mxu2 %v9133_v60  ;;  %v12051_v60 = vld [vmem:[#allocation3 + $0x64] sm:$0xf] }
 0x1d1   :  { %v1049_v39 = vmul.f32 %v12790_v3, %v1042_v38  ;;  %v12059_v3 = vld [vmem:[#allocation3 + $0xa4] sm:$0xf]  ;;  %v9109_v38 = vor.u32 %v12061_v5, %v9108_v4  ;;  %1614 = vmatpush.bf16.msra.mxu3 %v9121_v6  ;;  %v9078_v4 = vld [vmem:[#allocation3 + $0x70] sm:$0xf0]  ;;  %v9084_v5 = vld [vmem:[#allocation3 + $0x68] sm:$0xf] }
 0x1d3   :  { %v1050_v50 = vpack.c.bf16 %v1049_v39, %v1049_v39  ;;  %v9110_v39 = vld [vmem:[#allocation3 + $0xb0] sm:$0xf0]  ;;  %1575 = vmatpush.bf16.msra.mxu0 %v9109_v38 }
 0x1d4   :  { %v9113_v51 = vor.u32 %v12059_v3, %v9110_v39  ;;  %v12054_v3 = vld [vmem:[#allocation3 + $0x74] sm:$0xf0] }
 0x1d5   :  { %1052 = vst [vmem:[#allocation11 + $0x4] sm:$0xf] %v1050_v50  ;;  %1260 = vmatmul.bf16.vlgmr.msrb.gmra.mxu0 %v1050_v50  ;;  %1273 = vmatmul.bf16.vlgmr.msrb.gmra.mxu1 %v1050_v50 }
 0x1d6   :  { %1286 = vmatmul.bf16.vlgmr.msrb.gmra.mxu2 %v1050_v50  ;;  %1299 = vmatmul.bf16.vlgmr.msrb.gmra.mxu3 %v1050_v50  ;;  %v9116_v50 = vld [vmem:[#allocation3 + $0xa8] sm:$0xf] }
 0x1d7   :  { %v9117_v56 = vor.u32 %v12062_v42, %v9116_v50  ;;  %1588 = vmatpush.bf16.msra.mxu1 %v9113_v51  ;;  %1576 = vmatpush.bf16.msra.mxu0 %v9093_v36  ;;  %v9081_v50 = vor.u32 %v12051_v60, %v9078_v4  ;;  %v9085_v42 = vor.u32 %v12054_v3, %v9084_v5  ;;  %v12052_v51 = vld [vmem:[#allocation3 + $0x6c] sm:$0xf]  ;;  %v9052_v4 = vld [vmem:[#allocation3 + $0x28] sm:$0xf] }
 0x1d8   :  { %1615 = vmatpush.bf16.msra.mxu3 %v9105_v55  ;;  %v9061_v36 = vor.u32 %v12049_v46, %v9060_v7  ;;  %v9044_v55 = vld [vmem:[#allocation3 + $0x20] sm:$0xf]  ;;  %v12041_v7 = vld [vmem:[#allocation3 + $0xc] sm:$0xf0]  ;;  %v12039_v46 = vld [vmem:[#allocation3 + $0x4] sm:$0xf] }
 0x1d9   :  { %1601 = vmatpush.bf16.msra.mxu2 %v9117_v56  ;;  %v9086_v56 = vld [vmem:[#allocation3 + $0x78] sm:$0xf0] }
 0x1da   :  { %v9089_v6 = vor.u32 %v12052_v51, %v9086_v56 }
 0x1db   :  { %1589 = vmatpush.bf16.msra.mxu1 %v9097_v2  ;;  %1577 = vmatpush.bf16.msra.mxu0 %v9077_v40  ;;  %v12050_v2 = vld [vmem:[#allocation3 + $0x54] sm:$0xf0]  ;;  %v9046_v40 = vld [vmem:[#allocation3 + $0x30] sm:$0xf0] }
 0x1dc   :  { %1616 = vmatpush.bf16.msra.mxu3 %v9089_v6  ;;  %v9069_v54 = vor.u32 %v12050_v2, %v9068_v47  ;;  %v9028_v6 = vld [vmem:[#allocation3] sm:$0xf]  ;;  %v12040_v47 = vld [vmem:[#allocation3 + $0xc] sm:$0xf]  ;;  %v9038_v2 = vld [vmem:[#allocation3 + $0x18] sm:$0xf0] }
 0x1dd   :  { %1602 = vmatpush.bf16.msra.mxu2 %v9101_v63  ;;  %v12048_v63 = vld [vmem:[#allocation3 + $0x4c] sm:$0xf]  ;;  %v9029_v8 = vor.u32 %v12041_v7, %v9028_v6 }
 0x1de   :  { %v9073_v60 = vor.u32 %v12048_v63, %v9070_v62 }
 0x1df   :  { %1590 = vmatpush.bf16.msra.mxu1 %v9081_v50  ;;  %1578 = vmatpush.bf16.msra.mxu0 %v9061_v36  ;;  %v12044_v50 = vld [vmem:[#allocation3 + $0x2c] sm:$0xf]  ;;  %v12042_v36 = vld [vmem:[#allocation3 + $0x14] sm:$0xf0] }
 0x1e0   :  { %1617 = vmatpush.bf16.msra.mxu3 %v9073_v60 }
 0x1e1   :  { %1603 = vmatpush.bf16.msra.mxu2 %v9085_v42  ;;  %v9054_v42 = vld [vmem:[#allocation3 + $0x38] sm:$0xf0] }
 0x1e2   :  { %v9057_v9 = vor.u32 %v12044_v50, %v9054_v42 }
 0x1e3   :  { %1591 = vmatpush.bf16.msra.mxu1 %v9065_v58 }
 0x1e4   :  { %1618 = vmatpush.bf16.msra.mxu3 %v9057_v9 }
 0x1e5   :  { %1604 = vmatpush.bf16.msra.mxu2 %v9069_v54 }
 0x252   :  { %v1261_v38 = vpop.f32.mrf.mxu0  ;;  %v1274_v39 = vpop.f32.mrf.mxu1 }
 0x253   :  { %v1304_v45 = vadd.f32 %v1261_v38, %v223_v0  ;;  %v1305_v37 = vadd.f32 %v1274_v39, %v262_v1  ;;  %v9045_v0 = vor.u32 %v12045_v48, %v9044_v55  ;;  %v12043_v1 = vld [vmem:[#allocation3 + $0x24] sm:$0xf]  ;;  %v12046_v39 = vld [vmem:[#allocation3 + $0x34] sm:$0xf0]  ;;  %v9041_v48 = vor.u32 %v12040_v47, %v9038_v2 }
 0x254   :  { %v9049_v38 = vor.u32 %v12043_v1, %v9046_v40  ;;  %v340_v40 = vadd.f32 %v13449_v10, %v13541_v43 }
 0x255   :  { %v9023_v44 = vmul.f32 -1.442695, %v1304_v45  ;;  %v9024_v53 = vmul.f32 -1.442695, %v1305_v37  ;;  %v9053_v37 = vor.u32 %v12046_v39, %v9052_v4  ;;  %1579 = vmatpush.bf16.msra.mxu0 %v9045_v0  ;;  %1619 = vmatpush.bf16.msra.mxu3 %v9041_v48 }
 0x256   :  { %1592 = vmatpush.bf16.msra.mxu1 %v9049_v38 }
 0x257   :  { %12791 = vpow2.f32 %v9023_v44  ;;  %v9030_v44 = vld [vmem:[#allocation3 + $0x10] sm:$0xf0]  ;;  %1605 = vmatpush.bf16.msra.mxu2 %v9053_v37 }
 0x258   :  { %12793 = vpow2.f32 %v9024_v53  ;;  %v9036_v53 = vld [vmem:[#allocation3 + $0x8] sm:$0xf]  ;;  %v9033_v58 = vor.u32 %v12039_v46, %v9030_v44 }
 0x259   :  { %v1287_v5 = vpop.f32.mrf.mxu2  ;;  %v1300_v3 = vpop.f32.mrf.mxu3  ;;  %v9037_v54 = vor.u32 %v12042_v36, %v9036_v53  ;;  %1580 = vmatpush.bf16.msra.mxu0 %v9029_v8 }
 0x25a   :  { %v1306_v51 = vadd.f32 %v1287_v5, %v301_v41  ;;  %v1263_v56 = vpop.f32.mrf.mxu0  ;;  %v1276_v45 = vpop.f32.mrf.mxu1  ;;  %1593 = vmatpush.bf16.msra.mxu1 %v9033_v58  ;;  %v1307_v38 = vadd.f32 %v1300_v3, %v340_v40 }
 0x25b   :  { %1606 = vmatpush.bf16.msra.mxu2 %v9037_v54 }
 0x25c   :  { %v9025_v61 = vmul.f32 -1.442695, %v1306_v51 }
 0x25d   :  { %v12792_v63 = vpop.eup %12791 }
 0x25e   :  { %v12794_v62 = vpop.eup %12793  ;;  %v1317_v55 = vadd.f32 1.0, %v12792_v63  ;;  %12795 = vpow2.f32 %v9025_v61 }
 0x25f   :  { %v1318_v41 = vadd.f32 1.0, %v12794_v62 }
 0x260   :  { %12797 = vrcp.f32 %v1317_v55  ;;  %v1331_v45 = vand.u32 2147483648, %v1317_v55  ;;  %v1329_v6 = vand.u32 2147483647, %v1317_v55  ;;  %vm1325_vm11 = vweird.f32 %v1317_v55 }
 0x261   :  { %12799 = vrcp.f32 %v1318_v41  ;;  %v1289_v60 = vpop.f32.mrf.mxu2  ;;  %v1302_v0 = vpop.f32.mrf.mxu3  ;;  %v1346_v37 = vand.u32 2147483648, %v1318_v41  ;;  %v1344_v46 = vand.u32 2147483647, %v1318_v41  ;;  %vm1340_vm12 = vweird.f32 %v1318_v41 }
 0x262   :  { %v1332_v44 = vor.u32 1.1754944e-38, %v1331_v45  ;;  %vm1330_vm15 = vcmp.eq.f32.partialorder %v1329_v6, 8.507059e+37 }
 0x263   :  { %v1347_v36 = vor.u32 1.1754944e-38, %v1346_v37  ;;  %vm1345_vm0 = vcmp.eq.f32.partialorder %v1344_v46, 8.507059e+37  ;;  %v9273_v37 = vld [vmem:[#allocation3 + $0xf0] sm:$0xf0]  ;;  %v12100_v46 = vld [vmem:[#allocation3 + $0xec] sm:$0xf] }
 0x264   :  { %v12796_v1 = vpop.eup %12795 }
 0x265   :  { %v1319_v4 = vadd.f32 1.0, %v12796_v1 }
 0x266   :  { %v12798_v5 = vpop.eup %12797 }
 0x267   :  { %v12800_v39 = vpop.eup %12799  ;;  %v1321_v50 = vmul.f32 %v12798_v5, %v1317_v55  ;;  %12801 = vrcp.f32 %v1319_v4  ;;  %vm1326_vm9 = vweird.f32 %v12798_v5  ;;  %v1361_v0 = vand.u32 2147483648, %v1319_v4 }
 0x268   :  { %v1336_v42 = vmul.f32 %v12800_v39, %v1318_v41  ;;  %12803 = vtanh.f32 %v1307_v38  ;;  %vm1341_vm10 = vweird.f32 %v12800_v39  ;;  %vm1327_vm13 = vmor %vm1325_vm11, %vm1326_vm9  ;;  %vm1355_vm2 = vweird.f32 %v1319_v4 }
 0x269   :  { %v1322_v51 = vsub.f32 1.0, %v1321_v50  ;;  %vm1342_vm14 = vmor %vm1340_vm12, %vm1341_vm10  ;;  %v1359_v1 = vand.u32 2147483647, %v1319_v4 }
 0x26a   :  { %v1337_v56 = vsub.f32 1.0, %v1336_v42 }
 0x26b   :  { %v1323_v9 = vmul.f32 %v12798_v5, %v1322_v51  ;;  %vm1360_vm4 = vcmp.eq.f32.partialorder %v1359_v1, 8.507059e+37  ;;  %v12101_v51 = vld [vmem:[#allocation3 + $0xec] sm:$0xf0] }
 0x26c   :  { %v1338_v7 = vmul.f32 %v12800_v39, %v1337_v56  ;;  %v12099_v56 = vld [vmem:[#allocation3 + $0xe4] sm:$0xf] }
 0x26d   :  { %v12802_v8 = vpop.eup %12801  ;;  %v1324_v10 = vadd.f32 %v12798_v5, %v1323_v9  ;;  %v9279_v9 = vld [vmem:[#allocation3 + $0xe8] sm:$0xf]  ;;  %v9276_v6 = vor.u32 %v12099_v56, %v9273_v37  ;;  %v9223_v56 = vld [vmem:[#allocation3 + $0x80] sm:$0xf]  ;;  %v12087_v37 = vld [vmem:[#allocation3 + $0x84] sm:$0xf] }
 0x26e   :  { %v1351_v3 = vmul.f32 %v12802_v8, %v1319_v4  ;;  %v1339_v53 = vadd.f32 %v12800_v39, %v1338_v7  ;;  %v12804_v58 = vpop.eup %12803  ;;  %vm1356_vm1 = vweird.f32 %v12802_v8  ;;  %v12102_v4 = vld [vmem:[#allocation3 + $0xf4] sm:$0xf0] }
 0x26f   :  { %v1328_v61 = vsel %vm1327_vm13, %v12798_v5, %v1324_v10  ;;  %vm1357_vm3 = vmor %vm1355_vm2, %vm1356_vm1  ;;  %v1362_v5 = vor.u32 1.1754944e-38, %v1361_v0  ;;  %v9280_v7 = vor.u32 %v12102_v4, %v9279_v9  ;;  %1907 = vmatpush.bf16.msrb.mxu1 %v9276_v6  ;;  %v12091_v0 = vld [vmem:[#allocation3 + $0xa4] sm:$0xf]  ;;  %v9225_v4 = vld [vmem:[#allocation3 + $0x90] sm:$0xf0] }
 0x270   :  { %v1352_v47 = vsub.f32 1.0, %v1351_v3  ;;  %v1333_v2 = vsel %vm1330_vm15, %v1332_v44, %v1328_v61  ;;  %v1343_v63 = vsel %vm1342_vm14, %v12800_v39, %v1339_v53  ;;  %v9255_v3 = vld [vmem:[#allocation3 + $0xc0] sm:$0xf]  ;;  %v12097_v44 = vld [vmem:[#allocation3 + $0xcc] sm:$0xf0] }
 0x271   :  { %v1348_v54 = vsel %vm1345_vm0, %v1347_v36, %v1343_v63  ;;  %v1367_v62 = vmul.f32 %v12804_v58, %v1333_v2  ;;  %1920 = vmatpush.bf16.msrb.mxu2 %v9280_v7  ;;  %v12095_v53 = vld [vmem:[#allocation3 + $0xc4] sm:$0xf]  ;;  %v9256_v36 = vor.u32 %v12097_v44, %v9255_v3  ;;  %v9257_v61 = vld [vmem:[#allocation3 + $0xd0] sm:$0xf0]  ;;  %v9263_v58 = vld [vmem:[#allocation3 + $0xc8] sm:$0xf] }
 0x272   :  { %v1353_v48 = vmul.f32 %v12802_v8, %v1352_v47  ;;  %v1366_v60 = vmul.f32 %v1348_v54, %v13557_v57  ;;  %v9271_v57 = vld [vmem:[#allocation3 + $0xe0] sm:$0xf]  ;;  %v12098_v47 = vld [vmem:[#allocation3 + $0xd4] sm:$0xf0]  ;;  %v9260_v2 = vor.u32 %v12095_v53, %v9257_v61  ;;  %v12096_v54 = vld [vmem:[#allocation3 + $0xcc] sm:$0xf] }
 0x273   :  { %v9272_v45 = vor.u32 %v12101_v51, %v9271_v57  ;;  %v9264_v63 = vor.u32 %v12098_v47, %v9263_v58  ;;  %v9249_v57 = vld [vmem:[#allocation3 + $0xb8] sm:$0xf0]  ;;  %v9231_v6 = vld [vmem:[#allocation3 + $0x88] sm:$0xf]  ;;  %v12090_v7 = vld [vmem:[#allocation3 + $0x94] sm:$0xf0]  ;;  %v225_v58 = vadd.f32 %v13451_v11, %v13520_v59  ;;  %v264_v47 = vadd.f32 %v13453_v12, %v13525_v49 }
 0x274   :  { %v13569_v55 = vadd.f32 %v1367_v62, %v1366_v60  ;;  %v1354_v41 = vadd.f32 %v12802_v8, %v1353_v48  ;;  %v9265_v62 = vld [vmem:[#allocation3 + $0xd8] sm:$0xf0]  ;;  %1908 = vmatpush.bf16.msrb.mxu1 %v9260_v2  ;;  %v9239_v60 = vld [vmem:[#allocation3 + $0xa0] sm:$0xf]  ;;  %v12083_v61 = vld [vmem:[#allocation3 + $0x64] sm:$0xf] }
 0x275   :  { %1894 = vmatpush.bf16.msrb.mxu0 %v9272_v45  ;;  %v9268_v48 = vor.u32 %v12096_v54, %v9265_v62  ;;  %1921 = vmatpush.bf16.msrb.mxu2 %v9264_v63  ;;  %v12089_v45 = vld [vmem:[#allocation3 + $0x8c] sm:$0xf0]  ;;  %v9233_v3 = vld [vmem:[#allocation3 + $0x98] sm:$0xf0]  ;;  %v9207_v53 = vld [vmem:[#allocation3 + $0x60] sm:$0xf] }
 0x276   :  { %12805 = vtanh.f32 %v13569_v55  ;;  %v1358_v40 = vsel %vm1357_vm3, %v12802_v8, %v1354_v41  ;;  %v9281_v8 = vld [vmem:[#allocation3 + $0xf8] sm:$0xf0]  ;;  %v12093_v41 = vld [vmem:[#allocation3 + $0xac] sm:$0xf0]  ;;  %v9224_v9 = vor.u32 %v12089_v45, %v9223_v56  ;;  %v9209_v63 = vld [vmem:[#allocation3 + $0x70] sm:$0xf0] }
 0x277   :  { %v1363_v39 = vsel %vm1360_vm4, %v1362_v5, %v1358_v40  ;;  %v9284_v10 = vor.u32 %v12100_v46, %v9281_v8  ;;  %v9240_v1 = vor.u32 %v12093_v41, %v9239_v60  ;;  %v9241_v40 = vld [vmem:[#allocation3 + $0xb0] sm:$0xf0]  ;;  %v9247_v5 = vld [vmem:[#allocation3 + $0xa8] sm:$0xf]  ;;  %v9228_v46 = vor.u32 %v12087_v37, %v9225_v4  ;;  %v12086_v62 = vld [vmem:[#allocation3 + $0x74] sm:$0xf0] }
 0x278   :  { %v9232_v8 = vor.u32 %v12090_v7, %v9231_v6  ;;  %v9215_v54 = vld [vmem:[#allocation3 + $0x68] sm:$0xf]  ;;  %v9212_v41 = vor.u32 %v12083_v61, %v9209_v63  ;;  %v9191_v11 = vld [vmem:[#allocation3 + $0x40] sm:$0xf]  ;;  %v12079_v12 = vld [vmem:[#allocation3 + $0x44] sm:$0xf] }
 0x279   :  { %1933 = vmatpush.bf16.msrb.mxu3 %v9284_v10  ;;  %1895 = vmatpush.bf16.msrb.mxu0 %v9256_v36  ;;  %v12088_v10 = vld [vmem:[#allocation3 + $0x8c] sm:$0xf]  ;;  %v12085_v36 = vld [vmem:[#allocation3 + $0x6c] sm:$0xf0]  ;;  %v9193_v56 = vld [vmem:[#allocation3 + $0x50] sm:$0xf0] }
 0x27a   :  { %v9236_v44 = vor.u32 %v12088_v10, %v9233_v3  ;;  %v9208_v2 = vor.u32 %v12085_v36, %v9207_v53  ;;  %v9196_v45 = vor.u32 %v12079_v12, %v9193_v56  ;;  %v9199_v37 = vld [vmem:[#allocation3 + $0x48] sm:$0xf]  ;;  %v12080_v4 = vld [vmem:[#allocation3 + $0x4c] sm:$0xf]  ;;  %v9201_v7 = vld [vmem:[#allocation3 + $0x58] sm:$0xf0]  ;;  %v303_v10 = vadd.f32 %v13455_v13, %v13536_v52 }
 0x27b   :  { %v9204_v3 = vor.u32 %v12080_v4, %v9201_v7  ;;  %v12075_v53 = vld [vmem:[#allocation3 + $0x24] sm:$0xf]  ;;  %v9177_v36 = vld [vmem:[#allocation3 + $0x30] sm:$0xf0]  ;;  %v9183_v61 = vld [vmem:[#allocation3 + $0x28] sm:$0xf] }
 0x27c   :  { %v12806_v38 = vpop.eup %12805  ;;  %v12078_v63 = vld [vmem:[#allocation3 + $0x34] sm:$0xf0] }
 0x27d   :  { %v1370_v50 = vmul.f32 %v12806_v38, %v1363_v39  ;;  %1934 = vmatpush.bf16.msrb.mxu3 %v9268_v48  ;;  %v12094_v38 = vld [vmem:[#allocation3 + $0xb4] sm:$0xf0]  ;;  %v9244_v39 = vor.u32 %v12091_v0, %v9241_v40  ;;  %1896 = vmatpush.bf16.msrb.mxu0 %v9240_v1  ;;  %v9216_v0 = vor.u32 %v12086_v62, %v9215_v54  ;;  %v12084_v1 = vld [vmem:[#allocation3 + $0x6c] sm:$0xf]  ;;  %v9217_v40 = vld [vmem:[#allocation3 + $0x78] sm:$0xf0] }
 0x27e   :  { %v12076_v54 = vld [vmem:[#allocation3 + $0x2c] sm:$0xf]  ;;  %v9185_v62 = vld [vmem:[#allocation3 + $0x38] sm:$0xf0] }
 0x27f   :  { %v1371_v42 = vpack.c.bf16 %v1370_v50, %v1370_v50  ;;  %v9248_v50 = vor.u32 %v12094_v38, %v9247_v5  ;;  %1909 = vmatpush.bf16.msrb.mxu1 %v9244_v39  ;;  %v9220_v39 = vor.u32 %v12084_v1, %v9217_v40  ;;  %v9188_v13 = vor.u32 %v12076_v54, %v9185_v62  ;;  %v9159_v1 = vld [vmem:[#allocation3] sm:$0xf]  ;;  %v12073_v40 = vld [vmem:[#allocation3 + $0xc] sm:$0xf0] }
 0x281   :  { %1373 = vst [vmem:[#allocation11 + $0x8] sm:$0xf] %v1371_v42  ;;  %1581 = vmatmul.bf16.vlgmr.msra.gmra.mxu0 %v1371_v42  ;;  %1594 = vmatmul.bf16.vlgmr.msra.gmra.mxu1 %v1371_v42 }
 0x282   :  { %1607 = vmatmul.bf16.vlgmr.msra.gmra.mxu2 %v1371_v42  ;;  %1620 = vmatmul.bf16.vlgmr.msra.gmra.mxu3 %v1371_v42  ;;  %v12092_v42 = vld [vmem:[#allocation3 + $0xac] sm:$0xf] }
 0x283   :  { %v9252_v51 = vor.u32 %v12092_v42, %v9249_v57  ;;  %1922 = vmatpush.bf16.msrb.mxu2 %v9248_v50  ;;  %1897 = vmatpush.bf16.msrb.mxu0 %v9224_v9  ;;  %v12081_v50 = vld [vmem:[#allocation3 + $0x4c] sm:$0xf0]  ;;  %v12082_v9 = vld [vmem:[#allocation3 + $0x54] sm:$0xf0] }
 0x284   :  { %1910 = vmatpush.bf16.msrb.mxu1 %v9228_v46  ;;  %v9200_v6 = vor.u32 %v12082_v9, %v9199_v37  ;;  %v9175_v46 = vld [vmem:[#allocation3 + $0x20] sm:$0xf] }
 0x285   :  { %1935 = vmatpush.bf16.msrb.mxu3 %v9252_v51  ;;  %v9192_v51 = vor.u32 %v12081_v50, %v9191_v11  ;;  %v9167_v11 = vld [vmem:[#allocation3 + $0x8] sm:$0xf]  ;;  %v12074_v50 = vld [vmem:[#allocation3 + $0x14] sm:$0xf0] }
 0x287   :  { %1923 = vmatpush.bf16.msrb.mxu2 %v9232_v8  ;;  %1898 = vmatpush.bf16.msrb.mxu0 %v9208_v2  ;;  %v12077_v8 = vld [vmem:[#allocation3 + $0x2c] sm:$0xf0]  ;;  %v9180_v2 = vor.u32 %v12075_v53, %v9177_v36 }
 0x288   :  { %1911 = vmatpush.bf16.msrb.mxu1 %v9212_v41 }
 0x289   :  { %1936 = vmatpush.bf16.msrb.mxu3 %v9236_v44  ;;  %v9176_v44 = vor.u32 %v12077_v8, %v9175_v46 }
 0x28b   :  { %1924 = vmatpush.bf16.msrb.mxu2 %v9216_v0  ;;  %1899 = vmatpush.bf16.msrb.mxu0 %v9192_v51  ;;  %v9184_v0 = vor.u32 %v12078_v63, %v9183_v61  ;;  %v9169_v51 = vld [vmem:[#allocation3 + $0x18] sm:$0xf0] }
 0x28c   :  { %1912 = vmatpush.bf16.msrb.mxu1 %v9196_v45  ;;  %v9168_v45 = vor.u32 %v12074_v50, %v9167_v11 }
 0x28d   :  { %1937 = vmatpush.bf16.msrb.mxu3 %v9220_v39  ;;  %v9161_v39 = vld [vmem:[#allocation3 + $0x10] sm:$0xf0] }
 0x28f   :  { %1925 = vmatpush.bf16.msrb.mxu2 %v9200_v6  ;;  %1900 = vmatpush.bf16.msrb.mxu0 %v9176_v44 }
 0x290   :  { %1913 = vmatpush.bf16.msrb.mxu1 %v9180_v2 }
 0x291   :  { %1938 = vmatpush.bf16.msrb.mxu3 %v9204_v3 }
 0x293   :  { %1926 = vmatpush.bf16.msrb.mxu2 %v9184_v0 }
 0x295   :  { %1939 = vmatpush.bf16.msrb.mxu3 %v9188_v13 }
 0x297   :  { %1927 = vmatpush.bf16.msrb.mxu2 %v9168_v45 }
 0x2fe   :  { %v1582_v48 = vpop.f32.mrf.mxu0  ;;  %v1595_v60 = vpop.f32.mrf.mxu1 }
 0x2ff   :  { %v1625_v5 = vadd.f32 %v1582_v48, %v225_v58  ;;  %v1626_v38 = vadd.f32 %v1595_v60, %v264_v47 }
 0x301   :  { %v9154_v42 = vmul.f32 -1.442695, %v1625_v5  ;;  %v9155_v57 = vmul.f32 -1.442695, %v1626_v38  ;;  %v12071_v5 = vld [vmem:[#allocation3 + $0x4] sm:$0xf]  ;;  %v9160_v38 = vor.u32 %v12073_v40, %v9159_v1 }
 0x303   :  { %12807 = vpow2.f32 %v9154_v42  ;;  %v9164_v42 = vor.u32 %v12071_v5, %v9161_v39  ;;  %1901 = vmatpush.bf16.msrb.mxu0 %v9160_v38 }
 0x304   :  { %12809 = vpow2.f32 %v9155_v57  ;;  %v12072_v57 = vld [vmem:[#allocation3 + $0xc] sm:$0xf] }
 0x305   :  { %v1608_v58 = vpop.f32.mrf.mxu2  ;;  %v1621_v47 = vpop.f32.mrf.mxu3  ;;  %v9172_v4 = vor.u32 %v12072_v57, %v9169_v51  ;;  %1914 = vmatpush.bf16.msrb.mxu1 %v9164_v42 }
 0x306   :  { %v1627_v48 = vadd.f32 %v1608_v58, %v303_v10  ;;  %v1584_v60 = vpop.f32.mrf.mxu0  ;;  %v1597_v41 = vpop.f32.mrf.mxu1  ;;  %v342_v10 = vadd.f32 %v13457_v14, %v13541_v43 }
 0x307   :  { %1940 = vmatpush.bf16.msrb.mxu3 %v9172_v4 }
 0x308   :  { %v9156_v12 = vmul.f32 -1.442695, %v1627_v48  ;;  %v1628_v53 = vadd.f32 %v1621_v47, %v342_v10 }
 0x309   :  { %v12808_v56 = vpop.eup %12807 }
 0x30a   :  { %v12810_v37 = vpop.eup %12809  ;;  %v1638_v9 = vadd.f32 1.0, %v12808_v56  ;;  %12811 = vpow2.f32 %v9156_v12 }
 0x30b   :  { %v1639_v6 = vadd.f32 1.0, %v12810_v37 }
 0x30c   :  { %12813 = vrcp.f32 %v1638_v9  ;;  %v1652_v54 = vand.u32 2147483648, %v1638_v9  ;;  %v1650_v60 = vand.u32 2147483647, %v1638_v9  ;;  %vm1646_vm7 = vweird.f32 %v1638_v9 }
 0x30d   :  { %12815 = vrcp.f32 %v1639_v6  ;;  %v1610_v7 = vpop.f32.mrf.mxu2  ;;  %v1623_v46 = vpop.f32.mrf.mxu3  ;;  %v1667_v62 = vand.u32 2147483648, %v1639_v6  ;;  %v1665_v0 = vand.u32 2147483647, %v1639_v6  ;;  %vm1661_vm8 = vweird.f32 %v1639_v6 }
 0x30e   :  { %v1653_v1 = vor.u32 1.1754944e-38, %v1652_v54  ;;  %vm1651_vm11 = vcmp.eq.f32.partialorder %v1650_v60, 8.507059e+37 }
 0x30f   :  { %v1668_v5 = vor.u32 1.1754944e-38, %v1667_v62  ;;  %vm1666_vm12 = vcmp.eq.f32.partialorder %v1665_v0, 8.507059e+37  ;;  %v12132_v62 = vld [vmem:[#allocation3 + $0xec] sm:$0xf]  ;;  %v12129_v0 = vld [vmem:[#allocation3 + $0xcc] sm:$0xf0] }
 0x310   :  { %v12812_v8 = vpop.eup %12811 }
 0x311   :  { %v1640_v3 = vadd.f32 1.0, %v12812_v8 }
 0x312   :  { %v12814_v44 = vpop.eup %12813 }
 0x313   :  { %v12816_v36 = vpop.eup %12815  ;;  %v1642_v61 = vmul.f32 %v12814_v44, %v1638_v9  ;;  %12817 = vrcp.f32 %v1640_v3  ;;  %vm1647_vm5 = vweird.f32 %v12814_v44  ;;  %v1682_v9 = vand.u32 2147483648, %v1640_v3 }
 0x314   :  { %v1657_v58 = vmul.f32 %v12816_v36, %v1639_v6  ;;  %12819 = vtanh.f32 %v1628_v53  ;;  %vm1662_vm6 = vweird.f32 %v12816_v36  ;;  %vm1648_vm9 = vmor %vm1646_vm7, %vm1647_vm5  ;;  %vm1676_vm14 = vweird.f32 %v1640_v3  ;;  %v12133_v53 = vld [vmem:[#allocation3 + $0xec] sm:$0xf0] }
 0x315   :  { %v1643_v2 = vsub.f32 1.0, %v1642_v61  ;;  %vm1663_vm10 = vmor %vm1661_vm8, %vm1662_vm6  ;;  %v1680_v4 = vand.u32 2147483647, %v1640_v3  ;;  %v1683_v7 = vor.u32 1.1754944e-38, %v1682_v9  ;;  %v12126_v9 = vld [vmem:[#allocation3 + $0xb4] sm:$0xf0] }
 0x316   :  { %v1658_v63 = vsub.f32 1.0, %v1657_v58  ;;  %v9404_v58 = vld [vmem:[#allocation3 + $0xf0] sm:$0xf0] }
 0x317   :  { %v1644_v48 = vmul.f32 %v12814_v44, %v1643_v2  ;;  %vm1681_vm0 = vcmp.eq.f32.partialorder %v1680_v4, 8.507059e+37  ;;  %v9410_v2 = vld [vmem:[#allocation3 + $0xe8] sm:$0xf] }
 0x318   :  { %v1659_v41 = vmul.f32 %v12816_v36, %v1658_v63 }
 0x319   :  { %v12818_v13 = vpop.eup %12817  ;;  %v1645_v14 = vadd.f32 %v12814_v44, %v1644_v48  ;;  %v9412_v48 = vld [vmem:[#allocation3 + $0xf8] sm:$0xf0] }
 0x31a   :  { %v1672_v47 = vmul.f32 %v12818_v13, %v1640_v3  ;;  %v1660_v40 = vadd.f32 %v12816_v36, %v1659_v41  ;;  %v12820_v39 = vpop.eup %12819  ;;  %vm1677_vm13 = vweird.f32 %v12818_v13  ;;  %v12134_v3 = vld [vmem:[#allocation3 + $0xf4] sm:$0xf0]  ;;  %v9415_v60 = vor.u32 %v12132_v62, %v9412_v48  ;;  %v9386_v41 = vld [vmem:[#allocation3 + $0xc0] sm:$0xf] }
 0x31b   :  { %v1649_v38 = vsel %vm1648_vm9, %v12814_v44, %v1645_v14  ;;  %vm1678_vm15 = vmor %vm1676_vm14, %vm1677_vm13  ;;  %v9411_v54 = vor.u32 %v12134_v3, %v9410_v2  ;;  %v9387_v14 = vor.u32 %v12129_v0, %v9386_v41  ;;  %v9338_v48 = vld [vmem:[#allocation3 + $0x60] sm:$0xf]  ;;  %v12115_v41 = vld [vmem:[#allocation3 + $0x64] sm:$0xf]  ;;  %v228_v0 = vadd.f32 %v13459_v15, %v13520_v59 }
 0x31c   :  { %v1673_v11 = vsub.f32 1.0, %v1672_v47  ;;  %v1654_v50 = vsel %vm1651_vm11, %v1653_v1, %v1649_v38  ;;  %v1664_v12 = vsel %vm1663_vm10, %v12816_v36, %v1660_v40  ;;  %v12131_v36 = vld [vmem:[#allocation3 + $0xe4] sm:$0xf]  ;;  %2254 = vmatpush.bf16.msra.mxu3 %v9415_v60  ;;  %v9388_v47 = vld [vmem:[#allocation3 + $0xd0] sm:$0xf0] }
 0x31d   :  { %v1669_v42 = vsel %vm1666_vm12, %v1668_v5, %v1664_v12  ;;  %v1688_v57 = vmul.f32 %v12820_v39, %v1654_v50  ;;  %v9407_v63 = vor.u32 %v12131_v36, %v9404_v58  ;;  %2241 = vmatpush.bf16.msra.mxu2 %v9411_v54  ;;  %v9394_v1 = vld [vmem:[#allocation3 + $0xc8] sm:$0xf]  ;;  %v12130_v40 = vld [vmem:[#allocation3 + $0xd4] sm:$0xf0]  ;;  %v12128_v39 = vld [vmem:[#allocation3 + $0xcc] sm:$0xf] }
 0x31e   :  { %v1674_v51 = vmul.f32 %v12818_v13, %v1673_v11  ;;  %v1687_v56 = vmul.f32 %v1669_v42, %v13569_v55  ;;  %v9402_v55 = vld [vmem:[#allocation3 + $0xe0] sm:$0xf]  ;;  %v9395_v38 = vor.u32 %v12130_v40, %v9394_v1  ;;  %v9396_v11 = vld [vmem:[#allocation3 + $0xd8] sm:$0xf0]  ;;  %v12125_v42 = vld [vmem:[#allocation3 + $0xac] sm:$0xf0] }
 0x31f   :  { %v9403_v61 = vor.u32 %v12133_v53, %v9402_v55  ;;  %2228 = vmatpush.bf16.msra.mxu1 %v9407_v63  ;;  %v9399_v50 = vor.u32 %v12128_v39, %v9396_v11  ;;  %v9370_v12 = vld [vmem:[#allocation3 + $0xa0] sm:$0xf]  ;;  %v12119_v55 = vld [vmem:[#allocation3 + $0x84] sm:$0xf]  ;;  %v9356_v36 = vld [vmem:[#allocation3 + $0x90] sm:$0xf0] }
 0x320   :  { %v13581_v45 = vadd.f32 %v1688_v57, %v1687_v56  ;;  %v1675_v37 = vadd.f32 %v12818_v13, %v1674_v51  ;;  %v12123_v57 = vld [vmem:[#allocation3 + $0xa4] sm:$0xf]  ;;  %v9371_v51 = vor.u32 %v12125_v42, %v9370_v12  ;;  %v9372_v56 = vld [vmem:[#allocation3 + $0xb0] sm:$0xf0]  ;;  %v12122_v58 = vld [vmem:[#allocation3 + $0x94] sm:$0xf0]  ;;  %v9359_v2 = vor.u32 %v12119_v55, %v9356_v36 }
 0x321   :  { %2215 = vmatpush.bf16.msra.mxu0 %v9403_v61  ;;  %2242 = vmatpush.bf16.msra.mxu2 %v9395_v38  ;;  %v9375_v4 = vor.u32 %v12123_v57, %v9372_v56  ;;  %v9362_v61 = vld [vmem:[#allocation3 + $0x88] sm:$0xf]  ;;  %v12120_v63 = vld [vmem:[#allocation3 + $0x8c] sm:$0xf]  ;;  %v9364_v54 = vld [vmem:[#allocation3 + $0x98] sm:$0xf0] }
 0x322   :  { %12821 = vtanh.f32 %v13581_v45  ;;  %v1679_v6 = vsel %vm1678_vm15, %v12818_v13, %v1675_v37  ;;  %v12127_v13 = vld [vmem:[#allocation3 + $0xc4] sm:$0xf]  ;;  %2255 = vmatpush.bf16.msra.mxu3 %v9399_v50  ;;  %v9378_v37 = vld [vmem:[#allocation3 + $0xa8] sm:$0xf]  ;;  %v9363_v3 = vor.u32 %v12122_v58, %v9362_v61  ;;  %v9367_v62 = vor.u32 %v12120_v63, %v9364_v54  ;;  %v12117_v60 = vld [vmem:[#allocation3 + $0x6c] sm:$0xf0] }
 0x323   :  { %v1684_v8 = vsel %vm1681_vm0, %v1683_v7, %v1679_v6  ;;  %v9391_v5 = vor.u32 %v12127_v13, %v9388_v47  ;;  %v9379_v6 = vor.u32 %v12126_v9, %v9378_v37  ;;  %v12124_v7 = vld [vmem:[#allocation3 + $0xac] sm:$0xf]  ;;  %v267_v13 = vadd.f32 %v13461_v16, %v13525_v49  ;;  %v9340_v47 = vld [vmem:[#allocation3 + $0x70] sm:$0xf0]  ;;  %v9346_v1 = vld [vmem:[#allocation3 + $0x68] sm:$0xf] }
 0x324   :  { %v12118_v40 = vld [vmem:[#allocation3 + $0x74] sm:$0xf0]  ;;  %v9343_v39 = vor.u32 %v12115_v41, %v9340_v47  ;;  %v12116_v50 = vld [vmem:[#allocation3 + $0x6c] sm:$0xf]  ;;  %v9348_v12 = vld [vmem:[#allocation3 + $0x78] sm:$0xf0]  ;;  %v306_v61 = vadd.f32 %v13463_v17, %v13536_v52 }
 0x325   :  { %2216 = vmatpush.bf16.msra.mxu0 %v9387_v14  ;;  %2229 = vmatpush.bf16.msra.mxu1 %v9391_v5  ;;  %v9339_v14 = vor.u32 %v12117_v60, %v9338_v48  ;;  %v9347_v11 = vor.u32 %v12118_v40, %v9346_v1  ;;  %v9322_v15 = vld [vmem:[#allocation3 + $0x40] sm:$0xf]  ;;  %v12113_v56 = vld [vmem:[#allocation3 + $0x4c] sm:$0xf0]  ;;  %v12111_v16 = vld [vmem:[#allocation3 + $0x44] sm:$0xf] }
 0x326   :  { %2243 = vmatpush.bf16.msra.mxu2 %v9379_v6  ;;  %v9324_v6 = vld [vmem:[#allocation3 + $0x50] sm:$0xf0]  ;;  %v9332_v55 = vld [vmem:[#allocation3 + $0x58] sm:$0xf0]  ;;  %v12109_v36 = vld [vmem:[#allocation3 + $0x2c] sm:$0xf0] }
 0x327   :  { %v9308_v63 = vld [vmem:[#allocation3 + $0x30] sm:$0xf0]  ;;  %v9314_v54 = vld [vmem:[#allocation3 + $0x28] sm:$0xf]  ;;  %v12110_v41 = vld [vmem:[#allocation3 + $0x34] sm:$0xf0] }
 0x328   :  { %v12822_v46 = vpop.eup %12821  ;;  %v9315_v40 = vor.u32 %v12110_v41, %v9314_v54 }
 0x329   :  { %v1691_v10 = vmul.f32 %v12822_v46, %v1684_v8  ;;  %v9380_v46 = vld [vmem:[#allocation3 + $0xb8] sm:$0xf0]  ;;  %2217 = vmatpush.bf16.msra.mxu0 %v9371_v51  ;;  %2230 = vmatpush.bf16.msra.mxu1 %v9375_v4  ;;  %v9351_v51 = vor.u32 %v12116_v50, %v9348_v12  ;;  %v9323_v4 = vor.u32 %v12113_v56, %v9322_v15  ;;  %v9292_v50 = vld [vmem:[#allocation3 + $0x10] sm:$0xf0]  ;;  %v9298_v12 = vld [vmem:[#allocation3 + $0x8] sm:$0xf] }
 0x32a   :  { %v9383_v8 = vor.u32 %v12124_v7, %v9380_v46  ;;  %2244 = vmatpush.bf16.msra.mxu2 %v9363_v3  ;;  %v9327_v7 = vor.u32 %v12111_v16, %v9324_v6  ;;  %v9330_v46 = vld [vmem:[#allocation3 + $0x48] sm:$0xf]  ;;  %v12107_v3 = vld [vmem:[#allocation3 + $0x24] sm:$0xf]  ;;  %v12104_v15 = vld [vmem:[#allocation3 + $0xc] sm:$0xf] }
 0x32b   :  { %v1692_v44 = vpack.c.bf16 %v1691_v10, %v1691_v10  ;;  %v9354_v10 = vld [vmem:[#allocation3 + $0x80] sm:$0xf]  ;;  %v9311_v60 = vor.u32 %v12107_v3, %v9308_v63  ;;  %v9300_v56 = vld [vmem:[#allocation3 + $0x18] sm:$0xf0] }
 0x32c   :  { %2256 = vmatpush.bf16.msra.mxu3 %v9383_v8  ;;  %v12114_v8 = vld [vmem:[#allocation3 + $0x54] sm:$0xf0]  ;;  %v9303_v6 = vor.u32 %v12104_v15, %v9300_v56 }
 0x32d   :  { %1694 = vst [vmem:[#allocation11 + $0xc] sm:$0xf] %v1692_v44  ;;  %1902 = vmatmul.bf16.vlgmr.msrb.gmra.mxu0 %v1692_v44  ;;  %1915 = vmatmul.bf16.vlgmr.msrb.gmra.mxu1 %v1692_v44 }
 0x32e   :  { %1928 = vmatmul.bf16.vlgmr.msrb.gmra.mxu2 %v1692_v44  ;;  %1941 = vmatmul.bf16.vlgmr.msrb.gmra.mxu3 %v1692_v44  ;;  %v12121_v44 = vld [vmem:[#allocation3 + $0x8c] sm:$0xf0] }
 0x32f   :  { %v9355_v53 = vor.u32 %v12121_v44, %v9354_v10  ;;  %2231 = vmatpush.bf16.msra.mxu1 %v9359_v2  ;;  %2245 = vmatpush.bf16.msra.mxu2 %v9347_v11  ;;  %v12112_v10 = vld [vmem:[#allocation3 + $0x4c] sm:$0xf]  ;;  %v9331_v44 = vor.u32 %v12114_v8, %v9330_v46 }
 0x330   :  { %2257 = vmatpush.bf16.msra.mxu3 %v9367_v62  ;;  %v9335_v58 = vor.u32 %v12112_v10, %v9332_v55 }
 0x331   :  { %2218 = vmatpush.bf16.msra.mxu0 %v9355_v53  ;;  %v9306_v53 = vld [vmem:[#allocation3 + $0x20] sm:$0xf] }
 0x332   :  { %v9307_v2 = vor.u32 %v12109_v36, %v9306_v53 }
 0x333   :  { %2232 = vmatpush.bf16.msra.mxu1 %v9343_v39  ;;  %2246 = vmatpush.bf16.msra.mxu2 %v9331_v44  ;;  %v12103_v39 = vld [vmem:[#allocation3 + $0x4] sm:$0xf]  ;;  %v345_v44 = vadd.f32 %v13465_v18, %v13541_v43 }
 0x334   :  { %2258 = vmatpush.bf16.msra.mxu3 %v9351_v51  ;;  %v9295_v51 = vor.u32 %v12103_v39, %v9292_v50 }
 0x335   :  { %2219 = vmatpush.bf16.msra.mxu0 %v9339_v14 }
 0x337   :  { %2233 = vmatpush.bf16.msra.mxu1 %v9327_v7  ;;  %2247 = vmatpush.bf16.msra.mxu2 %v9315_v40 }
 0x338   :  { %2259 = vmatpush.bf16.msra.mxu3 %v9335_v58 }
 0x339   :  { %2220 = vmatpush.bf16.msra.mxu0 %v9323_v4 }
 0x33b   :  { %2234 = vmatpush.bf16.msra.mxu1 %v9311_v60 }
 0x33d   :  { %2221 = vmatpush.bf16.msra.mxu0 %v9307_v2 }
 0x33f   :  { %2235 = vmatpush.bf16.msra.mxu1 %v9295_v51 }
 0x3aa   :  { %v1903_v5 = vpop.f32.mrf.mxu0  ;;  %v1916_v38 = vpop.f32.mrf.mxu1 }
 0x3ab   :  { %v1946_v42 = vadd.f32 %v1903_v5, %v228_v0  ;;  %v1947_v57 = vadd.f32 %v1916_v38, %v267_v13  ;;  %v12108_v0 = vld [vmem:[#allocation3 + $0x2c] sm:$0xf]  ;;  %v9316_v13 = vld [vmem:[#allocation3 + $0x38] sm:$0xf0]  ;;  %v9290_v5 = vld [vmem:[#allocation3] sm:$0xf] }
 0x3ac   :  { %v9319_v17 = vor.u32 %v12108_v0, %v9316_v13  ;;  %v12105_v38 = vld [vmem:[#allocation3 + $0xc] sm:$0xf0] }
 0x3ad   :  { %v9285_v37 = vmul.f32 -1.442695, %v1946_v42  ;;  %v9286_v9 = vmul.f32 -1.442695, %v1947_v57  ;;  %v9291_v11 = vor.u32 %v12105_v38, %v9290_v5  ;;  %v12106_v42 = vld [vmem:[#allocation3 + $0x14] sm:$0xf0] }
 0x3ae   :  { %2260 = vmatpush.bf16.msra.mxu3 %v9319_v17 }
 0x3af   :  { %12823 = vpow2.f32 %v9285_v37  ;;  %v9299_v37 = vor.u32 %v12106_v42, %v9298_v12  ;;  %2222 = vmatpush.bf16.msra.mxu0 %v9291_v11 }
 0x3b0   :  { %12825 = vpow2.f32 %v9286_v9 }
 0x3b1   :  { %v1929_v62 = vpop.f32.mrf.mxu2  ;;  %v1942_v48 = vpop.f32.mrf.mxu3  ;;  %2248 = vmatpush.bf16.msra.mxu2 %v9299_v37 }
 0x3b2   :  { %v1948_v14 = vadd.f32 %v1929_v62, %v306_v61  ;;  %v1905_v47 = vpop.f32.mrf.mxu0  ;;  %v1918_v1 = vpop.f32.mrf.mxu1  ;;  %2261 = vmatpush.bf16.msra.mxu3 %v9303_v6  ;;  %v1949_v36 = vadd.f32 %v1942_v48, %v345_v44 }
 0x3b4   :  { %v9287_v57 = vmul.f32 -1.442695, %v1948_v14 }
 0x3b5   :  { %v12824_v16 = vpop.eup %12823 }
 0x3b6   :  { %v12826_v9 = vpop.eup %12825  ;;  %v1959_v4 = vadd.f32 1.0, %v12824_v16  ;;  %12827 = vpow2.f32 %v9287_v57 }
 0x3b7   :  { %v1960_v7 = vadd.f32 1.0, %v12826_v9 }
 0x3b8   :  { %12829 = vrcp.f32 %v1959_v4  ;;  %v1973_v54 = vand.u32 2147483648, %v1959_v4  ;;  %v1971_v41 = vand.u32 2147483647, %v1959_v4  ;;  %vm1967_vm3 = vweird.f32 %v1959_v4 }
 0x3b9   :  { %12831 = vrcp.f32 %v1960_v7  ;;  %v1931_v46 = vpop.f32.mrf.mxu2  ;;  %v1944_v8 = vpop.f32.mrf.mxu3  ;;  %v1988_v62 = vand.u32 2147483648, %v1960_v7  ;;  %v1986_v13 = vand.u32 2147483647, %v1960_v7  ;;  %vm1982_vm4 = vweird.f32 %v1960_v7 }
 0x3ba   :  { %v1974_v47 = vor.u32 1.1754944e-38, %v1973_v54  ;;  %vm1972_vm7 = vcmp.eq.f32.partialorder %v1971_v41, 8.507059e+37  ;;  %v12165_v8 = vld [vmem:[#allocation3 + $0xec] sm:$0xf0]  ;;  %v9517_v54 = vld [vmem:[#allocation3 + $0xc0] sm:$0xf] }
 0x3bb   :  { %v1989_v40 = vor.u32 1.1754944e-38, %v1988_v62  ;;  %vm1987_vm8 = vcmp.eq.f32.partialorder %v1986_v13, 8.507059e+37  ;;  %v12161_v62 = vld [vmem:[#allocation3 + $0xcc] sm:$0xf0]  ;;  %v9525_v13 = vld [vmem:[#allocation3 + $0xc8] sm:$0xf] }
 0x3bc   :  { %v12828_v10 = vpop.eup %12827  ;;  %v9518_v41 = vor.u32 %v12161_v62, %v9517_v54  ;;  %v9471_v54 = vld [vmem:[#allocation3 + $0x70] sm:$0xf0]  ;;  %v9477_v62 = vld [vmem:[#allocation3 + $0x68] sm:$0xf] }
 0x3bd   :  { %v1961_v55 = vadd.f32 1.0, %v12828_v10  ;;  %v12163_v10 = vld [vmem:[#allocation3 + $0xe4] sm:$0xf] }
 0x3be   :  { %v12830_v53 = vpop.eup %12829 }
 0x3bf   :  { %v12832_v61 = vpop.eup %12831  ;;  %v1963_v58 = vmul.f32 %v12830_v53, %v1959_v4  ;;  %12833 = vrcp.f32 %v1961_v55  ;;  %vm1968_vm1 = vweird.f32 %v12830_v53  ;;  %v2003_v56 = vand.u32 2147483648, %v1961_v55 }
 0x3c0   :  { %v1978_v2 = vmul.f32 %v12832_v61, %v1960_v7  ;;  %12835 = vtanh.f32 %v1949_v36  ;;  %vm1983_vm2 = vweird.f32 %v12832_v61  ;;  %vm1969_vm5 = vmor %vm1967_vm3, %vm1968_vm1  ;;  %vm1997_vm10 = vweird.f32 %v1961_v55  ;;  %v9541_v36 = vld [vmem:[#allocation3 + $0xe8] sm:$0xf] }
 0x3c1   :  { %v1964_v3 = vsub.f32 1.0, %v1963_v58  ;;  %vm1984_vm6 = vmor %vm1982_vm4, %vm1983_vm2  ;;  %v2001_v16 = vand.u32 2147483647, %v1961_v55  ;;  %v2004_v9 = vor.u32 1.1754944e-38, %v2003_v56  ;;  %v9511_v56 = vld [vmem:[#allocation3 + $0xb8] sm:$0xf0] }
 0x3c2   :  { %v1979_v63 = vsub.f32 1.0, %v1978_v2  ;;  %v12164_v2 = vld [vmem:[#allocation3 + $0xec] sm:$0xf] }
 0x3c3   :  { %v1965_v60 = vmul.f32 %v12830_v53, %v1964_v3  ;;  %vm2002_vm12 = vcmp.eq.f32.partialorder %v2001_v16, 8.507059e+37  ;;  %v9543_v3 = vld [vmem:[#allocation3 + $0xf8] sm:$0xf0] }
 0x3c4   :  { %v1980_v0 = vmul.f32 %v12832_v61, %v1979_v63  ;;  %v9546_v63 = vor.u32 %v12164_v2, %v9543_v3  ;;  %v230_v2 = vadd.f32 %v13467_v19, %v13520_v59  ;;  %v269_v3 = vadd.f32 %v13469_v20, %v13525_v49  ;;  %v9453_v19 = vld [vmem:[#allocation3 + $0x40] sm:$0xf]  ;;  %v12143_v20 = vld [vmem:[#allocation3 + $0x44] sm:$0xf] }
 0x3c5   :  { %v12834_v14 = vpop.eup %12833  ;;  %v1966_v18 = vadd.f32 %v12830_v53, %v1965_v60  ;;  %v12159_v60 = vld [vmem:[#allocation3 + $0xc4] sm:$0xf] }
 0x3c6   :  { %v1993_v48 = vmul.f32 %v12834_v14, %v1961_v55  ;;  %v1981_v1 = vadd.f32 %v12832_v61, %v1980_v0  ;;  %v12836_v5 = vpop.eup %12835  ;;  %vm1998_vm9 = vweird.f32 %v12834_v14  ;;  %v12166_v55 = vld [vmem:[#allocation3 + $0xf4] sm:$0xf0]  ;;  %2575 = vmatpush.bf16.msrb.mxu3 %v9546_v63  ;;  %v9519_v0 = vld [vmem:[#allocation3 + $0xd0] sm:$0xf0] }
 0x3c7   :  { %v1970_v17 = vsel %vm1969_vm5, %v12830_v53, %v1966_v18  ;;  %vm1999_vm11 = vmor %vm1997_vm10, %vm1998_vm9  ;;  %v9535_v53 = vld [vmem:[#allocation3 + $0xf0] sm:$0xf0]  ;;  %v9542_v58 = vor.u32 %v12166_v55, %v9541_v36  ;;  %v9522_v18 = vor.u32 %v12159_v60, %v9519_v0  ;;  %v9469_v55 = vld [vmem:[#allocation3 + $0x60] sm:$0xf] }
 0x3c8   :  { %v1994_v38 = vsub.f32 1.0, %v1993_v48  ;;  %v1975_v39 = vsel %vm1972_vm7, %v1974_v47, %v1970_v17  ;;  %v1985_v11 = vsel %vm1984_vm6, %v12832_v61, %v1981_v1  ;;  %v9538_v61 = vor.u32 %v12163_v10, %v9535_v53  ;;  %v12160_v47 = vld [vmem:[#allocation3 + $0xcc] sm:$0xf]  ;;  %v9527_v1 = vld [vmem:[#allocation3 + $0xd8] sm:$0xf0] }
 0x3c9   :  { %v1990_v50 = vsel %vm1987_vm8, %v1989_v40, %v1985_v11  ;;  %v2009_v12 = vmul.f32 %v12836_v5, %v1975_v39  ;;  %2562 = vmatpush.bf16.msrb.mxu2 %v9542_v58  ;;  %v9530_v40 = vor.u32 %v12160_v47, %v9527_v1  ;;  %v9501_v17 = vld [vmem:[#allocation3 + $0xa0] sm:$0xf]  ;;  %v12157_v5 = vld [vmem:[#allocation3 + $0xac] sm:$0xf0]  ;;  %v9503_v11 = vld [vmem:[#allocation3 + $0xb0] sm:$0xf0] }
 0x3ca   :  { %v1995_v42 = vmul.f32 %v12834_v14, %v1994_v38  ;;  %v2008_v57 = vmul.f32 %v1990_v50, %v13581_v45  ;;  %v9533_v45 = vld [vmem:[#allocation3 + $0xe0] sm:$0xf]  ;;  %2549 = vmatpush.bf16.msrb.mxu1 %v9538_v61  ;;  %v12155_v38 = vld [vmem:[#allocation3 + $0xa4] sm:$0xf]  ;;  %v9502_v39 = vor.u32 %v12157_v5, %v9501_v17  ;;  %v9509_v50 = vld [vmem:[#allocation3 + $0xa8] sm:$0xf] }
 0x3cb   :  { %v9534_v44 = vor.u32 %v12165_v8, %v9533_v45  ;;  %2576 = vmatpush.bf16.msrb.mxu3 %v9530_v40  ;;  %v12154_v45 = vld [vmem:[#allocation3 + $0x94] sm:$0xf0]  ;;  %v9495_v53 = vld [vmem:[#allocation3 + $0x98] sm:$0xf0]  ;;  %v12149_v61 = vld [vmem:[#allocation3 + $0x6c] sm:$0xf0] }
 0x3cc   :  { %v13593_v51 = vadd.f32 %v2009_v12, %v2008_v57  ;;  %v1996_v15 = vadd.f32 %v12834_v14, %v1995_v42  ;;  %v12158_v12 = vld [vmem:[#allocation3 + $0xb4] sm:$0xf0]  ;;  %v9506_v42 = vor.u32 %v12155_v38, %v9503_v11  ;;  %v12147_v58 = vld [vmem:[#allocation3 + $0x64] sm:$0xf]  ;;  %v9470_v63 = vor.u32 %v12149_v61, %v9469_v55  ;;  %v12145_v17 = vld [vmem:[#allocation3 + $0x4c] sm:$0xf0] }
 0x3cd   :  { %2536 = vmatpush.bf16.msrb.mxu0 %v9534_v44  ;;  %v9510_v57 = vor.u32 %v12158_v12, %v9509_v50  ;;  %v12152_v44 = vld [vmem:[#allocation3 + $0x8c] sm:$0xf]  ;;  %v12150_v60 = vld [vmem:[#allocation3 + $0x74] sm:$0xf0]  ;;  %v9455_v11 = vld [vmem:[#allocation3 + $0x50] sm:$0xf0] }
 0x3ce   :  { %12837 = vtanh.f32 %v13593_v51  ;;  %v2000_v37 = vsel %vm1999_vm11, %v12834_v14, %v1996_v15  ;;  %v12162_v14 = vld [vmem:[#allocation3 + $0xd4] sm:$0xf0]  ;;  %2550 = vmatpush.bf16.msrb.mxu1 %v9522_v18  ;;  %v12156_v15 = vld [vmem:[#allocation3 + $0xac] sm:$0xf]  ;;  %v9498_v36 = vor.u32 %v12152_v44, %v9495_v53  ;;  %v9458_v50 = vor.u32 %v12143_v20, %v9455_v11  ;;  %v9461_v12 = vld [vmem:[#allocation3 + $0x48] sm:$0xf] }
 0x3cf   :  { %v2005_v6 = vsel %vm2002_vm12, %v2004_v9, %v2000_v37  ;;  %v9526_v48 = vor.u32 %v12162_v14, %v9525_v13  ;;  %v9514_v16 = vor.u32 %v12156_v15, %v9511_v56  ;;  %v9485_v37 = vld [vmem:[#allocation3 + $0x80] sm:$0xf]  ;;  %v12153_v9 = vld [vmem:[#allocation3 + $0x8c] sm:$0xf0]  ;;  %v9474_v13 = vor.u32 %v12147_v58, %v9471_v54  ;;  %v12148_v18 = vld [vmem:[#allocation3 + $0x6c] sm:$0xf] }
 0x3d0   :  { %v9478_v14 = vor.u32 %v12150_v60, %v9477_v62  ;;  %v9463_v56 = vld [vmem:[#allocation3 + $0x58] sm:$0xf0]  ;;  %v12142_v53 = vld [vmem:[#allocation3 + $0x34] sm:$0xf0]  ;;  %v12137_v54 = vld [vmem:[#allocation3 + $0xc] sm:$0xf0] }
 0x3d1   :  { %2537 = vmatpush.bf16.msrb.mxu0 %v9518_v41  ;;  %2563 = vmatpush.bf16.msrb.mxu2 %v9526_v48  ;;  %v9479_v48 = vld [vmem:[#allocation3 + $0x78] sm:$0xf0]  ;;  %v12135_v62 = vld [vmem:[#allocation3 + $0x4] sm:$0xf] }
 0x3d2   :  { %2551 = vmatpush.bf16.msrb.mxu1 %v9506_v42  ;;  %2577 = vmatpush.bf16.msrb.mxu3 %v9514_v16  ;;  %v9482_v40 = vor.u32 %v12148_v18, %v9479_v48  ;;  %v12146_v42 = vld [vmem:[#allocation3 + $0x54] sm:$0xf0]  ;;  %v9437_v16 = vld [vmem:[#allocation3 + $0x20] sm:$0xf]  ;;  %v9447_v55 = vld [vmem:[#allocation3 + $0x38] sm:$0xf0] }
 0x3d3   :  { %v9462_v15 = vor.u32 %v12146_v42, %v9461_v12  ;;  %v12136_v48 = vld [vmem:[#allocation3 + $0xc] sm:$0xf] }
 0x3d4   :  { %v12838_v4 = vpop.eup %12837 }
 0x3d5   :  { %v2012_v7 = vmul.f32 %v12838_v4, %v2005_v6  ;;  %2538 = vmatpush.bf16.msrb.mxu0 %v9502_v39  ;;  %2564 = vmatpush.bf16.msrb.mxu2 %v9510_v57  ;;  %v12151_v4 = vld [vmem:[#allocation3 + $0x84] sm:$0xf]  ;;  %v9486_v6 = vor.u32 %v12153_v9, %v9485_v37  ;;  %v9454_v39 = vor.u32 %v12145_v17, %v9453_v19  ;;  %v12144_v57 = vld [vmem:[#allocation3 + $0x4c] sm:$0xf]  ;;  %v12141_v37 = vld [vmem:[#allocation3 + $0x2c] sm:$0xf0] }
 0x3d6   :  { %2578 = vmatpush.bf16.msrb.mxu3 %v9498_v36  ;;  %v308_v9 = vadd.f32 %v13471_v21, %v13536_v52  ;;  %v12140_v36 = vld [vmem:[#allocation3 + $0x2c] sm:$0xf] }
 0x3d7   :  { %v2013_v46 = vpack.c.bf16 %v2012_v7, %v2012_v7  ;;  %v9487_v7 = vld [vmem:[#allocation3 + $0x90] sm:$0xf0]  ;;  %v9450_v21 = vor.u32 %v12140_v36, %v9447_v55 }
 0x3d8   :  { %v9490_v8 = vor.u32 %v12151_v4, %v9487_v7  ;;  %v9466_v4 = vor.u32 %v12144_v57, %v9463_v56  ;;  %v12139_v7 = vld [vmem:[#allocation3 + $0x24] sm:$0xf] }
 0x3d9   :  { %2015 = vst [vmem:[#allocation11 + $0x10] sm:$0xf] %v2013_v46  ;;  %2223 = vmatmul.bf16.vlgmr.msra.gmra.mxu0 %v2013_v46  ;;  %2236 = vmatmul.bf16.vlgmr.msra.gmra.mxu1 %v2013_v46 }
 0x3da   :  { %2249 = vmatmul.bf16.vlgmr.msra.gmra.mxu2 %v2013_v46  ;;  %2262 = vmatmul.bf16.vlgmr.msra.gmra.mxu3 %v2013_v46  ;;  %v9493_v46 = vld [vmem:[#allocation3 + $0x88] sm:$0xf] }
 0x3db   :  { %v9494_v10 = vor.u32 %v12154_v45, %v9493_v46  ;;  %2539 = vmatpush.bf16.msrb.mxu0 %v9486_v6  ;;  %2552 = vmatpush.bf16.msrb.mxu1 %v9490_v8  ;;  %v9438_v6 = vor.u32 %v12141_v37, %v9437_v16  ;;  %v9439_v46 = vld [vmem:[#allocation3 + $0x30] sm:$0xf0]  ;;  %v9445_v45 = vld [vmem:[#allocation3 + $0x28] sm:$0xf] }
 0x3dc   :  { %2579 = vmatpush.bf16.msrb.mxu3 %v9482_v40  ;;  %v9442_v44 = vor.u32 %v12139_v7, %v9439_v46 }
 0x3dd   :  { %2565 = vmatpush.bf16.msrb.mxu2 %v9494_v10 }
 0x3df   :  { %2540 = vmatpush.bf16.msrb.mxu0 %v9470_v63  ;;  %2553 = vmatpush.bf16.msrb.mxu1 %v9474_v13  ;;  %v9421_v63 = vld [vmem:[#allocation3] sm:$0xf]  ;;  %v12138_v13 = vld [vmem:[#allocation3 + $0x14] sm:$0xf0] }
 0x3e0   :  { %2580 = vmatpush.bf16.msrb.mxu3 %v9466_v4  ;;  %v9422_v60 = vor.u32 %v12137_v54, %v9421_v63 }
 0x3e1   :  { %2566 = vmatpush.bf16.msrb.mxu2 %v9478_v14 }
 0x3e3   :  { %2541 = vmatpush.bf16.msrb.mxu0 %v9454_v39  ;;  %2554 = vmatpush.bf16.msrb.mxu1 %v9458_v50  ;;  %v347_v50 = vadd.f32 %v13473_v22, %v13541_v43 }
 0x3e4   :  { %2581 = vmatpush.bf16.msrb.mxu3 %v9450_v21 }
 0x3e5   :  { %2567 = vmatpush.bf16.msrb.mxu2 %v9462_v15 }
 0x3e7   :  { %2542 = vmatpush.bf16.msrb.mxu0 %v9438_v6  ;;  %2555 = vmatpush.bf16.msrb.mxu1 %v9442_v44 }
 0x3eb   :  { %2543 = vmatpush.bf16.msrb.mxu0 %v9422_v60 }
 0x456   :  { %v2224_v41 = vpop.f32.mrf.mxu0  ;;  %v2237_v0 = vpop.f32.mrf.mxu1 }
 0x457   :  { %v2267_v47 = vadd.f32 %v2224_v41, %v230_v2  ;;  %v2268_v1 = vadd.f32 %v2237_v0, %v269_v3  ;;  %v9446_v3 = vor.u32 %v12142_v53, %v9445_v45  ;;  %v9423_v41 = vld [vmem:[#allocation3 + $0x10] sm:$0xf0]  ;;  %v9429_v0 = vld [vmem:[#allocation3 + $0x8] sm:$0xf] }
 0x458   :  { %v9426_v18 = vor.u32 %v12135_v62, %v9423_v41  ;;  %v9430_v40 = vor.u32 %v12138_v13, %v9429_v0 }
 0x459   :  { %v9416_v5 = vmul.f32 -1.442695, %v2267_v47  ;;  %v9417_v38 = vmul.f32 -1.442695, %v2268_v1  ;;  %v9431_v47 = vld [vmem:[#allocation3 + $0x18] sm:$0xf0]  ;;  %2568 = vmatpush.bf16.msrb.mxu2 %v9446_v3 }
 0x45a   :  { %v9434_v20 = vor.u32 %v12136_v48, %v9431_v47  ;;  %2556 = vmatpush.bf16.msrb.mxu1 %v9426_v18 }
 0x45b   :  { %12839 = vpow2.f32 %v9416_v5 }
 0x45c   :  { %12841 = vpow2.f32 %v9417_v38  ;;  %2582 = vmatpush.bf16.msrb.mxu3 %v9434_v20  ;;  %v12195_v20 = vld [vmem:[#allocation3 + $0xe4] sm:$0xf] }
 0x45d   :  { %v2250_v8 = vpop.f32.mrf.mxu2  ;;  %v2263_v10 = vpop.f32.mrf.mxu3  ;;  %2569 = vmatpush.bf16.msrb.mxu2 %v9430_v40 }
 0x45e   :  { %v2269_v61 = vadd.f32 %v2250_v8, %v308_v9  ;;  %v2226_v58 = vpop.f32.mrf.mxu0  ;;  %v2239_v2 = vpop.f32.mrf.mxu1  ;;  %v2270_v57 = vadd.f32 %v2263_v10, %v347_v50 }
 0x460   :  { %v9418_v14 = vmul.f32 -1.442695, %v2269_v61 }
 0x461   :  { %v12840_v1 = vpop.eup %12839 }
 0x462   :  { %v12842_v19 = vpop.eup %12841  ;;  %v2280_v17 = vadd.f32 1.0, %v12840_v1  ;;  %12843 = vpow2.f32 %v9418_v14 }
 0x463   :  { %v2281_v5 = vadd.f32 1.0, %v12842_v19 }
 0x464   :  { %12845 = vrcp.f32 %v2280_v17  ;;  %v2294_v4 = vand.u32 2147483648, %v2280_v17  ;;  %v2292_v46 = vand.u32 2147483647, %v2280_v17  ;;  %vm2288_vm15 = vweird.f32 %v2280_v17 }
 0x465   :  { %12847 = vrcp.f32 %v2281_v5  ;;  %v2252_v38 = vpop.f32.mrf.mxu2  ;;  %v2265_v39 = vpop.f32.mrf.mxu3  ;;  %v2309_v6 = vand.u32 2147483648, %v2281_v5  ;;  %v2307_v8 = vand.u32 2147483647, %v2281_v5  ;;  %vm2303_vm0 = vweird.f32 %v2281_v5 }
 0x466   :  { %v2295_v53 = vor.u32 1.1754944e-38, %v2294_v4  ;;  %vm2293_vm3 = vcmp.eq.f32.partialorder %v2292_v46, 8.507059e+37  ;;  %v9666_v38 = vld [vmem:[#allocation3 + $0xf0] sm:$0xf0]  ;;  %v9672_v39 = vld [vmem:[#allocation3 + $0xe8] sm:$0xf] }
 0x467   :  { %v2310_v55 = vor.u32 1.1754944e-38, %v2309_v6  ;;  %vm2308_vm4 = vcmp.eq.f32.partialorder %v2307_v8, 8.507059e+37  ;;  %v9669_v50 = vor.u32 %v12195_v20, %v9666_v38  ;;  %v9650_v4 = vld [vmem:[#allocation3 + $0xd0] sm:$0xf0]  ;;  %v9656_v6 = vld [vmem:[#allocation3 + $0xc8] sm:$0xf] }
 0x468   :  { %v12844_v11 = vpop.eup %12843  ;;  %v12192_v8 = vld [vmem:[#allocation3 + $0xcc] sm:$0xf]  ;;  %v9600_v20 = vld [vmem:[#allocation3 + $0x60] sm:$0xf]  ;;  %v12179_v38 = vld [vmem:[#allocation3 + $0x64] sm:$0xf] }
 0x469   :  { %v2282_v12 = vadd.f32 1.0, %v12844_v11  ;;  %v12198_v11 = vld [vmem:[#allocation3 + $0xf4] sm:$0xf0]  ;;  %2870 = vmatpush.bf16.msra.mxu1 %v9669_v50 }
 0x46a   :  { %v12846_v42 = vpop.eup %12845 }
 0x46b   :  { %v12848_v15 = vpop.eup %12847  ;;  %v2284_v56 = vmul.f32 %v12846_v42, %v2280_v17  ;;  %12849 = vrcp.f32 %v2282_v12  ;;  %vm2289_vm13 = vweird.f32 %v12846_v42  ;;  %v2324_v13 = vand.u32 2147483648, %v2282_v12  ;;  %v12197_v17 = vld [vmem:[#allocation3 + $0xec] sm:$0xf0] }
 0x46c   :  { %v2299_v16 = vmul.f32 %v12848_v15, %v2281_v5  ;;  %12851 = vtanh.f32 %v2270_v57  ;;  %vm2304_vm14 = vweird.f32 %v12848_v15  ;;  %vm2290_vm1 = vmor %vm2288_vm15, %vm2289_vm13  ;;  %vm2318_vm6 = vweird.f32 %v2282_v12  ;;  %v9674_v57 = vld [vmem:[#allocation3 + $0xf8] sm:$0xf0] }
 0x46d   :  { %v2285_v37 = vsub.f32 1.0, %v2284_v56  ;;  %vm2305_vm2 = vmor %vm2303_vm0, %vm2304_vm14  ;;  %v2322_v14 = vand.u32 2147483647, %v2282_v12  ;;  %v2325_v48 = vor.u32 1.1754944e-38, %v2324_v13  ;;  %v9648_v56 = vld [vmem:[#allocation3 + $0xc0] sm:$0xf] }
 0x46e   :  { %v2300_v9 = vsub.f32 1.0, %v2299_v16  ;;  %v12193_v16 = vld [vmem:[#allocation3 + $0xcc] sm:$0xf0]  ;;  %v12183_v13 = vld [vmem:[#allocation3 + $0x84] sm:$0xf] }
 0x46f   :  { %v2286_v7 = vmul.f32 %v12846_v42, %v2285_v37  ;;  %vm2323_vm8 = vcmp.eq.f32.partialorder %v2322_v14, 8.507059e+37  ;;  %v12191_v37 = vld [vmem:[#allocation3 + $0xc4] sm:$0xf] }
 0x470   :  { %v2301_v45 = vmul.f32 %v12848_v15, %v2300_v9  ;;  %v9649_v9 = vor.u32 %v12193_v16, %v9648_v56  ;;  %v9653_v46 = vor.u32 %v12191_v37, %v9650_v4  ;;  %v9610_v4 = vld [vmem:[#allocation3 + $0x78] sm:$0xf0] }
 0x471   :  { %v12850_v44 = vpop.eup %12849  ;;  %v2287_v22 = vadd.f32 %v12846_v42, %v2286_v7  ;;  %v12194_v7 = vld [vmem:[#allocation3 + $0xd4] sm:$0xf0] }
 0x472   :  { %v2314_v10 = vmul.f32 %v12850_v44, %v2282_v12  ;;  %v2302_v36 = vadd.f32 %v12848_v15, %v2301_v45  ;;  %v12852_v58 = vpop.eup %12851  ;;  %vm2319_vm5 = vweird.f32 %v12850_v44  ;;  %v9673_v12 = vor.u32 %v12198_v11, %v9672_v39  ;;  %2871 = vmatpush.bf16.msra.mxu1 %v9653_v46 }
 0x473   :  { %v2291_v61 = vsel %vm2290_vm1, %v12846_v42, %v2287_v22  ;;  %vm2320_vm7 = vmor %vm2318_vm6, %vm2319_vm5  ;;  %v12196_v42 = vld [vmem:[#allocation3 + $0xec] sm:$0xf]  ;;  %v9657_v45 = vor.u32 %v12194_v7, %v9656_v6  ;;  %v233_v39 = vadd.f32 %v13475_v23, %v13520_v59  ;;  %v272_v11 = vadd.f32 %v13477_v24, %v13525_v49  ;;  %v9584_v23 = vld [vmem:[#allocation3 + $0x40] sm:$0xf] }
 0x474   :  { %v2315_v2 = vsub.f32 1.0, %v2314_v10  ;;  %v2296_v3 = vsel %vm2293_vm3, %v2295_v53, %v2291_v61  ;;  %v2306_v21 = vsel %vm2305_vm2, %v12848_v15, %v2302_v36  ;;  %v9677_v15 = vor.u32 %v12196_v42, %v9674_v57  ;;  %2883 = vmatpush.bf16.msra.mxu2 %v9673_v12  ;;  %v9632_v10 = vld [vmem:[#allocation3 + $0xa0] sm:$0xf]  ;;  %v12189_v53 = vld [vmem:[#allocation3 + $0xac] sm:$0xf0] }
 0x475   :  { %v2311_v63 = vsel %vm2308_vm4, %v2310_v55, %v2306_v21  ;;  %v2330_v54 = vmul.f32 %v12852_v58, %v2296_v3  ;;  %v12187_v36 = vld [vmem:[#allocation3 + $0xa4] sm:$0xf]  ;;  %v9633_v55 = vor.u32 %v12189_v53, %v9632_v10  ;;  %v9634_v61 = vld [vmem:[#allocation3 + $0xb0] sm:$0xf0]  ;;  %v9640_v58 = vld [vmem:[#allocation3 + $0xa8] sm:$0xf] }
 0x476   :  { %v2316_v62 = vmul.f32 %v12850_v44, %v2315_v2  ;;  %v2329_v60 = vmul.f32 %v2311_v63, %v13593_v51  ;;  %v9664_v51 = vld [vmem:[#allocation3 + $0xe0] sm:$0xf]  ;;  %2896 = vmatpush.bf16.msra.mxu3 %v9677_v15  ;;  %v12190_v2 = vld [vmem:[#allocation3 + $0xb4] sm:$0xf0]  ;;  %v9637_v3 = vor.u32 %v12187_v36, %v9634_v61  ;;  %v12188_v63 = vld [vmem:[#allocation3 + $0xac] sm:$0xf] }
 0x477   :  { %v9665_v5 = vor.u32 %v12197_v17, %v9664_v51  ;;  %v9641_v21 = vor.u32 %v12190_v2, %v9640_v58  ;;  %v9626_v51 = vld [vmem:[#allocation3 + $0x98] sm:$0xf0]  ;;  %v9602_v12 = vld [vmem:[#allocation3 + $0x70] sm:$0xf0]  ;;  %v9608_v42 = vld [vmem:[#allocation3 + $0x68] sm:$0xf] }
 0x478   :  { %v13605_v41 = vadd.f32 %v2330_v54, %v2329_v60  ;;  %v2317_v0 = vadd.f32 %v12850_v44, %v2316_v62  ;;  %2884 = vmatpush.bf16.msra.mxu2 %v9657_v45  ;;  %v9642_v54 = vld [vmem:[#allocation3 + $0xb8] sm:$0xf0]  ;;  %2872 = vmatpush.bf16.msra.mxu1 %v9637_v3  ;;  %v9616_v60 = vld [vmem:[#allocation3 + $0x80] sm:$0xf]  ;;  %v12182_v57 = vld [vmem:[#allocation3 + $0x74] sm:$0xf0]  ;;  %v9605_v16 = vor.u32 %v12179_v38, %v9602_v12 }
 0x479   :  { %2857 = vmatpush.bf16.msra.mxu0 %v9665_v5  ;;  %v9645_v62 = vor.u32 %v12188_v63, %v9642_v54  ;;  %v12181_v5 = vld [vmem:[#allocation3 + $0x6c] sm:$0xf0]  ;;  %v9609_v37 = vor.u32 %v12182_v57, %v9608_v42  ;;  %v12175_v24 = vld [vmem:[#allocation3 + $0x44] sm:$0xf]  ;;  %v9586_v10 = vld [vmem:[#allocation3 + $0x50] sm:$0xf0]  ;;  %v311_v63 = vadd.f32 %v13479_v25, %v13536_v52 }
 0x47a   :  { %12853 = vtanh.f32 %v13605_v41  ;;  %v2321_v18 = vsel %vm2320_vm7, %v12850_v44, %v2317_v0  ;;  %v9658_v44 = vld [vmem:[#allocation3 + $0xd8] sm:$0xf0]  ;;  %v12185_v0 = vld [vmem:[#allocation3 + $0x8c] sm:$0xf0]  ;;  %v9601_v50 = vor.u32 %v12181_v5, %v9600_v20  ;;  %v9589_v53 = vor.u32 %v12175_v24, %v9586_v10  ;;  %v9592_v36 = vld [vmem:[#allocation3 + $0x48] sm:$0xf] }
 0x47b   :  { %v2326_v1 = vsel %vm2323_vm8, %v2325_v48, %v2321_v18  ;;  %v9661_v22 = vor.u32 %v12192_v8, %v9658_v44  ;;  %v9617_v14 = vor.u32 %v12185_v0, %v9616_v60  ;;  %v9618_v18 = vld [vmem:[#allocation3 + $0x90] sm:$0xf0]  ;;  %v9624_v48 = vld [vmem:[#allocation3 + $0x88] sm:$0xf]  ;;  %v12177_v45 = vld [vmem:[#allocation3 + $0x4c] sm:$0xf0] }
 0x47c   :  { %2885 = vmatpush.bf16.msra.mxu2 %v9641_v21  ;;  %v12176_v61 = vld [vmem:[#allocation3 + $0x4c] sm:$0xf]  ;;  %v9594_v2 = vld [vmem:[#allocation3 + $0x58] sm:$0xf0]  ;;  %v9568_v3 = vld [vmem:[#allocation3 + $0x20] sm:$0xf] }
 0x47d   :  { %2858 = vmatpush.bf16.msra.mxu0 %v9649_v9  ;;  %2897 = vmatpush.bf16.msra.mxu3 %v9661_v22  ;;  %v12180_v9 = vld [vmem:[#allocation3 + $0x6c] sm:$0xf]  ;;  %v9585_v22 = vor.u32 %v12177_v45, %v9584_v23  ;;  %v12173_v21 = vld [vmem:[#allocation3 + $0x2c] sm:$0xf0]  ;;  %v9597_v54 = vor.u32 %v12176_v61, %v9594_v2  ;;  %v12171_v60 = vld [vmem:[#allocation3 + $0x24] sm:$0xf] }
 0x47e   :  { %v9613_v46 = vor.u32 %v12180_v9, %v9610_v4  ;;  %v9570_v0 = vld [vmem:[#allocation3 + $0x30] sm:$0xf0]  ;;  %v9552_v5 = vld [vmem:[#allocation3] sm:$0xf]  ;;  %v12169_v38 = vld [vmem:[#allocation3 + $0xc] sm:$0xf0] }
 0x47f   :  { %v9560_v12 = vld [vmem:[#allocation3 + $0x8] sm:$0xf]  ;;  %v12170_v42 = vld [vmem:[#allocation3 + $0x14] sm:$0xf0] }
 0x480   :  { %v12854_v47 = vpop.eup %12853  ;;  %v9561_v9 = vor.u32 %v12170_v42, %v9560_v12 }
 0x481   :  { %v2333_v40 = vmul.f32 %v12854_v47, %v2326_v1  ;;  %2859 = vmatpush.bf16.msra.mxu0 %v9633_v55  ;;  %2898 = vmatpush.bf16.msra.mxu3 %v9645_v62  ;;  %v12186_v47 = vld [vmem:[#allocation3 + $0x94] sm:$0xf0]  ;;  %v9621_v1 = vor.u32 %v12183_v13, %v9618_v18  ;;  %v9569_v62 = vor.u32 %v12173_v21, %v9568_v3  ;;  %v9576_v13 = vld [vmem:[#allocation3 + $0x28] sm:$0xf] }
 0x482   :  { %v12178_v55 = vld [vmem:[#allocation3 + $0x54] sm:$0xf0] }
 0x483   :  { %v2334_v19 = vpack.c.bf16 %v2333_v40, %v2333_v40  ;;  %v9625_v40 = vor.u32 %v12186_v47, %v9624_v48  ;;  %2873 = vmatpush.bf16.msra.mxu1 %v9621_v1  ;;  %v9593_v58 = vor.u32 %v12178_v55, %v9592_v36  ;;  %v9573_v48 = vor.u32 %v12171_v60, %v9570_v0  ;;  %v12174_v47 = vld [vmem:[#allocation3 + $0x34] sm:$0xf0]  ;;  %v12172_v1 = vld [vmem:[#allocation3 + $0x2c] sm:$0xf] }
 0x484   :  { %v9577_v20 = vor.u32 %v12174_v47, %v9576_v13 }
 0x485   :  { %2336 = vst [vmem:[#allocation11 + $0x14] sm:$0xf] %v2334_v19  ;;  %2544 = vmatmul.bf16.vlgmr.msrb.gmra.mxu0 %v2334_v19  ;;  %2557 = vmatmul.bf16.vlgmr.msrb.gmra.mxu1 %v2334_v19 }
 0x486   :  { %2570 = vmatmul.bf16.vlgmr.msrb.gmra.mxu2 %v2334_v19  ;;  %2583 = vmatmul.bf16.vlgmr.msrb.gmra.mxu3 %v2334_v19  ;;  %v12184_v19 = vld [vmem:[#allocation3 + $0x8c] sm:$0xf] }
 0x487   :  { %2860 = vmatpush.bf16.msra.mxu0 %v9617_v14  ;;  %v9629_v17 = vor.u32 %v12184_v19, %v9626_v51  ;;  %2886 = vmatpush.bf16.msra.mxu2 %v9625_v40  ;;  %v9578_v40 = vld [vmem:[#allocation3 + $0x38] sm:$0xf0] }
 0x488   :  { %2874 = vmatpush.bf16.msra.mxu1 %v9605_v16  ;;  %v9581_v25 = vor.u32 %v12172_v1, %v9578_v40  ;;  %v9562_v16 = vld [vmem:[#allocation3 + $0x18] sm:$0xf0] }
 0x489   :  { %2899 = vmatpush.bf16.msra.mxu3 %v9629_v17 }
 0x48b   :  { %2861 = vmatpush.bf16.msra.mxu0 %v9601_v50  ;;  %2887 = vmatpush.bf16.msra.mxu2 %v9609_v37  ;;  %v9554_v50 = vld [vmem:[#allocation3 + $0x10] sm:$0xf0] }
 0x48c   :  { %2875 = vmatpush.bf16.msra.mxu1 %v9589_v53 }
 0x48d   :  { %2900 = vmatpush.bf16.msra.mxu3 %v9613_v46 }
 0x48f   :  { %2862 = vmatpush.bf16.msra.mxu0 %v9585_v22  ;;  %2888 = vmatpush.bf16.msra.mxu2 %v9593_v58 }
 0x490   :  { %2876 = vmatpush.bf16.msra.mxu1 %v9573_v48 }
 0x491   :  { %2901 = vmatpush.bf16.msra.mxu3 %v9597_v54 }
 0x493   :  { %2863 = vmatpush.bf16.msra.mxu0 %v9569_v62  ;;  %2889 = vmatpush.bf16.msra.mxu2 %v9577_v20 }
 0x495   :  { %2902 = vmatpush.bf16.msra.mxu3 %v9581_v25 }
 0x497   :  { %2890 = vmatpush.bf16.msra.mxu2 %v9561_v9 }
 0x502   :  { %v2545_v15 = vpop.f32.mrf.mxu0  ;;  %v2558_v56 = vpop.f32.mrf.mxu1 }
 0x503   :  { %v2588_v6 = vadd.f32 %v2545_v15, %v233_v39  ;;  %v2589_v7 = vadd.f32 %v2558_v56, %v272_v11  ;;  %v12167_v39 = vld [vmem:[#allocation3 + $0x4] sm:$0xf]  ;;  %v9553_v11 = vor.u32 %v12169_v38, %v9552_v5  ;;  %v12168_v56 = vld [vmem:[#allocation3 + $0xc] sm:$0xf] }
 0x504   :  { %v9557_v15 = vor.u32 %v12167_v39, %v9554_v50 }
 0x505   :  { %v9547_v8 = vmul.f32 -1.442695, %v2588_v6  ;;  %v9548_v44 = vmul.f32 -1.442695, %v2589_v7  ;;  %v9565_v7 = vor.u32 %v12168_v56, %v9562_v16  ;;  %2864 = vmatpush.bf16.msra.mxu0 %v9553_v11  ;;  %v12229_v16 = vld [vmem:[#allocation3 + $0xec] sm:$0xf0] }
 0x506   :  { %2877 = vmatpush.bf16.msra.mxu1 %v9557_v15 }
 0x507   :  { %12855 = vpow2.f32 %v9547_v8  ;;  %2903 = vmatpush.bf16.msra.mxu3 %v9565_v7  ;;  %v350_v8 = vadd.f32 %v13481_v26, %v13541_v43  ;;  %v12230_v7 = vld [vmem:[#allocation3 + $0xf4] sm:$0xf0] }
 0x508   :  { %12857 = vpow2.f32 %v9548_v44 }
 0x509   :  { %v2571_v14 = vpop.f32.mrf.mxu2  ;;  %v2584_v18 = vpop.f32.mrf.mxu3 }
 0x50a   :  { %v2590_v19 = vadd.f32 %v2571_v14, %v311_v63  ;;  %v2547_v51 = vpop.f32.mrf.mxu0  ;;  %v2560_v17 = vpop.f32.mrf.mxu1  ;;  %v2591_v10 = vadd.f32 %v2584_v18, %v350_v8 }
 0x50c   :  { %v9549_v57 = vmul.f32 -1.442695, %v2590_v19 }
 0x50d   :  { %v12856_v37 = vpop.eup %12855 }
 0x50e   :  { %v12858_v4 = vpop.eup %12857  ;;  %v2601_v6 = vadd.f32 1.0, %v12856_v37  ;;  %12859 = vpow2.f32 %v9549_v57  ;;  %v12227_v37 = vld [vmem:[#allocation3 + $0xe4] sm:$0xf] }
 0x50f   :  { %v2602_v46 = vadd.f32 1.0, %v12858_v4  ;;  %v9797_v4 = vld [vmem:[#allocation3 + $0xf0] sm:$0xf0] }
 0x510   :  { %12861 = vrcp.f32 %v2601_v6  ;;  %v2615_v2 = vand.u32 2147483648, %v2601_v6  ;;  %v2613_v63 = vand.u32 2147483647, %v2601_v6  ;;  %vm2609_vm11 = vweird.f32 %v2601_v6 }
 0x511   :  { %12863 = vrcp.f32 %v2602_v46  ;;  %v2573_v23 = vpop.f32.mrf.mxu2  ;;  %v2586_v45 = vpop.f32.mrf.mxu3  ;;  %v2630_v3 = vand.u32 2147483648, %v2602_v46  ;;  %v2628_v62 = vand.u32 2147483647, %v2602_v46  ;;  %vm2624_vm12 = vweird.f32 %v2602_v46 }
 0x512   :  { %v2616_v13 = vor.u32 1.1754944e-38, %v2615_v2  ;;  %vm2614_vm15 = vcmp.eq.f32.partialorder %v2613_v63, 8.507059e+37  ;;  %v12228_v45 = vld [vmem:[#allocation3 + $0xec] sm:$0xf] }
 0x513   :  { %v2631_v18 = vor.u32 1.1754944e-38, %v2630_v3  ;;  %vm2629_vm0 = vcmp.eq.f32.partialorder %v2628_v62, 8.507059e+37  ;;  %v12224_v3 = vld [vmem:[#allocation3 + $0xcc] sm:$0xf]  ;;  %v12221_v62 = vld [vmem:[#allocation3 + $0xac] sm:$0xf0] }
 0x514   :  { %v12860_v24 = vpop.eup %12859 }
 0x515   :  { %v2603_v44 = vadd.f32 1.0, %v12860_v24  ;;  %v9805_v24 = vld [vmem:[#allocation3 + $0xf8] sm:$0xf0] }
 0x516   :  { %v12862_v22 = vpop.eup %12861  ;;  %v9808_v8 = vor.u32 %v12228_v45, %v9805_v24 }
 0x517   :  { %v12864_v53 = vpop.eup %12863  ;;  %v2605_v36 = vmul.f32 %v12862_v22, %v2601_v6  ;;  %12865 = vrcp.f32 %v2603_v44  ;;  %vm2610_vm9 = vweird.f32 %v12862_v22  ;;  %v2645_v39 = vand.u32 2147483648, %v2603_v44  ;;  %v9803_v6 = vld [vmem:[#allocation3 + $0xe8] sm:$0xf] }
 0x518   :  { %v2620_v55 = vmul.f32 %v12864_v53, %v2602_v46  ;;  %12867 = vtanh.f32 %v2591_v10  ;;  %vm2625_vm10 = vweird.f32 %v12864_v53  ;;  %vm2611_vm13 = vmor %vm2609_vm11, %vm2610_vm9  ;;  %vm2639_vm2 = vweird.f32 %v2603_v44  ;;  %v12223_v10 = vld [vmem:[#allocation3 + $0xc4] sm:$0xf]  ;;  %3217 = vmatpush.bf16.msrb.mxu3 %v9808_v8  ;;  %v12212_v8 = vld [vmem:[#allocation3 + $0x6c] sm:$0xf] }
 0x519   :  { %v2606_v61 = vsub.f32 1.0, %v2605_v36  ;;  %vm2626_vm14 = vmor %vm2624_vm12, %vm2625_vm10  ;;  %v2643_v11 = vand.u32 2147483647, %v2603_v44  ;;  %v2646_v12 = vor.u32 1.1754944e-38, %v2645_v39  ;;  %v9800_v46 = vor.u32 %v12227_v37, %v9797_v4  ;;  %v9781_v36 = vld [vmem:[#allocation3 + $0xd0] sm:$0xf0] }
 0x51a   :  { %v2621_v58 = vsub.f32 1.0, %v2620_v55  ;;  %v9804_v23 = vor.u32 %v12230_v7, %v9803_v6  ;;  %v9787_v55 = vld [vmem:[#allocation3 + $0xc8] sm:$0xf]  ;;  %v12218_v39 = vld [vmem:[#allocation3 + $0x94] sm:$0xf0]  ;;  %v274_v37 = vadd.f32 %v13485_v28, %v13525_v49 }
 0x51b   :  { %v2607_v21 = vmul.f32 %v12862_v22, %v2606_v61  ;;  %vm2644_vm4 = vcmp.eq.f32.partialorder %v2643_v11, 8.507059e+37  ;;  %3191 = vmatpush.bf16.msrb.mxu1 %v9800_v46  ;;  %v12226_v61 = vld [vmem:[#allocation3 + $0xd4] sm:$0xf0]  ;;  %v9733_v4 = vld [vmem:[#allocation3 + $0x70] sm:$0xf0] }
 0x51c   :  { %v2622_v54 = vmul.f32 %v12864_v53, %v2621_v58  ;;  %3204 = vmatpush.bf16.msrb.mxu2 %v9804_v23  ;;  %v9784_v58 = vor.u32 %v12223_v10, %v9781_v36  ;;  %v9788_v2 = vor.u32 %v12226_v61, %v9787_v55  ;;  %v9739_v6 = vld [vmem:[#allocation3 + $0x68] sm:$0xf]  ;;  %v12214_v7 = vld [vmem:[#allocation3 + $0x74] sm:$0xf0]  ;;  %v12209_v36 = vld [vmem:[#allocation3 + $0x4c] sm:$0xf0] }
 0x51d   :  { %v12866_v60 = vpop.eup %12865  ;;  %v2608_v26 = vadd.f32 %v12862_v22, %v2607_v21  ;;  %v9789_v21 = vld [vmem:[#allocation3 + $0xd8] sm:$0xf0]  ;;  %v9740_v24 = vor.u32 %v12214_v7, %v9739_v6  ;;  %v12207_v28 = vld [vmem:[#allocation3 + $0x44] sm:$0xf] }
 0x51e   :  { %v2635_v0 = vmul.f32 %v12866_v60, %v2603_v44  ;;  %v2623_v14 = vadd.f32 %v12864_v53, %v2622_v54  ;;  %v12868_v47 = vpop.eup %12867  ;;  %vm2640_vm1 = vweird.f32 %v12866_v60  ;;  %v9779_v44 = vld [vmem:[#allocation3 + $0xc0] sm:$0xf]  ;;  %v9792_v63 = vor.u32 %v12224_v3, %v9789_v21  ;;  %v9723_v21 = vld [vmem:[#allocation3 + $0x48] sm:$0xf]  ;;  %v9693_v6 = vld [vmem:[#allocation3 + $0x18] sm:$0xf0] }
 0x51f   :  { %v2612_v48 = vsel %vm2611_vm13, %v12862_v22, %v2608_v26  ;;  %vm2641_vm3 = vmor %vm2639_vm2, %vm2640_vm1  ;;  %v12225_v22 = vld [vmem:[#allocation3 + $0xcc] sm:$0xf0]  ;;  %3192 = vmatpush.bf16.msrb.mxu1 %v9784_v58  ;;  %v9763_v54 = vld [vmem:[#allocation3 + $0xa0] sm:$0xf] }
 0x520   :  { %v2636_v1 = vsub.f32 1.0, %v2635_v0  ;;  %v2617_v40 = vsel %vm2614_vm15, %v2616_v13, %v2612_v48  ;;  %v2627_v19 = vsel %vm2626_vm14, %v12864_v53, %v2623_v14  ;;  %v9780_v53 = vor.u32 %v12225_v22, %v9779_v44  ;;  %3205 = vmatpush.bf16.msrb.mxu2 %v9788_v2  ;;  %3218 = vmatpush.bf16.msrb.mxu3 %v9792_v63  ;;  %v9765_v0 = vld [vmem:[#allocation3 + $0xb0] sm:$0xf0]  ;;  %v9771_v13 = vld [vmem:[#allocation3 + $0xa8] sm:$0xf] }
 0x521   :  { %v2632_v51 = vsel %vm2629_vm0, %v2631_v18, %v2627_v19  ;;  %v2651_v17 = vmul.f32 %v12868_v47, %v2617_v40  ;;  %v9764_v26 = vor.u32 %v12221_v62, %v9763_v54  ;;  %v12222_v14 = vld [vmem:[#allocation3 + $0xb4] sm:$0xf0]  ;;  %v12220_v47 = vld [vmem:[#allocation3 + $0xac] sm:$0xf]  ;;  %v9747_v19 = vld [vmem:[#allocation3 + $0x80] sm:$0xf] }
 0x522   :  { %v2637_v20 = vmul.f32 %v12866_v60, %v2636_v1  ;;  %v2650_v25 = vmul.f32 %v2632_v51, %v13605_v41  ;;  %v9795_v41 = vld [vmem:[#allocation3 + $0xe0] sm:$0xf]  ;;  %v9772_v48 = vor.u32 %v12222_v14, %v9771_v13  ;;  %v9773_v1 = vld [vmem:[#allocation3 + $0xb8] sm:$0xf0]  ;;  %v12217_v51 = vld [vmem:[#allocation3 + $0x8c] sm:$0xf0]  ;;  %v313_v13 = vadd.f32 %v13487_v29, %v13536_v52 }
 0x523   :  { %v9796_v9 = vor.u32 %v12229_v16, %v9795_v41  ;;  %v9776_v40 = vor.u32 %v12220_v47, %v9773_v1  ;;  %v12211_v41 = vld [vmem:[#allocation3 + $0x64] sm:$0xf]  ;;  %v235_v16 = vadd.f32 %v13483_v27, %v13520_v59  ;;  %v9741_v44 = vld [vmem:[#allocation3 + $0x78] sm:$0xf0]  ;;  %v9715_v27 = vld [vmem:[#allocation3 + $0x40] sm:$0xf] }
 0x524   :  { %v13617_v5 = vadd.f32 %v2651_v17, %v2650_v25  ;;  %v2638_v38 = vadd.f32 %v12866_v60, %v2637_v20  ;;  %3206 = vmatpush.bf16.msrb.mxu2 %v9772_v48  ;;  %v12215_v17 = vld [vmem:[#allocation3 + $0x84] sm:$0xf]  ;;  %v9748_v20 = vor.u32 %v12217_v51, %v9747_v19  ;;  %v9749_v25 = vld [vmem:[#allocation3 + $0x90] sm:$0xf0]  ;;  %v9736_v45 = vor.u32 %v12211_v41, %v9733_v4  ;;  %v12210_v63 = vld [vmem:[#allocation3 + $0x54] sm:$0xf0] }
 0x525   :  { %3178 = vmatpush.bf16.msrb.mxu0 %v9796_v9  ;;  %3219 = vmatpush.bf16.msrb.mxu3 %v9776_v40  ;;  %v9752_v11 = vor.u32 %v12215_v17, %v9749_v25  ;;  %v9716_v58 = vor.u32 %v12209_v36, %v9715_v27  ;;  %v9717_v2 = vld [vmem:[#allocation3 + $0x50] sm:$0xf0]  ;;  %v12208_v54 = vld [vmem:[#allocation3 + $0x4c] sm:$0xf]  ;;  %v9724_v62 = vor.u32 %v12210_v63, %v9723_v21  ;;  %v12203_v48 = vld [vmem:[#allocation3 + $0x24] sm:$0xf] }
 0x526   :  { %12869 = vtanh.f32 %v13617_v5  ;;  %v2642_v50 = vsel %vm2641_vm3, %v12866_v60, %v2638_v38  ;;  %v12219_v60 = vld [vmem:[#allocation3 + $0xa4] sm:$0xf]  ;;  %v9755_v38 = vld [vmem:[#allocation3 + $0x88] sm:$0xf]  ;;  %v9720_v3 = vor.u32 %v12207_v28, %v9717_v2  ;;  %v9701_v47 = vld [vmem:[#allocation3 + $0x30] sm:$0xf0] }
 0x527   :  { %v2647_v57 = vsel %vm2644_vm4, %v2646_v12, %v2642_v50  ;;  %v9768_v18 = vor.u32 %v12219_v60, %v9765_v0  ;;  %v9756_v50 = vor.u32 %v12218_v39, %v9755_v38  ;;  %v12216_v12 = vld [vmem:[#allocation3 + $0x8c] sm:$0xf]  ;;  %v9725_v60 = vld [vmem:[#allocation3 + $0x58] sm:$0xf0]  ;;  %v12205_v0 = vld [vmem:[#allocation3 + $0x2c] sm:$0xf0]  ;;  %v9704_v51 = vor.u32 %v12203_v48, %v9701_v47 }
 0x528   :  { %v9728_v14 = vor.u32 %v12208_v54, %v9725_v60  ;;  %v9707_v1 = vld [vmem:[#allocation3 + $0x28] sm:$0xf]  ;;  %v12206_v17 = vld [vmem:[#allocation3 + $0x34] sm:$0xf0]  ;;  %v9709_v25 = vld [vmem:[#allocation3 + $0x38] sm:$0xf0] }
 0x529   :  { %3179 = vmatpush.bf16.msrb.mxu0 %v9780_v53  ;;  %3193 = vmatpush.bf16.msrb.mxu1 %v9768_v18  ;;  %v9744_v53 = vor.u32 %v12212_v8, %v9741_v44  ;;  %v9691_v41 = vld [vmem:[#allocation3 + $0x8] sm:$0xf]  ;;  %v12200_v4 = vld [vmem:[#allocation3 + $0xc] sm:$0xf] }
 0x52a   :  { %3207 = vmatpush.bf16.msrb.mxu2 %v9756_v50  ;;  %v9708_v50 = vor.u32 %v12206_v17, %v9707_v1 }
 0x52c   :  { %v12870_v42 = vpop.eup %12869 }
 0x52d   :  { %v2654_v15 = vmul.f32 %v12870_v42, %v2647_v57  ;;  %3180 = vmatpush.bf16.msrb.mxu0 %v9764_v26  ;;  %v9757_v42 = vld [vmem:[#allocation3 + $0x98] sm:$0xf0]  ;;  %3194 = vmatpush.bf16.msrb.mxu1 %v9752_v11  ;;  %v9699_v26 = vld [vmem:[#allocation3 + $0x20] sm:$0xf] }
 0x52e   :  { %v9760_v57 = vor.u32 %v12216_v12, %v9757_v42  ;;  %3208 = vmatpush.bf16.msrb.mxu2 %v9740_v24  ;;  %v9700_v18 = vor.u32 %v12205_v0, %v9699_v26  ;;  %v9683_v12 = vld [vmem:[#allocation3] sm:$0xf]  ;;  %v12201_v42 = vld [vmem:[#allocation3 + $0xc] sm:$0xf0]  ;;  %v9696_v24 = vor.u32 %v12200_v4, %v9693_v6  ;;  %v9928_v4 = vld [vmem:[#allocation3 + $0xf0] sm:$0xf0] }
 0x52f   :  { %v2655_v56 = vpack.c.bf16 %v2654_v15, %v2654_v15  ;;  %v9731_v15 = vld [vmem:[#allocation3 + $0x60] sm:$0xf]  ;;  %v9934_v6 = vld [vmem:[#allocation3 + $0xe8] sm:$0xf] }
 0x530   :  { %3220 = vmatpush.bf16.msrb.mxu3 %v9760_v57  ;;  %v12199_v57 = vld [vmem:[#allocation3 + $0x4] sm:$0xf] }
 0x531   :  { %2657 = vst [vmem:[#allocation11 + $0x18] sm:$0xf] %v2655_v56  ;;  %2865 = vmatmul.bf16.vlgmr.msra.gmra.mxu0 %v2655_v56  ;;  %2878 = vmatmul.bf16.vlgmr.msra.gmra.mxu1 %v2655_v56 }
 0x532   :  { %2891 = vmatmul.bf16.vlgmr.msra.gmra.mxu2 %v2655_v56  ;;  %2904 = vmatmul.bf16.vlgmr.msra.gmra.mxu3 %v2655_v56  ;;  %v12213_v56 = vld [vmem:[#allocation3 + $0x6c] sm:$0xf0] }
 0x533   :  { %3181 = vmatpush.bf16.msrb.mxu0 %v9748_v20  ;;  %v9732_v9 = vor.u32 %v12213_v56, %v9731_v15  ;;  %3195 = vmatpush.bf16.msrb.mxu1 %v9736_v45  ;;  %v12204_v20 = vld [vmem:[#allocation3 + $0x2c] sm:$0xf]  ;;  %v9684_v15 = vor.u32 %v12201_v42, %v9683_v12  ;;  %v9685_v56 = vld [vmem:[#allocation3 + $0x10] sm:$0xf0] }
 0x534   :  { %3221 = vmatpush.bf16.msrb.mxu3 %v9744_v53  ;;  %3209 = vmatpush.bf16.msrb.mxu2 %v9724_v62  ;;  %v9712_v29 = vor.u32 %v12204_v20, %v9709_v25  ;;  %v352_v53 = vadd.f32 %v13489_v30, %v13541_v43 }
 0x537   :  { %3182 = vmatpush.bf16.msrb.mxu0 %v9732_v9  ;;  %3196 = vmatpush.bf16.msrb.mxu1 %v9720_v3  ;;  %v9688_v9 = vor.u32 %v12199_v57, %v9685_v56 }
 0x538   :  { %3222 = vmatpush.bf16.msrb.mxu3 %v9728_v14  ;;  %3210 = vmatpush.bf16.msrb.mxu2 %v9708_v50 }
 0x53b   :  { %3183 = vmatpush.bf16.msrb.mxu0 %v9716_v58  ;;  %3197 = vmatpush.bf16.msrb.mxu1 %v9704_v51 }
 0x53c   :  { %3223 = vmatpush.bf16.msrb.mxu3 %v9712_v29 }
 0x53f   :  { %3184 = vmatpush.bf16.msrb.mxu0 %v9700_v18  ;;  %3198 = vmatpush.bf16.msrb.mxu1 %v9688_v9 }
 0x540   :  { %3224 = vmatpush.bf16.msrb.mxu3 %v9696_v24  ;;  %v9936_v24 = vld [vmem:[#allocation3 + $0xf8] sm:$0xf0] }
 0x543   :  { %3185 = vmatpush.bf16.msrb.mxu0 %v9684_v15 }
 0x5ae   :  { %v2866_v46 = vpop.f32.mrf.mxu0  ;;  %v2879_v23 = vpop.f32.mrf.mxu1 }
 0x5af   :  { %v2909_v22 = vadd.f32 %v2866_v46, %v235_v16  ;;  %v2910_v10 = vadd.f32 %v2879_v23, %v274_v37  ;;  %v12202_v16 = vld [vmem:[#allocation3 + $0x14] sm:$0xf0] }
 0x5b0   :  { %v9692_v46 = vor.u32 %v12202_v16, %v9691_v41  ;;  %v12261_v16 = vld [vmem:[#allocation3 + $0xec] sm:$0xf0] }
 0x5b1   :  { %v9678_v55 = vmul.f32 -1.442695, %v2909_v22  ;;  %v9679_v61 = vmul.f32 -1.442695, %v2910_v10 }
 0x5b2   :  { %3211 = vmatpush.bf16.msrb.mxu2 %v9692_v46 }
 0x5b3   :  { %12871 = vpow2.f32 %v9678_v55 }
 0x5b4   :  { %12873 = vpow2.f32 %v9679_v61 }
 0x5b5   :  { %v2892_v40 = vpop.f32.mrf.mxu2  ;;  %v2905_v19 = vpop.f32.mrf.mxu3 }
 0x5b6   :  { %v2911_v38 = vadd.f32 %v2892_v40, %v313_v13  ;;  %v2868_v39 = vpop.f32.mrf.mxu0  ;;  %v2881_v11 = vpop.f32.mrf.mxu1  ;;  %v2912_v28 = vadd.f32 %v2905_v19, %v352_v53 }
 0x5b8   :  { %v9680_v37 = vmul.f32 -1.442695, %v2911_v38 }
 0x5b9   :  { %v12872_v7 = vpop.eup %12871 }
 0x5ba   :  { %v12874_v23 = vpop.eup %12873  ;;  %v2922_v45 = vadd.f32 1.0, %v12872_v7  ;;  %12875 = vpow2.f32 %v9680_v37  ;;  %v12259_v37 = vld [vmem:[#allocation3 + $0xe4] sm:$0xf]  ;;  %v12262_v7 = vld [vmem:[#allocation3 + $0xf4] sm:$0xf0] }
 0x5bb   :  { %v2923_v8 = vadd.f32 1.0, %v12874_v23  ;;  %v9931_v46 = vor.u32 %v12259_v37, %v9928_v4  ;;  %v9935_v23 = vor.u32 %v12262_v7, %v9934_v6  ;;  %v12246_v37 = vld [vmem:[#allocation3 + $0x74] sm:$0xf0] }
 0x5bc   :  { %12877 = vrcp.f32 %v2922_v45  ;;  %v2936_v21 = vand.u32 2147483648, %v2922_v45  ;;  %v2934_v62 = vand.u32 2147483647, %v2922_v45  ;;  %vm2930_vm7 = vweird.f32 %v2922_v45 }
 0x5bd   :  { %12879 = vrcp.f32 %v2923_v8  ;;  %v2894_v44 = vpop.f32.mrf.mxu2  ;;  %v2907_v22 = vpop.f32.mrf.mxu3  ;;  %v2951_v63 = vand.u32 2147483648, %v2923_v8  ;;  %v2949_v26 = vand.u32 2147483647, %v2923_v8  ;;  %vm2945_vm8 = vweird.f32 %v2923_v8  ;;  %3512 = vmatpush.bf16.msra.mxu1 %v9931_v46  ;;  %3525 = vmatpush.bf16.msra.mxu2 %v9935_v23  ;;  %v12244_v46 = vld [vmem:[#allocation3 + $0x6c] sm:$0xf] }
 0x5be   :  { %v2937_v14 = vor.u32 1.1754944e-38, %v2936_v21  ;;  %vm2935_vm11 = vcmp.eq.f32.partialorder %v2934_v62, 8.507059e+37  ;;  %v9910_v44 = vld [vmem:[#allocation3 + $0xc0] sm:$0xf]  ;;  %v12257_v22 = vld [vmem:[#allocation3 + $0xcc] sm:$0xf0] }
 0x5bf   :  { %v2952_v48 = vor.u32 1.1754944e-38, %v2951_v63  ;;  %vm2950_vm12 = vcmp.eq.f32.partialorder %v2949_v26, 8.507059e+37  ;;  %v9911_v53 = vor.u32 %v12257_v22, %v9910_v44  ;;  %v9894_v21 = vld [vmem:[#allocation3 + $0xa0] sm:$0xf]  ;;  %v12253_v63 = vld [vmem:[#allocation3 + $0xac] sm:$0xf0] }
 0x5c0   :  { %v12876_v10 = vpop.eup %12875  ;;  %v9895_v62 = vor.u32 %v12253_v63, %v9894_v21  ;;  %v9902_v26 = vld [vmem:[#allocation3 + $0xa8] sm:$0xf]  ;;  %v9872_v23 = vld [vmem:[#allocation3 + $0x78] sm:$0xf0]  ;;  %v12241_v44 = vld [vmem:[#allocation3 + $0x4c] sm:$0xf0]  ;;  %v316_v63 = vadd.f32 %v13495_v33, %v13536_v52 }
 0x5c1   :  { %v2924_v27 = vadd.f32 1.0, %v12876_v10  ;;  %v12255_v10 = vld [vmem:[#allocation3 + $0xc4] sm:$0xf]  ;;  %v12237_v21 = vld [vmem:[#allocation3 + $0x2c] sm:$0xf0] }
 0x5c2   :  { %v12878_v36 = vpop.eup %12877 }
 0x5c3   :  { %v12880_v55 = vpop.eup %12879  ;;  %v2926_v61 = vmul.f32 %v12878_v36, %v2922_v45  ;;  %12881 = vrcp.f32 %v2924_v27  ;;  %vm2931_vm5 = vweird.f32 %v12878_v36  ;;  %v2966_v50 = vand.u32 2147483648, %v2924_v27  ;;  %v12260_v45 = vld [vmem:[#allocation3 + $0xec] sm:$0xf] }
 0x5c4   :  { %v2941_v58 = vmul.f32 %v12880_v55, %v2923_v8  ;;  %12883 = vtanh.f32 %v2912_v28  ;;  %vm2946_vm6 = vweird.f32 %v12880_v55  ;;  %vm2932_vm9 = vmor %vm2930_vm7, %vm2931_vm5  ;;  %vm2960_vm14 = vweird.f32 %v2924_v27  ;;  %v12258_v28 = vld [vmem:[#allocation3 + $0xd4] sm:$0xf0] }
 0x5c5   :  { %v2927_v2 = vsub.f32 1.0, %v2926_v61  ;;  %vm2947_vm10 = vmor %vm2945_vm8, %vm2946_vm6  ;;  %v2964_v29 = vand.u32 2147483647, %v2924_v27  ;;  %v2967_v42 = vor.u32 1.1754944e-38, %v2966_v50  ;;  %v9939_v8 = vor.u32 %v12260_v45, %v9936_v24  ;;  %v9888_v50 = vld [vmem:[#allocation3 + $0x98] sm:$0xf0] }
 0x5c6   :  { %v2942_v3 = vsub.f32 1.0, %v2941_v58  ;;  %v12256_v58 = vld [vmem:[#allocation3 + $0xcc] sm:$0xf] }
 0x5c7   :  { %v2928_v54 = vmul.f32 %v12878_v36, %v2927_v2  ;;  %vm2965_vm0 = vcmp.eq.f32.partialorder %v2964_v29, 8.507059e+37  ;;  %3538 = vmatpush.bf16.msra.mxu3 %v9939_v8  ;;  %v9920_v2 = vld [vmem:[#allocation3 + $0xd8] sm:$0xf0]  ;;  %v9875_v8 = vor.u32 %v12244_v46, %v9872_v23  ;;  %v355_v46 = vadd.f32 %v13497_v34, %v13541_v43 }
 0x5c8   :  { %v2943_v60 = vmul.f32 %v12880_v55, %v2942_v3  ;;  %v9923_v3 = vor.u32 %v12256_v58, %v9920_v2  ;;  %v9856_v2 = vld [vmem:[#allocation3 + $0x58] sm:$0xf0] }
 0x5c9   :  { %v12882_v0 = vpop.eup %12881  ;;  %v2929_v30 = vadd.f32 %v12878_v36, %v2928_v54  ;;  %v12251_v54 = vld [vmem:[#allocation3 + $0xa4] sm:$0xf] }
 0x5ca   :  { %v2956_v13 = vmul.f32 %v12882_v0, %v2924_v27  ;;  %v2944_v18 = vadd.f32 %v12880_v55, %v2943_v60  ;;  %v12884_v1 = vpop.eup %12883  ;;  %vm2961_vm13 = vweird.f32 %v12882_v0  ;;  %v9912_v27 = vld [vmem:[#allocation3 + $0xd0] sm:$0xf0] }
 0x5cb   :  { %v2933_v47 = vsel %vm2932_vm9, %v12878_v36, %v2929_v30  ;;  %vm2962_vm15 = vmor %vm2960_vm14, %vm2961_vm13  ;;  %v9918_v36 = vld [vmem:[#allocation3 + $0xc8] sm:$0xf]  ;;  %3539 = vmatpush.bf16.msra.mxu3 %v9923_v3  ;;  %v9896_v60 = vld [vmem:[#allocation3 + $0xb0] sm:$0xf0] }
 0x5cc   :  { %v2957_v40 = vsub.f32 1.0, %v2956_v13  ;;  %v2938_v19 = vsel %vm2935_vm11, %v2937_v14, %v2933_v47  ;;  %v2948_v51 = vsel %vm2947_vm10, %v12880_v55, %v2944_v18  ;;  %v9915_v55 = vor.u32 %v12255_v10, %v9912_v27  ;;  %v12252_v14 = vld [vmem:[#allocation3 + $0xac] sm:$0xf]  ;;  %v9904_v18 = vld [vmem:[#allocation3 + $0xb8] sm:$0xf0] }
 0x5cd   :  { %v2953_v17 = vsel %vm2950_vm12, %v2952_v48, %v2948_v51  ;;  %v2972_v20 = vmul.f32 %v12884_v1, %v2938_v19  ;;  %v9919_v61 = vor.u32 %v12258_v28, %v9918_v36  ;;  %v9899_v30 = vor.u32 %v12251_v54, %v9896_v60  ;;  %v9878_v47 = vld [vmem:[#allocation3 + $0x80] sm:$0xf]  ;;  %v12249_v1 = vld [vmem:[#allocation3 + $0x8c] sm:$0xf0]  ;;  %v9880_v51 = vld [vmem:[#allocation3 + $0x90] sm:$0xf0] }
 0x5ce   :  { %v2958_v25 = vmul.f32 %v12882_v0, %v2957_v40  ;;  %v2971_v38 = vmul.f32 %v2953_v17, %v13617_v5  ;;  %v9926_v5 = vld [vmem:[#allocation3 + $0xe0] sm:$0xf]  ;;  %3513 = vmatpush.bf16.msra.mxu1 %v9915_v55  ;;  %v9907_v48 = vor.u32 %v12252_v14, %v9904_v18  ;;  %v12247_v40 = vld [vmem:[#allocation3 + $0x84] sm:$0xf]  ;;  %v9879_v19 = vor.u32 %v12249_v1, %v9878_v47  ;;  %v9886_v17 = vld [vmem:[#allocation3 + $0x88] sm:$0xf] }
 0x5cf   :  { %v9927_v9 = vor.u32 %v12261_v16, %v9926_v5  ;;  %3526 = vmatpush.bf16.msra.mxu2 %v9919_v61  ;;  %v9864_v5 = vld [vmem:[#allocation3 + $0x70] sm:$0xf0]  ;;  %v9870_v16 = vld [vmem:[#allocation3 + $0x68] sm:$0xf]  ;;  %v12242_v55 = vld [vmem:[#allocation3 + $0x54] sm:$0xf0] }
 0x5d0   :  { %v13629_v39 = vadd.f32 %v2972_v20, %v2971_v38  ;;  %v2959_v11 = vadd.f32 %v12882_v0, %v2958_v25  ;;  %3540 = vmatpush.bf16.msra.mxu3 %v9907_v48  ;;  %v12250_v20 = vld [vmem:[#allocation3 + $0x94] sm:$0xf0]  ;;  %v9883_v25 = vor.u32 %v12247_v40, %v9880_v51  ;;  %v9871_v7 = vor.u32 %v12246_v37, %v9870_v16  ;;  %v9848_v27 = vld [vmem:[#allocation3 + $0x50] sm:$0xf0]  ;;  %v9854_v28 = vld [vmem:[#allocation3 + $0x48] sm:$0xf] }
 0x5d1   :  { %3499 = vmatpush.bf16.msra.mxu0 %v9927_v9  ;;  %v9887_v38 = vor.u32 %v12250_v20, %v9886_v17  ;;  %v12240_v61 = vld [vmem:[#allocation3 + $0x4c] sm:$0xf]  ;;  %v9855_v58 = vor.u32 %v12242_v55, %v9854_v28  ;;  %v9830_v3 = vld [vmem:[#allocation3 + $0x20] sm:$0xf]  ;;  %v12235_v60 = vld [vmem:[#allocation3 + $0x24] sm:$0xf] }
 0x5d2   :  { %12885 = vtanh.f32 %v13629_v39  ;;  %v2963_v12 = vsel %vm2962_vm15, %v12882_v0, %v2959_v11  ;;  %v12254_v0 = vld [vmem:[#allocation3 + $0xb4] sm:$0xf0]  ;;  %3514 = vmatpush.bf16.msra.mxu1 %v9899_v30  ;;  %v12248_v11 = vld [vmem:[#allocation3 + $0x8c] sm:$0xf]  ;;  %v9859_v54 = vor.u32 %v12240_v61, %v9856_v2  ;;  %v9840_v47 = vld [vmem:[#allocation3 + $0x38] sm:$0xf0] }
 0x5d3   :  { %v2968_v15 = vsel %vm2965_vm0, %v2967_v42, %v2963_v12  ;;  %v9903_v13 = vor.u32 %v12254_v0, %v9902_v26  ;;  %v9891_v29 = vor.u32 %v12248_v11, %v9888_v50  ;;  %v9862_v12 = vld [vmem:[#allocation3 + $0x60] sm:$0xf]  ;;  %v12245_v42 = vld [vmem:[#allocation3 + $0x6c] sm:$0xf0]  ;;  %v9832_v26 = vld [vmem:[#allocation3 + $0x30] sm:$0xf0] }
 0x5d4   :  { %v9838_v0 = vld [vmem:[#allocation3 + $0x28] sm:$0xf]  ;;  %v9835_v14 = vor.u32 %v12235_v60, %v9832_v26  ;;  %v12238_v18 = vld [vmem:[#allocation3 + $0x34] sm:$0xf0]  ;;  %v12236_v48 = vld [vmem:[#allocation3 + $0x2c] sm:$0xf] }
 0x5d5   :  { %3500 = vmatpush.bf16.msra.mxu0 %v9911_v53  ;;  %3527 = vmatpush.bf16.msra.mxu2 %v9903_v13  ;;  %v9839_v51 = vor.u32 %v12238_v18, %v9838_v0  ;;  %v9843_v33 = vor.u32 %v12236_v48, %v9840_v47  ;;  %v9814_v17 = vld [vmem:[#allocation3] sm:$0xf]  ;;  %v12233_v20 = vld [vmem:[#allocation3 + $0xc] sm:$0xf0]  ;;  %v9816_v11 = vld [vmem:[#allocation3 + $0x10] sm:$0xf0] }
 0x5d6   :  { %3515 = vmatpush.bf16.msra.mxu1 %v9883_v25  ;;  %3541 = vmatpush.bf16.msra.mxu3 %v9891_v29  ;;  %v12231_v25 = vld [vmem:[#allocation3 + $0x4] sm:$0xf]  ;;  %v9822_v50 = vld [vmem:[#allocation3 + $0x8] sm:$0xf]  ;;  %v12234_v29 = vld [vmem:[#allocation3 + $0x14] sm:$0xf0] }
 0x5d8   :  { %v12886_v57 = vpop.eup %12885 }
 0x5d9   :  { %v2975_v56 = vmul.f32 %v12886_v57, %v2968_v15  ;;  %3501 = vmatpush.bf16.msra.mxu0 %v9895_v62  ;;  %3528 = vmatpush.bf16.msra.mxu2 %v9887_v38  ;;  %v12243_v57 = vld [vmem:[#allocation3 + $0x64] sm:$0xf]  ;;  %v238_v15 = vadd.f32 %v13491_v31, %v13520_v59  ;;  %v9846_v31 = vld [vmem:[#allocation3 + $0x40] sm:$0xf]  ;;  %v9831_v62 = vor.u32 %v12237_v21, %v9830_v3 }
 0x5da   :  { %v9867_v6 = vor.u32 %v12243_v57, %v9864_v5  ;;  %3542 = vmatpush.bf16.msra.mxu3 %v9875_v8  ;;  %v9847_v53 = vor.u32 %v12241_v44, %v9846_v31  ;;  %v9815_v38 = vor.u32 %v12233_v20, %v9814_v17  ;;  %v12232_v57 = vld [vmem:[#allocation3 + $0xc] sm:$0xf] }
 0x5db   :  { %v2976_v41 = vpack.c.bf16 %v2975_v56, %v2975_v56  ;;  %v277_v56 = vadd.f32 %v13493_v32, %v13525_v49  ;;  %v12239_v32 = vld [vmem:[#allocation3 + $0x44] sm:$0xf] }
 0x5dc   :  { %3516 = vmatpush.bf16.msra.mxu1 %v9867_v6  ;;  %v9851_v36 = vor.u32 %v12239_v32, %v9848_v27 }
 0x5dd   :  { %2978 = vst [vmem:[#allocation11 + $0x1c] sm:$0xf] %v2976_v41  ;;  %3186 = vmatmul.bf16.vlgmr.msrb.gmra.mxu0 %v2976_v41  ;;  %3199 = vmatmul.bf16.vlgmr.msrb.gmra.mxu1 %v2976_v41 }
 0x5de   :  { %3212 = vmatmul.bf16.vlgmr.msrb.gmra.mxu2 %v2976_v41  ;;  %3225 = vmatmul.bf16.vlgmr.msrb.gmra.mxu3 %v2976_v41  ;;  %v9863_v41 = vor.u32 %v12245_v42, %v9862_v12  ;;  %v9819_v42 = vor.u32 %v12231_v25, %v9816_v11  ;;  %v12293_v25 = vld [vmem:[#allocation3 + $0xec] sm:$0xf0] }
 0x5df   :  { %3502 = vmatpush.bf16.msra.mxu0 %v9879_v19  ;;  %3529 = vmatpush.bf16.msra.mxu2 %v9871_v7 }
 0x5e0   :  { %3517 = vmatpush.bf16.msra.mxu1 %v9851_v36  ;;  %3543 = vmatpush.bf16.msra.mxu3 %v9859_v54 }
 0x5e3   :  { %3503 = vmatpush.bf16.msra.mxu0 %v9863_v41  ;;  %3530 = vmatpush.bf16.msra.mxu2 %v9855_v58  ;;  %v9823_v41 = vor.u32 %v12234_v29, %v9822_v50  ;;  %v10059_v50 = vld [vmem:[#allocation3 + $0xf0] sm:$0xf0]  ;;  %v10065_v29 = vld [vmem:[#allocation3 + $0xe8] sm:$0xf] }
 0x5e4   :  { %3518 = vmatpush.bf16.msra.mxu1 %v9835_v14  ;;  %3544 = vmatpush.bf16.msra.mxu3 %v9843_v33 }
 0x5e7   :  { %3504 = vmatpush.bf16.msra.mxu0 %v9847_v53  ;;  %3531 = vmatpush.bf16.msra.mxu2 %v9839_v51 }
 0x5e8   :  { %3519 = vmatpush.bf16.msra.mxu1 %v9819_v42 }
 0x5eb   :  { %3505 = vmatpush.bf16.msra.mxu0 %v9831_v62  ;;  %3532 = vmatpush.bf16.msra.mxu2 %v9823_v41 }
 0x5ef   :  { %3506 = vmatpush.bf16.msra.mxu0 %v9815_v38  ;;  %v12291_v38 = vld [vmem:[#allocation3 + $0xe4] sm:$0xf] }
 0x5f0   :  { %v10062_v42 = vor.u32 %v12291_v38, %v10059_v50  ;;  %v12276_v50 = vld [vmem:[#allocation3 + $0x6c] sm:$0xf] }
 0x5f2   :  { %3833 = vmatpush.bf16.msrb.mxu1 %v10062_v42 }
 0x65a   :  { %v3187_v9 = vpop.f32.mrf.mxu0  ;;  %v3200_v4 = vpop.f32.mrf.mxu1 }
 0x65b   :  { %v3230_v45 = vadd.f32 %v3187_v9, %v238_v15  ;;  %v3231_v24 = vadd.f32 %v3200_v4, %v277_v56  ;;  %v9824_v15 = vld [vmem:[#allocation3 + $0x18] sm:$0xf0] }
 0x65c   :  { %v9827_v37 = vor.u32 %v12232_v57, %v9824_v15  ;;  %v12292_v15 = vld [vmem:[#allocation3 + $0xec] sm:$0xf] }
 0x65d   :  { %v9809_v22 = vmul.f32 -1.442695, %v3230_v45  ;;  %v9810_v10 = vmul.f32 -1.442695, %v3231_v24 }
 0x65e   :  { %3545 = vmatpush.bf16.msra.mxu3 %v9827_v37  ;;  %v12287_v37 = vld [vmem:[#allocation3 + $0xc4] sm:$0xf] }
 0x65f   :  { %12887 = vpow2.f32 %v9809_v22 }
 0x660   :  { %12889 = vpow2.f32 %v9810_v10 }
 0x661   :  { %v3213_v30 = vpop.f32.mrf.mxu2  ;;  %v3226_v13 = vpop.f32.mrf.mxu3 }
 0x662   :  { %v3232_v1 = vadd.f32 %v3213_v30, %v316_v63  ;;  %v3189_v40 = vpop.f32.mrf.mxu0  ;;  %v3202_v19 = vpop.f32.mrf.mxu1  ;;  %v3233_v24 = vadd.f32 %v3226_v13, %v355_v46 }
 0x664   :  { %v9811_v12 = vmul.f32 -1.442695, %v3232_v1 }
 0x665   :  { %v12888_v56 = vpop.eup %12887 }
 0x666   :  { %v12890_v5 = vpop.eup %12889  ;;  %v3243_v16 = vadd.f32 1.0, %v12888_v56  ;;  %12891 = vpow2.f32 %v9811_v12  ;;  %v12294_v12 = vld [vmem:[#allocation3 + $0xf4] sm:$0xf0]  ;;  %v10067_v56 = vld [vmem:[#allocation3 + $0xf8] sm:$0xf0] }
 0x667   :  { %v3244_v9 = vadd.f32 1.0, %v12890_v5  ;;  %v10066_v57 = vor.u32 %v12294_v12, %v10065_v29  ;;  %v10070_v41 = vor.u32 %v12292_v15, %v10067_v56  ;;  %v10041_v5 = vld [vmem:[#allocation3 + $0xc0] sm:$0xf]  ;;  %v10003_v29 = vld [vmem:[#allocation3 + $0x78] sm:$0xf0] }
 0x668   :  { %12893 = vrcp.f32 %v3243_v16  ;;  %v3257_v10 = vand.u32 2147483648, %v3243_v16  ;;  %v3255_v36 = vand.u32 2147483647, %v3243_v16  ;;  %vm3251_vm3 = vweird.f32 %v3243_v16  ;;  %v12273_v15 = vld [vmem:[#allocation3 + $0x4c] sm:$0xf0] }
 0x669   :  { %12895 = vrcp.f32 %v3244_v9  ;;  %v3215_v4 = vpop.f32.mrf.mxu2  ;;  %v3228_v6 = vpop.f32.mrf.mxu3  ;;  %v3272_v53 = vand.u32 2147483648, %v3244_v9  ;;  %v3270_v55 = vand.u32 2147483647, %v3244_v9  ;;  %vm3266_vm4 = vweird.f32 %v3244_v9  ;;  %3846 = vmatpush.bf16.msrb.mxu2 %v10066_v57  ;;  %3859 = vmatpush.bf16.msrb.mxu3 %v10070_v41  ;;  %v12271_v56 = vld [vmem:[#allocation3 + $0x44] sm:$0xf] }
 0x66a   :  { %v3258_v2 = vor.u32 1.1754944e-38, %v3257_v10  ;;  %vm3256_vm7 = vcmp.eq.f32.partialorder %v3255_v36, 8.507059e+37  ;;  %v10043_v4 = vld [vmem:[#allocation3 + $0xd0] sm:$0xf0]  ;;  %v10049_v6 = vld [vmem:[#allocation3 + $0xc8] sm:$0xf]  ;;  %v10006_v57 = vor.u32 %v12276_v50, %v10003_v29 }
 0x66b   :  { %v3273_v21 = vor.u32 1.1754944e-38, %v3272_v53  ;;  %vm3271_vm8 = vcmp.eq.f32.partialorder %v3270_v55, 8.507059e+37  ;;  %v10046_v46 = vor.u32 %v12287_v37, %v10043_v4  ;;  %v10027_v10 = vld [vmem:[#allocation3 + $0xb0] sm:$0xf0]  ;;  %v10033_v53 = vld [vmem:[#allocation3 + $0xa8] sm:$0xf] }
 0x66c   :  { %v12892_v7 = vpop.eup %12891  ;;  %v12284_v55 = vld [vmem:[#allocation3 + $0xac] sm:$0xf]  ;;  %v9979_v37 = vld [vmem:[#allocation3 + $0x50] sm:$0xf0]  ;;  %v9985_v4 = vld [vmem:[#allocation3 + $0x48] sm:$0xf] }
 0x66d   :  { %v3245_v23 = vadd.f32 1.0, %v12892_v7  ;;  %v12290_v7 = vld [vmem:[#allocation3 + $0xd4] sm:$0xf0]  ;;  %3834 = vmatpush.bf16.msrb.mxu1 %v10046_v46 }
 0x66e   :  { %v12894_v45 = vpop.eup %12893 }
 0x66f   :  { %v12896_v8 = vpop.eup %12895  ;;  %v3247_v31 = vmul.f32 %v12894_v45, %v3243_v16  ;;  %12897 = vrcp.f32 %v3245_v23  ;;  %vm3252_vm1 = vweird.f32 %v12894_v45  ;;  %v3287_v47 = vand.u32 2147483648, %v3245_v23  ;;  %v12289_v16 = vld [vmem:[#allocation3 + $0xcc] sm:$0xf0] }
 0x670   :  { %v3262_v44 = vmul.f32 %v12896_v8, %v3244_v9  ;;  %12899 = vtanh.f32 %v3233_v24  ;;  %vm3267_vm2 = vweird.f32 %v12896_v8  ;;  %vm3253_vm5 = vmor %vm3251_vm3, %vm3252_vm1  ;;  %vm3281_vm10 = vweird.f32 %v3245_v23  ;;  %v10051_v24 = vld [vmem:[#allocation3 + $0xd8] sm:$0xf0] }
 0x671   :  { %v3248_v32 = vsub.f32 1.0, %v3247_v31  ;;  %vm3268_vm6 = vmor %vm3266_vm4, %vm3267_vm2  ;;  %v3285_v1 = vand.u32 2147483647, %v3245_v23  ;;  %v3288_v19 = vor.u32 1.1754944e-38, %v3287_v47  ;;  %v10042_v9 = vor.u32 %v12289_v16, %v10041_v5  ;;  %v10025_v31 = vld [vmem:[#allocation3 + $0xa0] sm:$0xf] }
 0x672   :  { %v3263_v22 = vsub.f32 1.0, %v3262_v44  ;;  %v12285_v44 = vld [vmem:[#allocation3 + $0xac] sm:$0xf0]  ;;  %v12275_v47 = vld [vmem:[#allocation3 + $0x64] sm:$0xf] }
 0x673   :  { %v3249_v27 = vmul.f32 %v12894_v45, %v3248_v32  ;;  %vm3286_vm12 = vcmp.eq.f32.partialorder %v3285_v1, 8.507059e+37  ;;  %v12283_v32 = vld [vmem:[#allocation3 + $0xa4] sm:$0xf]  ;;  %v240_v1 = vadd.f32 %v13499_v35, %v13520_v59  ;;  %v9977_v35 = vld [vmem:[#allocation3 + $0x40] sm:$0xf] }
 0x674   :  { %v3264_v28 = vmul.f32 %v12896_v8, %v3263_v22  ;;  %v10026_v22 = vor.u32 %v12285_v44, %v10025_v31  ;;  %v10030_v36 = vor.u32 %v12283_v32, %v10027_v10  ;;  %v9978_v16 = vor.u32 %v12273_v15, %v9977_v35  ;;  %v9963_v10 = vld [vmem:[#allocation3 + $0x30] sm:$0xf0] }
 0x675   :  { %v12898_v61 = vpop.eup %12897  ;;  %v3250_v34 = vadd.f32 %v12894_v45, %v3249_v27  ;;  %v12286_v27 = vld [vmem:[#allocation3 + $0xb4] sm:$0xf0] }
 0x676   :  { %v3277_v58 = vmul.f32 %v12898_v61, %v3245_v23  ;;  %v3265_v3 = vadd.f32 %v12896_v8, %v3264_v28  ;;  %v12900_v54 = vpop.eup %12899  ;;  %vm3282_vm9 = vweird.f32 %v12898_v61  ;;  %v10050_v23 = vor.u32 %v12290_v7, %v10049_v6  ;;  %3835 = vmatpush.bf16.msrb.mxu1 %v10030_v36  ;;  %v12274_v6 = vld [vmem:[#allocation3 + $0x54] sm:$0xf0]  ;;  %v12272_v7 = vld [vmem:[#allocation3 + $0x4c] sm:$0xf] }
 0x677   :  { %v3254_v63 = vsel %vm3253_vm5, %v12894_v45, %v3250_v34  ;;  %vm3283_vm11 = vmor %vm3281_vm10, %vm3282_vm9  ;;  %v12288_v45 = vld [vmem:[#allocation3 + $0xcc] sm:$0xf]  ;;  %v10034_v28 = vor.u32 %v12286_v27, %v10033_v53  ;;  %v9986_v46 = vor.u32 %v12274_v6, %v9985_v4  ;;  %v9969_v53 = vld [vmem:[#allocation3 + $0x28] sm:$0xf] }
 0x678   :  { %v3278_v62 = vsub.f32 1.0, %v3277_v58  ;;  %v3259_v60 = vsel %vm3256_vm7, %v3258_v2, %v3254_v63  ;;  %v3269_v26 = vsel %vm3268_vm6, %v12896_v8, %v3265_v3  ;;  %v10054_v8 = vor.u32 %v12288_v45, %v10051_v24  ;;  %3847 = vmatpush.bf16.msrb.mxu2 %v10050_v23  ;;  %v10009_v58 = vld [vmem:[#allocation3 + $0x80] sm:$0xf]  ;;  %v12281_v2 = vld [vmem:[#allocation3 + $0x8c] sm:$0xf0] }
 0x679   :  { %v3274_v0 = vsel %vm3271_vm8, %v3273_v21, %v3269_v26  ;;  %v3293_v30 = vmul.f32 %v12900_v54, %v3259_v60  ;;  %v12279_v3 = vld [vmem:[#allocation3 + $0x84] sm:$0xf]  ;;  %v10010_v21 = vor.u32 %v12281_v2, %v10009_v58  ;;  %v10011_v63 = vld [vmem:[#allocation3 + $0x90] sm:$0xf0]  ;;  %v10017_v54 = vld [vmem:[#allocation3 + $0x88] sm:$0xf] }
 0x67a   :  { %v3279_v13 = vmul.f32 %v12898_v61, %v3278_v62  ;;  %v3292_v14 = vmul.f32 %v3274_v0, %v13629_v39  ;;  %v10057_v39 = vld [vmem:[#allocation3 + $0xe0] sm:$0xf]  ;;  %3860 = vmatpush.bf16.msrb.mxu3 %v10054_v8  ;;  %v12282_v62 = vld [vmem:[#allocation3 + $0x94] sm:$0xf0]  ;;  %v10014_v60 = vor.u32 %v12279_v3, %v10011_v63  ;;  %v12280_v0 = vld [vmem:[#allocation3 + $0x8c] sm:$0xf] }
 0x67b   :  { %v10058_v11 = vor.u32 %v12293_v25, %v10057_v39  ;;  %v10018_v26 = vor.u32 %v12282_v62, %v10017_v54  ;;  %v9987_v23 = vld [vmem:[#allocation3 + $0x58] sm:$0xf0]  ;;  %v9961_v45 = vld [vmem:[#allocation3 + $0x20] sm:$0xf]  ;;  %v12269_v24 = vld [vmem:[#allocation3 + $0x2c] sm:$0xf0] }
 0x67c   :  { %v13641_v18 = vadd.f32 %v3293_v30, %v3292_v14  ;;  %v3280_v48 = vadd.f32 %v12898_v61, %v3279_v13  ;;  %3848 = vmatpush.bf16.msrb.mxu2 %v10034_v28  ;;  %v10019_v30 = vld [vmem:[#allocation3 + $0x98] sm:$0xf0]  ;;  %3836 = vmatpush.bf16.msrb.mxu1 %v10014_v60  ;;  %v9993_v14 = vld [vmem:[#allocation3 + $0x60] sm:$0xf]  ;;  %v9990_v44 = vor.u32 %v12272_v7, %v9987_v23  ;;  %v12265_v62 = vld [vmem:[#allocation3 + $0xc] sm:$0xf0] }
 0x67d   :  { %3820 = vmatpush.bf16.msrb.mxu0 %v10058_v11  ;;  %v10022_v13 = vor.u32 %v12280_v0, %v10019_v30  ;;  %v14074_v8 = vld [vmem:[#allocation17_spill] sm:$0xff]  ;;  %v9962_v32 = vor.u32 %v12269_v24, %v9961_v45  ;;  %v12263_v60 = vld [vmem:[#allocation3 + $0x4] sm:$0xf]  ;;  %v9947_v0 = vld [vmem:[#allocation3 + $0x10] sm:$0xf0] }
 0x67e   :  { %12901 = vtanh.f32 %v13641_v18  ;;  %v3284_v40 = vsel %vm3283_vm11, %v12898_v61, %v3280_v48  ;;  %v10035_v61 = vld [vmem:[#allocation3 + $0xb8] sm:$0xf0]  ;;  %v12277_v48 = vld [vmem:[#allocation3 + $0x6c] sm:$0xf0]  ;;  %v318_v31 = vadd.f32 %v14074_v8, %v13536_v52  ;;  %v9945_v54 = vld [vmem:[#allocation3] sm:$0xf] }
 0x67f   :  { %v3289_v33 = vsel %vm3286_vm12, %v3288_v19, %v3284_v40  ;;  %v10038_v34 = vor.u32 %v12284_v55, %v10035_v61  ;;  %v14073_v40 = vld [vmem:[#allocation16_spill] sm:$0xff]  ;;  %v12268_v61 = vld [vmem:[#allocation3 + $0x2c] sm:$0xf]  ;;  %v9953_v30 = vld [vmem:[#allocation3 + $0x8] sm:$0xf] }
 0x680   :  { %3849 = vmatpush.bf16.msrb.mxu2 %v10018_v26  ;;  %v279_v19 = vadd.f32 %v14073_v40, %v13525_v49  ;;  %v12270_v55 = vld [vmem:[#allocation3 + $0x34] sm:$0xf0]  ;;  %v9946_v26 = vor.u32 %v12265_v62, %v9945_v54 }
 0x681   :  { %3821 = vmatpush.bf16.msrb.mxu0 %v10042_v9  ;;  %3861 = vmatpush.bf16.msrb.mxu3 %v10038_v34  ;;  %v9982_v9 = vor.u32 %v12271_v56, %v9979_v37  ;;  %v9971_v34 = vld [vmem:[#allocation3 + $0x38] sm:$0xf0] }
 0x682   :  { %v9974_v63 = vor.u32 %v12268_v61, %v9971_v34 }
 0x684   :  { %v12902_v51 = vpop.eup %12901 }
 0x685   :  { %v3296_v17 = vmul.f32 %v12902_v51, %v3289_v33  ;;  %3822 = vmatpush.bf16.msrb.mxu0 %v10026_v22  ;;  %3862 = vmatpush.bf16.msrb.mxu3 %v10022_v13  ;;  %v9994_v51 = vor.u32 %v12277_v48, %v9993_v14  ;;  %v9995_v33 = vld [vmem:[#allocation3 + $0x70] sm:$0xf0]  ;;  %v12267_v22 = vld [vmem:[#allocation3 + $0x24] sm:$0xf]  ;;  %v12266_v13 = vld [vmem:[#allocation3 + $0x14] sm:$0xf0]  ;;  %v9950_v48 = vor.u32 %v12263_v60, %v9947_v0 }
 0x686   :  { %v9998_v38 = vor.u32 %v12275_v47, %v9995_v33  ;;  %v9966_v28 = vor.u32 %v12267_v22, %v9963_v10  ;;  %v12264_v47 = vld [vmem:[#allocation3 + $0xc] sm:$0xf]  ;;  %v12325_v60 = vld [vmem:[#allocation3 + $0xec] sm:$0xf0] }
 0x687   :  { %v3297_v20 = vpack.c.bf16 %v3296_v17, %v3296_v17  ;;  %v10001_v17 = vld [vmem:[#allocation3 + $0x68] sm:$0xf] }
 0x688   :  { %3837 = vmatpush.bf16.msrb.mxu1 %v9998_v38 }
 0x689   :  { %3299 = vst [vmem:[#allocation11 + $0x20] sm:$0xf] %v3297_v20  ;;  %3507 = vmatmul.bf16.vlgmr.msra.gmra.mxu0 %v3297_v20  ;;  %3520 = vmatmul.bf16.vlgmr.msra.gmra.mxu1 %v3297_v20 }
 0x68a   :  { %3533 = vmatmul.bf16.vlgmr.msra.gmra.mxu2 %v3297_v20  ;;  %3546 = vmatmul.bf16.vlgmr.msra.gmra.mxu3 %v3297_v20  ;;  %v12278_v20 = vld [vmem:[#allocation3 + $0x74] sm:$0xf0] }
 0x68b   :  { %3823 = vmatpush.bf16.msrb.mxu0 %v10010_v21  ;;  %v10002_v11 = vor.u32 %v12278_v20, %v10001_v17  ;;  %3863 = vmatpush.bf16.msrb.mxu3 %v10006_v57  ;;  %v9970_v21 = vor.u32 %v12270_v55, %v9969_v53 }
 0x68c   :  { %3838 = vmatpush.bf16.msrb.mxu1 %v9982_v9 }
 0x68d   :  { %3850 = vmatpush.bf16.msrb.mxu2 %v10002_v11  ;;  %v14075_v11 = vld [vmem:[#allocation18_spill] sm:$0xff] }
 0x68e   :  { %v357_v50 = vadd.f32 %v14075_v11, %v13541_v43 }
 0x68f   :  { %3824 = vmatpush.bf16.msrb.mxu0 %v9994_v51  ;;  %3864 = vmatpush.bf16.msrb.mxu3 %v9990_v44 }
 0x690   :  { %3839 = vmatpush.bf16.msrb.mxu1 %v9966_v28 }
 0x691   :  { %3851 = vmatpush.bf16.msrb.mxu2 %v9986_v46 }
 0x693   :  { %3825 = vmatpush.bf16.msrb.mxu0 %v9978_v16  ;;  %3865 = vmatpush.bf16.msrb.mxu3 %v9974_v63 }
 0x694   :  { %3840 = vmatpush.bf16.msrb.mxu1 %v9950_v48 }
 0x695   :  { %3852 = vmatpush.bf16.msrb.mxu2 %v9970_v21 }
 0x697   :  { %3826 = vmatpush.bf16.msrb.mxu0 %v9962_v32 }
 0x69b   :  { %3827 = vmatpush.bf16.msrb.mxu0 %v9946_v26  ;;  %v12323_v26 = vld [vmem:[#allocation3 + $0xe4] sm:$0xf] }
 0x706   :  { %v3508_v39 = vpop.f32.mrf.mxu0  ;;  %v3521_v25 = vpop.f32.mrf.mxu1 }
 0x707   :  { %v3551_v12 = vadd.f32 %v3508_v39, %v240_v1  ;;  %v3552_v42 = vadd.f32 %v3521_v25, %v279_v19  ;;  %v9955_v1 = vld [vmem:[#allocation3 + $0x18] sm:$0xf0]  ;;  %v9954_v19 = vor.u32 %v12266_v13, %v9953_v30  ;;  %v10190_v30 = vld [vmem:[#allocation3 + $0xf0] sm:$0xf0]  ;;  %v10196_v13 = vld [vmem:[#allocation3 + $0xe8] sm:$0xf] }
 0x708   :  { %v9958_v17 = vor.u32 %v12264_v47, %v9955_v1  ;;  %v10193_v48 = vor.u32 %v12323_v26, %v10190_v30  ;;  %v12324_v1 = vld [vmem:[#allocation3 + $0xec] sm:$0xf]  ;;  %v12305_v26 = vld [vmem:[#allocation3 + $0x4c] sm:$0xf0] }
 0x709   :  { %v9940_v41 = vmul.f32 -1.442695, %v3551_v12  ;;  %v9941_v5 = vmul.f32 -1.442695, %v3552_v42  ;;  %3853 = vmatpush.bf16.msrb.mxu2 %v9954_v19 }
 0x70a   :  { %3866 = vmatpush.bf16.msrb.mxu3 %v9958_v17  ;;  %4154 = vmatpush.bf16.msra.mxu1 %v10193_v48  ;;  %v12319_v17 = vld [vmem:[#allocation3 + $0xc4] sm:$0xf]  ;;  %v12306_v48 = vld [vmem:[#allocation3 + $0x54] sm:$0xf0] }
 0x70b   :  { %12903 = vpow2.f32 %v9940_v41 }
 0x70c   :  { %12905 = vpow2.f32 %v9941_v5 }
 0x70d   :  { %v3534_v27 = vpop.f32.mrf.mxu2  ;;  %v3547_v36 = vpop.f32.mrf.mxu3 }
 0x70e   :  { %v3553_v58 = vadd.f32 %v3534_v27, %v318_v31  ;;  %v3510_v2 = vpop.f32.mrf.mxu0  ;;  %v3523_v3 = vpop.f32.mrf.mxu1  ;;  %v3554_v42 = vadd.f32 %v3547_v36, %v357_v50 }
 0x710   :  { %v9942_v14 = vmul.f32 -1.442695, %v3553_v58 }
 0x711   :  { %v12904_v40 = vpop.eup %12903 }
 0x712   :  { %v12906_v51 = vpop.eup %12905  ;;  %v3564_v33 = vadd.f32 1.0, %v12904_v40  ;;  %12907 = vpow2.f32 %v9942_v14  ;;  %v12326_v14 = vld [vmem:[#allocation3 + $0xf4] sm:$0xf0]  ;;  %v10198_v40 = vld [vmem:[#allocation3 + $0xf8] sm:$0xf0] }
 0x713   :  { %v3565_v20 = vadd.f32 1.0, %v12906_v51  ;;  %v10197_v47 = vor.u32 %v12326_v14, %v10196_v13  ;;  %v10201_v19 = vor.u32 %v12324_v1, %v10198_v40  ;;  %v10172_v51 = vld [vmem:[#allocation3 + $0xc0] sm:$0xf]  ;;  %v10110_v13 = vld [vmem:[#allocation3 + $0x50] sm:$0xf0] }
 0x714   :  { %12909 = vrcp.f32 %v3564_v33  ;;  %v3578_v5 = vand.u32 2147483648, %v3564_v33  ;;  %v3576_v9 = vand.u32 2147483647, %v3564_v33  ;;  %vm3572_vm15 = vweird.f32 %v3564_v33  ;;  %v10116_v14 = vld [vmem:[#allocation3 + $0x48] sm:$0xf] }
 0x715   :  { %12911 = vrcp.f32 %v3565_v20  ;;  %v3536_v39 = vpop.f32.mrf.mxu2  ;;  %v3549_v25 = vpop.f32.mrf.mxu3  ;;  %v3593_v16 = vand.u32 2147483648, %v3565_v20  ;;  %v3591_v6 = vand.u32 2147483647, %v3565_v20  ;;  %vm3587_vm0 = vweird.f32 %v3565_v20  ;;  %4167 = vmatpush.bf16.msra.mxu2 %v10197_v47  ;;  %4180 = vmatpush.bf16.msra.mxu3 %v10201_v19  ;;  %v12304_v40 = vld [vmem:[#allocation3 + $0x4c] sm:$0xf] }
 0x716   :  { %v3579_v45 = vor.u32 1.1754944e-38, %v3578_v5  ;;  %vm3577_vm3 = vcmp.eq.f32.partialorder %v3576_v9, 8.507059e+37  ;;  %v10174_v39 = vld [vmem:[#allocation3 + $0xd0] sm:$0xf0]  ;;  %v10180_v25 = vld [vmem:[#allocation3 + $0xc8] sm:$0xf]  ;;  %v10117_v1 = vor.u32 %v12306_v48, %v10116_v14 }
 0x717   :  { %v3594_v8 = vor.u32 1.1754944e-38, %v3593_v16  ;;  %vm3592_vm4 = vcmp.eq.f32.partialorder %v3591_v6, 8.507059e+37  ;;  %v10177_v11 = vor.u32 %v12319_v17, %v10174_v39  ;;  %v10164_v5 = vld [vmem:[#allocation3 + $0xa8] sm:$0xf]  ;;  %v12318_v16 = vld [vmem:[#allocation3 + $0xb4] sm:$0xf0] }
 0x718   :  { %v12908_v38 = vpop.eup %12907  ;;  %v10165_v9 = vor.u32 %v12318_v16, %v10164_v5  ;;  %v10166_v6 = vld [vmem:[#allocation3 + $0xb8] sm:$0xf0]  ;;  %v12301_v17 = vld [vmem:[#allocation3 + $0x2c] sm:$0xf0]  ;;  %v10078_v5 = vld [vmem:[#allocation3 + $0x10] sm:$0xf0] }
 0x719   :  { %v3566_v29 = vadd.f32 1.0, %v12908_v38  ;;  %v12322_v38 = vld [vmem:[#allocation3 + $0xd4] sm:$0xf0]  ;;  %4155 = vmatpush.bf16.msra.mxu1 %v10177_v11  ;;  %v10118_v19 = vld [vmem:[#allocation3 + $0x58] sm:$0xf0] }
 0x71a   :  { %v12910_v12 = vpop.eup %12909  ;;  %v10181_v50 = vor.u32 %v12322_v38, %v10180_v25  ;;  %v10094_v25 = vld [vmem:[#allocation3 + $0x30] sm:$0xf0]  ;;  %v10100_v38 = vld [vmem:[#allocation3 + $0x28] sm:$0xf]  ;;  %v12302_v11 = vld [vmem:[#allocation3 + $0x34] sm:$0xf0] }
 0x71b   :  { %v12912_v57 = vpop.eup %12911  ;;  %v3568_v35 = vmul.f32 %v12910_v12, %v3564_v33  ;;  %12913 = vrcp.f32 %v3566_v29  ;;  %vm3573_vm13 = vweird.f32 %v12910_v12  ;;  %v3608_v34 = vand.u32 2147483648, %v3566_v29  ;;  %v12321_v33 = vld [vmem:[#allocation3 + $0xcc] sm:$0xf0]  ;;  %v10084_v16 = vld [vmem:[#allocation3 + $0x8] sm:$0xf] }
 0x71c   :  { %v3583_v15 = vmul.f32 %v12912_v57, %v3565_v20  ;;  %12915 = vtanh.f32 %v3554_v42  ;;  %vm3588_vm14 = vweird.f32 %v12912_v57  ;;  %vm3574_vm1 = vmor %vm3572_vm15, %vm3573_vm13  ;;  %vm3602_vm6 = vweird.f32 %v3566_v29  ;;  %4168 = vmatpush.bf16.msra.mxu2 %v10181_v50  ;;  %v12360_v14 = vld [vmem:[#allocation8 + $0xd4] sm:$0xf0] }
 0x71d   :  { %v3569_v56 = vsub.f32 1.0, %v3568_v35  ;;  %vm3589_vm2 = vmor %vm3587_vm0, %vm3588_vm14  ;;  %v3606_v58 = vand.u32 2147483647, %v3566_v29  ;;  %v3609_v3 = vor.u32 1.1754944e-38, %v3608_v34  ;;  %v10173_v20 = vor.u32 %v12321_v33, %v10172_v51  ;;  %v12317_v35 = vld [vmem:[#allocation3 + $0xac] sm:$0xf0] }
 0x71e   :  { %v3584_v41 = vsub.f32 1.0, %v3583_v15  ;;  %v12315_v15 = vld [vmem:[#allocation3 + $0xa4] sm:$0xf]  ;;  %v10121_v51 = vor.u32 %v12304_v40, %v10118_v19  ;;  %v10092_v33 = vld [vmem:[#allocation3 + $0x20] sm:$0xf] }
 0x71f   :  { %v3570_v37 = vmul.f32 %v12910_v12, %v3569_v56  ;;  %vm3607_vm8 = vcmp.eq.f32.partialorder %v3606_v58, 8.507059e+37  ;;  %v10126_v58 = vld [vmem:[#allocation3 + $0x70] sm:$0xf0]  ;;  %v10093_v39 = vor.u32 %v12301_v17, %v10092_v33  ;;  %v10337_v40 = vld [vmem:[#allocation8 + $0xd8] sm:$0xf0] }
 0x720   :  { %v3585_v4 = vmul.f32 %v12912_v57, %v3584_v41  ;;  %v10158_v41 = vld [vmem:[#allocation3 + $0xb0] sm:$0xf0]  ;;  %4169 = vmatpush.bf16.msra.mxu2 %v10165_v9  ;;  %v14076_v9 = vld [vmem:[#allocation19_spill] sm:$0xff]  ;;  %v10311_v19 = vld [vmem:[#allocation8 + $0xa0] sm:$0xf] }
 0x721   :  { %v12914_v7 = vpop.eup %12913  ;;  %v3571_v46 = vadd.f32 %v12910_v12, %v3570_v37  ;;  %v10161_v37 = vor.u32 %v12315_v15, %v10158_v41  ;;  %v12297_v15 = vld [vmem:[#allocation3 + $0xc] sm:$0xf0] }
 0x722   :  { %v3598_v23 = vmul.f32 %v12914_v7, %v3566_v29  ;;  %v3586_v24 = vadd.f32 %v12912_v57, %v3585_v4  ;;  %v12916_v44 = vpop.eup %12915  ;;  %vm3603_vm5 = vweird.f32 %v12914_v7  ;;  %v12320_v29 = vld [vmem:[#allocation3 + $0xcc] sm:$0xf] }
 0x723   :  { %v3575_v31 = vsel %vm3574_vm1, %v12910_v12, %v3571_v46  ;;  %vm3604_vm7 = vmor %vm3602_vm6, %vm3603_vm5  ;;  %v10182_v12 = vld [vmem:[#allocation3 + $0xd8] sm:$0xf0]  ;;  %v12316_v4 = vld [vmem:[#allocation3 + $0xac] sm:$0xf]  ;;  %4156 = vmatpush.bf16.msra.mxu1 %v10161_v37 }
 0x724   :  { %v3599_v32 = vsub.f32 1.0, %v3598_v23  ;;  %v3580_v22 = vsel %vm3577_vm3, %v3579_v45, %v3575_v31  ;;  %v3590_v10 = vsel %vm3589_vm2, %v12912_v57, %v3586_v24  ;;  %v10185_v42 = vor.u32 %v12320_v29, %v10182_v12  ;;  %v10156_v57 = vld [vmem:[#allocation3 + $0xa0] sm:$0xf]  ;;  %v12313_v23 = vld [vmem:[#allocation3 + $0x8c] sm:$0xf0] }
 0x725   :  { %v3595_v53 = vsel %vm3592_vm4, %v3594_v8, %v3590_v10  ;;  %v3614_v27 = vmul.f32 %v12916_v44, %v3580_v22  ;;  %v10157_v56 = vor.u32 %v12317_v35, %v10156_v57  ;;  %v10140_v46 = vld [vmem:[#allocation3 + $0x80] sm:$0xf]  ;;  %v12311_v45 = vld [vmem:[#allocation3 + $0x84] sm:$0xf]  ;;  %v10142_v8 = vld [vmem:[#allocation3 + $0x90] sm:$0xf0]  ;;  %v10101_v29 = vor.u32 %v12302_v11, %v10100_v38 }
 0x726   :  { %v3600_v36 = vmul.f32 %v12914_v7, %v3599_v32  ;;  %v3613_v28 = vmul.f32 %v3595_v53, %v13641_v18  ;;  %v10188_v18 = vld [vmem:[#allocation3 + $0xe0] sm:$0xf]  ;;  %4181 = vmatpush.bf16.msra.mxu3 %v10185_v42  ;;  %v10141_v24 = vor.u32 %v12313_v23, %v10140_v46  ;;  %v10148_v31 = vld [vmem:[#allocation3 + $0x88] sm:$0xf]  ;;  %v12314_v44 = vld [vmem:[#allocation3 + $0x94] sm:$0xf0]  ;;  %v10145_v32 = vor.u32 %v12311_v45, %v10142_v8 }
 0x727   :  { %v10189_v0 = vor.u32 %v12325_v60, %v10188_v18  ;;  %v10149_v22 = vor.u32 %v12314_v44, %v10148_v31  ;;  %v12312_v10 = vld [vmem:[#allocation3 + $0x8c] sm:$0xf]  ;;  %v10150_v53 = vld [vmem:[#allocation3 + $0x98] sm:$0xf0]  ;;  %v10108_v60 = vld [vmem:[#allocation3 + $0x40] sm:$0xf] }
 0x728   :  { %v13653_v55 = vadd.f32 %v3614_v27, %v3613_v28  ;;  %v3601_v61 = vadd.f32 %v12914_v7, %v3600_v36  ;;  %v10153_v27 = vor.u32 %v12312_v10, %v10150_v53  ;;  %4157 = vmatpush.bf16.msra.mxu1 %v10145_v32  ;;  %v10124_v36 = vld [vmem:[#allocation3 + $0x60] sm:$0xf]  ;;  %v12309_v28 = vld [vmem:[#allocation3 + $0x6c] sm:$0xf0]  ;;  %v10109_v30 = vor.u32 %v12305_v26, %v10108_v60  ;;  %v12300_v12 = vld [vmem:[#allocation3 + $0x2c] sm:$0xf] }
 0x729   :  { %4141 = vmatpush.bf16.msra.mxu0 %v10189_v0  ;;  %4170 = vmatpush.bf16.msra.mxu2 %v10149_v22  ;;  %v10125_v34 = vor.u32 %v12309_v28, %v10124_v36  ;;  %v12303_v0 = vld [vmem:[#allocation3 + $0x44] sm:$0xf]  ;;  %v10102_v42 = vld [vmem:[#allocation3 + $0x38] sm:$0xf0]  ;;  %v10076_v35 = vld [vmem:[#allocation3] sm:$0xf] }
 0x72a   :  { %12917 = vtanh.f32 %v13653_v55  ;;  %v3605_v2 = vsel %vm3604_vm7, %v12914_v7, %v3601_v61  ;;  %v10169_v7 = vor.u32 %v12316_v4, %v10166_v6  ;;  %v12307_v61 = vld [vmem:[#allocation3 + $0x64] sm:$0xf]  ;;  %v10113_v47 = vor.u32 %v12303_v0, %v10110_v13  ;;  %v12298_v37 = vld [vmem:[#allocation3 + $0x14] sm:$0xf0]  ;;  %v12296_v45 = vld [vmem:[#allocation3 + $0xc] sm:$0xf] }
 0x72b   :  { %v3610_v63 = vsel %vm3607_vm8, %v3609_v3, %v3605_v2  ;;  %v10132_v2 = vld [vmem:[#allocation3 + $0x68] sm:$0xf]  ;;  %v12310_v3 = vld [vmem:[#allocation3 + $0x74] sm:$0xf0]  ;;  %v10105_v57 = vor.u32 %v12300_v12, %v10102_v42  ;;  %v10077_v41 = vor.u32 %v12297_v15, %v10076_v35  ;;  %v243_v4 = vadd.f32 %v14076_v9, %v13520_v59  ;;  %v10343_v8 = vld [vmem:[#allocation8 + $0xe0] sm:$0xf] }
 0x72c   :  { %4182 = vmatpush.bf16.msra.mxu3 %v10169_v7  ;;  %v14077_v6 = vld [vmem:[#allocation20_spill] sm:$0xff]  ;;  %v10085_v23 = vor.u32 %v12298_v37, %v10084_v16  ;;  %v12361_v10 = vld [vmem:[#allocation8 + $0xe4] sm:$0xf]  ;;  %v10335_v13 = vld [vmem:[#allocation8 + $0xc8] sm:$0xf] }
 0x72d   :  { %4142 = vmatpush.bf16.msra.mxu0 %v10173_v20  ;;  %v12299_v20 = vld [vmem:[#allocation3 + $0x24] sm:$0xf]  ;;  %v282_v7 = vadd.f32 %v14077_v6, %v13525_v49  ;;  %v12363_v22 = vld [vmem:[#allocation8 + $0xec] sm:$0xf0]  ;;  %v10345_v53 = vld [vmem:[#allocation8 + $0xf0] sm:$0xf0] }
 0x72e   :  { %v10097_v50 = vor.u32 %v12299_v20, %v10094_v25  ;;  %v10344_v28 = vor.u32 %v12363_v22, %v10343_v8  ;;  %v12357_v0 = vld [vmem:[#allocation8 + $0xc4] sm:$0xf]  ;;  %v12355_v20 = vld [vmem:[#allocation8 + $0xac] sm:$0xf0]  ;;  %v10313_v25 = vld [vmem:[#allocation8 + $0xb0] sm:$0xf0] }
 0x72f   :  { %v12356_v12 = vld [vmem:[#allocation8 + $0xb4] sm:$0xf0]  ;;  %v12354_v42 = vld [vmem:[#allocation8 + $0xac] sm:$0xf]  ;;  %v10295_v16 = vld [vmem:[#allocation8 + $0x80] sm:$0xf] }
 0x730   :  { %v12918_v21 = vpop.eup %12917  ;;  %4183 = vmatpush.bf16.msra.mxu3 %v10153_v27  ;;  %v12351_v37 = vld [vmem:[#allocation8 + $0x8c] sm:$0xf0]  ;;  %v10297_v6 = vld [vmem:[#allocation8 + $0x90] sm:$0xf0] }
 0x731   :  { %v3617_v54 = vmul.f32 %v12918_v21, %v3610_v63  ;;  %4143 = vmatpush.bf16.msra.mxu0 %v10157_v56  ;;  %v10129_v21 = vor.u32 %v12307_v61, %v10126_v58  ;;  %v10133_v63 = vor.u32 %v12310_v3, %v10132_v2  ;;  %v12295_v56 = vld [vmem:[#allocation3 + $0x4] sm:$0xf]  ;;  %v10351_v61 = vld [vmem:[#allocation8 + $0xe8] sm:$0xf]  ;;  %v12362_v58 = vld [vmem:[#allocation8 + $0xec] sm:$0xf]  ;;  %v10348_v2 = vor.u32 %v12361_v10, %v10345_v53 }
 0x732   :  { %v10081_v46 = vor.u32 %v12295_v56, %v10078_v5  ;;  %v10321_v5 = vld [vmem:[#allocation8 + $0xb8] sm:$0xf0]  ;;  %v10296_v8 = vor.u32 %v12351_v37, %v10295_v16  ;;  %v12337_v16 = vld [vmem:[#allocation8 + $0x24] sm:$0xf]  ;;  %v10249_v37 = vld [vmem:[#allocation8 + $0x30] sm:$0xf0] }
 0x733   :  { %v3618_v62 = vpack.c.bf16 %v3617_v54, %v3617_v54  ;;  %v12308_v54 = vld [vmem:[#allocation3 + $0x6c] sm:$0xf]  ;;  %4158 = vmatpush.bf16.msra.mxu1 %v10129_v21  ;;  %4171 = vmatpush.bf16.msra.mxu2 %v10133_v63  ;;  %v10353_v21 = vld [vmem:[#allocation8 + $0xf8] sm:$0xf0]  ;;  %v10327_v63 = vld [vmem:[#allocation8 + $0xc0] sm:$0xf]  ;;  %v10324_v9 = vor.u32 %v12354_v42, %v10321_v5 }
 0x734   :  { %v10356_v60 = vor.u32 %v12362_v58, %v10353_v21  ;;  %v14079_v58 = vld [vmem:[#allocation22_spill] sm:$0xff] }
 0x735   :  { %3620 = vst [vmem:[#allocation11 + $0x24] sm:$0xf] %v3618_v62  ;;  %3828 = vmatmul.bf16.vlgmr.msrb.gmra.mxu0 %v3618_v62  ;;  %3841 = vmatmul.bf16.vlgmr.msrb.gmra.mxu1 %v3618_v62  ;;  %v12345_v21 = vld [vmem:[#allocation8 + $0x64] sm:$0xf] }
 0x736   :  { %3854 = vmatmul.bf16.vlgmr.msrb.gmra.mxu2 %v3618_v62  ;;  %3867 = vmatmul.bf16.vlgmr.msrb.gmra.mxu3 %v3618_v62  ;;  %v10134_v62 = vld [vmem:[#allocation3 + $0x78] sm:$0xf0] }
 0x737   :  { %4144 = vmatpush.bf16.msra.mxu0 %v10141_v24  ;;  %v10137_v18 = vor.u32 %v12308_v54, %v10134_v62  ;;  %4159 = vmatpush.bf16.msra.mxu1 %v10113_v47  ;;  %v10086_v24 = vld [vmem:[#allocation3 + $0x18] sm:$0xf0]  ;;  %v12359_v54 = vld [vmem:[#allocation8 + $0xcc] sm:$0xf0]  ;;  %v10336_v47 = vor.u32 %v12360_v14, %v10335_v13  ;;  %v12346_v13 = vld [vmem:[#allocation8 + $0x6c] sm:$0xf] }
 0x738   :  { %4172 = vmatpush.bf16.msra.mxu2 %v10117_v1  ;;  %v10089_v32 = vor.u32 %v12296_v45, %v10086_v24  ;;  %v10328_v26 = vor.u32 %v12359_v54, %v10327_v63  ;;  %v12358_v1 = vld [vmem:[#allocation8 + $0xcc] sm:$0xf]  ;;  %v10281_v63 = vld [vmem:[#allocation8 + $0x70] sm:$0xf0]  ;;  %v10289_v14 = vld [vmem:[#allocation8 + $0x78] sm:$0xf0] }
 0x739   :  { %4184 = vmatpush.bf16.msra.mxu3 %v10137_v18  ;;  %v10340_v17 = vor.u32 %v12358_v1, %v10337_v40  ;;  %v12350_v45 = vld [vmem:[#allocation8 + $0x8c] sm:$0xf]  ;;  %v10292_v1 = vor.u32 %v12346_v13, %v10289_v14  ;;  %v12343_v40 = vld [vmem:[#allocation8 + $0x4c] sm:$0xf0] }
 0x73b   :  { %4145 = vmatpush.bf16.msra.mxu0 %v10125_v34  ;;  %4160 = vmatpush.bf16.msra.mxu1 %v10097_v50  ;;  %v12364_v34 = vld [vmem:[#allocation8 + $0xf4] sm:$0xf0]  ;;  %v10312_v50 = vor.u32 %v12355_v20, %v10311_v19  ;;  %v12341_v19 = vld [vmem:[#allocation8 + $0x44] sm:$0xf]  ;;  %v10271_v20 = vld [vmem:[#allocation8 + $0x48] sm:$0xf] }
 0x73c   :  { %4173 = vmatpush.bf16.msra.mxu2 %v10101_v29  ;;  %v10352_v3 = vor.u32 %v12364_v34, %v10351_v61  ;;  %v10319_v29 = vld [vmem:[#allocation8 + $0xa8] sm:$0xf]  ;;  %v12347_v34 = vld [vmem:[#allocation8 + $0x6c] sm:$0xf0] }
 0x73d   :  { %4185 = vmatpush.bf16.msra.mxu3 %v10121_v51  ;;  %v14078_v51 = vld [vmem:[#allocation21_spill] sm:$0xff] }
 0x73e   :  { %v321_v33 = vadd.f32 %v14078_v51, %v13536_v52 }
 0x73f   :  { %4146 = vmatpush.bf16.msra.mxu0 %v10109_v30  ;;  %4161 = vmatpush.bf16.msra.mxu1 %v10081_v46  ;;  %v10329_v30 = vld [vmem:[#allocation8 + $0xd0] sm:$0xf0] }
 0x740   :  { %4174 = vmatpush.bf16.msra.mxu2 %v10085_v23  ;;  %v10332_v48 = vor.u32 %v12357_v0, %v10329_v30  ;;  %v12352_v23 = vld [vmem:[#allocation8 + $0x94] sm:$0xf0] }
 0x741   :  { %4186 = vmatpush.bf16.msra.mxu3 %v10105_v57 }
 0x743   :  { %4147 = vmatpush.bf16.msra.mxu0 %v10093_v39  ;;  %4552 = vmatpush.bf16.msrb.mxu1 %v10348_v2  ;;  %v12353_v39 = vld [vmem:[#allocation8 + $0xa4] sm:$0xf]  ;;  %v360_v2 = vadd.f32 %v14079_v58, %v13541_v43 }
 0x744   :  { %4591 = vmatpush.bf16.msrb.mxu2 %v10352_v3  ;;  %v10316_v56 = vor.u32 %v12353_v39, %v10313_v25  ;;  %v12344_v39 = vld [vmem:[#allocation8 + $0x54] sm:$0xf0] }
 0x745   :  { %4187 = vmatpush.bf16.msra.mxu3 %v10089_v32  ;;  %v10272_v5 = vor.u32 %v12344_v39, %v10271_v20 }
 0x747   :  { %4148 = vmatpush.bf16.msra.mxu0 %v10077_v41  ;;  %4553 = vmatpush.bf16.msrb.mxu1 %v10332_v48  ;;  %v10320_v41 = vor.u32 %v12356_v12, %v10319_v29  ;;  %v10263_v48 = vld [vmem:[#allocation8 + $0x40] sm:$0xf]  ;;  %v10273_v29 = vld [vmem:[#allocation8 + $0x58] sm:$0xf0] }
 0x748   :  { %4592 = vmatpush.bf16.msrb.mxu2 %v10336_v47 }
 0x749   :  { %4630 = vmatpush.bf16.msrb.mxu3 %v10356_v60  ;;  %v12348_v60 = vld [vmem:[#allocation8 + $0x74] sm:$0xf0] }
 0x74b   :  { %4513 = vmatpush.bf16.msrb.mxu0 %v10344_v28  ;;  %4554 = vmatpush.bf16.msrb.mxu1 %v10316_v56 }
 0x74c   :  { %4593 = vmatpush.bf16.msrb.mxu2 %v10320_v41 }
 0x74d   :  { %4631 = vmatpush.bf16.msrb.mxu3 %v10340_v17  ;;  %v10265_v17 = vld [vmem:[#allocation8 + $0x50] sm:$0xf0] }
 0x74e   :  { %v10268_v41 = vor.u32 %v12341_v19, %v10265_v17 }
 0x74f   :  { %4514 = vmatpush.bf16.msrb.mxu0 %v10328_v26 }
 0x751   :  { %4632 = vmatpush.bf16.msrb.mxu3 %v10324_v9 }
 0x753   :  { %4515 = vmatpush.bf16.msrb.mxu0 %v10312_v50  ;;  %v12342_v50 = vld [vmem:[#allocation8 + $0x4c] sm:$0xf] }
 0x757   :  { %4516 = vmatpush.bf16.msrb.mxu0 %v10296_v8 }
 0x7b2   :  { %v3829_v31 = vpop.f32.mrf.mxu0  ;;  %v3842_v44 = vpop.f32.mrf.mxu1 }
 0x7b3   :  { %v3872_v27 = vadd.f32 %v3829_v31, %v243_v4  ;;  %v3873_v36 = vadd.f32 %v3842_v44, %v282_v7  ;;  %v12349_v4 = vld [vmem:[#allocation8 + $0x84] sm:$0xf]  ;;  %v10303_v7 = vld [vmem:[#allocation8 + $0x88] sm:$0xf]  ;;  %v10305_v31 = vld [vmem:[#allocation8 + $0x98] sm:$0xf0] }
 0x7b4   :  { %v10300_v22 = vor.u32 %v12349_v4, %v10297_v6  ;;  %v10304_v10 = vor.u32 %v12352_v23, %v10303_v7  ;;  %v10276_v6 = vor.u32 %v12342_v50, %v10273_v29  ;;  %v12340_v23 = vld [vmem:[#allocation8 + $0x34] sm:$0xf0] }
 0x7b5   :  { %v10071_v62 = vmul.f32 -1.442695, %v3872_v27  ;;  %v10072_v18 = vmul.f32 -1.442695, %v3873_v36  ;;  %v10308_v27 = vor.u32 %v12350_v45, %v10305_v31  ;;  %v10279_v36 = vld [vmem:[#allocation8 + $0x60] sm:$0xf] }
 0x7b6   :  { %4555 = vmatpush.bf16.msrb.mxu1 %v10300_v22  ;;  %4594 = vmatpush.bf16.msrb.mxu2 %v10304_v10  ;;  %v10280_v3 = vor.u32 %v12347_v34, %v10279_v36  ;;  %v12338_v31 = vld [vmem:[#allocation8 + $0x2c] sm:$0xf]  ;;  %v10231_v22 = vld [vmem:[#allocation8] sm:$0xf]  ;;  %v12335_v36 = vld [vmem:[#allocation8 + $0xc] sm:$0xf0] }
 0x7b7   :  { %12919 = vpow2.f32 %v10071_v62  ;;  %4633 = vmatpush.bf16.msrb.mxu3 %v10308_v27  ;;  %v10284_v62 = vor.u32 %v12345_v21, %v10281_v63  ;;  %v12336_v21 = vld [vmem:[#allocation8 + $0x14] sm:$0xf0]  ;;  %v12334_v63 = vld [vmem:[#allocation8 + $0xc] sm:$0xf] }
 0x7b8   :  { %12921 = vpow2.f32 %v10072_v18  ;;  %v10287_v18 = vld [vmem:[#allocation8 + $0x68] sm:$0xf]  ;;  %4517 = vmatpush.bf16.msrb.mxu0 %v10280_v3 }
 0x7b9   :  { %v3855_v38 = vpop.f32.mrf.mxu2  ;;  %v3868_v11 = vpop.f32.mrf.mxu3  ;;  %v10288_v30 = vor.u32 %v12348_v60, %v10287_v18  ;;  %v10239_v3 = vld [vmem:[#allocation8 + $0x8] sm:$0xf] }
 0x7ba   :  { %v3874_v57 = vadd.f32 %v3855_v38, %v321_v33  ;;  %v3831_v35 = vpop.f32.mrf.mxu0  ;;  %v3844_v15 = vpop.f32.mrf.mxu1  ;;  %v3875_v0 = vadd.f32 %v3868_v11, %v360_v2  ;;  %4556 = vmatpush.bf16.msrb.mxu1 %v10284_v62  ;;  %v10264_v33 = vor.u32 %v12343_v40, %v10263_v48  ;;  %v10232_v2 = vor.u32 %v12335_v36, %v10231_v22  ;;  %v10463_v22 = vld [vmem:[#allocation9 + $0xc8] sm:$0xf]  ;;  %v12330_v36 = vld [vmem:[#allocation11 + $0x18] sm:$0xff] }
 0x7bb   :  { %4595 = vmatpush.bf16.msrb.mxu2 %v10288_v30  ;;  %4634 = vmatpush.bf16.msrb.mxu3 %v10292_v1  ;;  %v12339_v35 = vld [vmem:[#allocation8 + $0x2c] sm:$0xf0]  ;;  %v10240_v13 = vor.u32 %v12336_v21, %v10239_v3  ;;  %v10441_v3 = vld [vmem:[#allocation9 + $0xb0] sm:$0xf0]  ;;  %v12390_v21 = vld [vmem:[#allocation9 + $0xcc] sm:$0xf] }
 0x7bc   :  { %v10073_v46 = vmul.f32 -1.442695, %v3874_v57  ;;  %v10247_v57 = vld [vmem:[#allocation8 + $0x20] sm:$0xf]  ;;  %4518 = vmatpush.bf16.msrb.mxu0 %v10264_v33 }
 0x7bd   :  { %v12920_v24 = vpop.eup %12919  ;;  %v10248_v7 = vor.u32 %v12339_v35, %v10247_v57  ;;  %v12328_v57 = vld [vmem:[#allocation11 + $0x8] sm:$0xff]  ;;  %v10471_v35 = vld [vmem:[#allocation9 + $0xe0] sm:$0xf] }
 0x7be   :  { %v12922_v44 = vpop.eup %12921  ;;  %v13662_v32 = vadd.f32 1.0, %v12920_v24  ;;  %12923 = vpow2.f32 %v10073_v46  ;;  %v10255_v46 = vld [vmem:[#allocation8 + $0x28] sm:$0xf]  ;;  %4557 = vmatpush.bf16.msrb.mxu1 %v10268_v41  ;;  %v10252_v24 = vor.u32 %v12337_v16, %v10249_v37  ;;  %v12396_v37 = vld [vmem:[#allocation9 + $0xf4] sm:$0xf0] }
 0x7bf   :  { %v13664_v53 = vadd.f32 1.0, %v12922_v44  ;;  %4596 = vmatpush.bf16.msrb.mxu2 %v10272_v5  ;;  %v10256_v8 = vor.u32 %v12340_v23, %v10255_v46  ;;  %v10257_v44 = vld [vmem:[#allocation8 + $0x38] sm:$0xf0]  ;;  %4635 = vmatpush.bf16.msrb.mxu3 %v10276_v6  ;;  %v10473_v5 = vld [vmem:[#allocation9 + $0xf0] sm:$0xf0] }
 0x7c0   :  { %12925 = vrcp.f32 %v13662_v32  ;;  %v3897_v54 = vand.u32 2147483647, %v13662_v32  ;;  %v3899_v11 = vand.u32 2147483648, %v13662_v32  ;;  %v10260_v27 = vor.u32 %v12338_v31, %v10257_v44  ;;  %4519 = vmatpush.bf16.msrb.mxu0 %v10248_v7  ;;  %v10479_v16 = vld [vmem:[#allocation9 + $0xe8] sm:$0xf] }
 0x7c1   :  { %12927 = vrcp.f32 %v13664_v53  ;;  %v3857_v28 = vpop.f32.mrf.mxu2  ;;  %v3870_v61 = vpop.f32.mrf.mxu3  ;;  %v3912_v42 = vand.u32 2147483647, %v13664_v53  ;;  %v3914_v56 = vand.u32 2147483648, %v13664_v53  ;;  %vm3908_vm12 = vweird.f32 %v13664_v53  ;;  %v10455_v6 = vld [vmem:[#allocation9 + $0xc0] sm:$0xf] }
 0x7c2   :  { %vm13685_vm9 = vcmp.eq.f32.partialorder %v3897_v54, 8.507059e+37  ;;  %v12333_v28 = vld [vmem:[#allocation8 + $0x4] sm:$0xf]  ;;  %v10233_v61 = vld [vmem:[#allocation8 + $0x10] sm:$0xf0]  ;;  %vm3893_vm13 = vweird.f32 %v13662_v32  ;;  %v3900_v60 = vor.u32 1.1754944e-38, %v3899_v11  ;;  %4558 = vmatpush.bf16.msrb.mxu1 %v10252_v24  ;;  %v10480_v4 = vor.u32 %v12396_v37, %v10479_v16 }
 0x7c3   :  { %v3915_v62 = vor.u32 1.1754944e-38, %v3914_v56  ;;  %vm3913_vm0 = vcmp.eq.f32.partialorder %v3912_v42, 8.507059e+37  ;;  %4597 = vmatpush.bf16.msrb.mxu2 %v10256_v8  ;;  %v10236_v30 = vor.u32 %v12333_v28, %v10233_v61  ;;  %4636 = vmatpush.bf16.msrb.mxu3 %v10260_v27  ;;  %v12327_v42 = vld [vmem:[#allocation11] sm:$0xff]  ;;  %v12391_v7 = vld [vmem:[#allocation9 + $0xcc] sm:$0xf0] }
 0x7c4   :  { %v12924_v26 = vpop.eup %12923  ;;  %4520 = vmatpush.bf16.msrb.mxu0 %v10232_v2  ;;  %v12393_v56 = vld [vmem:[#allocation9 + $0xe4] sm:$0xf]  ;;  %v10456_v23 = vor.u32 %v12391_v7, %v10455_v6  ;;  %v12394_v24 = vld [vmem:[#allocation9 + $0xec] sm:$0xf]  ;;  %v10481_v8 = vld [vmem:[#allocation9 + $0xf8] sm:$0xf0] }
 0x7c5   :  { %v13671_v47 = vadd.f32 1.0, %v12924_v26  ;;  %v12389_v46 = vld [vmem:[#allocation9 + $0xc4] sm:$0xf]  ;;  %v10484_v44 = vor.u32 %v12394_v24, %v10481_v8  ;;  %v10439_v61 = vld [vmem:[#allocation9 + $0xa0] sm:$0xf] }
 0x7c6   :  { %v13673_v51 = vpop.eup %12925  ;;  %4559 = vmatpush.bf16.msrb.mxu1 %v10236_v30  ;;  %v12331_v28 = vld [vmem:[#allocation11 + $0x20] sm:$0xff]  ;;  %v14083_v30 = vld [vmem:[#allocation24_spill] sm:$0xff]  ;;  %v10449_v6 = vld [vmem:[#allocation9 + $0xb8] sm:$0xf0] }
 0x7c7   :  { %v13675_v25 = vpop.eup %12927  ;;  %v3889_v38 = vmul.f32 %v13673_v51, %v13662_v32  ;;  %12929 = vrcp.f32 %v13671_v47  ;;  %vm3894_vm10 = vweird.f32 %v13673_v51  ;;  %4598 = vmatpush.bf16.msrb.mxu2 %v10240_v13  ;;  %v3929_v39 = vand.u32 2147483648, %v13671_v47  ;;  %v14085_v37 = vld [vmem:[#allocation26_spill] sm:$0xff]  ;;  %v10431_v7 = vld [vmem:[#allocation9 + $0x88] sm:$0xf] }
 0x7c8   :  { %v3904_v12 = vmul.f32 %v13675_v25, %v13664_v53  ;;  %12931 = vtanh.f32 %v3875_v0  ;;  %vm3909_vm11 = vweird.f32 %v13675_v25  ;;  %vm3895_vm14 = vmor %vm3893_vm13, %vm3894_vm10  ;;  %v10241_v0 = vld [vmem:[#allocation8 + $0x18] sm:$0xf0]  ;;  %vm3923_vm2 = vweird.f32 %v13671_v47 }
 0x7c9   :  { %v3890_v15 = vsub.f32 1.0, %v3889_v38  ;;  %vm3910_vm15 = vmor %vm3908_vm12, %vm3909_vm11  ;;  %v10244_v40 = vor.u32 %v12334_v63, %v10241_v0  ;;  %v3930_v11 = vor.u32 1.1754944e-38, %v3929_v39  ;;  %v10465_v63 = vld [vmem:[#allocation9 + $0xd8] sm:$0xf0]  ;;  %v14082_v0 = vld [vmem:[#allocation23_spill] sm:$0xff]  ;;  %v284_v13 = vadd.f32 %v14083_v30, %v13525_v49 }
 0x7ca   :  { %v3905_v9 = vsub.f32 1.0, %v3904_v12  ;;  %v12373_v30 = vld [vmem:[#allocation9 + $0x44] sm:$0xf] }
 0x7cb   :  { %v3891_v45 = vmul.f32 %v13673_v51, %v3890_v15  ;;  %4637 = vmatpush.bf16.msrb.mxu3 %v10244_v40  ;;  %v12395_v15 = vld [vmem:[#allocation9 + $0xec] sm:$0xf0] }
 0x7cc   :  { %v3906_v10 = vmul.f32 %v13675_v25, %v3905_v9  ;;  %v10472_v41 = vor.u32 %v12395_v15, %v10471_v35  ;;  %v10476_v9 = vor.u32 %v12393_v56, %v10473_v5  ;;  %v12381_v35 = vld [vmem:[#allocation9 + $0x84] sm:$0xf]  ;;  %v12386_v5 = vld [vmem:[#allocation9 + $0xac] sm:$0xf] }
 0x7cd   :  { %v12930_v34 = vpop.eup %12929  ;;  %v3892_v58 = vadd.f32 %v13673_v51, %v3891_v45  ;;  %v10457_v45 = vld [vmem:[#allocation9 + $0xd0] sm:$0xf0]  ;;  %v10452_v24 = vor.u32 %v12386_v5, %v10449_v6  ;;  %v12367_v6 = vld [vmem:[#allocation9 + $0xc] sm:$0xf0] }
 0x7ce   :  { %v12932_v54 = vpop.eup %12931  ;;  %v3919_v18 = vmul.f32 %v12930_v34, %v13671_v47  ;;  %v3907_v26 = vadd.f32 %v13675_v25, %v3906_v10  ;;  %vm3924_vm1 = vweird.f32 %v12930_v34  ;;  %v10460_v31 = vor.u32 %v12389_v46, %v10457_v45  ;;  %v12392_v10 = vld [vmem:[#allocation9 + $0xd4] sm:$0xf0] }
 0x7cf   :  { %v3896_v32 = vsel %vm3895_vm14, %v13673_v51, %v3892_v58  ;;  %vm3925_vm3 = vmor %vm3923_vm2, %vm3924_vm1  ;;  %v10464_v27 = vor.u32 %v12392_v10, %v10463_v22  ;;  %v12385_v58 = vld [vmem:[#allocation9 + $0xa4] sm:$0xf]  ;;  %v12384_v46 = vld [vmem:[#allocation9 + $0x94] sm:$0xf0] }
 0x7d0   :  { %v3920_v14 = vsub.f32 1.0, %v3919_v18  ;;  %v3901_v48 = vsel %vm13685_vm9, %v3900_v60, %v3896_v32  ;;  %v3911_v1 = vsel %vm3910_vm15, %v13675_v25, %v3907_v26  ;;  %v3927_v25 = vand.u32 2147483647, %v13671_v47  ;;  %v12329_v47 = vld [vmem:[#allocation11 + $0x10] sm:$0xff]  ;;  %v10447_v18 = vld [vmem:[#allocation9 + $0xa8] sm:$0xf] }
 0x7d1   :  { %v3916_v19 = vsel %vm3913_vm0, %v3915_v62, %v3911_v1  ;;  %v3935_v33 = vmul.f32 %v12932_v54, %v3901_v48  ;;  %v10444_v54 = vor.u32 %v12385_v58, %v10441_v3  ;;  %v10468_v62 = vor.u32 %v12390_v21, %v10465_v63  ;;  %v12388_v60 = vld [vmem:[#allocation9 + $0xb4] sm:$0xf0]  ;;  %v10433_v3 = vld [vmem:[#allocation9 + $0x98] sm:$0xf0]  ;;  %v10415_v63 = vld [vmem:[#allocation9 + $0x68] sm:$0xf] }
 0x7d2   :  { %v3921_v53 = vmul.f32 %v12930_v34, %v3920_v14  ;;  %v3934_v17 = vmul.f32 %v3916_v19, %v13653_v55  ;;  %vm3928_vm4 = vcmp.eq.f32.partialorder %v3927_v25, 8.507059e+37  ;;  %v10448_v26 = vor.u32 %v12388_v60, %v10447_v18 }
 0x7d3   :  { %v245_v32 = vadd.f32 %v14082_v0, %v13520_v59  ;;  %v10432_v8 = vor.u32 %v12384_v46, %v10431_v7 }
 0x7d4   :  { %v13709_v51 = vadd.f32 %v3935_v33, %v3934_v17  ;;  %v3922_v20 = vadd.f32 %v12930_v34, %v3921_v53  ;;  %v14084_v53 = vld [vmem:[#allocation25_spill] sm:$0xff] }
 0x7d5   :  { %v323_v17 = vadd.f32 %v14084_v53, %v13536_v52  ;;  %v10399_v53 = vld [vmem:[#allocation9 + $0x48] sm:$0xf] }
 0x7d6   :  { %12933 = vtanh.f32 %v13709_v51  ;;  %v3926_v38 = vsel %vm3925_vm3, %v12930_v34, %v3922_v20  ;;  %v12387_v34 = vld [vmem:[#allocation9 + $0xac] sm:$0xf0] }
 0x7d7   :  { %v3931_v50 = vsel %vm3928_vm4, %v3930_v11, %v3926_v38  ;;  %v10440_v2 = vor.u32 %v12387_v34, %v10439_v61 }
 0x7dc   :  { %v12934_v55 = vpop.eup %12933 }
 0x7dd   :  { %v3938_v29 = vmul.f32 %v12934_v55, %v3931_v50 }
 0x7df   :  { %v3939_v12 = vpack.c.bf16 %v3938_v29, %v3938_v29 }
 0x7e1   :  { %3941 = vst [vmem:[#allocation11 + $0x28] sm:$0xf] %v3939_v12  ;;  %4149 = vmatmul.bf16.vlgmr.msra.gmra.mxu0 %v3939_v12  ;;  %4162 = vmatmul.bf16.vlgmr.msra.gmra.mxu1 %v3939_v12 }
 0x7e2   :  { %4175 = vmatmul.bf16.vlgmr.msra.gmra.mxu2 %v3939_v12  ;;  %4188 = vmatmul.bf16.vlgmr.msra.gmra.mxu3 %v3939_v12  ;;  %v10423_v12 = vld [vmem:[#allocation9 + $0x80] sm:$0xf] }
 0x7e3   :  { %4913 = vmatpush.bf16.msra.mxu0 %v10472_v41  ;;  %4926 = vmatpush.bf16.msra.mxu1 %v10476_v9  ;;  %v10425_v41 = vld [vmem:[#allocation9 + $0x90] sm:$0xf0]  ;;  %v362_v9 = vadd.f32 %v14085_v37, %v13541_v43 }
 0x7e4   :  { %4939 = vmatpush.bf16.msra.mxu2 %v10480_v4  ;;  %4952 = vmatpush.bf16.msra.mxu3 %v10484_v44  ;;  %v10428_v4 = vor.u32 %v12381_v35, %v10425_v41  ;;  %v12379_v44 = vld [vmem:[#allocation9 + $0x6c] sm:$0xf0]  ;;  %v10409_v43 = vld [vmem:[#allocation9 + $0x70] sm:$0xf0]  ;;  %v10383_v41 = vld [vmem:[#allocation9 + $0x28] sm:$0xf] }
 0x7e7   :  { %4914 = vmatpush.bf16.msra.mxu0 %v10456_v23  ;;  %4927 = vmatpush.bf16.msra.mxu1 %v10460_v31  ;;  %v10407_v31 = vld [vmem:[#allocation9 + $0x60] sm:$0xf] }
 0x7e8   :  { %4940 = vmatpush.bf16.msra.mxu2 %v10464_v27  ;;  %4953 = vmatpush.bf16.msra.mxu3 %v10468_v62  ;;  %v10408_v27 = vor.u32 %v12379_v44, %v10407_v31  ;;  %v10391_v62 = vld [vmem:[#allocation9 + $0x40] sm:$0xf]  ;;  %v12365_v31 = vld [vmem:[#allocation9 + $0x4] sm:$0xf]  ;;  %v10361_v44 = vld [vmem:[#allocation9 + $0x10] sm:$0xf0] }
 0x7eb   :  { %4915 = vmatpush.bf16.msra.mxu0 %v10440_v2  ;;  %4928 = vmatpush.bf16.msra.mxu1 %v10444_v54  ;;  %v12380_v54 = vld [vmem:[#allocation9 + $0x74] sm:$0xf0] }
 0x7ec   :  { %4941 = vmatpush.bf16.msra.mxu2 %v10448_v26  ;;  %4954 = vmatpush.bf16.msra.mxu3 %v10452_v24 }
 0x7ef   :  { %4929 = vmatpush.bf16.msra.mxu1 %v10428_v4  ;;  %v10359_v4 = vld [vmem:[#allocation9] sm:$0xf] }
 0x7f0   :  { %4942 = vmatpush.bf16.msra.mxu2 %v10432_v8  ;;  %v10360_v58 = vor.u32 %v12367_v6, %v10359_v4 }
 0x7f1   :  { %4521 = vmatmul.bf16.vlgmr.msrb.gmra.mxu0 %v12327_v42  ;;  %4560 = vmatmul.bf16.vlgmr.msrb.gmra.mxu1 %v12327_v42 }
 0x7f2   :  { %4599 = vmatmul.bf16.vlgmr.msrb.gmra.mxu2 %v12327_v42  ;;  %4638 = vmatmul.bf16.vlgmr.msrb.gmra.mxu3 %v12327_v42 }
 0x801   :  { %4526 = vmatmul.bf16.gmra.mxu0 %v12328_v57  ;;  %4565 = vmatmul.bf16.gmra.mxu1 %v12328_v57 }
 0x802   :  { %4604 = vmatmul.bf16.gmra.mxu2 %v12328_v57  ;;  %4643 = vmatmul.bf16.gmra.mxu3 %v12328_v57 }
 0x811   :  { %4531 = vmatmul.bf16.gmra.mxu0 %v12329_v47  ;;  %4570 = vmatmul.bf16.gmra.mxu1 %v12329_v47 }
 0x812   :  { %4609 = vmatmul.bf16.gmra.mxu2 %v12329_v47  ;;  %4648 = vmatmul.bf16.gmra.mxu3 %v12329_v47  ;;  %v12383_v47 = vld [vmem:[#allocation9 + $0x8c] sm:$0xf0] }
 0x813   :  { %v10424_v56 = vor.u32 %v12383_v47, %v10423_v12 }
 0x815   :  { %4916 = vmatpush.bf16.msra.mxu0 %v10424_v56 }
 0x819   :  { %4917 = vmatpush.bf16.msra.mxu0 %v10408_v27  ;;  %v12370_v27 = vld [vmem:[#allocation9 + $0x2c] sm:$0xf] }
 0x821   :  { %4536 = vmatmul.bf16.gmra.mxu0 %v12330_v36  ;;  %4575 = vmatmul.bf16.gmra.mxu1 %v12330_v36 }
 0x822   :  { %4614 = vmatmul.bf16.gmra.mxu2 %v12330_v36  ;;  %4653 = vmatmul.bf16.gmra.mxu3 %v12330_v36  ;;  %v12377_v36 = vld [vmem:[#allocation9 + $0x64] sm:$0xf] }
 0x823   :  { %v10412_v26 = vor.u32 %v12377_v36, %v10409_v43  ;;  %v10385_v36 = vld [vmem:[#allocation9 + $0x38] sm:$0xf0] }
 0x825   :  { %4930 = vmatpush.bf16.msra.mxu1 %v10412_v26 }
 0x831   :  { %4541 = vmatmul.bf16.gmra.mxu0 %v12331_v28  ;;  %4580 = vmatmul.bf16.gmra.mxu1 %v12331_v28 }
 0x832   :  { %4619 = vmatmul.bf16.gmra.mxu2 %v12331_v28  ;;  %4658 = vmatmul.bf16.gmra.mxu3 %v12331_v28  ;;  %v12382_v28 = vld [vmem:[#allocation9 + $0x8c] sm:$0xf] }
 0x833   :  { %v10436_v0 = vor.u32 %v12382_v28, %v10433_v3  ;;  %v12368_v3 = vld [vmem:[#allocation9 + $0x14] sm:$0xf0] }
 0x835   :  { %4955 = vmatpush.bf16.msra.mxu3 %v10436_v0 }
 0x85e   :  { %v4150_v14 = vpop.f32.mrf.mxu0  ;;  %v4163_v48 = vpop.f32.mrf.mxu1 }
 0x85f   :  { %v4193_v1 = vadd.f32 %v4150_v14, %v245_v32  ;;  %v4194_v40 = vadd.f32 %v4163_v48, %v284_v13  ;;  %v12375_v32 = vld [vmem:[#allocation9 + $0x4c] sm:$0xf0] }
 0x861   :  { %v10202_v19 = vmul.f32 -1.442695, %v4193_v1  ;;  %v10203_v33 = vmul.f32 -1.442695, %v4194_v40  ;;  %v10393_v1 = vld [vmem:[#allocation9 + $0x50] sm:$0xf0] }
 0x862   :  { %v12378_v40 = vld [vmem:[#allocation9 + $0x6c] sm:$0xf] }
 0x863   :  { %12935 = vpow2.f32 %v10202_v19 }
 0x864   :  { %12937 = vpow2.f32 %v10203_v33  ;;  %v10417_v33 = vld [vmem:[#allocation9 + $0x78] sm:$0xf0] }
 0x865   :  { %v4176_v20 = vpop.f32.mrf.mxu2  ;;  %v4189_v39 = vpop.f32.mrf.mxu3  ;;  %v10420_v12 = vor.u32 %v12378_v40, %v10417_v33 }
 0x866   :  { %v4195_v25 = vadd.f32 %v4176_v20, %v323_v17  ;;  %v4152_v38 = vpop.f32.mrf.mxu0  ;;  %v4165_v59 = vpop.f32.mrf.mxu1  ;;  %v4196_v10 = vadd.f32 %v4189_v39, %v362_v9  ;;  %v12376_v17 = vld [vmem:[#allocation9 + $0x54] sm:$0xf0]  ;;  %v10416_v39 = vor.u32 %v12380_v54, %v10415_v63  ;;  %v10388_v63 = vor.u32 %v12370_v27, %v10385_v36  ;;  %v10602_v27 = vld [vmem:[#allocation9 + $0xe0] sm:$0xf]  ;;  %v12427_v36 = vld [vmem:[#allocation9 + $0xec] sm:$0xf0] }
 0x867   :  { %v10396_v38 = vor.u32 %v12373_v30, %v10393_v1  ;;  %v10375_v59 = vld [vmem:[#allocation9 + $0x20] sm:$0xf]  ;;  %4956 = vmatpush.bf16.msra.mxu3 %v10420_v12  ;;  %v12372_v9 = vld [vmem:[#allocation9 + $0x34] sm:$0xf0] }
 0x868   :  { %v10204_v11 = vmul.f32 -1.442695, %v4195_v25  ;;  %v10392_v25 = vor.u32 %v12375_v32, %v10391_v62  ;;  %4943 = vmatpush.bf16.msra.mxu2 %v10416_v39  ;;  %v12366_v62 = vld [vmem:[#allocation9 + $0xc] sm:$0xf] }
 0x869   :  { %v12936_v55 = vpop.eup %12935  ;;  %4931 = vmatpush.bf16.msra.mxu1 %v10396_v38 }
 0x86a   :  { %v12938_v49 = vpop.eup %12937  ;;  %v13721_v50 = vadd.f32 1.0, %v12936_v55  ;;  %12939 = vpow2.f32 %v10204_v11  ;;  %v12371_v11 = vld [vmem:[#allocation9 + $0x2c] sm:$0xf0]  ;;  %v12369_v55 = vld [vmem:[#allocation9 + $0x24] sm:$0xf]  ;;  %4918 = vmatpush.bf16.msra.mxu0 %v10392_v25 }
 0x86b   :  { %v13723_v29 = vadd.f32 1.0, %v12938_v49 }
 0x86c   :  { %12941 = vrcp.f32 %v13721_v50  ;;  %v4218_v57 = vand.u32 2147483647, %v13721_v50  ;;  %v4220_v15 = vand.u32 2147483648, %v13721_v50  ;;  %vm4214_vm10 = vweird.f32 %v13721_v50 }
 0x86d   :  { %12943 = vrcp.f32 %v13723_v29  ;;  %v4178_v52 = vpop.f32.mrf.mxu2  ;;  %v4191_v42 = vpop.f32.mrf.mxu3  ;;  %v4235_v23 = vand.u32 2147483648, %v13723_v29  ;;  %v4233_v2 = vand.u32 2147483647, %v13723_v29  ;;  %vm4229_vm6 = vweird.f32 %v13723_v29 }
 0x86e   :  { %vm13741_vm5 = vcmp.eq.f32.partialorder %v4218_v57, 8.507059e+37  ;;  %v4221_v60 = vor.u32 1.1754944e-38, %v4220_v15  ;;  %v10377_v52 = vld [vmem:[#allocation9 + $0x30] sm:$0xf0]  ;;  %v12374_v42 = vld [vmem:[#allocation9 + $0x4c] sm:$0xf]  ;;  %v13798_v33 = vpop.f32.mrf.mxu1 }
 0x86f   :  { %v4236_v48 = vor.u32 1.1754944e-38, %v4235_v23  ;;  %v10401_v57 = vld [vmem:[#allocation9 + $0x58] sm:$0xf0]  ;;  %vm13770_vm12 = vcmp.eq.f32.partialorder %v4233_v2, 8.507059e+37  ;;  %v10380_v37 = vor.u32 %v12369_v55, %v10377_v52  ;;  %v10364_v2 = vor.u32 %v12365_v31, %v10361_v44 }
 0x870   :  { %v12940_v16 = vpop.eup %12939  ;;  %v10404_v8 = vor.u32 %v12374_v42, %v10401_v57 }
 0x871   :  { %v13732_v45 = vadd.f32 1.0, %v12940_v16  ;;  %v10376_v16 = vor.u32 %v12371_v11, %v10375_v59  ;;  %4932 = vmatpush.bf16.msra.mxu1 %v10380_v37 }
 0x872   :  { %v13734_v22 = vpop.eup %12941  ;;  %4957 = vmatpush.bf16.msra.mxu3 %v10404_v8 }
 0x873   :  { %v13736_v61 = vpop.eup %12943  ;;  %v4210_v34 = vmul.f32 %v13734_v22, %v13721_v50  ;;  %12945 = vrcp.f32 %v13732_v45  ;;  %vm4215_vm9 = vweird.f32 %v13734_v22  ;;  %v10400_v50 = vor.u32 %v12376_v17, %v10399_v53  ;;  %4919 = vmatpush.bf16.msra.mxu0 %v10376_v16 }
 0x874   :  { %v4225_v21 = vmul.f32 %v13736_v61, %v13723_v29  ;;  %vm4230_vm7 = vweird.f32 %v13736_v61  ;;  %12947 = vtanh.f32 %v4196_v10  ;;  %vm13765_vm11 = vmor %vm4214_vm10, %vm4215_vm9  ;;  %vm4244_vm14 = vweird.f32 %v13732_v45 }
 0x875   :  { %v4211_v18 = vsub.f32 1.0, %v4210_v34  ;;  %vm13750_vm8 = vmor %vm4229_vm6, %vm4230_vm7  ;;  %4944 = vmatpush.bf16.msra.mxu2 %v10400_v50  ;;  %v10384_v34 = vor.u32 %v12372_v9, %v10383_v41  ;;  %v4248_v26 = vand.u32 2147483647, %v13732_v45  ;;  %4933 = vmatpush.bf16.msra.mxu1 %v10364_v2  ;;  %v13800_v53 = vpop.f32.mrf.mxu2  ;;  %v13802_v17 = vpop.f32.mrf.mxu3  ;;  %v10604_v2 = vld [vmem:[#allocation9 + $0xf0] sm:$0xf0] }
 0x876   :  { %v4226_v13 = vsub.f32 1.0, %v4225_v21  ;;  %4958 = vmatpush.bf16.msra.mxu3 %v10388_v63  ;;  %v13806_v39 = vpop.f32.mrf.mxu1 }
 0x877   :  { %v4212_v19 = vmul.f32 %v13734_v22, %v4211_v18  ;;  %v10369_v18 = vld [vmem:[#allocation9 + $0x18] sm:$0xf0]  ;;  %4920 = vmatpush.bf16.msra.mxu0 %v10360_v58  ;;  %vm4249_vm0 = vcmp.eq.f32.partialorder %v4248_v26, 8.507059e+37  ;;  %v10603_v58 = vor.u32 %v12427_v36, %v10602_v27  ;;  %v10586_v26 = vld [vmem:[#allocation9 + $0xc0] sm:$0xf] }
 0x878   :  { %v4227_v20 = vmul.f32 %v13736_v61, %v4226_v13  ;;  %v10372_v0 = vor.u32 %v12366_v62, %v10369_v18  ;;  %v12426_v18 = vld [vmem:[#allocation9 + $0xec] sm:$0xf]  ;;  %v10596_v27 = vld [vmem:[#allocation9 + $0xd8] sm:$0xf0] }
 0x879   :  { %v13757_v49 = vpop.eup %12945  ;;  %v4213_v29 = vadd.f32 %v13734_v22, %v4212_v19  ;;  %4945 = vmatpush.bf16.msra.mxu2 %v10384_v34  ;;  %v13796_v19 = vpop.f32.mrf.mxu0  ;;  %v13883_v36 = vld [vmem:[%s14058_s6] sm:$0xf]  ;;  %s13278_s6 = smov [#allocation11]  }
 0x87a   :  { %v4240_v47 = vmul.f32 %v13757_v49, %v13732_v45  ;;  %v4228_v15 = vadd.f32 %v13736_v61, %v4227_v20  ;;  %v12948_v7 = vpop.eup %12947  ;;  %vm4245_vm13 = vweird.f32 %v13757_v49  ;;  %4959 = vmatpush.bf16.msra.mxu3 %v10372_v0  ;;  %v12423_v0 = vld [vmem:[#allocation9 + $0xcc] sm:$0xf0]  ;;  %s8525_s13 = sshll.u32 %s13278_s6, 4  ;;  %s8526_s13 = int_to_ptr.vmem [resolvable:$true] %s8525_s13 }
 0x87b   :  { %v4217_v5 = vsel %vm13765_vm11, %v13734_v22, %v4213_v29  ;;  %vm4246_vm15 = vmor %vm4244_vm14, %vm4245_vm13  ;;  %5230 = vmatpush.bf16.msrb.mxu0 %v10603_v58  ;;  %v10570_v58 = vld [vmem:[#allocation9 + $0xa0] sm:$0xf] }
 0x87c   :  { %v4241_v46 = vsub.f32 1.0, %v4240_v47  ;;  %v4222_v23 = vsel %vm13741_vm5, %v4221_v60, %v4217_v5  ;;  %v4232_v24 = vsel %vm13750_vm8, %v13736_v61, %v4228_v15  ;;  %v10367_v61 = vld [vmem:[#allocation9 + $0x8] sm:$0xf]  ;;  %v4250_v60 = vand.u32 2147483648, %v13732_v45 }
 0x87d   :  { %v4237_v22 = vsel %vm13770_vm12, %v4236_v48, %v4232_v24  ;;  %v4256_v10 = vmul.f32 %v12948_v7, %v4222_v23  ;;  %v14094_v45 = vmov 0   ;;  %v13808_v25 = vpop.f32.mrf.mxu2  ;;  %v13810_v38 = vpop.f32.mrf.mxu3 }
 0x87e   :  { %v4242_v43 = vmul.f32 %v13757_v49, %v4241_v46  ;;  %v4255_v28 = vmul.f32 %v4237_v22, %v13709_v51  ;;  %v10368_v51 = vor.u32 %v12368_v3, %v10367_v61  ;;  %v4251_v30 = vor.u32 1.1754944e-38, %v4250_v60  ;;  %v13814_v11 = vpop.f32.mrf.mxu1  ;;  %v10610_v61 = vld [vmem:[#allocation9 + $0xe8] sm:$0xf]  ;;  %v12428_v3 = vld [vmem:[#allocation9 + $0xf4] sm:$0xf0] }
 0x87f   :  { %v10611_v62 = vor.u32 %v12428_v3, %v10610_v61  ;;  %v10612_v60 = vld [vmem:[#allocation9 + $0xf8] sm:$0xf0]  ;;  %v12417_v61 = vld [vmem:[#allocation9 + $0xa4] sm:$0xf] }
 0x880   :  { %v4257_v21 = vadd.f32 %v4256_v10, %v4255_v28  ;;  %v4243_v54 = vadd.f32 %v13757_v49, %v4242_v43  ;;  %4946 = vmatpush.bf16.msra.mxu2 %v10368_v51  ;;  %v12425_v43 = vld [vmem:[#allocation9 + $0xe4] sm:$0xf]  ;;  %v10615_v51 = vor.u32 %v12426_v18, %v10612_v60  ;;  %v10572_v18 = vld [vmem:[#allocation9 + $0xb0] sm:$0xf0]  ;;  %v10578_v60 = vld [vmem:[#allocation9 + $0xa8] sm:$0xf] }
 0x881   :  { %v13804_v20 = vpop.f32.mrf.mxu0 }
 0x882   :  { %12949 = vtanh.f32 %v4257_v21  ;;  %v4247_v32 = vsel %vm4246_vm15, %v13757_v49, %v4243_v54  ;;  %v10607_v54 = vor.u32 %v12425_v43, %v10604_v2  ;;  %5269 = vmatpush.bf16.msrb.mxu3 %v10615_v51  ;;  %v12419_v2 = vld [vmem:[#allocation9 + $0xac] sm:$0xf0]  ;;  %v12420_v51 = vld [vmem:[#allocation9 + $0xb4] sm:$0xf0] }
 0x883   :  { %v4252_v14 = vsel %vm4249_vm0, %v4251_v30, %v4247_v32  ;;  %v12421_v32 = vld [vmem:[#allocation9 + $0xc4] sm:$0xf]  ;;  %v10587_v30 = vor.u32 %v12423_v0, %v10586_v26 }
 0x884   :  { %5243 = vmatpush.bf16.msrb.mxu1 %v10607_v54  ;;  %5256 = vmatpush.bf16.msrb.mxu2 %v10611_v62  ;;  %v10571_v62 = vor.u32 %v12419_v2, %v10570_v58  ;;  %v10556_v2 = vld [vmem:[#allocation9 + $0x90] sm:$0xf0] }
 0x885   :  { %v13816_v55 = vpop.f32.mrf.mxu2  ;;  %v13818_v49 = vpop.f32.mrf.mxu3  ;;  %5231 = vmatpush.bf16.msrb.mxu0 %v10587_v30  ;;  %v10579_v30 = vor.u32 %v12420_v51, %v10578_v60 }
 0x886   :  { %v13822_v12 = vpop.f32.mrf.mxu1 }
 0x888   :  { %v12950_v13 = vpop.eup %12949 }
 0x889   :  { %v4259_v48 = vmul.f32 %v12950_v13, %v4252_v14  ;;  %v13812_v59 = vpop.f32.mrf.mxu0  ;;  %v10588_v13 = vld [vmem:[#allocation9 + $0xd0] sm:$0xf0]  ;;  %v10594_v14 = vld [vmem:[#allocation9 + $0xc8] sm:$0xf]  ;;  %5232 = vmatpush.bf16.msrb.mxu0 %v10571_v62  ;;  %v10538_v62 = vld [vmem:[#allocation9 + $0x60] sm:$0xf] }
 0x88b   :  { %v4260_v1 = vpack.c.bf16 %v4259_v48, %v4259_v48  ;;  %v12424_v48 = vld [vmem:[#allocation9 + $0xd4] sm:$0xf0] }
 0x88d   :  { %4262 = vst [vmem:[#allocation11 + $0x2c] sm:$0xf] %v4260_v1  ;;  %v13824_v52 = vpop.f32.mrf.mxu2  ;;  %v13826_v42 = vpop.f32.mrf.mxu3  ;;  %v10591_v1 = vor.u32 %v12421_v32, %v10588_v13  ;;  %v10575_v32 = vor.u32 %v12417_v61, %v10572_v18  ;;  %v12418_v13 = vld [vmem:[#allocation9 + $0xac] sm:$0xf]  ;;  %v10562_v61 = vld [vmem:[#allocation9 + $0x88] sm:$0xf] }
 0x88e   :  { %v13830_v47 = vpop.f32.mrf.mxu1  ;;  %v12416_v18 = vld [vmem:[#allocation9 + $0x94] sm:$0xf0] }
 0x88f   :  { %5244 = vmatpush.bf16.msrb.mxu1 %v10591_v1  ;;  %v13897_v1 = vperm.slane %v13883_v36, 1  ;;  %v10563_v51 = vor.u32 %v12416_v18, %v10562_v61 }
 0x891   :  { %v13820_v29 = vpop.f32.mrf.mxu0 }
 0x893   :  { %5245 = vmatpush.bf16.msrb.mxu1 %v10575_v32  ;;  %v12409_v32 = vld [vmem:[#allocation9 + $0x64] sm:$0xf] }
 0x894   :  { %v12332_v40 = vld [vmem:[#allocation11 + $0x28] sm:$0xff] }
 0x895   :  { %4546 = vmatmul.bf16.gmra.mxu0 %v12332_v40  ;;  %4585 = vmatmul.bf16.gmra.mxu1 %v12332_v40  ;;  %v13832_v35 = vpop.f32.mrf.mxu2  ;;  %v13834_v15 = vpop.f32.mrf.mxu3 }
 0x896   :  { %4624 = vmatmul.bf16.gmra.mxu2 %v12332_v40  ;;  %4663 = vmatmul.bf16.gmra.mxu3 %v12332_v40  ;;  %v13838_v50 = vpop.f32.mrf.mxu1  ;;  %v10595_v40 = vor.u32 %v12424_v48, %v10594_v14  ;;  %v10580_v14 = vld [vmem:[#allocation9 + $0xb8] sm:$0xf0]  ;;  %v13894_v48 = vperm.slane %v13883_v36, 0 }
 0x898   :  { %5257 = vmatpush.bf16.msrb.mxu2 %v10595_v40  ;;  %v10583_v40 = vor.u32 %v12418_v13, %v10580_v14  ;;  %v12411_v13 = vld [vmem:[#allocation9 + $0x6c] sm:$0xf0]  ;;  %v4562_v14 = vadd.f32 %v13798_v33, %v13897_v1 }
 0x899   :  { %v13828_v57 = vpop.f32.mrf.mxu0 }
 0x89c   :  { %5258 = vmatpush.bf16.msrb.mxu2 %v10579_v30  ;;  %v4523_v30 = vadd.f32 %v13796_v19, %v13894_v48  ;;  %v13908_v19 = vperm.slane %v13883_v36, 2 }
 0x89d   :  { %v13840_v41 = vpop.f32.mrf.mxu2  ;;  %v13842_v5 = vpop.f32.mrf.mxu3 }
 0x89e   :  { %v13846_v37 = vpop.f32.mrf.mxu1 }
 0x8a0   :  { %5259 = vmatpush.bf16.msrb.mxu2 %v10563_v51  ;;  %v10548_v51 = vld [vmem:[#allocation9 + $0x78] sm:$0xf0] }
 0x8a1   :  { %v13836_v56 = vpop.f32.mrf.mxu0 }
 0x8a5   :  { %4921 = vmatmul.bf16.vlgmr.msra.gmra.mxu0 %v14094_v45  ;;  %4934 = vmatmul.bf16.vlgmr.msra.gmra.mxu1 %v14094_v45  ;;  %v13848_v9 = vpop.f32.mrf.mxu2  ;;  %v13850_v4 = vpop.f32.mrf.mxu3 }
 0x8a6   :  { %4947 = vmatmul.bf16.vlgmr.msra.gmra.mxu2 %v14094_v45  ;;  %4960 = vmatmul.bf16.vlgmr.msra.gmra.mxu3 %v14094_v45  ;;  %v13854_v7 = vpop.f32.mrf.mxu1  ;;  %v12422_v45 = vld [vmem:[#allocation9 + $0xcc] sm:$0xf] }
 0x8a7   :  { %v10599_v43 = vor.u32 %v12422_v45, %v10596_v27  ;;  %v10554_v45 = vld [vmem:[#allocation9 + $0x80] sm:$0xf]  ;;  %v12415_v27 = vld [vmem:[#allocation9 + $0x8c] sm:$0xf0] }
 0x8a8   :  { %v10555_v58 = vor.u32 %v12415_v27, %v10554_v45  ;;  %v10539_v27 = vor.u32 %v12411_v13, %v10538_v62  ;;  %v12407_v62 = vld [vmem:[#allocation9 + $0x4c] sm:$0xf0]  ;;  %v12405_v13 = vld [vmem:[#allocation9 + $0x44] sm:$0xf] }
 0x8a9   :  { %v13844_v16 = vpop.f32.mrf.mxu0  ;;  %5270 = vmatpush.bf16.msrb.mxu3 %v10599_v43  ;;  %v12413_v43 = vld [vmem:[#allocation9 + $0x84] sm:$0xf] }
 0x8aa   :  { %v10559_v60 = vor.u32 %v12413_v43, %v10556_v2  ;;  %5233 = vmatpush.bf16.msrb.mxu0 %v10555_v58  ;;  %v10540_v43 = vld [vmem:[#allocation9 + $0x70] sm:$0xf0]  ;;  %v10546_v58 = vld [vmem:[#allocation9 + $0x68] sm:$0xf] }
 0x8ab   :  { %v10543_v61 = vor.u32 %v12409_v32, %v10540_v43  ;;  %v10524_v32 = vld [vmem:[#allocation9 + $0x50] sm:$0xf0] }
 0x8ac   :  { %5246 = vmatpush.bf16.msrb.mxu1 %v10559_v60  ;;  %v12410_v60 = vld [vmem:[#allocation9 + $0x6c] sm:$0xf]  ;;  %v10527_v43 = vor.u32 %v12405_v13, %v10524_v32 }
 0x8ad   :  { %v13856_v46 = vpop.f32.mrf.mxu2  ;;  %v13858_v23 = vpop.f32.mrf.mxu3  ;;  %5271 = vmatpush.bf16.msrb.mxu3 %v10583_v40 }
 0x8ae   :  { %v13862_v8 = vpop.f32.mrf.mxu1  ;;  %5234 = vmatpush.bf16.msrb.mxu0 %v10539_v27  ;;  %v10506_v27 = vld [vmem:[#allocation9 + $0x20] sm:$0xf] }
 0x8b0   :  { %5247 = vmatpush.bf16.msrb.mxu1 %v10543_v61 }
 0x8b1   :  { %v13852_v6 = vpop.f32.mrf.mxu0 }
 0x8b4   :  { %5248 = vmatpush.bf16.msrb.mxu1 %v10527_v43  ;;  %v12399_v43 = vld [vmem:[#allocation9 + $0xc] sm:$0xf0] }
 0x8b5   :  { %v13864_v31 = vpop.f32.mrf.mxu2  ;;  %v13866_v44 = vpop.f32.mrf.mxu3 }
 0x8b6   :  { %v13870_v10 = vpop.f32.mrf.mxu1 }
 0x8b7   :  { %14096 = vst [vmem:[#allocation17_spill] sm:$0xff] %v13870_v10 }
 0x8b9   :  { %v13860_v24 = vpop.f32.mrf.mxu0 }
 0x8bd   :  { %v13872_v28 = vpop.f32.mrf.mxu2  ;;  %v13874_v34 = vpop.f32.mrf.mxu3 }
 0x8be   :  { %14097 = vst [vmem:[#allocation18_spill] sm:$0xff] %v13872_v28  ;;  %v12400_v28 = vld [vmem:[#allocation9 + $0x14] sm:$0xf0] }
 0x8bf   :  { %14098 = vst [vmem:[#allocation19_spill] sm:$0xff] %v13874_v34  ;;  %v12406_v34 = vld [vmem:[#allocation9 + $0x4c] sm:$0xf] }
 0x8c1   :  { %v13868_v22 = vpop.f32.mrf.mxu0 }
 0x8c2   :  { %14095 = vst [vmem:[#allocation16_spill] sm:$0xff] %v13868_v22 }
 0x912   :  { %v13876_v21 = vpop.f32.mrf.mxu0  ;;  %v13878_v63 = vpop.f32.mrf.mxu1 }
 0x913   :  { %14099 = vst [vmem:[#allocation20_spill] sm:$0xff] %v13876_v21 }
 0x914   :  { %14100 = vst [vmem:[#allocation21_spill] sm:$0xff] %v13878_v63 }
 0x919   :  { %v13885_v3 = vpop.f32.mrf.mxu2  ;;  %v13887_v54 = vpop.f32.mrf.mxu3 }
 0x91a   :  { %14101 = vst [vmem:[#allocation22_spill] sm:$0xff] %v13885_v3  ;;  %v13889_v26 = vpop.f32.mrf.mxu0  ;;  %v13891_v0 = vpop.f32.mrf.mxu1 }
 0x91b   :  { %14102 = vst [vmem:[#allocation23_spill] sm:$0xff] %v13887_v54 }
 0x91c   :  { %14103 = vst [vmem:[#allocation24_spill] sm:$0xff] %v13889_v26  ;;  %v10564_v26 = vld [vmem:[#allocation9 + $0x98] sm:$0xf0] }
 0x91d   :  { %14104 = vst [vmem:[#allocation25_spill] sm:$0xff] %v13891_v0  ;;  %v12414_v0 = vld [vmem:[#allocation9 + $0x8c] sm:$0xf] }
 0x91e   :  { %v10567_v54 = vor.u32 %v12414_v0, %v10564_v26  ;;  %v12412_v26 = vld [vmem:[#allocation9 + $0x74] sm:$0xf0] }
 0x91f   :  { %v10547_v18 = vor.u32 %v12412_v26, %v10546_v58  ;;  %v10530_v58 = vld [vmem:[#allocation9 + $0x48] sm:$0xf]  ;;  %v12408_v26 = vld [vmem:[#allocation9 + $0x54] sm:$0xf0] }
 0x920   :  { %5272 = vmatpush.bf16.msrb.mxu3 %v10567_v54  ;;  %v10522_v54 = vld [vmem:[#allocation9 + $0x40] sm:$0xf] }
 0x921   :  { %v13903_v40 = vpop.f32.mrf.mxu2  ;;  %v13905_v45 = vpop.f32.mrf.mxu3  ;;  %5260 = vmatpush.bf16.msrb.mxu2 %v10547_v18  ;;  %v10523_v21 = vor.u32 %v12407_v62, %v10522_v54  ;;  %v10508_v18 = vld [vmem:[#allocation9 + $0x30] sm:$0xf0]  ;;  %v10516_v62 = vld [vmem:[#allocation9 + $0x38] sm:$0xf0] }
 0x922   :  { %14105 = vst [vmem:[#allocation26_spill] sm:$0xff] %v13903_v40  ;;  %v4922_v0 = vpop.f32.mrf.mxu0  ;;  %v4935_v2 = vpop.f32.mrf.mxu1  ;;  %v10551_v40 = vor.u32 %v12410_v60, %v10548_v51  ;;  %v10514_v60 = vld [vmem:[#allocation9 + $0x28] sm:$0xf] }
 0x923   :  { %14106 = vst [vmem:[#allocation27_spill] sm:$0xff] %v13905_v45  ;;  %v4965_v3 = vadd.f32 %v4922_v0, %v4523_v30  ;;  %v4966_v33 = vadd.f32 %v4935_v2, %v4562_v14  ;;  %5235 = vmatpush.bf16.msrb.mxu0 %v10523_v21  ;;  %v10531_v30 = vor.u32 %v12408_v26, %v10530_v58  ;;  %v10532_v14 = vld [vmem:[#allocation9 + $0x58] sm:$0xf0]  ;;  %v12403_v0 = vld [vmem:[#allocation9 + $0x2c] sm:$0xf0] }
 0x924   :  { %5273 = vmatpush.bf16.msrb.mxu3 %v10551_v40  ;;  %v4601_v2 = vadd.f32 %v13800_v53, %v13908_v19  ;;  %v10507_v61 = vor.u32 %v12403_v0, %v10506_v27  ;;  %v12401_v40 = vld [vmem:[#allocation9 + $0x24] sm:$0xf]  ;;  %v12402_v21 = vld [vmem:[#allocation9 + $0x2c] sm:$0xf]  ;;  %v10492_v27 = vld [vmem:[#allocation9 + $0x10] sm:$0xf0] }
 0x925   :  { %v10485_v45 = vmul.f32 -1.442695, %v4965_v3  ;;  %v10486_v63 = vmul.f32 -1.442695, %v4966_v33  ;;  %v10535_v3 = vor.u32 %v12406_v34, %v10532_v14  ;;  %5261 = vmatpush.bf16.msrb.mxu2 %v10531_v30  ;;  %v10511_v54 = vor.u32 %v12401_v40, %v10508_v18  ;;  %v12397_v34 = vld [vmem:[#allocation9 + $0x4] sm:$0xf] }
 0x926   :  { %v10519_v53 = vor.u32 %v12402_v21, %v10516_v62  ;;  %v10498_v0 = vld [vmem:[#allocation9 + $0x8] sm:$0xf]  ;;  %v10495_v30 = vor.u32 %v12397_v34, %v10492_v27  ;;  %v12398_v40 = vld [vmem:[#allocation9 + $0xc] sm:$0xf]  ;;  %v10500_v18 = vld [vmem:[#allocation9 + $0x18] sm:$0xf0] }
 0x927   :  { %12951 = vpow2.f32 %v10485_v45  ;;  %v12404_v45 = vld [vmem:[#allocation9 + $0x34] sm:$0xf0]  ;;  %5236 = vmatpush.bf16.msrb.mxu0 %v10507_v61  ;;  %5249 = vmatpush.bf16.msrb.mxu1 %v10511_v54  ;;  %v13913_v61 = vperm.slane %v13883_v36, 3 }
 0x928   :  { %12953 = vpow2.f32 %v10486_v63  ;;  %5274 = vmatpush.bf16.msrb.mxu3 %v10535_v3  ;;  %v10515_v26 = vor.u32 %v12404_v45, %v10514_v60  ;;  %v10490_v63 = vld [vmem:[#allocation9] sm:$0xf]  ;;  %v10503_v60 = vor.u32 %v12398_v40, %v10500_v18 }
 0x929   :  { %v4948_v51 = vpop.f32.mrf.mxu2  ;;  %v4961_v33 = vpop.f32.mrf.mxu3  ;;  %v10491_v14 = vor.u32 %v12399_v43, %v10490_v63 }
 0x92a   :  { %v4967_v13 = vadd.f32 %v4948_v51, %v4601_v2  ;;  %v4924_v32 = vpop.f32.mrf.mxu0  ;;  %v4937_v58 = vpop.f32.mrf.mxu1  ;;  %5262 = vmatpush.bf16.msrb.mxu2 %v10515_v26  ;;  %v10499_v2 = vor.u32 %v12400_v28, %v10498_v0  ;;  %v4640_v28 = vadd.f32 %v13802_v17, %v13913_v61 }
 0x92b   :  { %5237 = vmatpush.bf16.msrb.mxu0 %v10491_v14  ;;  %5250 = vmatpush.bf16.msrb.mxu1 %v10495_v30 }
 0x92c   :  { %v10487_v10 = vmul.f32 -1.442695, %v4967_v13  ;;  %5275 = vmatpush.bf16.msrb.mxu3 %v10519_v53  ;;  %v4968_v13 = vadd.f32 %v4961_v33, %v4640_v28 }
 0x92d   :  { %v12952_v22 = vpop.eup %12951 }
 0x92e   :  { %v12954_v51 = vpop.eup %12953  ;;  %v4978_v3 = vadd.f32 1.0, %v12952_v22  ;;  %12955 = vpow2.f32 %v10487_v10  ;;  %5263 = vmatpush.bf16.msrb.mxu2 %v10499_v2 }
 0x92f   :  { %v4979_v45 = vadd.f32 1.0, %v12954_v51 }
 0x930   :  { %12957 = vrcp.f32 %v4978_v3  ;;  %5276 = vmatpush.bf16.msrb.mxu3 %v10503_v60  ;;  %v4992_v63 = vand.u32 2147483648, %v4978_v3  ;;  %v4990_v14 = vand.u32 2147483647, %v4978_v3  ;;  %vm4986_vm3 = vweird.f32 %v4978_v3 }
 0x931   :  { %12959 = vrcp.f32 %v4979_v45  ;;  %v4950_v54 = vpop.f32.mrf.mxu2  ;;  %v4963_v21 = vpop.f32.mrf.mxu3  ;;  %v5007_v43 = vand.u32 2147483648, %v4979_v45  ;;  %v5005_v0 = vand.u32 2147483647, %v4979_v45  ;;  %vm5001_vm4 = vweird.f32 %v4979_v45 }
 0x932   :  { %v4993_v40 = vor.u32 1.1754944e-38, %v4992_v63  ;;  %vm4991_vm6 = vcmp.eq.f32.partialorder %v4990_v14, 8.507059e+37 }
 0x933   :  { %v5008_v2 = vor.u32 1.1754944e-38, %v5007_v43  ;;  %vm5006_vm8 = vcmp.eq.f32.partialorder %v5005_v0, 8.507059e+37  ;;  %v12459_v0 = vld [vmem:[#allocation9 + $0xec] sm:$0xf0] }
 0x934   :  { %v12956_v62 = vpop.eup %12955 }
 0x935   :  { %v4980_v22 = vadd.f32 1.0, %v12956_v62 }
 0x936   :  { %v12958_v10 = vpop.eup %12957 }
 0x937   :  { %v12960_v32 = vpop.eup %12959  ;;  %v4982_v58 = vmul.f32 %v12958_v10, %v4978_v3  ;;  %12961 = vrcp.f32 %v4980_v22  ;;  %vm4987_vm1 = vweird.f32 %v12958_v10  ;;  %vm5016_vm10 = vweird.f32 %v4980_v22 }
 0x938   :  { %v4997_v26 = vmul.f32 %v12960_v32, %v4979_v45  ;;  %12963 = vtanh.f32 %v4968_v13  ;;  %vm5002_vm2 = vweird.f32 %v12960_v32  ;;  %vm4988_vm5 = vmor %vm4986_vm3, %vm4987_vm1  ;;  %v5022_v45 = vand.u32 2147483648, %v4980_v22 }
 0x939   :  { %v4983_v36 = vsub.f32 1.0, %v4982_v58  ;;  %vm5003_vm7 = vmor %vm5001_vm4, %vm5002_vm2 }
 0x93a   :  { %v4998_v53 = vsub.f32 1.0, %v4997_v26  ;;  %v5023_v63 = vor.u32 1.1754944e-38, %v5022_v45 }
 0x93b   :  { %v4984_v34 = vmul.f32 %v12958_v10, %v4983_v36 }
 0x93c   :  { %v4999_v27 = vmul.f32 %v12960_v32, %v4998_v53 }
 0x93d   :  { %v12962_v30 = vpop.eup %12961  ;;  %v4985_v17 = vadd.f32 %v12958_v10, %v4984_v34 }
 0x93e   :  { %v5012_v33 = vmul.f32 %v12962_v30, %v4980_v22  ;;  %v5000_v18 = vadd.f32 %v12960_v32, %v4999_v27  ;;  %v12964_v60 = vpop.eup %12963  ;;  %vm5017_vm9 = vweird.f32 %v12962_v30  ;;  %v10733_v27 = vld [vmem:[#allocation9 + $0xe0] sm:$0xf] }
 0x93f   :  { %v4989_v51 = vsel %vm4988_vm5, %v12958_v10, %v4985_v17  ;;  %v5020_v10 = vand.u32 2147483647, %v4980_v22  ;;  %vm5018_vm11 = vmor %vm5016_vm10, %vm5017_vm9  ;;  %v12457_v17 = vld [vmem:[#allocation9 + $0xe4] sm:$0xf]  ;;  %v12460_v22 = vld [vmem:[#allocation9 + $0xf4] sm:$0xf0] }
 0x940   :  { %v5013_v54 = vsub.f32 1.0, %v5012_v33  ;;  %v4994_v21 = vsel %vm4991_vm6, %v4993_v40, %v4989_v51  ;;  %v5004_v62 = vsel %vm5003_vm7, %v12960_v32, %v5000_v18  ;;  %v10734_v33 = vor.u32 %v12459_v0, %v10733_v27  ;;  %v10735_v40 = vld [vmem:[#allocation9 + $0xf0] sm:$0xf0]  ;;  %v10741_v18 = vld [vmem:[#allocation9 + $0xe8] sm:$0xf] }
 0x941   :  { %v5009_v28 = vsel %vm5006_vm8, %v5008_v2, %v5004_v62  ;;  %v5028_v13 = vmul.f32 %v12964_v60, %v4994_v21  ;;  %vm5021_vm12 = vcmp.eq.f32.partialorder %v5020_v10, 8.507059e+37  ;;  %v10738_v2 = vor.u32 %v12457_v17, %v10735_v40  ;;  %v12458_v51 = vld [vmem:[#allocation9 + $0xec] sm:$0xf]  ;;  %v10743_v60 = vld [vmem:[#allocation9 + $0xf8] sm:$0xf0] }
 0x942   :  { %v5014_v58 = vmul.f32 %v12962_v30, %v5013_v54  ;;  %v5027_v26 = vmul.f32 0.0, %v5009_v28  ;;  %5547 = vmatpush.bf16.msra.mxu0 %v10734_v33  ;;  %v10746_v54 = vor.u32 %v12458_v51, %v10743_v60  ;;  %v10717_v21 = vld [vmem:[#allocation9 + $0xc0] sm:$0xf]  ;;  %v12455_v62 = vld [vmem:[#allocation9 + $0xcc] sm:$0xf0] }
 0x943   :  { %5560 = vmatpush.bf16.msra.mxu1 %v10738_v2  ;;  %v12453_v28 = vld [vmem:[#allocation9 + $0xc4] sm:$0xf]  ;;  %v10703_v0 = vld [vmem:[#allocation9 + $0xb0] sm:$0xf0]  ;;  %v10709_v17 = vld [vmem:[#allocation9 + $0xa8] sm:$0xf] }
 0x944   :  { %v13917_v36 = vadd.f32 %v5028_v13, %v5027_v26  ;;  %v5015_v3 = vadd.f32 %v12962_v30, %v5014_v58  ;;  %5586 = vmatpush.bf16.msra.mxu3 %v10746_v54  ;;  %v10718_v13 = vor.u32 %v12455_v62, %v10717_v21  ;;  %v10719_v58 = vld [vmem:[#allocation9 + $0xd0] sm:$0xf0]  ;;  %v10725_v26 = vld [vmem:[#allocation9 + $0xc8] sm:$0xf]  ;;  %v12452_v33 = vld [vmem:[#allocation9 + $0xb4] sm:$0xf0] }
 0x945   :  { %v10722_v45 = vor.u32 %v12453_v28, %v10719_v58  ;;  %v10711_v2 = vld [vmem:[#allocation9 + $0xb8] sm:$0xf0]  ;;  %v10685_v51 = vld [vmem:[#allocation9 + $0x80] sm:$0xf]  ;;  %v12447_v60 = vld [vmem:[#allocation9 + $0x8c] sm:$0xf0] }
 0x946   :  { %12965 = vtanh.f32 %v13917_v36  ;;  %v5019_v53 = vsel %vm5018_vm11, %v12962_v30, %v5015_v3  ;;  %v10742_v30 = vor.u32 %v12460_v22, %v10741_v18  ;;  %v12456_v3 = vld [vmem:[#allocation9 + $0xd4] sm:$0xf0]  ;;  %5548 = vmatpush.bf16.msra.mxu0 %v10718_v13  ;;  %v10710_v18 = vor.u32 %v12452_v33, %v10709_v17  ;;  %v12450_v22 = vld [vmem:[#allocation9 + $0xac] sm:$0xf]  ;;  %v12445_v54 = vld [vmem:[#allocation9 + $0x84] sm:$0xf] }
 0x947   :  { %v5024_v32 = vsel %vm5021_vm12, %v5023_v63, %v5019_v53  ;;  %v10726_v10 = vor.u32 %v12456_v3, %v10725_v26  ;;  %v12454_v53 = vld [vmem:[#allocation9 + $0xcc] sm:$0xf]  ;;  %v10727_v63 = vld [vmem:[#allocation9 + $0xd8] sm:$0xf0]  ;;  %5561 = vmatpush.bf16.msra.mxu1 %v10722_v45  ;;  %v10686_v21 = vor.u32 %v12447_v60, %v10685_v51  ;;  %v10687_v62 = vld [vmem:[#allocation9 + $0x90] sm:$0xf0] }
 0x948   :  { %5573 = vmatpush.bf16.msra.mxu2 %v10742_v30  ;;  %v10714_v30 = vor.u32 %v12450_v22, %v10711_v2  ;;  %v10693_v28 = vld [vmem:[#allocation9 + $0x88] sm:$0xf]  ;;  %v12448_v13 = vld [vmem:[#allocation9 + $0x94] sm:$0xf0]  ;;  %v10690_v58 = vor.u32 %v12445_v54, %v10687_v62  ;;  %v12446_v3 = vld [vmem:[#allocation9 + $0x8c] sm:$0xf] }
 0x949   :  { %v10694_v26 = vor.u32 %v12448_v13, %v10693_v28  ;;  %v10695_v45 = vld [vmem:[#allocation9 + $0x98] sm:$0xf0]  ;;  %v12444_v17 = vld [vmem:[#allocation9 + $0x74] sm:$0xf0]  ;;  %v12442_v2 = vld [vmem:[#allocation9 + $0x6c] sm:$0xf] }
 0x94c   :  { %v12966_v43 = vpop.eup %12965  ;;  %5574 = vmatpush.bf16.msra.mxu2 %v10726_v10  ;;  %v10698_v10 = vor.u32 %v12446_v3, %v10695_v45  ;;  %v10661_v3 = vld [vmem:[#allocation9 + $0x48] sm:$0xf]  ;;  %v12440_v45 = vld [vmem:[#allocation9 + $0x54] sm:$0xf0] }
 0x94d   :  { %v5031_v34 = vmul.f32 %v12966_v43, %v5024_v32  ;;  %v10730_v43 = vor.u32 %v12454_v53, %v10727_v63  ;;  %v10701_v32 = vld [vmem:[#allocation9 + $0xa0] sm:$0xf]  ;;  %v12443_v63 = vld [vmem:[#allocation9 + $0x6c] sm:$0xf0] }
 0x94e   :  { %v10669_v53 = vld [vmem:[#allocation9 + $0x60] sm:$0xf] }
 0x94f   :  { %v5032_v14 = vpack.c.bf16 %v5031_v34, %v5031_v34  ;;  %v12451_v34 = vld [vmem:[#allocation9 + $0xac] sm:$0xf0]  ;;  %5587 = vmatpush.bf16.msra.mxu3 %v10730_v43  ;;  %v12441_v43 = vld [vmem:[#allocation9 + $0x64] sm:$0xf] }
 0x950   :  { %v10702_v27 = vor.u32 %v12451_v34, %v10701_v32  ;;  %5575 = vmatpush.bf16.msra.mxu2 %v10710_v18  ;;  %v4525_v32 = vadd.f32 %v13804_v20, %v13894_v48  ;;  %v4564_v34 = vadd.f32 %v13806_v39, %v13897_v1  ;;  %v10653_v20 = vld [vmem:[#allocation9 + $0x40] sm:$0xf]  ;;  %v12437_v39 = vld [vmem:[#allocation9 + $0x44] sm:$0xf] }
 0x951   :  { %5033 = vst [vmem:[#allocation11] sm:$0xf] %v5032_v14  ;;  %5238 = vmatmul.bf16.vlgmr.msrb.gmra.mxu0 %v5032_v14  ;;  %5251 = vmatmul.bf16.vlgmr.msrb.gmra.mxu1 %v5032_v14 }
 0x952   :  { %5264 = vmatmul.bf16.vlgmr.msrb.gmra.mxu2 %v5032_v14  ;;  %5277 = vmatmul.bf16.vlgmr.msrb.gmra.mxu3 %v5032_v14  ;;  %v12449_v14 = vld [vmem:[#allocation9 + $0xa4] sm:$0xf] }
 0x953   :  { %v10706_v40 = vor.u32 %v12449_v14, %v10703_v0  ;;  %5549 = vmatpush.bf16.msra.mxu0 %v10702_v27  ;;  %5588 = vmatpush.bf16.msra.mxu3 %v10714_v30  ;;  %v10670_v14 = vor.u32 %v12443_v63, %v10669_v53  ;;  %v10671_v27 = vld [vmem:[#allocation9 + $0x70] sm:$0xf0]  ;;  %v10677_v0 = vld [vmem:[#allocation9 + $0x68] sm:$0xf]  ;;  %v10679_v30 = vld [vmem:[#allocation9 + $0x78] sm:$0xf0]  ;;  %v10662_v53 = vor.u32 %v12440_v45, %v10661_v3 }
 0x954   :  { %5576 = vmatpush.bf16.msra.mxu2 %v10694_v26  ;;  %v10674_v18 = vor.u32 %v12441_v43, %v10671_v27  ;;  %v10678_v22 = vor.u32 %v12444_v17, %v10677_v0  ;;  %v10682_v54 = vor.u32 %v12442_v2, %v10679_v30  ;;  %v10663_v63 = vld [vmem:[#allocation9 + $0x58] sm:$0xf0]  ;;  %v10637_v43 = vld [vmem:[#allocation9 + $0x20] sm:$0xf]  ;;  %v12433_v0 = vld [vmem:[#allocation9 + $0x24] sm:$0xf] }
 0x955   :  { %5562 = vmatpush.bf16.msra.mxu1 %v10706_v40  ;;  %v10639_v17 = vld [vmem:[#allocation9 + $0x30] sm:$0xf0]  ;;  %v12436_v2 = vld [vmem:[#allocation9 + $0x34] sm:$0xf0]  ;;  %v12434_v30 = vld [vmem:[#allocation9 + $0x2c] sm:$0xf] }
 0x956   :  { %v12432_v3 = vld [vmem:[#allocation9 + $0x14] sm:$0xf0] }
 0x957   :  { %5550 = vmatpush.bf16.msra.mxu0 %v10686_v21  ;;  %5589 = vmatpush.bf16.msra.mxu3 %v10698_v10  ;;  %v12439_v21 = vld [vmem:[#allocation9 + $0x4c] sm:$0xf0]  ;;  %v12438_v10 = vld [vmem:[#allocation9 + $0x4c] sm:$0xf] }
 0x958   :  { %5577 = vmatpush.bf16.msra.mxu2 %v10678_v22  ;;  %v10654_v13 = vor.u32 %v12439_v21, %v10653_v20  ;;  %v10642_v22 = vor.u32 %v12433_v0, %v10639_v17 }
 0x959   :  { %5563 = vmatpush.bf16.msra.mxu1 %v10690_v58  ;;  %v10655_v58 = vld [vmem:[#allocation9 + $0x50] sm:$0xf0] }
 0x95a   :  { %v10658_v26 = vor.u32 %v12437_v39, %v10655_v58  ;;  %v10621_v39 = vld [vmem:[#allocation9] sm:$0xf]  ;;  %v10623_v58 = vld [vmem:[#allocation9 + $0x10] sm:$0xf0] }
 0x95b   :  { %5551 = vmatpush.bf16.msra.mxu0 %v10670_v14  ;;  %5590 = vmatpush.bf16.msra.mxu3 %v10682_v54  ;;  %v10666_v14 = vor.u32 %v12438_v10, %v10663_v63  ;;  %v10631_v63 = vld [vmem:[#allocation9 + $0x18] sm:$0xf0] }
 0x95c   :  { %5578 = vmatpush.bf16.msra.mxu2 %v10662_v53  ;;  %v12430_v53 = vld [vmem:[#allocation9 + $0xc] sm:$0xf] }
 0x95d   :  { %5564 = vmatpush.bf16.msra.mxu1 %v10674_v18  ;;  %v10634_v0 = vor.u32 %v12430_v53, %v10631_v63 }
 0x95f   :  { %5552 = vmatpush.bf16.msra.mxu0 %v10654_v13  ;;  %5591 = vmatpush.bf16.msra.mxu3 %v10666_v14 }
 0x961   :  { %5565 = vmatpush.bf16.msra.mxu1 %v10658_v26  ;;  %v10629_v26 = vld [vmem:[#allocation9 + $0x8] sm:$0xf] }
 0x965   :  { %5566 = vmatpush.bf16.msra.mxu1 %v10642_v22  ;;  %v4642_v22 = vadd.f32 %v13810_v38, %v13913_v61 }
 0x9ce   :  { %v5239_v33 = vpop.f32.mrf.mxu0  ;;  %v5252_v40 = vpop.f32.mrf.mxu1 }
 0x9cf   :  { %v5282_v51 = vadd.f32 %v5239_v33, %v4525_v32  ;;  %v5283_v60 = vadd.f32 %v5252_v40, %v4564_v34  ;;  %v12435_v32 = vld [vmem:[#allocation9 + $0x2c] sm:$0xf0]  ;;  %v4603_v34 = vadd.f32 %v13808_v25, %v13908_v19  ;;  %v10645_v33 = vld [vmem:[#allocation9 + $0x28] sm:$0xf] }
 0x9d0   :  { %v10638_v27 = vor.u32 %v12435_v32, %v10637_v43  ;;  %v10646_v21 = vor.u32 %v12436_v2, %v10645_v33  ;;  %v10630_v32 = vor.u32 %v12432_v3, %v10629_v26 }
 0x9d1   :  { %v10616_v62 = vmul.f32 -1.442695, %v5282_v51  ;;  %v10617_v28 = vmul.f32 -1.442695, %v5283_v60  ;;  %v10647_v51 = vld [vmem:[#allocation9 + $0x38] sm:$0xf0] }
 0x9d2   :  { %v10650_v25 = vor.u32 %v12434_v30, %v10647_v51  ;;  %5553 = vmatpush.bf16.msra.mxu0 %v10638_v27  ;;  %5579 = vmatpush.bf16.msra.mxu2 %v10646_v21 }
 0x9d3   :  { %12967 = vpow2.f32 %v10616_v62  ;;  %v12431_v62 = vld [vmem:[#allocation9 + $0xc] sm:$0xf0] }
 0x9d4   :  { %12969 = vpow2.f32 %v10617_v28  ;;  %v12429_v28 = vld [vmem:[#allocation9 + $0x4] sm:$0xf]  ;;  %v10622_v13 = vor.u32 %v12431_v62, %v10621_v39  ;;  %5592 = vmatpush.bf16.msra.mxu3 %v10650_v25 }
 0x9d5   :  { %v5265_v40 = vpop.f32.mrf.mxu2  ;;  %v5278_v18 = vpop.f32.mrf.mxu3  ;;  %v10626_v10 = vor.u32 %v12429_v28, %v10623_v58 }
 0x9d6   :  { %v5284_v60 = vadd.f32 %v5265_v40, %v4603_v34  ;;  %v5241_v54 = vpop.f32.mrf.mxu0  ;;  %v5254_v20 = vpop.f32.mrf.mxu1  ;;  %5554 = vmatpush.bf16.msra.mxu0 %v10622_v13  ;;  %5580 = vmatpush.bf16.msra.mxu2 %v10630_v32  ;;  %v5285_v51 = vadd.f32 %v5278_v18, %v4642_v22 }
 0x9d7   :  { %5567 = vmatpush.bf16.msra.mxu1 %v10626_v10 }
 0x9d8   :  { %v10618_v45 = vmul.f32 -1.442695, %v5284_v60  ;;  %5593 = vmatpush.bf16.msra.mxu3 %v10634_v0 }
 0x9d9   :  { %v12968_v43 = vpop.eup %12967 }
 0x9da   :  { %v12970_v34 = vpop.eup %12969  ;;  %v5295_v14 = vadd.f32 1.0, %v12968_v43  ;;  %12971 = vpow2.f32 %v10618_v45 }
 0x9db   :  { %v5296_v17 = vadd.f32 1.0, %v12970_v34 }
 0x9dc   :  { %12973 = vrcp.f32 %v5295_v14  ;;  %v5309_v39 = vand.u32 2147483648, %v5295_v14  ;;  %v5307_v13 = vand.u32 2147483647, %v5295_v14  ;;  %vm5303_vm15 = vweird.f32 %v5295_v14 }
 0x9dd   :  { %12975 = vrcp.f32 %v5296_v17  ;;  %v5267_v27 = vpop.f32.mrf.mxu2  ;;  %v5280_v33 = vpop.f32.mrf.mxu3  ;;  %v5324_v62 = vand.u32 2147483648, %v5296_v17  ;;  %v5322_v26 = vand.u32 2147483647, %v5296_v17  ;;  %vm5318_vm0 = vweird.f32 %v5296_v17 }
 0x9de   :  { %v5310_v45 = vor.u32 1.1754944e-38, %v5309_v39  ;;  %vm5308_vm3 = vcmp.eq.f32.partialorder %v5307_v13, 8.507059e+37 }
 0x9df   :  { %v5325_v53 = vor.u32 1.1754944e-38, %v5324_v62  ;;  %vm5323_vm4 = vcmp.eq.f32.partialorder %v5322_v26, 8.507059e+37  ;;  %v12491_v62 = vld [vmem:[#allocation9 + $0xec] sm:$0xf0]  ;;  %v10872_v26 = vld [vmem:[#allocation9 + $0xe8] sm:$0xf] }
 0x9e0   :  { %v12972_v40 = vpop.eup %12971 }
 0x9e1   :  { %v5297_v2 = vadd.f32 1.0, %v12972_v40 }
 0x9e2   :  { %v12974_v30 = vpop.eup %12973 }
 0x9e3   :  { %v12976_v60 = vpop.eup %12975  ;;  %v5299_v54 = vmul.f32 %v12974_v30, %v5295_v14  ;;  %12977 = vrcp.f32 %v5297_v2  ;;  %vm5304_vm13 = vweird.f32 %v12974_v30  ;;  %vm5333_vm6 = vweird.f32 %v5297_v2 }
 0x9e4   :  { %v5314_v20 = vmul.f32 %v12976_v60, %v5296_v17  ;;  %12979 = vtanh.f32 %v5285_v51  ;;  %vm5319_vm14 = vweird.f32 %v12976_v60  ;;  %vm5305_vm1 = vmor %vm5303_vm15, %vm5304_vm13  ;;  %v5339_v51 = vand.u32 2147483648, %v5297_v2 }
 0x9e5   :  { %v5300_v21 = vsub.f32 1.0, %v5299_v54  ;;  %vm5320_vm2 = vmor %vm5318_vm0, %vm5319_vm14 }
 0x9e6   :  { %v5315_v25 = vsub.f32 1.0, %v5314_v20  ;;  %v5340_v20 = vor.u32 1.1754944e-38, %v5339_v51 }
 0x9e7   :  { %v5301_v28 = vmul.f32 %v12974_v30, %v5300_v21 }
 0x9e8   :  { %v5316_v58 = vmul.f32 %v12976_v60, %v5315_v25 }
 0x9e9   :  { %v12978_v3 = vpop.eup %12977  ;;  %v5302_v38 = vadd.f32 %v12974_v30, %v5301_v28  ;;  %v12489_v28 = vld [vmem:[#allocation9 + $0xe4] sm:$0xf] }
 0x9ea   :  { %v5329_v18 = vmul.f32 %v12978_v3, %v5297_v2  ;;  %v5317_v10 = vadd.f32 %v12976_v60, %v5316_v58  ;;  %v12980_v43 = vpop.eup %12979  ;;  %vm5334_vm5 = vweird.f32 %v12978_v3  ;;  %v10866_v58 = vld [vmem:[#allocation9 + $0xf0] sm:$0xf0] }
 0x9eb   :  { %v5306_v63 = vsel %vm5305_vm1, %v12974_v30, %v5302_v38  ;;  %v5337_v30 = vand.u32 2147483647, %v5297_v2  ;;  %vm5335_vm7 = vmor %vm5333_vm6, %vm5334_vm5  ;;  %v12492_v2 = vld [vmem:[#allocation9 + $0xf4] sm:$0xf0]  ;;  %v10869_v38 = vor.u32 %v12489_v28, %v10866_v58  ;;  %v12482_v28 = vld [vmem:[#allocation9 + $0xac] sm:$0xf] }
 0x9ec   :  { %v5330_v32 = vsub.f32 1.0, %v5329_v18  ;;  %v5311_v34 = vsel %vm5308_vm3, %v5310_v45, %v5306_v63  ;;  %v5321_v0 = vsel %vm5320_vm2, %v12976_v60, %v5317_v10  ;;  %v12490_v18 = vld [vmem:[#allocation9 + $0xec] sm:$0xf]  ;;  %v10874_v45 = vld [vmem:[#allocation9 + $0xf8] sm:$0xf0] }
 0x9ed   :  { %v5326_v27 = vsel %vm5323_vm4, %v5325_v53, %v5321_v0  ;;  %v5345_v33 = vmul.f32 %v12980_v43, %v5311_v34  ;;  %vm5338_vm8 = vcmp.eq.f32.partialorder %v5337_v30, 8.507059e+37  ;;  %v10877_v10 = vor.u32 %v12490_v18, %v10874_v45  ;;  %5877 = vmatpush.bf16.msrb.mxu1 %v10869_v38  ;;  %v10848_v53 = vld [vmem:[#allocation9 + $0xc0] sm:$0xf]  ;;  %v12487_v63 = vld [vmem:[#allocation9 + $0xcc] sm:$0xf0] }
 0x9ee   :  { %v5331_v40 = vmul.f32 %v12978_v3, %v5330_v32  ;;  %v5344_v22 = vmul.f32 %v5326_v27, %v13917_v36  ;;  %v10864_v36 = vld [vmem:[#allocation9 + $0xe0] sm:$0xf]  ;;  %v12485_v43 = vld [vmem:[#allocation9 + $0xc4] sm:$0xf]  ;;  %v10849_v32 = vor.u32 %v12487_v63, %v10848_v53  ;;  %v10850_v34 = vld [vmem:[#allocation9 + $0xd0] sm:$0xf0] }
 0x9ef   :  { %v10865_v13 = vor.u32 %v12491_v62, %v10864_v36  ;;  %5903 = vmatpush.bf16.msrb.mxu3 %v10877_v10  ;;  %v10856_v0 = vld [vmem:[#allocation9 + $0xc8] sm:$0xf]  ;;  %v12488_v27 = vld [vmem:[#allocation9 + $0xd4] sm:$0xf0]  ;;  %v10832_v30 = vld [vmem:[#allocation9 + $0xa0] sm:$0xf] }
 0x9f0   :  { %v13929_v14 = vadd.f32 %v5345_v33, %v5344_v22  ;;  %v5332_v17 = vadd.f32 %v12978_v3, %v5331_v40  ;;  %v10853_v33 = vor.u32 %v12485_v43, %v10850_v34  ;;  %v10857_v40 = vor.u32 %v12488_v27, %v10856_v0  ;;  %v12486_v22 = vld [vmem:[#allocation9 + $0xcc] sm:$0xf]  ;;  %v12477_v38 = vld [vmem:[#allocation9 + $0x84] sm:$0xf]  ;;  %v10818_v18 = vld [vmem:[#allocation9 + $0x90] sm:$0xf0] }
 0x9f1   :  { %5864 = vmatpush.bf16.msrb.mxu0 %v10865_v13  ;;  %v10842_v13 = vld [vmem:[#allocation9 + $0xb8] sm:$0xf0]  ;;  %v10824_v45 = vld [vmem:[#allocation9 + $0x88] sm:$0xf]  ;;  %v12480_v10 = vld [vmem:[#allocation9 + $0x94] sm:$0xf0]  ;;  %v10821_v53 = vor.u32 %v12477_v38, %v10818_v18 }
 0x9f2   :  { %12981 = vtanh.f32 %v13929_v14  ;;  %v5336_v54 = vsel %vm5335_vm7, %v12978_v3, %v5332_v17  ;;  %v10873_v3 = vor.u32 %v12492_v2, %v10872_v26  ;;  %v10858_v17 = vld [vmem:[#allocation9 + $0xd8] sm:$0xf0]  ;;  %5878 = vmatpush.bf16.msrb.mxu1 %v10853_v33  ;;  %v10845_v58 = vor.u32 %v12482_v28, %v10842_v13  ;;  %v10816_v26 = vld [vmem:[#allocation9 + $0x80] sm:$0xf]  ;;  %v12479_v2 = vld [vmem:[#allocation9 + $0x8c] sm:$0xf0] }
 0x9f3   :  { %v5341_v21 = vsel %vm5338_vm8, %v5340_v20, %v5336_v54  ;;  %v10861_v51 = vor.u32 %v12486_v22, %v10858_v17  ;;  %v12483_v54 = vld [vmem:[#allocation9 + $0xac] sm:$0xf0]  ;;  %v12481_v20 = vld [vmem:[#allocation9 + $0xa4] sm:$0xf]  ;;  %v10825_v63 = vor.u32 %v12480_v10, %v10824_v45  ;;  %v12478_v43 = vld [vmem:[#allocation9 + $0x8c] sm:$0xf]  ;;  %v4567_v22 = vadd.f32 %v13814_v11, %v13897_v1 }
 0x9f4   :  { %5890 = vmatpush.bf16.msrb.mxu2 %v10873_v3  ;;  %v10817_v3 = vor.u32 %v12479_v2, %v10816_v26  ;;  %v10800_v0 = vld [vmem:[#allocation9 + $0x60] sm:$0xf]  ;;  %v12475_v27 = vld [vmem:[#allocation9 + $0x6c] sm:$0xf0]  ;;  %v12473_v33 = vld [vmem:[#allocation9 + $0x64] sm:$0xf] }
 0x9f5   :  { %5865 = vmatpush.bf16.msrb.mxu0 %v10849_v32  ;;  %5904 = vmatpush.bf16.msrb.mxu3 %v10861_v51  ;;  %v10826_v32 = vld [vmem:[#allocation9 + $0x98] sm:$0xf0]  ;;  %v10801_v17 = vor.u32 %v12475_v27, %v10800_v0  ;;  %v10802_v51 = vld [vmem:[#allocation9 + $0x70] sm:$0xf0]  ;;  %v12469_v11 = vld [vmem:[#allocation9 + $0x44] sm:$0xf]  ;;  %v4606_v0 = vadd.f32 %v13816_v55, %v13908_v19 }
 0x9f6   :  { %v10829_v34 = vor.u32 %v12478_v43, %v10826_v32  ;;  %v10792_v45 = vld [vmem:[#allocation9 + $0x48] sm:$0xf]  ;;  %v12472_v10 = vld [vmem:[#allocation9 + $0x54] sm:$0xf0]  ;;  %v10794_v43 = vld [vmem:[#allocation9 + $0x58] sm:$0xf0] }
 0x9f7   :  { %v10768_v32 = vld [vmem:[#allocation9 + $0x20] sm:$0xf] }
 0x9f8   :  { %v12982_v60 = vpop.eup %12981  ;;  %5891 = vmatpush.bf16.msrb.mxu2 %v10857_v40  ;;  %v4528_v40 = vadd.f32 %v13812_v59, %v13894_v48  ;;  %v10784_v59 = vld [vmem:[#allocation9 + $0x40] sm:$0xf] }
 0x9f9   :  { %v5348_v25 = vmul.f32 %v12982_v60, %v5341_v21  ;;  %v10833_v60 = vor.u32 %v12483_v54, %v10832_v30  ;;  %v10834_v21 = vld [vmem:[#allocation9 + $0xb0] sm:$0xf0]  ;;  %5905 = vmatpush.bf16.msrb.mxu3 %v10845_v58  ;;  %v10808_v30 = vld [vmem:[#allocation9 + $0x68] sm:$0xf]  ;;  %v12476_v54 = vld [vmem:[#allocation9 + $0x74] sm:$0xf0] }
 0x9fa   :  { %v10837_v36 = vor.u32 %v12481_v20, %v10834_v21  ;;  %v10805_v21 = vor.u32 %v12473_v33, %v10802_v51  ;;  %v12471_v58 = vld [vmem:[#allocation9 + $0x4c] sm:$0xf0] }
 0x9fb   :  { %v5349_v39 = vpack.c.bf16 %v5348_v25, %v5348_v25  ;;  %v10840_v25 = vld [vmem:[#allocation9 + $0xa8] sm:$0xf]  ;;  %5866 = vmatpush.bf16.msrb.mxu0 %v10833_v60  ;;  %v10785_v38 = vor.u32 %v12471_v58, %v10784_v59  ;;  %v12461_v59 = vld [vmem:[#allocation9 + $0x4] sm:$0xf] }
 0x9fc   :  { %5879 = vmatpush.bf16.msrb.mxu1 %v10837_v36  ;;  %v10810_v36 = vld [vmem:[#allocation9 + $0x78] sm:$0xf0] }
 0x9fd   :  { %5350 = vst [vmem:[#allocation11 + $0x4] sm:$0xf] %v5349_v39  ;;  %5555 = vmatmul.bf16.vlgmr.msra.gmra.mxu0 %v5349_v39  ;;  %5568 = vmatmul.bf16.vlgmr.msra.gmra.mxu1 %v5349_v39 }
 0x9fe   :  { %5581 = vmatmul.bf16.vlgmr.msra.gmra.mxu2 %v5349_v39  ;;  %5594 = vmatmul.bf16.vlgmr.msra.gmra.mxu3 %v5349_v39  ;;  %v12484_v39 = vld [vmem:[#allocation9 + $0xb4] sm:$0xf0] }
 0x9ff   :  { %v10841_v62 = vor.u32 %v12484_v39, %v10840_v25  ;;  %5867 = vmatpush.bf16.msrb.mxu0 %v10817_v3  ;;  %5906 = vmatpush.bf16.msrb.mxu3 %v10829_v34  ;;  %v10809_v25 = vor.u32 %v12476_v54, %v10808_v30  ;;  %v12474_v39 = vld [vmem:[#allocation9 + $0x6c] sm:$0xf]  ;;  %v10786_v3 = vld [vmem:[#allocation9 + $0x50] sm:$0xf0]  ;;  %v12467_v34 = vld [vmem:[#allocation9 + $0x2c] sm:$0xf0] }
 0xa00   :  { %5880 = vmatpush.bf16.msrb.mxu1 %v10821_v53  ;;  %v10813_v13 = vor.u32 %v12474_v39, %v10810_v36  ;;  %v10789_v18 = vor.u32 %v12469_v11, %v10786_v3  ;;  %v12470_v53 = vld [vmem:[#allocation9 + $0x4c] sm:$0xf]  ;;  %v10769_v33 = vor.u32 %v12467_v34, %v10768_v32  ;;  %v10754_v11 = vld [vmem:[#allocation9 + $0x10] sm:$0xf0] }
 0xa01   :  { %5892 = vmatpush.bf16.msrb.mxu2 %v10841_v62  ;;  %v10797_v27 = vor.u32 %v12470_v53, %v10794_v43  ;;  %v10757_v3 = vor.u32 %v12461_v59, %v10754_v11 }
 0xa03   :  { %5868 = vmatpush.bf16.msrb.mxu0 %v10801_v17  ;;  %5907 = vmatpush.bf16.msrb.mxu3 %v10813_v13  ;;  %v10776_v17 = vld [vmem:[#allocation9 + $0x28] sm:$0xf]  ;;  %v12463_v13 = vld [vmem:[#allocation9 + $0xc] sm:$0xf0] }
 0xa04   :  { %5881 = vmatpush.bf16.msrb.mxu1 %v10805_v21  ;;  %v10778_v21 = vld [vmem:[#allocation9 + $0x38] sm:$0xf0] }
 0xa05   :  { %5893 = vmatpush.bf16.msrb.mxu2 %v10825_v63  ;;  %v10793_v63 = vor.u32 %v12472_v10, %v10792_v45  ;;  %v10762_v45 = vld [vmem:[#allocation9 + $0x18] sm:$0xf0] }
 0xa07   :  { %5869 = vmatpush.bf16.msrb.mxu0 %v10785_v38  ;;  %5908 = vmatpush.bf16.msrb.mxu3 %v10797_v27 }
 0xa08   :  { %5882 = vmatpush.bf16.msrb.mxu1 %v10789_v18  ;;  %v12462_v18 = vld [vmem:[#allocation9 + $0xc] sm:$0xf] }
 0xa09   :  { %5894 = vmatpush.bf16.msrb.mxu2 %v10809_v25  ;;  %v10765_v32 = vor.u32 %v12462_v18, %v10762_v45 }
 0xa0b   :  { %5870 = vmatpush.bf16.msrb.mxu0 %v10769_v33 }
 0xa0d   :  { %5895 = vmatpush.bf16.msrb.mxu2 %v10793_v63 }
 0xa7a   :  { %v5556_v20 = vpop.f32.mrf.mxu0  ;;  %v5569_v60 = vpop.f32.mrf.mxu1 }
 0xa7b   :  { %v5599_v62 = vadd.f32 %v5556_v20, %v4528_v40  ;;  %v5600_v28 = vadd.f32 %v5569_v60, %v4567_v22  ;;  %v12465_v40 = vld [vmem:[#allocation9 + $0x24] sm:$0xf]  ;;  %v10770_v22 = vld [vmem:[#allocation9 + $0x30] sm:$0xf0]  ;;  %v12468_v20 = vld [vmem:[#allocation9 + $0x34] sm:$0xf0] }
 0xa7c   :  { %v10773_v54 = vor.u32 %v12465_v40, %v10770_v22  ;;  %v12466_v60 = vld [vmem:[#allocation9 + $0x2c] sm:$0xf]  ;;  %v4645_v40 = vadd.f32 %v13818_v49, %v13913_v61 }
 0xa7d   :  { %v10747_v26 = vmul.f32 -1.442695, %v5599_v62  ;;  %v10748_v2 = vmul.f32 -1.442695, %v5600_v28  ;;  %v10777_v62 = vor.u32 %v12468_v20, %v10776_v17  ;;  %v10781_v55 = vor.u32 %v12466_v60, %v10778_v21  ;;  %v10752_v28 = vld [vmem:[#allocation9] sm:$0xf] }
 0xa7e   :  { %v10753_v58 = vor.u32 %v12463_v13, %v10752_v28  ;;  %5883 = vmatpush.bf16.msrb.mxu1 %v10773_v54 }
 0xa7f   :  { %12983 = vpow2.f32 %v10747_v26  ;;  %v10760_v26 = vld [vmem:[#allocation9 + $0x8] sm:$0xf]  ;;  %5896 = vmatpush.bf16.msrb.mxu2 %v10777_v62  ;;  %5909 = vmatpush.bf16.msrb.mxu3 %v10781_v55 }
 0xa80   :  { %12985 = vpow2.f32 %v10748_v2  ;;  %v12464_v2 = vld [vmem:[#allocation9 + $0x14] sm:$0xf0]  ;;  %5871 = vmatpush.bf16.msrb.mxu0 %v10753_v58 }
 0xa81   :  { %v5582_v51 = vpop.f32.mrf.mxu2  ;;  %v5595_v30 = vpop.f32.mrf.mxu3  ;;  %v10761_v53 = vor.u32 %v12464_v2, %v10760_v26 }
 0xa82   :  { %v5601_v25 = vadd.f32 %v5582_v51, %v4606_v0  ;;  %v5558_v39 = vpop.f32.mrf.mxu0  ;;  %v5571_v36 = vpop.f32.mrf.mxu1  ;;  %5884 = vmatpush.bf16.msrb.mxu1 %v10757_v3  ;;  %v5602_v51 = vadd.f32 %v5595_v30, %v4645_v40 }
 0xa83   :  { %5897 = vmatpush.bf16.msrb.mxu2 %v10761_v53  ;;  %5910 = vmatpush.bf16.msrb.mxu3 %v10765_v32 }
 0xa84   :  { %v10749_v38 = vmul.f32 -1.442695, %v5601_v25 }
 0xa85   :  { %v12984_v10 = vpop.eup %12983 }
 0xa86   :  { %v12986_v63 = vpop.eup %12985  ;;  %v5612_v43 = vadd.f32 1.0, %v12984_v10  ;;  %12987 = vpow2.f32 %v10749_v38 }
 0xa87   :  { %v5613_v34 = vadd.f32 1.0, %v12986_v63 }
 0xa88   :  { %12989 = vrcp.f32 %v5612_v43  ;;  %v5626_v39 = vand.u32 2147483648, %v5612_v43  ;;  %v5624_v55 = vand.u32 2147483647, %v5612_v43  ;;  %vm5620_vm11 = vweird.f32 %v5612_v43 }
 0xa89   :  { %12991 = vrcp.f32 %v5613_v34  ;;  %v5584_v0 = vpop.f32.mrf.mxu2  ;;  %v5597_v27 = vpop.f32.mrf.mxu3  ;;  %v5641_v36 = vand.u32 2147483648, %v5613_v34  ;;  %v5639_v13 = vand.u32 2147483647, %v5613_v34  ;;  %vm5635_vm12 = vweird.f32 %v5613_v34 }
 0xa8a   :  { %v5627_v58 = vor.u32 1.1754944e-38, %v5626_v39  ;;  %vm5625_vm15 = vcmp.eq.f32.partialorder %v5624_v55, 8.507059e+37  ;;  %v10997_v39 = vld [vmem:[#allocation9 + $0xf0] sm:$0xf0] }
 0xa8b   :  { %v5642_v26 = vor.u32 1.1754944e-38, %v5641_v36  ;;  %vm5640_vm0 = vcmp.eq.f32.partialorder %v5639_v13, 8.507059e+37  ;;  %v11003_v36 = vld [vmem:[#allocation9 + $0xe8] sm:$0xf]  ;;  %v11005_v13 = vld [vmem:[#allocation9 + $0xf8] sm:$0xf0] }
 0xa8c   :  { %v12988_v33 = vpop.eup %12987 }
 0xa8d   :  { %v5614_v22 = vadd.f32 1.0, %v12988_v33 }
 0xa8e   :  { %v12990_v17 = vpop.eup %12989 }
 0xa8f   :  { %v12992_v54 = vpop.eup %12991  ;;  %v5616_v20 = vmul.f32 %v12990_v17, %v5612_v43  ;;  %12993 = vrcp.f32 %v5614_v22  ;;  %vm5621_vm9 = vweird.f32 %v12990_v17  ;;  %v5656_v0 = vand.u32 2147483648, %v5614_v22 }
 0xa90   :  { %v5631_v60 = vmul.f32 %v12992_v54, %v5613_v34  ;;  %12995 = vtanh.f32 %v5602_v51  ;;  %vm5636_vm10 = vweird.f32 %v12992_v54  ;;  %vm5622_vm13 = vmor %vm5620_vm11, %vm5621_vm9  ;;  %vm5650_vm2 = vweird.f32 %v5614_v22 }
 0xa91   :  { %v5617_v21 = vsub.f32 1.0, %v5616_v20  ;;  %vm5637_vm14 = vmor %vm5635_vm12, %vm5636_vm10  ;;  %v5654_v27 = vand.u32 2147483647, %v5614_v22  ;;  %v5657_v40 = vor.u32 1.1754944e-38, %v5656_v0 }
 0xa92   :  { %v5632_v25 = vsub.f32 1.0, %v5631_v60  ;;  %v12523_v60 = vld [vmem:[#allocation9 + $0xec] sm:$0xf0] }
 0xa93   :  { %v5618_v62 = vmul.f32 %v12990_v17, %v5617_v21  ;;  %vm5655_vm4 = vcmp.eq.f32.partialorder %v5654_v27, 8.507059e+37  ;;  %v12521_v21 = vld [vmem:[#allocation9 + $0xe4] sm:$0xf]  ;;  %v10965_v27 = vld [vmem:[#allocation9 + $0xb0] sm:$0xf0] }
 0xa94   :  { %v5633_v28 = vmul.f32 %v12992_v54, %v5632_v25 }
 0xa95   :  { %v12994_v59 = vpop.eup %12993  ;;  %v5619_v49 = vadd.f32 %v12990_v17, %v5618_v62  ;;  %v11000_v62 = vor.u32 %v12521_v21, %v10997_v39  ;;  %v12511_v21 = vld [vmem:[#allocation9 + $0x8c] sm:$0xf0] }
 0xa96   :  { %v5646_v30 = vmul.f32 %v12994_v59, %v5614_v22  ;;  %v5634_v11 = vadd.f32 %v12992_v54, %v5633_v28  ;;  %v12996_v38 = vpop.eup %12995  ;;  %vm5651_vm1 = vweird.f32 %v12994_v59  ;;  %v12524_v22 = vld [vmem:[#allocation9 + $0xf4] sm:$0xf0]  ;;  %v12522_v28 = vld [vmem:[#allocation9 + $0xec] sm:$0xf] }
 0xa97   :  { %v5623_v2 = vsel %vm5622_vm13, %v12990_v17, %v5619_v49  ;;  %vm5652_vm3 = vmor %vm5650_vm2, %vm5651_vm1  ;;  %v11004_v55 = vor.u32 %v12524_v22, %v11003_v36  ;;  %6194 = vmatpush.bf16.msra.mxu1 %v11000_v62  ;;  %v10979_v49 = vld [vmem:[#allocation9 + $0xc0] sm:$0xf]  ;;  %v10949_v36 = vld [vmem:[#allocation9 + $0x90] sm:$0xf0] }
 0xa98   :  { %v5647_v3 = vsub.f32 1.0, %v5646_v30  ;;  %v5628_v18 = vsel %vm5625_vm15, %v5627_v58, %v5623_v2  ;;  %v5638_v45 = vsel %vm5637_vm14, %v12992_v54, %v5634_v11  ;;  %v12519_v30 = vld [vmem:[#allocation9 + $0xcc] sm:$0xf0]  ;;  %v12517_v58 = vld [vmem:[#allocation9 + $0xc4] sm:$0xf] }
 0xa99   :  { %v5643_v10 = vsel %vm5640_vm0, %v5642_v26, %v5638_v45  ;;  %v5662_v53 = vmul.f32 %v12996_v38, %v5628_v18  ;;  %6207 = vmatpush.bf16.msra.mxu2 %v11004_v55  ;;  %v10980_v11 = vor.u32 %v12519_v30, %v10979_v49  ;;  %v10981_v26 = vld [vmem:[#allocation9 + $0xd0] sm:$0xf0]  ;;  %v10987_v2 = vld [vmem:[#allocation9 + $0xc8] sm:$0xf]  ;;  %v12520_v38 = vld [vmem:[#allocation9 + $0xd4] sm:$0xf0] }
 0xa9a   :  { %v5648_v63 = vmul.f32 %v12994_v59, %v5647_v3  ;;  %v5661_v32 = vmul.f32 %v5643_v10, %v13929_v14  ;;  %v10995_v14 = vld [vmem:[#allocation9 + $0xe0] sm:$0xf]  ;;  %v10984_v3 = vor.u32 %v12517_v58, %v10981_v26  ;;  %v10988_v18 = vor.u32 %v12520_v38, %v10987_v2  ;;  %v12518_v45 = vld [vmem:[#allocation9 + $0xcc] sm:$0xf]  ;;  %v10989_v10 = vld [vmem:[#allocation9 + $0xd8] sm:$0xf0] }
 0xa9b   :  { %v10996_v25 = vor.u32 %v12523_v60, %v10995_v14  ;;  %v10947_v60 = vld [vmem:[#allocation9 + $0x80] sm:$0xf]  ;;  %v10955_v22 = vld [vmem:[#allocation9 + $0x88] sm:$0xf]  ;;  %v12512_v62 = vld [vmem:[#allocation9 + $0x94] sm:$0xf0]  ;;  %v4530_v26 = vadd.f32 %v13820_v29, %v13894_v48  ;;  %v4569_v2 = vadd.f32 %v13822_v12, %v13897_v1 }
 0xa9c   :  { %v13941_v43 = vadd.f32 %v5662_v53, %v5661_v32  ;;  %v5649_v34 = vadd.f32 %v12994_v59, %v5648_v63  ;;  %v10992_v53 = vor.u32 %v12518_v45, %v10989_v10  ;;  %6195 = vmatpush.bf16.msra.mxu1 %v10984_v3  ;;  %v10963_v63 = vld [vmem:[#allocation9 + $0xa0] sm:$0xf]  ;;  %v12515_v32 = vld [vmem:[#allocation9 + $0xac] sm:$0xf0]  ;;  %v10948_v39 = vor.u32 %v12511_v21, %v10947_v60  ;;  %v10933_v3 = vld [vmem:[#allocation9 + $0x70] sm:$0xf0] }
 0xa9d   :  { %6181 = vmatpush.bf16.msra.mxu0 %v10996_v25  ;;  %6208 = vmatpush.bf16.msra.mxu2 %v10988_v18  ;;  %v10964_v0 = vor.u32 %v12515_v32, %v10963_v63  ;;  %v12509_v25 = vld [vmem:[#allocation9 + $0x84] sm:$0xf]  ;;  %v10931_v30 = vld [vmem:[#allocation9 + $0x60] sm:$0xf]  ;;  %v12507_v58 = vld [vmem:[#allocation9 + $0x6c] sm:$0xf0] }
 0xa9e   :  { %12997 = vtanh.f32 %v13941_v43  ;;  %v5653_v33 = vsel %vm5652_vm3, %v12994_v59, %v5649_v34  ;;  %v11008_v59 = vor.u32 %v12522_v28, %v11005_v13  ;;  %v12513_v34 = vld [vmem:[#allocation9 + $0xa4] sm:$0xf]  ;;  %v10952_v55 = vor.u32 %v12509_v25, %v10949_v36  ;;  %v12510_v13 = vld [vmem:[#allocation9 + $0x8c] sm:$0xf]  ;;  %v10939_v18 = vld [vmem:[#allocation9 + $0x68] sm:$0xf] }
 0xa9f   :  { %v5658_v51 = vsel %vm5655_vm4, %v5657_v40, %v5653_v33  ;;  %v10971_v33 = vld [vmem:[#allocation9 + $0xa8] sm:$0xf]  ;;  %v12516_v40 = vld [vmem:[#allocation9 + $0xb4] sm:$0xf0]  ;;  %v10956_v28 = vor.u32 %v12512_v62, %v10955_v22  ;;  %v10932_v38 = vor.u32 %v12507_v58, %v10931_v30  ;;  %v10915_v29 = vld [vmem:[#allocation9 + $0x40] sm:$0xf] }
 0xaa0   :  { %6220 = vmatpush.bf16.msra.mxu3 %v11008_v59  ;;  %v10957_v59 = vld [vmem:[#allocation9 + $0x98] sm:$0xf0]  ;;  %v12508_v45 = vld [vmem:[#allocation9 + $0x74] sm:$0xf0]  ;;  %v12501_v12 = vld [vmem:[#allocation9 + $0x44] sm:$0xf] }
 0xaa1   :  { %6182 = vmatpush.bf16.msra.mxu0 %v10980_v11  ;;  %v10960_v49 = vor.u32 %v12510_v13, %v10957_v59  ;;  %v12505_v11 = vld [vmem:[#allocation9 + $0x64] sm:$0xf]  ;;  %v10940_v32 = vor.u32 %v12508_v45, %v10939_v18  ;;  %v10923_v21 = vld [vmem:[#allocation9 + $0x48] sm:$0xf]  ;;  %v12504_v25 = vld [vmem:[#allocation9 + $0x54] sm:$0xf0] }
 0xaa2   :  { %v10936_v63 = vor.u32 %v12505_v11, %v10933_v3  ;;  %v10924_v36 = vor.u32 %v12504_v25, %v10923_v21  ;;  %v10925_v22 = vld [vmem:[#allocation9 + $0x58] sm:$0xf0]  ;;  %v10899_v62 = vld [vmem:[#allocation9 + $0x20] sm:$0xf]  ;;  %v10901_v30 = vld [vmem:[#allocation9 + $0x30] sm:$0xf0] }
 0xaa3   :  { %v10907_v58 = vld [vmem:[#allocation9 + $0x28] sm:$0xf]  ;;  %v12498_v3 = vld [vmem:[#allocation9 + $0x2c] sm:$0xf]  ;;  %v10909_v18 = vld [vmem:[#allocation9 + $0x38] sm:$0xf0] }
 0xaa4   :  { %v12998_v17 = vpop.eup %12997  ;;  %6221 = vmatpush.bf16.msra.mxu3 %v10992_v53 }
 0xaa5   :  { %v5665_v54 = vmul.f32 %v12998_v17, %v5658_v51  ;;  %v10968_v17 = vor.u32 %v12513_v34, %v10965_v27  ;;  %v10972_v51 = vor.u32 %v12516_v40, %v10971_v33  ;;  %6183 = vmatpush.bf16.msra.mxu0 %v10964_v0  ;;  %v12506_v34 = vld [vmem:[#allocation9 + $0x6c] sm:$0xf]  ;;  %v10941_v0 = vld [vmem:[#allocation9 + $0x78] sm:$0xf0] }
 0xaa6   :  { %v10944_v40 = vor.u32 %v12506_v34, %v10941_v0  ;;  %v12495_v34 = vld [vmem:[#allocation9 + $0xc] sm:$0xf0]  ;;  %v12493_v0 = vld [vmem:[#allocation9 + $0x4] sm:$0xf] }
 0xaa7   :  { %v5666_v20 = vpack.c.bf16 %v5665_v54, %v5665_v54  ;;  %v12514_v54 = vld [vmem:[#allocation9 + $0xac] sm:$0xf]  ;;  %6196 = vmatpush.bf16.msra.mxu1 %v10968_v17  ;;  %6209 = vmatpush.bf16.msra.mxu2 %v10972_v51  ;;  %v12503_v17 = vld [vmem:[#allocation9 + $0x4c] sm:$0xf0] }
 0xaa9   :  { %5667 = vst [vmem:[#allocation11 + $0x8] sm:$0xf] %v5666_v20  ;;  %5872 = vmatmul.bf16.vlgmr.msrb.gmra.mxu0 %v5666_v20  ;;  %5885 = vmatmul.bf16.vlgmr.msrb.gmra.mxu1 %v5666_v20 }
 0xaaa   :  { %5898 = vmatmul.bf16.vlgmr.msrb.gmra.mxu2 %v5666_v20  ;;  %5911 = vmatmul.bf16.vlgmr.msrb.gmra.mxu3 %v5666_v20  ;;  %v10973_v20 = vld [vmem:[#allocation9 + $0xb8] sm:$0xf0] }
 0xaab   :  { %v10976_v14 = vor.u32 %v12514_v54, %v10973_v20  ;;  %6184 = vmatpush.bf16.msra.mxu0 %v10948_v39  ;;  %6197 = vmatpush.bf16.msra.mxu1 %v10952_v55  ;;  %v10916_v20 = vor.u32 %v12503_v17, %v10915_v29  ;;  %v12502_v39 = vld [vmem:[#allocation9 + $0x4c] sm:$0xf]  ;;  %v12499_v55 = vld [vmem:[#allocation9 + $0x2c] sm:$0xf0]  ;;  %v12496_v29 = vld [vmem:[#allocation9 + $0x14] sm:$0xf0] }
 0xaac   :  { %6210 = vmatpush.bf16.msra.mxu2 %v10956_v28  ;;  %v4608_v28 = vadd.f32 %v13824_v52, %v13908_v19  ;;  %v10928_v13 = vor.u32 %v12502_v39, %v10925_v22  ;;  %v10900_v59 = vor.u32 %v12499_v55, %v10899_v62  ;;  %v10912_v52 = vor.u32 %v12498_v3, %v10909_v18 }
 0xaad   :  { %6222 = vmatpush.bf16.msra.mxu3 %v10976_v14  ;;  %v10917_v14 = vld [vmem:[#allocation9 + $0x50] sm:$0xf0]  ;;  %v4647_v55 = vadd.f32 %v13826_v42, %v13913_v61 }
 0xaae   :  { %v10920_v60 = vor.u32 %v12501_v12, %v10917_v14 }
 0xaaf   :  { %6185 = vmatpush.bf16.msra.mxu0 %v10932_v38  ;;  %6198 = vmatpush.bf16.msra.mxu1 %v10936_v63  ;;  %v12500_v38 = vld [vmem:[#allocation9 + $0x34] sm:$0xf0] }
 0xab0   :  { %6211 = vmatpush.bf16.msra.mxu2 %v10940_v32  ;;  %v10908_v63 = vor.u32 %v12500_v38, %v10907_v58  ;;  %v10883_v32 = vld [vmem:[#allocation9] sm:$0xf] }
 0xab1   :  { %6223 = vmatpush.bf16.msra.mxu3 %v10960_v49  ;;  %v12497_v49 = vld [vmem:[#allocation9 + $0x24] sm:$0xf] }
 0xab3   :  { %6186 = vmatpush.bf16.msra.mxu0 %v10916_v20  ;;  %6199 = vmatpush.bf16.msra.mxu1 %v10920_v60 }
 0xab4   :  { %6212 = vmatpush.bf16.msra.mxu2 %v10924_v36 }
 0xab5   :  { %6224 = vmatpush.bf16.msra.mxu3 %v10944_v40  ;;  %v10891_v40 = vld [vmem:[#allocation9 + $0x8] sm:$0xf] }
 0xab6   :  { %v10892_v14 = vor.u32 %v12496_v29, %v10891_v40 }
 0xab7   :  { %6187 = vmatpush.bf16.msra.mxu0 %v10900_v59 }
 0xab8   :  { %6213 = vmatpush.bf16.msra.mxu2 %v10908_v63 }
 0xab9   :  { %6225 = vmatpush.bf16.msra.mxu3 %v10928_v13 }
 0xabc   :  { %6214 = vmatpush.bf16.msra.mxu2 %v10892_v14 }
 0xabd   :  { %6226 = vmatpush.bf16.msra.mxu3 %v10912_v52 }
 0xb26   :  { %v5873_v10 = vpop.f32.mrf.mxu0  ;;  %v5886_v53 = vpop.f32.mrf.mxu1 }
 0xb27   :  { %v5916_v27 = vadd.f32 %v5873_v10, %v4530_v26  ;;  %v5917_v33 = vadd.f32 %v5886_v53, %v4569_v2  ;;  %v10904_v2 = vor.u32 %v12497_v49, %v10901_v30 }
 0xb29   :  { %v10878_v51 = vmul.f32 -1.442695, %v5916_v27  ;;  %v10879_v54 = vmul.f32 -1.442695, %v5917_v33  ;;  %v10884_v27 = vor.u32 %v12495_v34, %v10883_v32  ;;  %v10885_v33 = vld [vmem:[#allocation9 + $0x10] sm:$0xf0]  ;;  %6200 = vmatpush.bf16.msra.mxu1 %v10904_v2 }
 0xb2a   :  { %v10888_v12 = vor.u32 %v12493_v0, %v10885_v33 }
 0xb2b   :  { %12999 = vpow2.f32 %v10878_v51  ;;  %v12494_v51 = vld [vmem:[#allocation9 + $0xc] sm:$0xf]  ;;  %6188 = vmatpush.bf16.msra.mxu0 %v10884_v27 }
 0xb2c   :  { %13001 = vpow2.f32 %v10879_v54  ;;  %v10893_v54 = vld [vmem:[#allocation9 + $0x18] sm:$0xf0] }
 0xb2d   :  { %v5899_v11 = vpop.f32.mrf.mxu2  ;;  %v5912_v26 = vpop.f32.mrf.mxu3  ;;  %v10896_v25 = vor.u32 %v12494_v51, %v10893_v54  ;;  %6201 = vmatpush.bf16.msra.mxu1 %v10888_v12 }
 0xb2e   :  { %v5918_v45 = vadd.f32 %v5899_v11, %v4608_v28  ;;  %v5875_v10 = vpop.f32.mrf.mxu0  ;;  %v5888_v53 = vpop.f32.mrf.mxu1  ;;  %v5919_v59 = vadd.f32 %v5912_v26, %v4647_v55 }
 0xb2f   :  { %6227 = vmatpush.bf16.msra.mxu3 %v10896_v25 }
 0xb30   :  { %v10880_v17 = vmul.f32 -1.442695, %v5918_v45 }
 0xb31   :  { %v13000_v20 = vpop.eup %12999 }
 0xb32   :  { %v13002_v60 = vpop.eup %13001  ;;  %v5929_v21 = vadd.f32 1.0, %v13000_v20  ;;  %13003 = vpow2.f32 %v10880_v17 }
 0xb33   :  { %v5930_v39 = vadd.f32 1.0, %v13002_v60 }
 0xb34   :  { %13005 = vrcp.f32 %v5929_v21  ;;  %v5943_v38 = vand.u32 2147483648, %v5929_v21  ;;  %v5941_v45 = vand.u32 2147483647, %v5929_v21  ;;  %vm5937_vm7 = vweird.f32 %v5929_v21 }
 0xb35   :  { %13007 = vrcp.f32 %v5930_v39  ;;  %v5901_v36 = vpop.f32.mrf.mxu2  ;;  %v5914_v22 = vpop.f32.mrf.mxu3  ;;  %v5958_v3 = vand.u32 2147483648, %v5930_v39  ;;  %v5956_v53 = vand.u32 2147483647, %v5930_v39  ;;  %vm5952_vm8 = vweird.f32 %v5930_v39 }
 0xb36   :  { %v5944_v52 = vor.u32 1.1754944e-38, %v5943_v38  ;;  %vm5942_vm11 = vcmp.eq.f32.partialorder %v5941_v45, 8.507059e+37  ;;  %v12554_v38 = vld [vmem:[#allocation9 + $0xec] sm:$0xf]  ;;  %v11110_v45 = vld [vmem:[#allocation9 + $0xc0] sm:$0xf] }
 0xb37   :  { %v5959_v34 = vor.u32 1.1754944e-38, %v5958_v3  ;;  %vm5957_vm12 = vcmp.eq.f32.partialorder %v5956_v53, 8.507059e+37  ;;  %v11136_v3 = vld [vmem:[#allocation9 + $0xf8] sm:$0xf0]  ;;  %v12549_v53 = vld [vmem:[#allocation9 + $0xc4] sm:$0xf] }
 0xb38   :  { %v13004_v62 = vpop.eup %13003 }
 0xb39   :  { %v5931_v28 = vadd.f32 1.0, %v13004_v62 }
 0xb3a   :  { %v13006_v13 = vpop.eup %13005 }
 0xb3b   :  { %v13008_v49 = vpop.eup %13007  ;;  %v5933_v30 = vmul.f32 %v13006_v13, %v5929_v21  ;;  %13009 = vrcp.f32 %v5931_v28  ;;  %vm5938_vm5 = vweird.f32 %v13006_v13  ;;  %v5973_v60 = vand.u32 2147483648, %v5931_v28 }
 0xb3c   :  { %v5948_v58 = vmul.f32 %v13008_v49, %v5930_v39  ;;  %13011 = vtanh.f32 %v5919_v59  ;;  %vm5953_vm6 = vweird.f32 %v13008_v49  ;;  %vm5939_vm9 = vmor %vm5937_vm7, %vm5938_vm5  ;;  %vm5967_vm14 = vweird.f32 %v5931_v28  ;;  %v12553_v59 = vld [vmem:[#allocation9 + $0xe4] sm:$0xf] }
 0xb3d   :  { %v5934_v11 = vsub.f32 1.0, %v5933_v30  ;;  %vm5954_vm10 = vmor %vm5952_vm8, %vm5953_vm6  ;;  %v5971_v21 = vand.u32 2147483647, %v5931_v28  ;;  %v5974_v39 = vor.u32 1.1754944e-38, %v5973_v60  ;;  %v11128_v30 = vld [vmem:[#allocation9 + $0xf0] sm:$0xf0] }
 0xb3e   :  { %v5949_v2 = vsub.f32 1.0, %v5948_v58  ;;  %v11134_v58 = vld [vmem:[#allocation9 + $0xe8] sm:$0xf] }
 0xb3f   :  { %v5935_v18 = vmul.f32 %v13006_v13, %v5934_v11  ;;  %vm5972_vm0 = vcmp.eq.f32.partialorder %v5971_v21, 8.507059e+37  ;;  %v11131_v11 = vor.u32 %v12553_v59, %v11128_v30  ;;  %v11086_v59 = vld [vmem:[#allocation9 + $0x88] sm:$0xf] }
 0xb40   :  { %v5950_v10 = vmul.f32 %v13008_v49, %v5949_v2 }
 0xb41   :  { %v13010_v63 = vpop.eup %13009  ;;  %v5936_v42 = vadd.f32 %v13006_v13, %v5935_v18  ;;  %v11139_v18 = vor.u32 %v12554_v38, %v11136_v3  ;;  %6511 = vmatpush.bf16.msrb.mxu1 %v11131_v11  ;;  %v11088_v11 = vld [vmem:[#allocation9 + $0x98] sm:$0xf0]  ;;  %v11062_v38 = vld [vmem:[#allocation9 + $0x60] sm:$0xf]  ;;  %v12539_v3 = vld [vmem:[#allocation9 + $0x6c] sm:$0xf0] }
 0xb42   :  { %v5963_v26 = vmul.f32 %v13010_v63, %v5931_v28  ;;  %v5951_v32 = vadd.f32 %v13008_v49, %v5950_v10  ;;  %v13012_v27 = vpop.eup %13011  ;;  %vm5968_vm13 = vweird.f32 %v13010_v63  ;;  %v12556_v28 = vld [vmem:[#allocation9 + $0xf4] sm:$0xf0]  ;;  %v12551_v10 = vld [vmem:[#allocation9 + $0xcc] sm:$0xf0] }
 0xb43   :  { %v5940_v0 = vsel %vm5939_vm9, %v13006_v13, %v5936_v42  ;;  %vm5969_vm15 = vmor %vm5967_vm14, %vm5968_vm13  ;;  %v12555_v13 = vld [vmem:[#allocation9 + $0xec] sm:$0xf0]  ;;  %v11135_v2 = vor.u32 %v12556_v28, %v11134_v58  ;;  %6537 = vmatpush.bf16.msrb.mxu3 %v11139_v18  ;;  %v11112_v42 = vld [vmem:[#allocation9 + $0xd0] sm:$0xf0] }
 0xb44   :  { %v5964_v33 = vsub.f32 1.0, %v5963_v26  ;;  %v5945_v40 = vsel %vm5942_vm11, %v5944_v52, %v5940_v0  ;;  %v5955_v29 = vsel %vm5954_vm10, %v13008_v49, %v5951_v32  ;;  %v11118_v26 = vld [vmem:[#allocation9 + $0xc8] sm:$0xf]  ;;  %v12552_v52 = vld [vmem:[#allocation9 + $0xd4] sm:$0xf0]  ;;  %v11115_v32 = vor.u32 %v12549_v53, %v11112_v42 }
 0xb45   :  { %v5960_v17 = vsel %vm5957_vm12, %v5959_v34, %v5955_v29  ;;  %v5979_v12 = vmul.f32 %v13012_v27, %v5945_v40  ;;  %6524 = vmatpush.bf16.msrb.mxu2 %v11135_v2  ;;  %v11119_v34 = vor.u32 %v12552_v52, %v11118_v26  ;;  %v12550_v0 = vld [vmem:[#allocation9 + $0xcc] sm:$0xf]  ;;  %v11120_v27 = vld [vmem:[#allocation9 + $0xd8] sm:$0xf0]  ;;  %v11094_v40 = vld [vmem:[#allocation9 + $0xa0] sm:$0xf]  ;;  %v11063_v53 = vor.u32 %v12539_v3, %v11062_v38 }
 0xb46   :  { %v5965_v51 = vmul.f32 %v13010_v63, %v5964_v33  ;;  %v5978_v54 = vmul.f32 %v5960_v17, %v13941_v43  ;;  %v11126_v43 = vld [vmem:[#allocation9 + $0xe0] sm:$0xf]  ;;  %v11123_v33 = vor.u32 %v12550_v0, %v11120_v27  ;;  %6512 = vmatpush.bf16.msrb.mxu1 %v11115_v32  ;;  %v12547_v29 = vld [vmem:[#allocation9 + $0xac] sm:$0xf0]  ;;  %v12545_v17 = vld [vmem:[#allocation9 + $0xa4] sm:$0xf] }
 0xb47   :  { %v11127_v49 = vor.u32 %v12555_v13, %v11126_v43  ;;  %v11080_v13 = vld [vmem:[#allocation9 + $0x90] sm:$0xf0]  ;;  %v12542_v28 = vld [vmem:[#allocation9 + $0x8c] sm:$0xf]  ;;  %v12537_v18 = vld [vmem:[#allocation9 + $0x64] sm:$0xf] }
 0xb48   :  { %v13953_v20 = vadd.f32 %v5979_v12, %v5978_v54  ;;  %v5966_v14 = vadd.f32 %v13010_v63, %v5965_v51  ;;  %6538 = vmatpush.bf16.msrb.mxu3 %v11123_v33  ;;  %v11095_v12 = vor.u32 %v12547_v29, %v11094_v40  ;;  %v11096_v51 = vld [vmem:[#allocation9 + $0xb0] sm:$0xf0]  ;;  %v11102_v54 = vld [vmem:[#allocation9 + $0xa8] sm:$0xf]  ;;  %v11091_v2 = vor.u32 %v12542_v28, %v11088_v11  ;;  %v12540_v26 = vld [vmem:[#allocation9 + $0x74] sm:$0xf0] }
 0xb49   :  { %6498 = vmatpush.bf16.msrb.mxu0 %v11127_v49  ;;  %6525 = vmatpush.bf16.msrb.mxu2 %v11119_v34  ;;  %v11099_v60 = vor.u32 %v12545_v17, %v11096_v51  ;;  %v12544_v49 = vld [vmem:[#allocation9 + $0x94] sm:$0xf0]  ;;  %v11070_v42 = vld [vmem:[#allocation9 + $0x68] sm:$0xf]  ;;  %v12538_v27 = vld [vmem:[#allocation9 + $0x6c] sm:$0xf] }
 0xb4a   :  { %13013 = vtanh.f32 %v13953_v20  ;;  %v5970_v25 = vsel %vm5969_vm15, %v13010_v63, %v5966_v14  ;;  %v11111_v63 = vor.u32 %v12551_v10, %v11110_v45  ;;  %v12548_v14 = vld [vmem:[#allocation9 + $0xb4] sm:$0xf0]  ;;  %v11087_v58 = vor.u32 %v12544_v49, %v11086_v59  ;;  %v11072_v33 = vld [vmem:[#allocation9 + $0x78] sm:$0xf0]  ;;  %v11038_v28 = vld [vmem:[#allocation9 + $0x28] sm:$0xf] }
 0xb4b   :  { %v5975_v22 = vsel %vm5972_vm0, %v5974_v39, %v5970_v25  ;;  %v11103_v21 = vor.u32 %v12548_v14, %v11102_v54  ;;  %v12546_v25 = vld [vmem:[#allocation9 + $0xac] sm:$0xf]  ;;  %v11104_v39 = vld [vmem:[#allocation9 + $0xb8] sm:$0xf0]  ;;  %6513 = vmatpush.bf16.msrb.mxu1 %v11099_v60  ;;  %v4533_v45 = vadd.f32 %v13828_v57, %v13894_v48  ;;  %v4572_v10 = vadd.f32 %v13830_v47, %v13897_v1  ;;  %v11046_v57 = vld [vmem:[#allocation9 + $0x40] sm:$0xf] }
 0xb4c   :  { %v11071_v0 = vor.u32 %v12540_v26, %v11070_v42  ;;  %v11075_v17 = vor.u32 %v12538_v27, %v11072_v33  ;;  %v12533_v47 = vld [vmem:[#allocation9 + $0x44] sm:$0xf]  ;;  %v11048_v60 = vld [vmem:[#allocation9 + $0x50] sm:$0xf0]  ;;  %v12532_v3 = vld [vmem:[#allocation9 + $0x34] sm:$0xf0] }
 0xb4d   :  { %6499 = vmatpush.bf16.msrb.mxu0 %v11111_v63  ;;  %6526 = vmatpush.bf16.msrb.mxu2 %v11103_v21  ;;  %v11064_v63 = vld [vmem:[#allocation9 + $0x70] sm:$0xf0]  ;;  %v11051_v21 = vor.u32 %v12533_v47, %v11048_v60  ;;  %v11039_v42 = vor.u32 %v12532_v3, %v11038_v28  ;;  %v11014_v26 = vld [vmem:[#allocation9] sm:$0xf]  ;;  %v11022_v27 = vld [vmem:[#allocation9 + $0x8] sm:$0xf] }
 0xb4e   :  { %v11067_v34 = vor.u32 %v12537_v18, %v11064_v63  ;;  %v12530_v18 = vld [vmem:[#allocation9 + $0x2c] sm:$0xf]  ;;  %v12528_v33 = vld [vmem:[#allocation9 + $0x14] sm:$0xf0] }
 0xb4f   :  { %v11023_v47 = vor.u32 %v12528_v33, %v11022_v27 }
 0xb50   :  { %v13014_v36 = vpop.eup %13013 }
 0xb51   :  { %v5982_v62 = vmul.f32 %v13014_v36, %v5975_v22  ;;  %6500 = vmatpush.bf16.msrb.mxu0 %v11095_v12  ;;  %v11107_v36 = vor.u32 %v12546_v25, %v11104_v39  ;;  %v11078_v22 = vld [vmem:[#allocation9 + $0x80] sm:$0xf]  ;;  %6527 = vmatpush.bf16.msrb.mxu2 %v11087_v58  ;;  %v12535_v12 = vld [vmem:[#allocation9 + $0x4c] sm:$0xf0]  ;;  %v11054_v25 = vld [vmem:[#allocation9 + $0x48] sm:$0xf] }
 0xb52   :  { %v11047_v14 = vor.u32 %v12535_v12, %v11046_v57  ;;  %v12536_v39 = vld [vmem:[#allocation9 + $0x54] sm:$0xf0]  ;;  %v11032_v58 = vld [vmem:[#allocation9 + $0x30] sm:$0xf0]  ;;  %v11024_v57 = vld [vmem:[#allocation9 + $0x18] sm:$0xf0] }
 0xb53   :  { %v5983_v55 = vpack.c.bf16 %v5982_v62, %v5982_v62  ;;  %v12543_v62 = vld [vmem:[#allocation9 + $0x8c] sm:$0xf0]  ;;  %6539 = vmatpush.bf16.msrb.mxu3 %v11107_v36  ;;  %v12534_v36 = vld [vmem:[#allocation9 + $0x4c] sm:$0xf] }
 0xb54   :  { %v11079_v43 = vor.u32 %v12543_v62, %v11078_v22  ;;  %v11055_v22 = vor.u32 %v12536_v39, %v11054_v25  ;;  %v11056_v62 = vld [vmem:[#allocation9 + $0x58] sm:$0xf0] }
 0xb55   :  { %5984 = vst [vmem:[#allocation11 + $0xc] sm:$0xf] %v5983_v55  ;;  %6189 = vmatmul.bf16.vlgmr.msra.gmra.mxu0 %v5983_v55  ;;  %6202 = vmatmul.bf16.vlgmr.msra.gmra.mxu1 %v5983_v55  ;;  %v11059_v59 = vor.u32 %v12534_v36, %v11056_v62  ;;  %v4650_v36 = vadd.f32 %v13834_v15, %v13913_v61 }
 0xb56   :  { %6215 = vmatmul.bf16.vlgmr.msra.gmra.mxu2 %v5983_v55  ;;  %6228 = vmatmul.bf16.vlgmr.msra.gmra.mxu3 %v5983_v55  ;;  %v12541_v55 = vld [vmem:[#allocation9 + $0x84] sm:$0xf] }
 0xb57   :  { %v11083_v30 = vor.u32 %v12541_v55, %v11080_v13  ;;  %6501 = vmatpush.bf16.msrb.mxu0 %v11079_v43  ;;  %6540 = vmatpush.bf16.msrb.mxu3 %v11091_v2  ;;  %v11030_v55 = vld [vmem:[#allocation9 + $0x20] sm:$0xf]  ;;  %v12531_v43 = vld [vmem:[#allocation9 + $0x2c] sm:$0xf0]  ;;  %v4611_v13 = vadd.f32 %v13832_v35, %v13908_v19 }
 0xb58   :  { %6528 = vmatpush.bf16.msrb.mxu2 %v11071_v0  ;;  %v11031_v49 = vor.u32 %v12531_v43, %v11030_v55  ;;  %v11016_v0 = vld [vmem:[#allocation9 + $0x10] sm:$0xf0] }
 0xb59   :  { %6514 = vmatpush.bf16.msrb.mxu1 %v11083_v30  ;;  %v12529_v30 = vld [vmem:[#allocation9 + $0x24] sm:$0xf] }
 0xb5a   :  { %v11035_v38 = vor.u32 %v12529_v30, %v11032_v58 }
 0xb5b   :  { %6502 = vmatpush.bf16.msrb.mxu0 %v11063_v53  ;;  %6541 = vmatpush.bf16.msrb.mxu3 %v11075_v17  ;;  %v12526_v17 = vld [vmem:[#allocation9 + $0xc] sm:$0xf] }
 0xb5c   :  { %6529 = vmatpush.bf16.msrb.mxu2 %v11055_v22 }
 0xb5d   :  { %6515 = vmatpush.bf16.msrb.mxu1 %v11067_v34 }
 0xb5f   :  { %6503 = vmatpush.bf16.msrb.mxu0 %v11047_v14  ;;  %6542 = vmatpush.bf16.msrb.mxu3 %v11059_v59  ;;  %v11027_v14 = vor.u32 %v12526_v17, %v11024_v57 }
 0xb60   :  { %6530 = vmatpush.bf16.msrb.mxu2 %v11039_v42 }
 0xb61   :  { %6516 = vmatpush.bf16.msrb.mxu1 %v11051_v21 }
 0xb63   :  { %6504 = vmatpush.bf16.msrb.mxu0 %v11031_v49 }
 0xb64   :  { %6531 = vmatpush.bf16.msrb.mxu2 %v11023_v47 }
 0xb65   :  { %6517 = vmatpush.bf16.msrb.mxu1 %v11035_v38 }
 0xbd2   :  { %v6190_v52 = vpop.f32.mrf.mxu0  ;;  %v6203_v32 = vpop.f32.mrf.mxu1 }
 0xbd3   :  { %v6233_v40 = vadd.f32 %v6190_v52, %v4533_v45  ;;  %v6234_v29 = vadd.f32 %v6203_v32, %v4572_v10  ;;  %v11040_v45 = vld [vmem:[#allocation9 + $0x38] sm:$0xf0]  ;;  %v12527_v52 = vld [vmem:[#allocation9 + $0xc] sm:$0xf0]  ;;  %v12525_v32 = vld [vmem:[#allocation9 + $0x4] sm:$0xf] }
 0xbd4   :  { %v11043_v35 = vor.u32 %v12530_v18, %v11040_v45  ;;  %v11015_v34 = vor.u32 %v12527_v52, %v11014_v26 }
 0xbd5   :  { %v11009_v51 = vmul.f32 -1.442695, %v6233_v40  ;;  %v11010_v54 = vmul.f32 -1.442695, %v6234_v29  ;;  %v11019_v29 = vor.u32 %v12525_v32, %v11016_v0 }
 0xbd6   :  { %6543 = vmatpush.bf16.msrb.mxu3 %v11043_v35  ;;  %6505 = vmatpush.bf16.msrb.mxu0 %v11015_v34 }
 0xbd7   :  { %13015 = vpow2.f32 %v11009_v51  ;;  %6518 = vmatpush.bf16.msrb.mxu1 %v11019_v29 }
 0xbd8   :  { %13017 = vpow2.f32 %v11010_v54 }
 0xbd9   :  { %v6216_v11 = vpop.f32.mrf.mxu2  ;;  %v6229_v2 = vpop.f32.mrf.mxu3 }
 0xbda   :  { %v6235_v10 = vadd.f32 %v6216_v11, %v4611_v13  ;;  %v6192_v53 = vpop.f32.mrf.mxu0  ;;  %v6205_v63 = vpop.f32.mrf.mxu1  ;;  %6544 = vmatpush.bf16.msrb.mxu3 %v11027_v14  ;;  %v6236_v55 = vadd.f32 %v6229_v2, %v4650_v36  ;;  %v11259_v36 = vld [vmem:[#allocation9 + $0xf0] sm:$0xf0] }
 0xbdc   :  { %v11011_v40 = vmul.f32 -1.442695, %v6235_v10 }
 0xbdd   :  { %v13016_v12 = vpop.eup %13015 }
 0xbde   :  { %v13018_v51 = vpop.eup %13017  ;;  %v6246_v54 = vadd.f32 1.0, %v13016_v12  ;;  %13019 = vpow2.f32 %v11011_v40 }
 0xbdf   :  { %v6247_v60 = vadd.f32 1.0, %v13018_v51 }
 0xbe0   :  { %13021 = vrcp.f32 %v6246_v54  ;;  %v6260_v58 = vand.u32 2147483648, %v6246_v54  ;;  %v6258_v38 = vand.u32 2147483647, %v6246_v54  ;;  %vm6254_vm3 = vweird.f32 %v6246_v54 }
 0xbe1   :  { %13023 = vrcp.f32 %v6247_v60  ;;  %v6218_v21 = vpop.f32.mrf.mxu2  ;;  %v6231_v25 = vpop.f32.mrf.mxu3  ;;  %v6275_v28 = vand.u32 2147483648, %v6247_v60  ;;  %v6273_v18 = vand.u32 2147483647, %v6247_v60  ;;  %vm6269_vm4 = vweird.f32 %v6247_v60 }
 0xbe2   :  { %v6261_v10 = vor.u32 1.1754944e-38, %v6260_v58  ;;  %vm6259_vm7 = vcmp.eq.f32.partialorder %v6258_v38, 8.507059e+37  ;;  %v12587_v21 = vld [vmem:[#allocation9 + $0xec] sm:$0xf0]  ;;  %v12585_v25 = vld [vmem:[#allocation9 + $0xe4] sm:$0xf] }
 0xbe3   :  { %v6276_v63 = vor.u32 1.1754944e-38, %v6275_v28  ;;  %vm6274_vm8 = vcmp.eq.f32.partialorder %v6273_v18, 8.507059e+37  ;;  %v12583_v58 = vld [vmem:[#allocation9 + $0xcc] sm:$0xf0]  ;;  %v12581_v28 = vld [vmem:[#allocation9 + $0xc4] sm:$0xf] }
 0xbe4   :  { %v13020_v39 = vpop.eup %13019  ;;  %v11243_v38 = vld [vmem:[#allocation9 + $0xd0] sm:$0xf0]  ;;  %v12584_v18 = vld [vmem:[#allocation9 + $0xd4] sm:$0xf0] }
 0xbe5   :  { %v6248_v22 = vadd.f32 1.0, %v13020_v39 }
 0xbe6   :  { %v13022_v62 = vpop.eup %13021 }
 0xbe7   :  { %v13024_v43 = vpop.eup %13023  ;;  %v6250_v13 = vmul.f32 %v13022_v62, %v6246_v54  ;;  %13025 = vrcp.f32 %v6248_v22  ;;  %vm6255_vm1 = vweird.f32 %v13022_v62  ;;  %v6290_v17 = vand.u32 2147483648, %v6248_v22 }
 0xbe8   :  { %v6265_v59 = vmul.f32 %v13024_v43, %v6247_v60  ;;  %13027 = vtanh.f32 %v6236_v55  ;;  %vm6270_vm2 = vweird.f32 %v13024_v43  ;;  %vm6256_vm5 = vmor %vm6254_vm3, %vm6255_vm1  ;;  %vm6284_vm10 = vweird.f32 %v6248_v22 }
 0xbe9   :  { %v6251_v49 = vsub.f32 1.0, %v6250_v13  ;;  %vm6271_vm6 = vmor %vm6269_vm4, %vm6270_vm2  ;;  %v6288_v57 = vand.u32 2147483647, %v6248_v22  ;;  %v6291_v47 = vor.u32 1.1754944e-38, %v6290_v17  ;;  %v11262_v55 = vor.u32 %v12585_v25, %v11259_v36  ;;  %v12586_v13 = vld [vmem:[#allocation9 + $0xec] sm:$0xf] }
 0xbea   :  { %v6266_v30 = vsub.f32 1.0, %v6265_v59  ;;  %v11267_v59 = vld [vmem:[#allocation9 + $0xf8] sm:$0xf0]  ;;  %v12574_v25 = vld [vmem:[#allocation9 + $0x8c] sm:$0xf] }
 0xbeb   :  { %v6252_v11 = vmul.f32 %v13022_v62, %v6251_v49  ;;  %vm6289_vm12 = vcmp.eq.f32.partialorder %v6288_v57, 8.507059e+37  ;;  %v11270_v49 = vor.u32 %v12586_v13, %v11267_v59  ;;  %6828 = vmatpush.bf16.msra.mxu1 %v11262_v55  ;;  %v11209_v57 = vld [vmem:[#allocation9 + $0x80] sm:$0xf]  ;;  %v12569_v55 = vld [vmem:[#allocation9 + $0x64] sm:$0xf]  ;;  %v4574_v13 = vadd.f32 %v13838_v50, %v13897_v1 }
 0xbec   :  { %v6267_v3 = vmul.f32 %v13024_v43, %v6266_v30  ;;  %v11241_v30 = vld [vmem:[#allocation9 + $0xc0] sm:$0xf]  ;;  %v12565_v50 = vld [vmem:[#allocation9 + $0x44] sm:$0xf] }
 0xbed   :  { %v13026_v45 = vpop.eup %13025  ;;  %v6253_v15 = vadd.f32 %v13022_v62, %v6252_v11  ;;  %6854 = vmatpush.bf16.msra.mxu3 %v11270_v49  ;;  %v11242_v11 = vor.u32 %v12583_v58, %v11241_v30  ;;  %v11195_v49 = vld [vmem:[#allocation9 + $0x70] sm:$0xf0]  ;;  %v11201_v30 = vld [vmem:[#allocation9 + $0x68] sm:$0xf]  ;;  %v12572_v58 = vld [vmem:[#allocation9 + $0x74] sm:$0xf0] }
 0xbee   :  { %v6280_v2 = vmul.f32 %v13026_v45, %v6248_v22  ;;  %v6268_v53 = vadd.f32 %v13024_v43, %v6267_v3  ;;  %v13028_v35 = vpop.eup %13027  ;;  %vm6285_vm9 = vweird.f32 %v13026_v45  ;;  %v12588_v22 = vld [vmem:[#allocation9 + $0xf4] sm:$0xf0]  ;;  %v11249_v3 = vld [vmem:[#allocation9 + $0xc8] sm:$0xf] }
 0xbef   :  { %v6257_v42 = vsel %vm6256_vm5, %v13022_v62, %v6253_v15  ;;  %vm6286_vm11 = vmor %vm6284_vm10, %vm6285_vm9  ;;  %v11265_v62 = vld [vmem:[#allocation9 + $0xe8] sm:$0xf]  ;;  %v11250_v15 = vor.u32 %v12584_v18, %v11249_v3  ;;  %v11202_v3 = vor.u32 %v12572_v58, %v11201_v30  ;;  %v12570_v18 = vld [vmem:[#allocation9 + $0x6c] sm:$0xf] }
 0xbf0   :  { %v6281_v26 = vsub.f32 1.0, %v6280_v2  ;;  %v6262_v52 = vsel %vm6259_vm7, %v6261_v10, %v6257_v42  ;;  %v6272_v32 = vsel %vm6271_vm6, %v13024_v43, %v6268_v53  ;;  %v11266_v43 = vor.u32 %v12588_v22, %v11265_v62  ;;  %v12582_v2 = vld [vmem:[#allocation9 + $0xcc] sm:$0xf]  ;;  %v11251_v10 = vld [vmem:[#allocation9 + $0xd8] sm:$0xf0] }
 0xbf1   :  { %v6277_v34 = vsel %vm6274_vm8, %v6276_v63, %v6272_v32  ;;  %v6296_v0 = vmul.f32 %v13028_v35, %v6262_v52  ;;  %v11254_v53 = vor.u32 %v12582_v2, %v11251_v10  ;;  %v11225_v63 = vld [vmem:[#allocation9 + $0xa0] sm:$0xf]  ;;  %v12579_v42 = vld [vmem:[#allocation9 + $0xac] sm:$0xf0]  ;;  %v12577_v35 = vld [vmem:[#allocation9 + $0xa4] sm:$0xf] }
 0xbf2   :  { %v6282_v27 = vmul.f32 %v13026_v45, %v6281_v26  ;;  %v6295_v33 = vmul.f32 %v6277_v34, %v13953_v20  ;;  %v11257_v20 = vld [vmem:[#allocation9 + $0xe0] sm:$0xf]  ;;  %6841 = vmatpush.bf16.msra.mxu2 %v11266_v43  ;;  %v11226_v26 = vor.u32 %v12579_v42, %v11225_v63  ;;  %v11227_v52 = vld [vmem:[#allocation9 + $0xb0] sm:$0xf0]  ;;  %v11233_v32 = vld [vmem:[#allocation9 + $0xa8] sm:$0xf]  ;;  %v4535_v43 = vadd.f32 %v13836_v56, %v13894_v48 }
 0xbf3   :  { %v11258_v39 = vor.u32 %v12587_v21, %v11257_v20  ;;  %6855 = vmatpush.bf16.msra.mxu3 %v11254_v53  ;;  %v12580_v34 = vld [vmem:[#allocation9 + $0xb4] sm:$0xf0]  ;;  %v11193_v62 = vld [vmem:[#allocation9 + $0x60] sm:$0xf]  ;;  %v12571_v22 = vld [vmem:[#allocation9 + $0x6c] sm:$0xf0] }
 0xbf4   :  { %v13965_v40 = vadd.f32 %v6296_v0, %v6295_v33  ;;  %v6283_v29 = vadd.f32 %v13026_v45, %v6282_v27  ;;  %v11230_v0 = vor.u32 %v12577_v35, %v11227_v52  ;;  %v11234_v27 = vor.u32 %v12580_v34, %v11233_v32  ;;  %v12578_v33 = vld [vmem:[#allocation9 + $0xac] sm:$0xf]  ;;  %v11177_v56 = vld [vmem:[#allocation9 + $0x40] sm:$0xf]  ;;  %v12567_v53 = vld [vmem:[#allocation9 + $0x4c] sm:$0xf0] }
 0xbf5   :  { %6815 = vmatpush.bf16.msra.mxu0 %v11258_v39  ;;  %v11219_v39 = vld [vmem:[#allocation9 + $0x98] sm:$0xf0]  ;;  %v11194_v59 = vor.u32 %v12571_v22, %v11193_v62  ;;  %v11178_v35 = vor.u32 %v12567_v53, %v11177_v56  ;;  %v11185_v32 = vld [vmem:[#allocation9 + $0x48] sm:$0xf]  ;;  %v12568_v34 = vld [vmem:[#allocation9 + $0x54] sm:$0xf0] }
 0xbf6   :  { %13029 = vtanh.f32 %v13965_v40  ;;  %v6287_v12 = vsel %vm6286_vm11, %v13026_v45, %v6283_v29  ;;  %v11246_v45 = vor.u32 %v12581_v28, %v11243_v38  ;;  %6842 = vmatpush.bf16.msra.mxu2 %v11250_v15  ;;  %v11235_v29 = vld [vmem:[#allocation9 + $0xb8] sm:$0xf0]  ;;  %v11222_v36 = vor.u32 %v12574_v25, %v11219_v39  ;;  %v12564_v25 = vld [vmem:[#allocation9 + $0x34] sm:$0xf0]  ;;  %v12562_v39 = vld [vmem:[#allocation9 + $0x2c] sm:$0xf] }
 0xbf7   :  { %v6292_v54 = vsel %vm6289_vm12, %v6291_v47, %v6287_v12  ;;  %v11238_v17 = vor.u32 %v12578_v33, %v11235_v29  ;;  %v12575_v12 = vld [vmem:[#allocation9 + $0x8c] sm:$0xf0]  ;;  %v12573_v47 = vld [vmem:[#allocation9 + $0x84] sm:$0xf]  ;;  %v11198_v38 = vor.u32 %v12569_v55, %v11195_v49  ;;  %v11187_v33 = vld [vmem:[#allocation9 + $0x58] sm:$0xf0] }
 0xbf8   :  { %6829 = vmatpush.bf16.msra.mxu1 %v11246_v45  ;;  %v11203_v45 = vld [vmem:[#allocation9 + $0x78] sm:$0xf0]  ;;  %v11161_v29 = vld [vmem:[#allocation9 + $0x20] sm:$0xf]  ;;  %v12557_v49 = vld [vmem:[#allocation9 + $0x4] sm:$0xf] }
 0xbf9   :  { %6816 = vmatpush.bf16.msra.mxu0 %v11242_v11  ;;  %6856 = vmatpush.bf16.msra.mxu3 %v11238_v17  ;;  %v11206_v10 = vor.u32 %v12570_v18, %v11203_v45  ;;  %v12563_v17 = vld [vmem:[#allocation9 + $0x2c] sm:$0xf0]  ;;  %v11147_v58 = vld [vmem:[#allocation9 + $0x10] sm:$0xf0]  ;;  %v12558_v18 = vld [vmem:[#allocation9 + $0xc] sm:$0xf] }
 0xbfa   :  { %6843 = vmatpush.bf16.msra.mxu2 %v11234_v27  ;;  %v11186_v27 = vor.u32 %v12568_v34, %v11185_v32  ;;  %v11155_v45 = vld [vmem:[#allocation9 + $0x18] sm:$0xf0] }
 0xbfb   :  { %v11158_v53 = vor.u32 %v12558_v18, %v11155_v45 }
 0xbfc   :  { %v13030_v51 = vpop.eup %13029  ;;  %6830 = vmatpush.bf16.msra.mxu1 %v11230_v0  ;;  %v12566_v0 = vld [vmem:[#allocation9 + $0x4c] sm:$0xf] }
 0xbfd   :  { %v6299_v14 = vmul.f32 %v13030_v51, %v6292_v54  ;;  %6817 = vmatpush.bf16.msra.mxu0 %v11226_v26  ;;  %v11210_v51 = vor.u32 %v12575_v12, %v11209_v57  ;;  %v11211_v54 = vld [vmem:[#allocation9 + $0x90] sm:$0xf0]  ;;  %6857 = vmatpush.bf16.msra.mxu3 %v11222_v36  ;;  %v4613_v57 = vadd.f32 %v13840_v41, %v13908_v19  ;;  %v11171_v36 = vld [vmem:[#allocation9 + $0x38] sm:$0xf0] }
 0xbfe   :  { %v11214_v20 = vor.u32 %v12573_v47, %v11211_v54  ;;  %v11179_v26 = vld [vmem:[#allocation9 + $0x50] sm:$0xf0]  ;;  %v11190_v12 = vor.u32 %v12566_v0, %v11187_v33  ;;  %v11162_v47 = vor.u32 %v12563_v17, %v11161_v29  ;;  %v11174_v41 = vor.u32 %v12562_v39, %v11171_v36 }
 0xbff   :  { %v6300_v60 = vpack.c.bf16 %v6299_v14, %v6299_v14  ;;  %v11217_v14 = vld [vmem:[#allocation9 + $0x88] sm:$0xf]  ;;  %v11182_v52 = vor.u32 %v12565_v50, %v11179_v26  ;;  %v11163_v54 = vld [vmem:[#allocation9 + $0x30] sm:$0xf0]  ;;  %v4652_v26 = vadd.f32 %v13842_v5, %v13913_v61 }
 0xc00   :  { %6831 = vmatpush.bf16.msra.mxu1 %v11214_v20 }
 0xc01   :  { %6301 = vst [vmem:[#allocation11 + $0x10] sm:$0xf] %v6300_v60  ;;  %6506 = vmatmul.bf16.vlgmr.msrb.gmra.mxu0 %v6300_v60  ;;  %6519 = vmatmul.bf16.vlgmr.msrb.gmra.mxu1 %v6300_v60 }
 0xc02   :  { %6532 = vmatmul.bf16.vlgmr.msrb.gmra.mxu2 %v6300_v60  ;;  %6545 = vmatmul.bf16.vlgmr.msrb.gmra.mxu3 %v6300_v60  ;;  %v12576_v60 = vld [vmem:[#allocation9 + $0x94] sm:$0xf0] }
 0xc03   :  { %v11218_v21 = vor.u32 %v12576_v60, %v11217_v14  ;;  %6818 = vmatpush.bf16.msra.mxu0 %v11210_v51  ;;  %6858 = vmatpush.bf16.msra.mxu3 %v11206_v10  ;;  %v12561_v51 = vld [vmem:[#allocation9 + $0x24] sm:$0xf]  ;;  %v11169_v14 = vld [vmem:[#allocation9 + $0x28] sm:$0xf] }
 0xc04   :  { %6832 = vmatpush.bf16.msra.mxu1 %v11198_v38 }
 0xc05   :  { %6844 = vmatpush.bf16.msra.mxu2 %v11218_v21  ;;  %v11166_v21 = vor.u32 %v12561_v51, %v11163_v54 }
 0xc07   :  { %6819 = vmatpush.bf16.msra.mxu0 %v11194_v59  ;;  %6859 = vmatpush.bf16.msra.mxu3 %v11190_v12  ;;  %v12559_v59 = vld [vmem:[#allocation9 + $0xc] sm:$0xf0] }
 0xc08   :  { %6833 = vmatpush.bf16.msra.mxu1 %v11182_v52 }
 0xc09   :  { %6845 = vmatpush.bf16.msra.mxu2 %v11202_v3  ;;  %v11150_v3 = vor.u32 %v12557_v49, %v11147_v58 }
 0xc0b   :  { %6820 = vmatpush.bf16.msra.mxu0 %v11178_v35  ;;  %6860 = vmatpush.bf16.msra.mxu3 %v11174_v41 }
 0xc0c   :  { %6834 = vmatpush.bf16.msra.mxu1 %v11166_v21 }
 0xc0d   :  { %6846 = vmatpush.bf16.msra.mxu2 %v11186_v27 }
 0xc0f   :  { %6821 = vmatpush.bf16.msra.mxu0 %v11162_v47  ;;  %6861 = vmatpush.bf16.msra.mxu3 %v11158_v53 }
 0xc10   :  { %6835 = vmatpush.bf16.msra.mxu1 %v11150_v3 }
 0xc7e   :  { %v6507_v28 = vpop.f32.mrf.mxu0  ;;  %v6520_v11 = vpop.f32.mrf.mxu1 }
 0xc7f   :  { %v6550_v15 = vadd.f32 %v6507_v28, %v4535_v43  ;;  %v6551_v2 = vadd.f32 %v6520_v11, %v4574_v13  ;;  %v11170_v43 = vor.u32 %v12564_v25, %v11169_v14  ;;  %v11145_v13 = vld [vmem:[#allocation9] sm:$0xf]  ;;  %v11153_v28 = vld [vmem:[#allocation9 + $0x8] sm:$0xf]  ;;  %v12560_v11 = vld [vmem:[#allocation9 + $0x14] sm:$0xf0] }
 0xc80   :  { %v11146_v30 = vor.u32 %v12559_v59, %v11145_v13 }
 0xc81   :  { %v11140_v63 = vmul.f32 -1.442695, %v6550_v15  ;;  %v11141_v42 = vmul.f32 -1.442695, %v6551_v2  ;;  %6847 = vmatpush.bf16.msra.mxu2 %v11170_v43  ;;  %v11154_v2 = vor.u32 %v12560_v11, %v11153_v28 }
 0xc82   :  { %6822 = vmatpush.bf16.msra.mxu0 %v11146_v30 }
 0xc83   :  { %13031 = vpow2.f32 %v11140_v63 }
 0xc84   :  { %13033 = vpow2.f32 %v11141_v42 }
 0xc85   :  { %v6533_v60 = vpop.f32.mrf.mxu2  ;;  %v6546_v20 = vpop.f32.mrf.mxu3  ;;  %6848 = vmatpush.bf16.msra.mxu2 %v11154_v2 }
 0xc86   :  { %v6552_v62 = vadd.f32 %v6533_v60, %v4613_v57  ;;  %v6509_v22 = vpop.f32.mrf.mxu0  ;;  %v6522_v55 = vpop.f32.mrf.mxu1  ;;  %v6553_v34 = vadd.f32 %v6546_v20, %v4652_v26 }
 0xc88   :  { %v11142_v38 = vmul.f32 -1.442695, %v6552_v62 }
 0xc89   :  { %v13032_v15 = vpop.eup %13031 }
 0xc8a   :  { %v13034_v10 = vpop.eup %13033  ;;  %v6563_v56 = vadd.f32 1.0, %v13032_v15  ;;  %13035 = vpow2.f32 %v11142_v38 }
 0xc8b   :  { %v6564_v50 = vadd.f32 1.0, %v13034_v10  ;;  %v12619_v10 = vld [vmem:[#allocation9 + $0xec] sm:$0xf0] }
 0xc8c   :  { %13037 = vrcp.f32 %v6563_v56  ;;  %v6577_v57 = vand.u32 2147483648, %v6563_v56  ;;  %v6575_v51 = vand.u32 2147483647, %v6563_v56  ;;  %vm6571_vm15 = vweird.f32 %v6563_v56 }
 0xc8d   :  { %13039 = vrcp.f32 %v6564_v50  ;;  %v6535_v63 = vpop.f32.mrf.mxu2  ;;  %v6548_v42 = vpop.f32.mrf.mxu3  ;;  %v6592_v12 = vand.u32 2147483648, %v6564_v50  ;;  %v6590_v14 = vand.u32 2147483647, %v6564_v50  ;;  %vm6586_vm0 = vweird.f32 %v6564_v50 }
 0xc8e   :  { %v6578_v21 = vor.u32 1.1754944e-38, %v6577_v57  ;;  %vm6576_vm3 = vcmp.eq.f32.partialorder %v6575_v51, 8.507059e+37  ;;  %v11396_v63 = vld [vmem:[#allocation9 + $0xe8] sm:$0xf]  ;;  %v12620_v42 = vld [vmem:[#allocation9 + $0xf4] sm:$0xf0] }
 0xc8f   :  { %v6593_v39 = vor.u32 1.1754944e-38, %v6592_v12  ;;  %vm6591_vm4 = vcmp.eq.f32.partialorder %v6590_v14, 8.507059e+37  ;;  %v11397_v26 = vor.u32 %v12620_v42, %v11396_v63  ;;  %v11380_v57 = vld [vmem:[#allocation9 + $0xc8] sm:$0xf]  ;;  %v12616_v12 = vld [vmem:[#allocation9 + $0xd4] sm:$0xf0]  ;;  %v4577_v63 = vadd.f32 %v13846_v37, %v13897_v1 }
 0xc90   :  { %v13036_v35 = vpop.eup %13035  ;;  %v11381_v51 = vor.u32 %v12616_v12, %v11380_v57  ;;  %v11382_v14 = vld [vmem:[#allocation9 + $0xd8] sm:$0xf0]  ;;  %v12597_v37 = vld [vmem:[#allocation9 + $0x44] sm:$0xf] }
 0xc91   :  { %v6565_v52 = vadd.f32 1.0, %v13036_v35  ;;  %7158 = vmatpush.bf16.msrb.mxu2 %v11397_v26  ;;  %v11332_v26 = vld [vmem:[#allocation9 + $0x68] sm:$0xf] }
 0xc92   :  { %v13038_v32 = vpop.eup %13037 }
 0xc93   :  { %v13040_v0 = vpop.eup %13039  ;;  %v6567_v27 = vmul.f32 %v13038_v32, %v6563_v56  ;;  %13041 = vrcp.f32 %v6565_v52  ;;  %vm6572_vm13 = vweird.f32 %v13038_v32  ;;  %v6607_v28 = vand.u32 2147483648, %v6565_v52  ;;  %v12617_v56 = vld [vmem:[#allocation9 + $0xe4] sm:$0xf] }
 0xc94   :  { %v6582_v33 = vmul.f32 %v13040_v0, %v6564_v50  ;;  %13043 = vtanh.f32 %v6553_v34  ;;  %vm6587_vm14 = vweird.f32 %v13040_v0  ;;  %vm6573_vm1 = vmor %vm6571_vm15, %vm6572_vm13  ;;  %vm6601_vm6 = vweird.f32 %v6565_v52  ;;  %v11390_v50 = vld [vmem:[#allocation9 + $0xf0] sm:$0xf0] }
 0xc95   :  { %v6568_v29 = vsub.f32 1.0, %v6567_v27  ;;  %vm6588_vm2 = vmor %vm6586_vm0, %vm6587_vm14  ;;  %v6605_v11 = vand.u32 2147483647, %v6565_v52  ;;  %v6608_v3 = vor.u32 1.1754944e-38, %v6607_v28  ;;  %v11393_v35 = vor.u32 %v12617_v56, %v11390_v50  ;;  %v12615_v27 = vld [vmem:[#allocation9 + $0xcc] sm:$0xf0]  ;;  %7159 = vmatpush.bf16.msrb.mxu2 %v11381_v51 }
 0xc96   :  { %v6583_v17 = vsub.f32 1.0, %v6582_v33  ;;  %v12613_v33 = vld [vmem:[#allocation9 + $0xc4] sm:$0xf]  ;;  %v12603_v56 = vld [vmem:[#allocation9 + $0x6c] sm:$0xf0]  ;;  %v4538_v50 = vadd.f32 %v13844_v16, %v13894_v48 }
 0xc97   :  { %v6569_v47 = vmul.f32 %v13038_v32, %v6568_v29  ;;  %vm6606_vm8 = vcmp.eq.f32.partialorder %v6605_v11, 8.507059e+37  ;;  %7145 = vmatpush.bf16.msrb.mxu1 %v11393_v35  ;;  %v11342_v11 = vld [vmem:[#allocation9 + $0x90] sm:$0xf0]  ;;  %v11308_v16 = vld [vmem:[#allocation9 + $0x40] sm:$0xf] }
 0xc98   :  { %v6584_v54 = vmul.f32 %v13040_v0, %v6583_v17  ;;  %v11374_v17 = vld [vmem:[#allocation9 + $0xd0] sm:$0xf0] }
 0xc99   :  { %v13042_v60 = vpop.eup %13041  ;;  %v6570_v5 = vadd.f32 %v13038_v32, %v6569_v47  ;;  %v11377_v47 = vor.u32 %v12613_v33, %v11374_v17  ;;  %v11326_v35 = vld [vmem:[#allocation9 + $0x70] sm:$0xf0]  ;;  %v12602_v33 = vld [vmem:[#allocation9 + $0x6c] sm:$0xf] }
 0xc9a   :  { %v6597_v20 = vmul.f32 %v13042_v60, %v6565_v52  ;;  %v6585_v25 = vadd.f32 %v13040_v0, %v6584_v54  ;;  %v13044_v62 = vpop.eup %13043  ;;  %vm6602_vm5 = vweird.f32 %v13042_v60  ;;  %v12618_v52 = vld [vmem:[#allocation9 + $0xec] sm:$0xf] }
 0xc9b   :  { %v6574_v36 = vsel %vm6573_vm1, %v13038_v32, %v6570_v5  ;;  %vm6603_vm7 = vmor %vm6601_vm6, %vm6602_vm5  ;;  %v11398_v32 = vld [vmem:[#allocation9 + $0xf8] sm:$0xf0]  ;;  %v12614_v54 = vld [vmem:[#allocation9 + $0xcc] sm:$0xf]  ;;  %7146 = vmatpush.bf16.msrb.mxu1 %v11377_v47 }
 0xc9c   :  { %v6598_v22 = vsub.f32 1.0, %v6597_v20  ;;  %v6579_v55 = vsel %vm6576_vm3, %v6578_v21, %v6574_v36  ;;  %v6589_v43 = vsel %vm6588_vm2, %v13040_v0, %v6585_v25  ;;  %v11401_v34 = vor.u32 %v12618_v52, %v11398_v32  ;;  %v11372_v0 = vld [vmem:[#allocation9 + $0xc0] sm:$0xf]  ;;  %v12611_v20 = vld [vmem:[#allocation9 + $0xac] sm:$0xf0] }
 0xc9d   :  { %v6594_v41 = vsel %vm6591_vm4, %v6593_v39, %v6589_v43  ;;  %v6613_v13 = vmul.f32 %v13044_v62, %v6579_v55  ;;  %v11373_v29 = vor.u32 %v12615_v27, %v11372_v0  ;;  %v11356_v5 = vld [vmem:[#allocation9 + $0xa0] sm:$0xf]  ;;  %v12609_v21 = vld [vmem:[#allocation9 + $0xa4] sm:$0xf]  ;;  %v11358_v39 = vld [vmem:[#allocation9 + $0xb0] sm:$0xf0] }
 0xc9e   :  { %v6599_v59 = vmul.f32 %v13042_v60, %v6598_v22  ;;  %v6612_v49 = vmul.f32 %v6594_v41, %v13965_v40  ;;  %v11388_v40 = vld [vmem:[#allocation9 + $0xe0] sm:$0xf]  ;;  %7171 = vmatpush.bf16.msrb.mxu3 %v11401_v34  ;;  %v11357_v25 = vor.u32 %v12611_v20, %v11356_v5  ;;  %v11364_v36 = vld [vmem:[#allocation9 + $0xa8] sm:$0xf]  ;;  %v12612_v62 = vld [vmem:[#allocation9 + $0xb4] sm:$0xf0]  ;;  %v11361_v22 = vor.u32 %v12609_v21, %v11358_v39 }
 0xc9f   :  { %v11389_v53 = vor.u32 %v12619_v10, %v11388_v40  ;;  %v11365_v55 = vor.u32 %v12612_v62, %v11364_v36  ;;  %v12610_v43 = vld [vmem:[#allocation9 + $0xac] sm:$0xf]  ;;  %v11366_v41 = vld [vmem:[#allocation9 + $0xb8] sm:$0xf0]  ;;  %v11324_v10 = vld [vmem:[#allocation9 + $0x60] sm:$0xf] }
 0xca0   :  { %v13977_v30 = vadd.f32 %v6613_v13, %v6612_v49  ;;  %v6600_v58 = vadd.f32 %v13042_v60, %v6599_v59  ;;  %v11369_v13 = vor.u32 %v12610_v43, %v11366_v41  ;;  %7147 = vmatpush.bf16.msrb.mxu1 %v11361_v22  ;;  %v11340_v59 = vld [vmem:[#allocation9 + $0x80] sm:$0xf]  ;;  %v12607_v49 = vld [vmem:[#allocation9 + $0x8c] sm:$0xf0]  ;;  %v11325_v42 = vor.u32 %v12603_v56, %v11324_v10  ;;  %v12604_v52 = vld [vmem:[#allocation9 + $0x74] sm:$0xf0] }
 0xca1   :  { %7132 = vmatpush.bf16.msrb.mxu0 %v11389_v53  ;;  %7160 = vmatpush.bf16.msrb.mxu2 %v11365_v55  ;;  %v11341_v28 = vor.u32 %v12607_v49, %v11340_v59  ;;  %v12601_v53 = vld [vmem:[#allocation9 + $0x64] sm:$0xf]  ;;  %v11333_v27 = vor.u32 %v12604_v52, %v11332_v26  ;;  %v12599_v47 = vld [vmem:[#allocation9 + $0x4c] sm:$0xf0]  ;;  %v11316_v20 = vld [vmem:[#allocation9 + $0x48] sm:$0xf]  ;;  %v4616_v55 = vadd.f32 %v13848_v9, %v13908_v19 }
 0xca2   :  { %13045 = vtanh.f32 %v13977_v30  ;;  %v6604_v38 = vsel %vm6603_vm7, %v13042_v60, %v6600_v58  ;;  %v11385_v60 = vor.u32 %v12614_v54, %v11382_v14  ;;  %v12605_v58 = vld [vmem:[#allocation9 + $0x84] sm:$0xf]  ;;  %v11329_v0 = vor.u32 %v12601_v53, %v11326_v35  ;;  %v12600_v21 = vld [vmem:[#allocation9 + $0x54] sm:$0xf0]  ;;  %v11318_v36 = vld [vmem:[#allocation9 + $0x58] sm:$0xf0] }
 0xca3   :  { %v6609_v45 = vsel %vm6606_vm8, %v6608_v3, %v6604_v38  ;;  %v11348_v38 = vld [vmem:[#allocation9 + $0x88] sm:$0xf]  ;;  %v12608_v3 = vld [vmem:[#allocation9 + $0x94] sm:$0xf0]  ;;  %v11309_v14 = vor.u32 %v12599_v47, %v11308_v16  ;;  %v11317_v39 = vor.u32 %v12600_v21, %v11316_v20  ;;  %v11292_v62 = vld [vmem:[#allocation9 + $0x20] sm:$0xf] }
 0xca4   :  { %7172 = vmatpush.bf16.msrb.mxu3 %v11385_v60  ;;  %v11310_v60 = vld [vmem:[#allocation9 + $0x50] sm:$0xf0]  ;;  %v12595_v22 = vld [vmem:[#allocation9 + $0x2c] sm:$0xf0]  ;;  %v11300_v49 = vld [vmem:[#allocation9 + $0x28] sm:$0xf] }
 0xca5   :  { %7133 = vmatpush.bf16.msrb.mxu0 %v11373_v29  ;;  %v11334_v29 = vld [vmem:[#allocation9 + $0x78] sm:$0xf0]  ;;  %v11313_v5 = vor.u32 %v12597_v37, %v11310_v60  ;;  %v11293_v41 = vor.u32 %v12595_v22, %v11292_v62  ;;  %v11294_v59 = vld [vmem:[#allocation9 + $0x30] sm:$0xf0]  ;;  %v11276_v10 = vld [vmem:[#allocation9] sm:$0xf]  ;;  %v4655_v37 = vadd.f32 %v13850_v4, %v13913_v61 }
 0xca6   :  { %v11337_v12 = vor.u32 %v12602_v33, %v11334_v29  ;;  %v12591_v56 = vld [vmem:[#allocation9 + $0xc] sm:$0xf0]  ;;  %v12589_v53 = vld [vmem:[#allocation9 + $0x4] sm:$0xf]  ;;  %v12592_v35 = vld [vmem:[#allocation9 + $0x14] sm:$0xf0] }
 0xca8   :  { %v13046_v18 = vpop.eup %13045  ;;  %7173 = vmatpush.bf16.msrb.mxu3 %v11369_v13  ;;  %v12593_v13 = vld [vmem:[#allocation9 + $0x24] sm:$0xf] }
 0xca9   :  { %v6616_v15 = vmul.f32 %v13046_v18, %v6609_v45  ;;  %7134 = vmatpush.bf16.msrb.mxu0 %v11357_v25  ;;  %v11345_v18 = vor.u32 %v12605_v58, %v11342_v11  ;;  %v11349_v45 = vor.u32 %v12608_v3, %v11348_v38  ;;  %v12598_v25 = vld [vmem:[#allocation9 + $0x4c] sm:$0xf]  ;;  %v11297_v11 = vor.u32 %v12593_v13, %v11294_v59  ;;  %v12596_v38 = vld [vmem:[#allocation9 + $0x34] sm:$0xf0] }
 0xcaa   :  { %v11321_v43 = vor.u32 %v12598_v25, %v11318_v36  ;;  %v12594_v3 = vld [vmem:[#allocation9 + $0x2c] sm:$0xf] }
 0xcab   :  { %v6617_v2 = vpack.c.bf16 %v6616_v15, %v6616_v15  ;;  %v12606_v15 = vld [vmem:[#allocation9 + $0x8c] sm:$0xf]  ;;  %7148 = vmatpush.bf16.msrb.mxu1 %v11345_v18  ;;  %7161 = vmatpush.bf16.msrb.mxu2 %v11349_v45  ;;  %v11302_v18 = vld [vmem:[#allocation9 + $0x38] sm:$0xf0] }
 0xcac   :  { %v11305_v9 = vor.u32 %v12594_v3, %v11302_v18 }
 0xcad   :  { %6618 = vst [vmem:[#allocation11 + $0x14] sm:$0xf] %v6617_v2  ;;  %6823 = vmatmul.bf16.vlgmr.msra.gmra.mxu0 %v6617_v2  ;;  %6836 = vmatmul.bf16.vlgmr.msra.gmra.mxu1 %v6617_v2 }
 0xcae   :  { %6849 = vmatmul.bf16.vlgmr.msra.gmra.mxu2 %v6617_v2  ;;  %6862 = vmatmul.bf16.vlgmr.msra.gmra.mxu3 %v6617_v2  ;;  %v11350_v2 = vld [vmem:[#allocation9 + $0x98] sm:$0xf0] }
 0xcaf   :  { %7135 = vmatpush.bf16.msrb.mxu0 %v11341_v28  ;;  %v11353_v40 = vor.u32 %v12606_v15, %v11350_v2  ;;  %7149 = vmatpush.bf16.msrb.mxu1 %v11329_v0 }
 0xcb0   :  { %7162 = vmatpush.bf16.msrb.mxu2 %v11333_v27 }
 0xcb1   :  { %7174 = vmatpush.bf16.msrb.mxu3 %v11353_v40  ;;  %v11301_v40 = vor.u32 %v12596_v38, %v11300_v49 }
 0xcb3   :  { %7136 = vmatpush.bf16.msrb.mxu0 %v11325_v42  ;;  %7150 = vmatpush.bf16.msrb.mxu1 %v11313_v5  ;;  %v11284_v42 = vld [vmem:[#allocation9 + $0x8] sm:$0xf] }
 0xcb4   :  { %7163 = vmatpush.bf16.msrb.mxu2 %v11317_v39  ;;  %v11285_v27 = vor.u32 %v12592_v35, %v11284_v42 }
 0xcb5   :  { %7175 = vmatpush.bf16.msrb.mxu3 %v11337_v12 }
 0xcb7   :  { %7137 = vmatpush.bf16.msrb.mxu0 %v11309_v14  ;;  %7151 = vmatpush.bf16.msrb.mxu1 %v11297_v11 }
 0xcb8   :  { %7164 = vmatpush.bf16.msrb.mxu2 %v11301_v40 }
 0xcb9   :  { %7176 = vmatpush.bf16.msrb.mxu3 %v11321_v43 }
 0xcbb   :  { %7138 = vmatpush.bf16.msrb.mxu0 %v11293_v41 }
 0xcbc   :  { %7165 = vmatpush.bf16.msrb.mxu2 %v11285_v27  ;;  %v11521_v27 = vld [vmem:[#allocation9 + $0xf0] sm:$0xf0] }
 0xcbd   :  { %7177 = vmatpush.bf16.msrb.mxu3 %v11305_v9 }
 0xd2a   :  { %v6824_v32 = vpop.f32.mrf.mxu0  ;;  %v6837_v34 = vpop.f32.mrf.mxu1 }
 0xd2b   :  { %v6867_v17 = vadd.f32 %v6824_v32, %v4538_v50  ;;  %v6868_v57 = vadd.f32 %v6837_v34, %v4577_v63  ;;  %v11277_v50 = vor.u32 %v12591_v56, %v11276_v10  ;;  %v11278_v63 = vld [vmem:[#allocation9 + $0x10] sm:$0xf0]  ;;  %v12590_v32 = vld [vmem:[#allocation9 + $0xc] sm:$0xf]  ;;  %v11286_v34 = vld [vmem:[#allocation9 + $0x18] sm:$0xf0] }
 0xd2c   :  { %v11281_v52 = vor.u32 %v12589_v53, %v11278_v63 }
 0xd2d   :  { %v11271_v51 = vmul.f32 -1.442695, %v6867_v17  ;;  %v11272_v54 = vmul.f32 -1.442695, %v6868_v57  ;;  %v11289_v17 = vor.u32 %v12590_v32, %v11286_v34  ;;  %7139 = vmatpush.bf16.msrb.mxu0 %v11277_v50  ;;  %v12651_v32 = vld [vmem:[#allocation9 + $0xec] sm:$0xf0] }
 0xd2e   :  { %7152 = vmatpush.bf16.msrb.mxu1 %v11281_v52  ;;  %v12649_v34 = vld [vmem:[#allocation9 + $0xe4] sm:$0xf] }
 0xd2f   :  { %13047 = vpow2.f32 %v11271_v51  ;;  %7178 = vmatpush.bf16.msrb.mxu3 %v11289_v17  ;;  %v11524_v17 = vor.u32 %v12649_v34, %v11521_v27  ;;  %v11463_v27 = vld [vmem:[#allocation9 + $0x68] sm:$0xf] }
 0xd30   :  { %13049 = vpow2.f32 %v11272_v54 }
 0xd31   :  { %v6850_v58 = vpop.f32.mrf.mxu2  ;;  %v6863_v28 = vpop.f32.mrf.mxu3 }
 0xd32   :  { %v6869_v45 = vadd.f32 %v6850_v58, %v4616_v55  ;;  %v6826_v15 = vpop.f32.mrf.mxu0  ;;  %v6839_v2 = vpop.f32.mrf.mxu1  ;;  %v6870_v14 = vadd.f32 %v6863_v28, %v4655_v37  ;;  %7462 = vmatpush.bf16.msra.mxu1 %v11524_v17  ;;  %v11503_v37 = vld [vmem:[#allocation9 + $0xc0] sm:$0xf] }
 0xd34   :  { %v11273_v26 = vmul.f32 -1.442695, %v6869_v45 }
 0xd35   :  { %v13048_v0 = vpop.eup %13047 }
 0xd36   :  { %v13050_v33 = vpop.eup %13049  ;;  %v6880_v29 = vadd.f32 1.0, %v13048_v0  ;;  %13051 = vpow2.f32 %v11273_v26 }
 0xd37   :  { %v6881_v57 = vadd.f32 1.0, %v13050_v33  ;;  %v11527_v33 = vld [vmem:[#allocation9 + $0xe8] sm:$0xf] }
 0xd38   :  { %13053 = vrcp.f32 %v6880_v29  ;;  %v6894_v39 = vand.u32 2147483648, %v6880_v29  ;;  %v6892_v22 = vand.u32 2147483647, %v6880_v29  ;;  %vm6888_vm11 = vweird.f32 %v6880_v29 }
 0xd39   :  { %13055 = vrcp.f32 %v6881_v57  ;;  %v6852_v12 = vpop.f32.mrf.mxu2  ;;  %v6865_v16 = vpop.f32.mrf.mxu3  ;;  %v6909_v36 = vand.u32 2147483648, %v6881_v57  ;;  %v6907_v43 = vand.u32 2147483647, %v6881_v57  ;;  %vm6903_vm12 = vweird.f32 %v6881_v57 }
 0xd3a   :  { %v6895_v59 = vor.u32 1.1754944e-38, %v6894_v39  ;;  %vm6893_vm15 = vcmp.eq.f32.partialorder %v6892_v22, 8.507059e+37  ;;  %v12650_v12 = vld [vmem:[#allocation9 + $0xec] sm:$0xf]  ;;  %v11529_v16 = vld [vmem:[#allocation9 + $0xf8] sm:$0xf0] }
 0xd3b   :  { %v6910_v58 = vor.u32 1.1754944e-38, %v6909_v36  ;;  %vm6908_vm0 = vcmp.eq.f32.partialorder %v6907_v43, 8.507059e+37  ;;  %v12646_v39 = vld [vmem:[#allocation9 + $0xcc] sm:$0xf]  ;;  %v11513_v36 = vld [vmem:[#allocation9 + $0xd8] sm:$0xf0] }
 0xd3c   :  { %v13052_v47 = vpop.eup %13051  ;;  %v11487_v22 = vld [vmem:[#allocation9 + $0xa0] sm:$0xf]  ;;  %v12641_v43 = vld [vmem:[#allocation9 + $0xa4] sm:$0xf] }
 0xd3d   :  { %v6882_v51 = vadd.f32 1.0, %v13052_v47  ;;  %v11532_v47 = vor.u32 %v12650_v12, %v11529_v16  ;;  %v12634_v16 = vld [vmem:[#allocation9 + $0x6c] sm:$0xf] }
 0xd3e   :  { %v13054_v54 = vpop.eup %13053 }
 0xd3f   :  { %v13056_v60 = vpop.eup %13055  ;;  %v6884_v5 = vmul.f32 %v13054_v54, %v6880_v29  ;;  %13057 = vrcp.f32 %v6882_v51  ;;  %vm6889_vm9 = vweird.f32 %v13054_v54  ;;  %v6924_v56 = vand.u32 2147483648, %v6882_v51  ;;  %v12652_v29 = vld [vmem:[#allocation9 + $0xf4] sm:$0xf0]  ;;  %7488 = vmatpush.bf16.msra.mxu3 %v11532_v47  ;;  %v11465_v47 = vld [vmem:[#allocation9 + $0x78] sm:$0xf0] }
 0xd40   :  { %v6899_v20 = vmul.f32 %v13056_v60, %v6881_v57  ;;  %13059 = vtanh.f32 %v6870_v14  ;;  %vm6904_vm10 = vweird.f32 %v13056_v60  ;;  %vm6890_vm13 = vmor %vm6888_vm11, %vm6889_vm9  ;;  %vm6918_vm2 = vweird.f32 %v6882_v51 }
 0xd41   :  { %v6885_v21 = vsub.f32 1.0, %v6884_v5  ;;  %vm6905_vm14 = vmor %vm6903_vm12, %vm6904_vm10  ;;  %v6922_v53 = vand.u32 2147483647, %v6882_v51  ;;  %v6925_v63 = vor.u32 1.1754944e-38, %v6924_v56  ;;  %v11528_v57 = vor.u32 %v12652_v29, %v11527_v33  ;;  %v11511_v5 = vld [vmem:[#allocation9 + $0xc8] sm:$0xf] }
 0xd42   :  { %v6900_v25 = vsub.f32 1.0, %v6899_v20  ;;  %v12648_v20 = vld [vmem:[#allocation9 + $0xd4] sm:$0xf0] }
 0xd43   :  { %v6886_v62 = vmul.f32 %v13054_v54, %v6885_v21  ;;  %vm6923_vm4 = vcmp.eq.f32.partialorder %v6922_v53, 8.507059e+37  ;;  %7475 = vmatpush.bf16.msra.mxu2 %v11528_v57  ;;  %v12636_v33 = vld [vmem:[#allocation9 + $0x74] sm:$0xf0] }
 0xd44   :  { %v6901_v55 = vmul.f32 %v13056_v60, %v6900_v25  ;;  %v11512_v25 = vor.u32 %v12648_v20, %v11511_v5  ;;  %v11464_v12 = vor.u32 %v12636_v33, %v11463_v27 }
 0xd45   :  { %v13058_v41 = vpop.eup %13057  ;;  %v6887_v4 = vadd.f32 %v13054_v54, %v6886_v62  ;;  %v11516_v62 = vor.u32 %v12646_v39, %v11513_v36  ;;  %v11447_v39 = vld [vmem:[#allocation9 + $0x48] sm:$0xf]  ;;  %v12632_v36 = vld [vmem:[#allocation9 + $0x54] sm:$0xf0] }
 0xd46   :  { %v6914_v13 = vmul.f32 %v13058_v41, %v6882_v51  ;;  %v6902_v49 = vadd.f32 %v13056_v60, %v6901_v55  ;;  %v13060_v11 = vpop.eup %13059  ;;  %vm6919_vm1 = vweird.f32 %v13058_v41  ;;  %v12647_v51 = vld [vmem:[#allocation9 + $0xcc] sm:$0xf0] }
 0xd47   :  { %v6891_v28 = vsel %vm6890_vm13, %v13054_v54, %v6887_v4  ;;  %vm6920_vm3 = vmor %vm6918_vm2, %vm6919_vm1  ;;  %v12645_v54 = vld [vmem:[#allocation9 + $0xc4] sm:$0xf]  ;;  %v11504_v14 = vor.u32 %v12647_v51, %v11503_v37  ;;  %7476 = vmatpush.bf16.msra.mxu2 %v11512_v25  ;;  %v12643_v55 = vld [vmem:[#allocation9 + $0xac] sm:$0xf0]  ;;  %7489 = vmatpush.bf16.msra.mxu3 %v11516_v62 }
 0xd48   :  { %v6915_v38 = vsub.f32 1.0, %v6914_v13  ;;  %v6896_v3 = vsel %vm6893_vm15, %v6895_v59, %v6891_v28  ;;  %v6906_v18 = vsel %vm6905_vm14, %v13056_v60, %v6902_v49  ;;  %v11505_v60 = vld [vmem:[#allocation9 + $0xd0] sm:$0xf0]  ;;  %v11495_v13 = vld [vmem:[#allocation9 + $0xa8] sm:$0xf] }
 0xd49   :  { %v6911_v45 = vsel %vm6908_vm0, %v6910_v58, %v6906_v18  ;;  %v6930_v15 = vmul.f32 %v13060_v11, %v6896_v3  ;;  %v11508_v21 = vor.u32 %v12645_v54, %v11505_v60  ;;  %v11489_v4 = vld [vmem:[#allocation9 + $0xb0] sm:$0xf0]  ;;  %v12644_v59 = vld [vmem:[#allocation9 + $0xb4] sm:$0xf0]  ;;  %v12642_v28 = vld [vmem:[#allocation9 + $0xac] sm:$0xf]  ;;  %v11468_v54 = vor.u32 %v12634_v16, %v11465_v47 }
 0xd4a   :  { %v6916_v2 = vmul.f32 %v13058_v41, %v6915_v38  ;;  %v6929_v40 = vmul.f32 %v6911_v45, %v13977_v30  ;;  %v11519_v30 = vld [vmem:[#allocation9 + $0xe0] sm:$0xf]  ;;  %v11492_v49 = vor.u32 %v12641_v43, %v11489_v4  ;;  %v11496_v58 = vor.u32 %v12644_v59, %v11495_v13  ;;  %v11497_v11 = vld [vmem:[#allocation9 + $0xb8] sm:$0xf0]  ;;  %v12639_v18 = vld [vmem:[#allocation9 + $0x8c] sm:$0xf0] }
 0xd4b   :  { %v11520_v0 = vor.u32 %v12651_v32, %v11519_v30  ;;  %7463 = vmatpush.bf16.msra.mxu1 %v11508_v21  ;;  %v11500_v38 = vor.u32 %v12642_v28, %v11497_v11  ;;  %v11471_v3 = vld [vmem:[#allocation9 + $0x80] sm:$0xf]  ;;  %v12637_v45 = vld [vmem:[#allocation9 + $0x84] sm:$0xf]  ;;  %v4540_v30 = vadd.f32 %v13852_v6, %v13894_v48  ;;  %v4579_v32 = vadd.f32 %v13854_v7, %v13897_v1  ;;  %v11441_v21 = vld [vmem:[#allocation9 + $0x50] sm:$0xf0] }
 0xd4c   :  { %v13989_v9 = vadd.f32 %v6930_v15, %v6929_v40  ;;  %v6917_v10 = vadd.f32 %v13058_v41, %v6916_v2  ;;  %7477 = vmatpush.bf16.msra.mxu2 %v11496_v58  ;;  %v11472_v15 = vor.u32 %v12639_v18, %v11471_v3  ;;  %v11473_v2 = vld [vmem:[#allocation9 + $0x90] sm:$0xf0]  ;;  %v11479_v40 = vld [vmem:[#allocation9 + $0x88] sm:$0xf]  ;;  %v11439_v6 = vld [vmem:[#allocation9 + $0x40] sm:$0xf]  ;;  %v4618_v4 = vadd.f32 %v13856_v46, %v13908_v19 }
 0xd4d   :  { %7449 = vmatpush.bf16.msra.mxu0 %v11520_v0  ;;  %7490 = vmatpush.bf16.msra.mxu3 %v11500_v38  ;;  %v11476_v56 = vor.u32 %v12637_v45, %v11473_v2  ;;  %v11457_v0 = vld [vmem:[#allocation9 + $0x70] sm:$0xf0]  ;;  %v12629_v7 = vld [vmem:[#allocation9 + $0x44] sm:$0xf]  ;;  %v12630_v62 = vld [vmem:[#allocation9 + $0x4c] sm:$0xf] }
 0xd4e   :  { %13061 = vtanh.f32 %v13989_v9  ;;  %v6921_v50 = vsel %vm6920_vm3, %v13058_v41, %v6917_v10  ;;  %v11488_v41 = vor.u32 %v12643_v55, %v11487_v22  ;;  %v12640_v10 = vld [vmem:[#allocation9 + $0x94] sm:$0xf0]  ;;  %v11444_v25 = vor.u32 %v12629_v7, %v11441_v21  ;;  %v11449_v55 = vld [vmem:[#allocation9 + $0x58] sm:$0xf0]  ;;  %v11423_v43 = vld [vmem:[#allocation9 + $0x20] sm:$0xf] }
 0xd4f   :  { %v6926_v35 = vsel %vm6923_vm4, %v6925_v63, %v6921_v50  ;;  %7464 = vmatpush.bf16.msra.mxu1 %v11492_v49  ;;  %v11480_v53 = vor.u32 %v12640_v10, %v11479_v40  ;;  %v12638_v50 = vld [vmem:[#allocation9 + $0x8c] sm:$0xf]  ;;  %v11481_v63 = vld [vmem:[#allocation9 + $0x98] sm:$0xf0]  ;;  %v11448_v22 = vor.u32 %v12632_v36, %v11447_v39  ;;  %v11452_v13 = vor.u32 %v12630_v62, %v11449_v55  ;;  %v12625_v49 = vld [vmem:[#allocation9 + $0x24] sm:$0xf] }
 0xd50   :  { %v11425_v58 = vld [vmem:[#allocation9 + $0x30] sm:$0xf0]  ;;  %v11431_v28 = vld [vmem:[#allocation9 + $0x28] sm:$0xf]  ;;  %v12628_v18 = vld [vmem:[#allocation9 + $0x34] sm:$0xf0] }
 0xd51   :  { %7450 = vmatpush.bf16.msra.mxu0 %v11504_v14  ;;  %7478 = vmatpush.bf16.msra.mxu2 %v11480_v53  ;;  %v12631_v14 = vld [vmem:[#allocation9 + $0x4c] sm:$0xf0]  ;;  %v11428_v3 = vor.u32 %v12625_v49, %v11425_v58  ;;  %v12626_v45 = vld [vmem:[#allocation9 + $0x2c] sm:$0xf]  ;;  %v11407_v53 = vld [vmem:[#allocation9] sm:$0xf] }
 0xd52   :  { %v11440_v20 = vor.u32 %v12631_v14, %v11439_v6 }
 0xd53   :  { %7465 = vmatpush.bf16.msra.mxu1 %v11476_v56  ;;  %v11432_v56 = vor.u32 %v12628_v18, %v11431_v28 }
 0xd54   :  { %v13062_v42 = vpop.eup %13061 }
 0xd55   :  { %v6933_v26 = vmul.f32 %v13062_v42, %v6926_v35  ;;  %7451 = vmatpush.bf16.msra.mxu0 %v11488_v41  ;;  %v11484_v42 = vor.u32 %v12638_v50, %v11481_v63  ;;  %v11455_v35 = vld [vmem:[#allocation9 + $0x60] sm:$0xf]  ;;  %7479 = vmatpush.bf16.msra.mxu2 %v11464_v12  ;;  %v12627_v41 = vld [vmem:[#allocation9 + $0x2c] sm:$0xf0]  ;;  %v12621_v63 = vld [vmem:[#allocation9 + $0x4] sm:$0xf] }
 0xd56   :  { %v11424_v59 = vor.u32 %v12627_v41, %v11423_v43  ;;  %v12623_v50 = vld [vmem:[#allocation9 + $0xc] sm:$0xf0] }
 0xd57   :  { %v6934_v52 = vpack.c.bf16 %v6933_v26, %v6933_v26  ;;  %v12635_v26 = vld [vmem:[#allocation9 + $0x6c] sm:$0xf0]  ;;  %7491 = vmatpush.bf16.msra.mxu3 %v11484_v42  ;;  %v11408_v42 = vor.u32 %v12623_v50, %v11407_v53 }
 0xd58   :  { %v11456_v34 = vor.u32 %v12635_v26, %v11455_v35  ;;  %v11409_v35 = vld [vmem:[#allocation9 + $0x10] sm:$0xf0]  ;;  %v11415_v26 = vld [vmem:[#allocation9 + $0x8] sm:$0xf] }
 0xd59   :  { %6935 = vst [vmem:[#allocation11 + $0x18] sm:$0xf] %v6934_v52  ;;  %7140 = vmatmul.bf16.vlgmr.msrb.gmra.mxu0 %v6934_v52  ;;  %7153 = vmatmul.bf16.vlgmr.msrb.gmra.mxu1 %v6934_v52 }
 0xd5a   :  { %7166 = vmatmul.bf16.vlgmr.msrb.gmra.mxu2 %v6934_v52  ;;  %7179 = vmatmul.bf16.vlgmr.msrb.gmra.mxu3 %v6934_v52  ;;  %v12633_v52 = vld [vmem:[#allocation9 + $0x64] sm:$0xf] }
 0xd5b   :  { %7452 = vmatpush.bf16.msra.mxu0 %v11472_v15  ;;  %v11460_v57 = vor.u32 %v12633_v52, %v11457_v0  ;;  %7492 = vmatpush.bf16.msra.mxu3 %v11468_v54  ;;  %v11433_v15 = vld [vmem:[#allocation9 + $0x38] sm:$0xf0]  ;;  %v12624_v52 = vld [vmem:[#allocation9 + $0x14] sm:$0xf0] }
 0xd5c   :  { %7480 = vmatpush.bf16.msra.mxu2 %v11448_v22  ;;  %v11436_v46 = vor.u32 %v12626_v45, %v11433_v15  ;;  %v11417_v0 = vld [vmem:[#allocation9 + $0x18] sm:$0xf0]  ;;  %v11416_v33 = vor.u32 %v12624_v52, %v11415_v26  ;;  %v12683_v26 = vld [vmem:[#allocation9 + $0xec] sm:$0xf0]  ;;  %v12681_v52 = vld [vmem:[#allocation9 + $0xe4] sm:$0xf] }
 0xd5d   :  { %7466 = vmatpush.bf16.msra.mxu1 %v11460_v57 }
 0xd5f   :  { %7453 = vmatpush.bf16.msra.mxu0 %v11456_v34  ;;  %7493 = vmatpush.bf16.msra.mxu3 %v11452_v13  ;;  %v12622_v34 = vld [vmem:[#allocation9 + $0xc] sm:$0xf] }
 0xd60   :  { %7481 = vmatpush.bf16.msra.mxu2 %v11432_v56  ;;  %v11420_v57 = vor.u32 %v12622_v34, %v11417_v0  ;;  %v11658_v34 = vld [vmem:[#allocation9 + $0xe8] sm:$0xf]  ;;  %v12684_v0 = vld [vmem:[#allocation9 + $0xf4] sm:$0xf0] }
 0xd61   :  { %7467 = vmatpush.bf16.msra.mxu1 %v11444_v25 }
 0xd63   :  { %7454 = vmatpush.bf16.msra.mxu0 %v11440_v20  ;;  %7494 = vmatpush.bf16.msra.mxu3 %v11436_v46 }
 0xd64   :  { %7482 = vmatpush.bf16.msra.mxu2 %v11416_v33  ;;  %v11659_v33 = vor.u32 %v12684_v0, %v11658_v34  ;;  %v12666_v0 = vld [vmem:[#allocation9 + $0x6c] sm:$0xf] }
 0xd65   :  { %7468 = vmatpush.bf16.msra.mxu1 %v11428_v3 }
 0xd67   :  { %7455 = vmatpush.bf16.msra.mxu0 %v11424_v59  ;;  %7495 = vmatpush.bf16.msra.mxu3 %v11420_v57 }
 0xd68   :  { %7792 = vmatpush.bf16.msrb.mxu2 %v11659_v33 }
 0xd6b   :  { %7456 = vmatpush.bf16.msra.mxu0 %v11408_v42 }
 0xdd6   :  { %v7141_v29 = vpop.f32.mrf.mxu0  ;;  %v7154_v17 = vpop.f32.mrf.mxu1 }
 0xdd7   :  { %v7184_v37 = vadd.f32 %v7141_v29, %v4540_v30  ;;  %v7185_v51 = vadd.f32 %v7154_v17, %v4579_v32  ;;  %v11412_v32 = vor.u32 %v12621_v63, %v11409_v35 }
 0xdd9   :  { %v11402_v60 = vmul.f32 -1.442695, %v7184_v37  ;;  %v11403_v5 = vmul.f32 -1.442695, %v7185_v51  ;;  %7469 = vmatpush.bf16.msra.mxu1 %v11412_v32  ;;  %v4657_v51 = vadd.f32 %v13858_v23, %v13913_v61  ;;  %v11652_v32 = vld [vmem:[#allocation9 + $0xf0] sm:$0xf0] }
 0xddb   :  { %13063 = vpow2.f32 %v11402_v60 }
 0xddc   :  { %13065 = vpow2.f32 %v11403_v5 }
 0xddd   :  { %v7167_v11 = vpop.f32.mrf.mxu2  ;;  %v7180_v38 = vpop.f32.mrf.mxu3 }
 0xdde   :  { %v7186_v2 = vadd.f32 %v7167_v11, %v4618_v4  ;;  %v7143_v40 = vpop.f32.mrf.mxu0  ;;  %v7156_v10 = vpop.f32.mrf.mxu1  ;;  %v7187_v14 = vadd.f32 %v7180_v38, %v4657_v51  ;;  %v11636_v51 = vld [vmem:[#allocation9 + $0xd0] sm:$0xf0] }
 0xde0   :  { %v11404_v30 = vmul.f32 -1.442695, %v7186_v2 }
 0xde1   :  { %v13064_v27 = vpop.eup %13063 }
 0xde2   :  { %v13066_v29 = vpop.eup %13065  ;;  %v7197_v17 = vadd.f32 1.0, %v13064_v27  ;;  %13067 = vpow2.f32 %v11404_v30  ;;  %v11655_v27 = vor.u32 %v12681_v52, %v11652_v32 }
 0xde3   :  { %v7198_v12 = vadd.f32 1.0, %v13066_v29  ;;  %v12682_v29 = vld [vmem:[#allocation9 + $0xec] sm:$0xf] }
 0xde4   :  { %13069 = vrcp.f32 %v7197_v17  ;;  %v7211_v25 = vand.u32 2147483648, %v7197_v17  ;;  %v7209_v62 = vand.u32 2147483647, %v7197_v17  ;;  %vm7205_vm7 = vweird.f32 %v7197_v17  ;;  %7779 = vmatpush.bf16.msrb.mxu1 %v11655_v27  ;;  %v11596_v27 = vld [vmem:[#allocation9 + $0x78] sm:$0xf0] }
 0xde5   :  { %13071 = vrcp.f32 %v7198_v12  ;;  %v7169_v16 = vpop.f32.mrf.mxu2  ;;  %v7182_v47 = vpop.f32.mrf.mxu3  ;;  %v7226_v39 = vand.u32 2147483648, %v7198_v12  ;;  %v7224_v55 = vand.u32 2147483647, %v7198_v12  ;;  %vm7220_vm8 = vweird.f32 %v7198_v12 }
 0xde6   :  { %v7212_v4 = vor.u32 1.1754944e-38, %v7211_v25  ;;  %vm7210_vm11 = vcmp.eq.f32.partialorder %v7209_v62, 8.507059e+37  ;;  %v12679_v16 = vld [vmem:[#allocation9 + $0xcc] sm:$0xf0]  ;;  %v12677_v47 = vld [vmem:[#allocation9 + $0xc4] sm:$0xf] }
 0xde7   :  { %v7227_v59 = vor.u32 1.1754944e-38, %v7226_v39  ;;  %vm7225_vm12 = vcmp.eq.f32.partialorder %v7224_v55, 8.507059e+37  ;;  %v12675_v25 = vld [vmem:[#allocation9 + $0xac] sm:$0xf0]  ;;  %v12673_v39 = vld [vmem:[#allocation9 + $0xa4] sm:$0xf] }
 0xde8   :  { %v13068_v37 = vpop.eup %13067  ;;  %v11620_v62 = vld [vmem:[#allocation9 + $0xb0] sm:$0xf0]  ;;  %v12676_v55 = vld [vmem:[#allocation9 + $0xb4] sm:$0xf0] }
 0xde9   :  { %v7199_v54 = vadd.f32 1.0, %v13068_v37 }
 0xdea   :  { %v13070_v6 = vpop.eup %13069 }
 0xdeb   :  { %v13072_v7 = vpop.eup %13071  ;;  %v7201_v60 = vmul.f32 %v13070_v6, %v7197_v17  ;;  %13073 = vrcp.f32 %v7199_v54  ;;  %vm7206_vm5 = vweird.f32 %v13070_v6  ;;  %v7241_v10 = vand.u32 2147483648, %v7199_v54  ;;  %v11660_v17 = vld [vmem:[#allocation9 + $0xf8] sm:$0xf0] }
 0xdec   :  { %v7216_v5 = vmul.f32 %v13072_v7, %v7198_v12  ;;  %13075 = vtanh.f32 %v7187_v14  ;;  %vm7221_vm6 = vweird.f32 %v13072_v7  ;;  %vm7207_vm9 = vmor %vm7205_vm7, %vm7206_vm5  ;;  %vm7235_vm14 = vweird.f32 %v7199_v54  ;;  %v11634_v12 = vld [vmem:[#allocation9 + $0xc0] sm:$0xf] }
 0xded   :  { %v7202_v20 = vsub.f32 1.0, %v7201_v60  ;;  %vm7222_vm10 = vmor %vm7220_vm8, %vm7221_vm6  ;;  %v7239_v56 = vand.u32 2147483647, %v7199_v54  ;;  %v7242_v53 = vor.u32 1.1754944e-38, %v7241_v10  ;;  %v11663_v57 = vor.u32 %v12682_v29, %v11660_v17  ;;  %v12678_v60 = vld [vmem:[#allocation9 + $0xcc] sm:$0xf] }
 0xdee   :  { %v7217_v21 = vsub.f32 1.0, %v7216_v5  ;;  %v11635_v37 = vor.u32 %v12679_v16, %v11634_v12  ;;  %v11639_v14 = vor.u32 %v12677_v47, %v11636_v51  ;;  %v11644_v5 = vld [vmem:[#allocation9 + $0xd8] sm:$0xf0]  ;;  %v11599_v17 = vor.u32 %v12666_v0, %v11596_v27 }
 0xdef   :  { %v7203_v36 = vmul.f32 %v13070_v6, %v7202_v20  ;;  %vm7240_vm0 = vcmp.eq.f32.partialorder %v7239_v56, 8.507059e+37  ;;  %7805 = vmatpush.bf16.msrb.mxu3 %v11663_v57  ;;  %v11647_v20 = vor.u32 %v12678_v60, %v11644_v5  ;;  %v11586_v56 = vld [vmem:[#allocation9 + $0x60] sm:$0xf]  ;;  %v12663_v57 = vld [vmem:[#allocation9 + $0x4c] sm:$0xf0] }
 0xdf0   :  { %v7218_v22 = vmul.f32 %v13072_v7, %v7217_v21  ;;  %7780 = vmatpush.bf16.msrb.mxu1 %v11639_v14  ;;  %v11618_v21 = vld [vmem:[#allocation9 + $0xa0] sm:$0xf]  ;;  %v12662_v14 = vld [vmem:[#allocation9 + $0x4c] sm:$0xf]  ;;  %v11580_v60 = vld [vmem:[#allocation9 + $0x58] sm:$0xf0] }
 0xdf1   :  { %v13074_v43 = vpop.eup %13073  ;;  %v7204_v23 = vadd.f32 %v13070_v6, %v7203_v36  ;;  %v11619_v36 = vor.u32 %v12675_v25, %v11618_v21  ;;  %v11554_v5 = vld [vmem:[#allocation9 + $0x20] sm:$0xf]  ;;  %v4621_v21 = vadd.f32 %v13864_v31, %v13908_v19  ;;  %v11583_v25 = vor.u32 %v12662_v14, %v11580_v60 }
 0xdf2   :  { %v7231_v41 = vmul.f32 %v13074_v43, %v7199_v54  ;;  %v7219_v13 = vadd.f32 %v13072_v7, %v7218_v22  ;;  %v13076_v58 = vpop.eup %13075  ;;  %vm7236_vm13 = vweird.f32 %v13074_v43  ;;  %v11642_v54 = vld [vmem:[#allocation9 + $0xc8] sm:$0xf] }
 0xdf3   :  { %v7208_v49 = vsel %vm7207_vm9, %v13070_v6, %v7204_v23  ;;  %vm7237_vm15 = vmor %vm7235_vm14, %vm7236_vm13  ;;  %v12680_v6 = vld [vmem:[#allocation9 + $0xd4] sm:$0xf0]  ;;  %7806 = vmatpush.bf16.msrb.mxu3 %v11647_v20  ;;  %v11626_v22 = vld [vmem:[#allocation9 + $0xa8] sm:$0xf] }
 0xdf4   :  { %v7232_v28 = vsub.f32 1.0, %v7231_v41  ;;  %v7213_v11 = vsel %vm7210_vm11, %v7212_v4, %v7208_v49  ;;  %v7223_v38 = vsel %vm7222_vm10, %v13072_v7, %v7219_v13  ;;  %v11643_v7 = vor.u32 %v12680_v6, %v11642_v54  ;;  %v12674_v41 = vld [vmem:[#allocation9 + $0xac] sm:$0xf]  ;;  %v11628_v4 = vld [vmem:[#allocation9 + $0xb8] sm:$0xf0] }
 0xdf5   :  { %v7228_v3 = vsel %vm7225_vm12, %v7227_v59, %v7223_v38  ;;  %v7247_v18 = vmul.f32 %v13076_v58, %v7213_v11  ;;  %v11627_v23 = vor.u32 %v12676_v55, %v11626_v22  ;;  %v11631_v13 = vor.u32 %v12674_v41, %v11628_v4  ;;  %v11602_v59 = vld [vmem:[#allocation9 + $0x80] sm:$0xf]  ;;  %v12671_v49 = vld [vmem:[#allocation9 + $0x8c] sm:$0xf0]  ;;  %v12669_v58 = vld [vmem:[#allocation9 + $0x84] sm:$0xf] }
 0xdf6   :  { %v7233_v45 = vmul.f32 %v13074_v43, %v7232_v28  ;;  %v7246_v15 = vmul.f32 %v7228_v3, %v13989_v9  ;;  %v11650_v9 = vld [vmem:[#allocation9 + $0xe0] sm:$0xf]  ;;  %7793 = vmatpush.bf16.msrb.mxu2 %v11643_v7  ;;  %v11603_v28 = vor.u32 %v12671_v49, %v11602_v59  ;;  %v11604_v11 = vld [vmem:[#allocation9 + $0x90] sm:$0xf0]  ;;  %v11610_v38 = vld [vmem:[#allocation9 + $0x88] sm:$0xf] }
 0xdf7   :  { %v11651_v30 = vor.u32 %v12683_v26, %v11650_v9  ;;  %7807 = vmatpush.bf16.msrb.mxu3 %v11631_v13  ;;  %v12672_v3 = vld [vmem:[#allocation9 + $0x94] sm:$0xf0]  ;;  %v11594_v9 = vld [vmem:[#allocation9 + $0x68] sm:$0xf]  ;;  %v12659_v20 = vld [vmem:[#allocation9 + $0x2c] sm:$0xf0] }
 0xdf8   :  { %v14001_v2 = vadd.f32 %v7247_v18, %v7246_v15  ;;  %v7234_v40 = vadd.f32 %v13074_v43, %v7233_v45  ;;  %v11607_v18 = vor.u32 %v12669_v58, %v11604_v11  ;;  %v11611_v45 = vor.u32 %v12672_v3, %v11610_v38  ;;  %v12670_v15 = vld [vmem:[#allocation9 + $0x8c] sm:$0xf]  ;;  %v12668_v26 = vld [vmem:[#allocation9 + $0x74] sm:$0xf0]  ;;  %v11578_v54 = vld [vmem:[#allocation9 + $0x48] sm:$0xf] }
 0xdf9   :  { %7766 = vmatpush.bf16.msrb.mxu0 %v11651_v30  ;;  %v11595_v34 = vor.u32 %v12668_v26, %v11594_v9  ;;  %v12664_v6 = vld [vmem:[#allocation9 + $0x54] sm:$0xf0]  ;;  %v11562_v22 = vld [vmem:[#allocation9 + $0x28] sm:$0xf]  ;;  %v12658_v4 = vld [vmem:[#allocation9 + $0x2c] sm:$0xf] }
 0xdfa   :  { %13077 = vtanh.f32 %v14001_v2  ;;  %v7238_v46 = vsel %vm7237_vm15, %v13074_v43, %v7234_v40  ;;  %v11623_v43 = vor.u32 %v12673_v39, %v11620_v62  ;;  %7794 = vmatpush.bf16.msrb.mxu2 %v11627_v23  ;;  %v11612_v40 = vld [vmem:[#allocation9 + $0x98] sm:$0xf0]  ;;  %v11579_v7 = vor.u32 %v12664_v6, %v11578_v54  ;;  %v11556_v62 = vld [vmem:[#allocation9 + $0x30] sm:$0xf0]  ;;  %v12660_v41 = vld [vmem:[#allocation9 + $0x34] sm:$0xf0] }
 0xdfb   :  { %v7243_v63 = vsel %vm7240_vm0, %v7242_v53, %v7238_v46  ;;  %v11615_v10 = vor.u32 %v12670_v15, %v11612_v40  ;;  %v12667_v46 = vld [vmem:[#allocation9 + $0x6c] sm:$0xf0]  ;;  %v12665_v53 = vld [vmem:[#allocation9 + $0x64] sm:$0xf]  ;;  %v11555_v39 = vor.u32 %v12659_v20, %v11554_v5  ;;  %v11564_v13 = vld [vmem:[#allocation9 + $0x38] sm:$0xf0] }
 0xdfc   :  { %7781 = vmatpush.bf16.msrb.mxu1 %v11623_v43  ;;  %v11567_v31 = vor.u32 %v12658_v4, %v11564_v13  ;;  %v11538_v11 = vld [vmem:[#allocation9] sm:$0xf]  ;;  %v12655_v38 = vld [vmem:[#allocation9 + $0xc] sm:$0xf0]  ;;  %v12653_v3 = vld [vmem:[#allocation9 + $0x4] sm:$0xf] }
 0xdfd   :  { %7767 = vmatpush.bf16.msrb.mxu0 %v11635_v37  ;;  %7808 = vmatpush.bf16.msrb.mxu3 %v11615_v10  ;;  %v11572_v37 = vld [vmem:[#allocation9 + $0x50] sm:$0xf0]  ;;  %v11546_v15 = vld [vmem:[#allocation9 + $0x8] sm:$0xf]  ;;  %v12656_v40 = vld [vmem:[#allocation9 + $0x14] sm:$0xf0] }
 0xdfe   :  { %7795 = vmatpush.bf16.msrb.mxu2 %v11611_v45  ;;  %v11540_v45 = vld [vmem:[#allocation9 + $0x10] sm:$0xf0] }
 0xe00   :  { %v13078_v50 = vpop.eup %13077  ;;  %7782 = vmatpush.bf16.msrb.mxu1 %v11607_v18  ;;  %v11539_v18 = vor.u32 %v12655_v38, %v11538_v11  ;;  %v12715_v38 = vld [vmem:[#allocation9 + $0xec] sm:$0xf0] }
 0xe01   :  { %v7250_v42 = vmul.f32 %v13078_v50, %v7243_v63  ;;  %7768 = vmatpush.bf16.msrb.mxu0 %v11619_v36  ;;  %v4543_v50 = vadd.f32 %v13860_v24, %v13894_v48  ;;  %v4582_v63 = vadd.f32 %v13862_v8, %v13897_v1  ;;  %v11570_v24 = vld [vmem:[#allocation9 + $0x40] sm:$0xf]  ;;  %v12661_v8 = vld [vmem:[#allocation9 + $0x44] sm:$0xf]  ;;  %7809 = vmatpush.bf16.msrb.mxu3 %v11599_v17 }
 0xe02   :  { %7796 = vmatpush.bf16.msrb.mxu2 %v11595_v34  ;;  %v11571_v47 = vor.u32 %v12663_v57, %v11570_v24  ;;  %v11575_v51 = vor.u32 %v12661_v8, %v11572_v37  ;;  %v12657_v36 = vld [vmem:[#allocation9 + $0x24] sm:$0xf]  ;;  %v4660_v34 = vadd.f32 %v13866_v44, %v13913_v61 }
 0xe03   :  { %v7251_v35 = vpack.c.bf16 %v7250_v42, %v7250_v42  ;;  %v11587_v42 = vor.u32 %v12667_v46, %v11586_v56  ;;  %v11559_v23 = vor.u32 %v12657_v36, %v11556_v62  ;;  %v11543_v56 = vor.u32 %v12653_v3, %v11540_v45  ;;  %v12654_v46 = vld [vmem:[#allocation9 + $0xc] sm:$0xf]  ;;  %v12713_v3 = vld [vmem:[#allocation9 + $0xe4] sm:$0xf]  ;;  %v11783_v45 = vld [vmem:[#allocation9 + $0xf0] sm:$0xf0] }
 0xe05   :  { %7252 = vst [vmem:[#allocation11 + $0x1c] sm:$0xf] %v7251_v35  ;;  %7457 = vmatmul.bf16.vlgmr.msra.gmra.mxu0 %v7251_v35  ;;  %7470 = vmatmul.bf16.vlgmr.msra.gmra.mxu1 %v7251_v35 }
 0xe06   :  { %7483 = vmatmul.bf16.vlgmr.msra.gmra.mxu2 %v7251_v35  ;;  %7496 = vmatmul.bf16.vlgmr.msra.gmra.mxu3 %v7251_v35  ;;  %v11588_v35 = vld [vmem:[#allocation9 + $0x70] sm:$0xf0] }
 0xe07   :  { %7769 = vmatpush.bf16.msrb.mxu0 %v11603_v28  ;;  %v11591_v32 = vor.u32 %v12665_v53, %v11588_v35  ;;  %7797 = vmatpush.bf16.msrb.mxu2 %v11579_v7  ;;  %v11563_v28 = vor.u32 %v12660_v41, %v11562_v22  ;;  %v11548_v53 = vld [vmem:[#allocation9 + $0x18] sm:$0xf0] }
 0xe08   :  { %7810 = vmatpush.bf16.msrb.mxu3 %v11583_v25  ;;  %v11551_v9 = vor.u32 %v12654_v46, %v11548_v53  ;;  %v12714_v46 = vld [vmem:[#allocation9 + $0xec] sm:$0xf]  ;;  %v11791_v53 = vld [vmem:[#allocation9 + $0xf8] sm:$0xf0] }
 0xe09   :  { %7783 = vmatpush.bf16.msrb.mxu1 %v11591_v32 }
 0xe0b   :  { %7770 = vmatpush.bf16.msrb.mxu0 %v11587_v42  ;;  %7798 = vmatpush.bf16.msrb.mxu2 %v11563_v28 }
 0xe0c   :  { %7811 = vmatpush.bf16.msrb.mxu3 %v11567_v31 }
 0xe0d   :  { %7784 = vmatpush.bf16.msrb.mxu1 %v11575_v51 }
 0xe0f   :  { %7771 = vmatpush.bf16.msrb.mxu0 %v11571_v47 }
 0xe10   :  { %7812 = vmatpush.bf16.msrb.mxu3 %v11551_v9 }
 0xe11   :  { %7785 = vmatpush.bf16.msrb.mxu1 %v11559_v23 }
 0xe13   :  { %7772 = vmatpush.bf16.msrb.mxu0 %v11555_v39 }
 0xe15   :  { %7786 = vmatpush.bf16.msrb.mxu1 %v11543_v56 }
 0xe17   :  { %7773 = vmatpush.bf16.msrb.mxu0 %v11539_v18 }
 0xe82   :  { %v7458_v52 = vpop.f32.mrf.mxu0  ;;  %v7471_v30 = vpop.f32.mrf.mxu1 }
 0xe83   :  { %v7501_v33 = vadd.f32 %v7458_v52, %v4543_v50  ;;  %v7502_v29 = vadd.f32 %v7471_v30, %v4582_v63  ;;  %v11547_v63 = vor.u32 %v12656_v40, %v11546_v15  ;;  %v11789_v15 = vld [vmem:[#allocation9 + $0xe8] sm:$0xf]  ;;  %v12716_v40 = vld [vmem:[#allocation9 + $0xf4] sm:$0xf0] }
 0xe84   :  { %v11790_v56 = vor.u32 %v12716_v40, %v11789_v15  ;;  %v11727_v15 = vld [vmem:[#allocation9 + $0x78] sm:$0xf0] }
 0xe85   :  { %v11533_v12 = vmul.f32 -1.442695, %v7501_v33  ;;  %v11534_v16 = vmul.f32 -1.442695, %v7502_v29  ;;  %7799 = vmatpush.bf16.msrb.mxu2 %v11547_v63  ;;  %v11765_v63 = vld [vmem:[#allocation9 + $0xc0] sm:$0xf] }
 0xe87   :  { %13079 = vpow2.f32 %v11533_v12 }
 0xe88   :  { %13081 = vpow2.f32 %v11534_v16 }
 0xe89   :  { %v7484_v55 = vpop.f32.mrf.mxu2  ;;  %v7497_v43 = vpop.f32.mrf.mxu3  ;;  %8109 = vmatpush.bf16.msra.mxu2 %v11790_v56 }
 0xe8a   :  { %v7503_v59 = vadd.f32 %v7484_v55, %v4621_v21  ;;  %v7460_v49 = vpop.f32.mrf.mxu0  ;;  %v7473_v58 = vpop.f32.mrf.mxu1  ;;  %v7504_v33 = vadd.f32 %v7497_v43, %v4660_v34 }
 0xe8c   :  { %v11535_v10 = vmul.f32 -1.442695, %v7503_v59 }
 0xe8d   :  { %v13080_v50 = vpop.eup %13079 }
 0xe8e   :  { %v13082_v42 = vpop.eup %13081  ;;  %v7514_v35 = vadd.f32 1.0, %v13080_v50  ;;  %13083 = vpow2.f32 %v11535_v10  ;;  %v11786_v10 = vor.u32 %v12713_v3, %v11783_v45  ;;  %v11794_v50 = vor.u32 %v12714_v46, %v11791_v53  ;;  %v12698_v45 = vld [vmem:[#allocation9 + $0x6c] sm:$0xf]  ;;  %v11701_v46 = vld [vmem:[#allocation9 + $0x40] sm:$0xf] }
 0xe8f   :  { %v7515_v26 = vadd.f32 1.0, %v13082_v42  ;;  %v12711_v42 = vld [vmem:[#allocation9 + $0xcc] sm:$0xf0]  ;;  %v11730_v56 = vor.u32 %v12698_v45, %v11727_v15 }
 0xe90   :  { %13085 = vrcp.f32 %v7514_v35  ;;  %v7528_v12 = vand.u32 2147483648, %v7514_v35  ;;  %v7526_v37 = vand.u32 2147483647, %v7514_v35  ;;  %vm7522_vm3 = vweird.f32 %v7514_v35  ;;  %8096 = vmatpush.bf16.msra.mxu1 %v11786_v10  ;;  %8122 = vmatpush.bf16.msra.mxu3 %v11794_v50  ;;  %v12695_v53 = vld [vmem:[#allocation9 + $0x4c] sm:$0xf0] }
 0xe91   :  { %13087 = vrcp.f32 %v7515_v26  ;;  %v7486_v52 = vpop.f32.mrf.mxu2  ;;  %v7499_v30 = vpop.f32.mrf.mxu3  ;;  %v7543_v16 = vand.u32 2147483648, %v7515_v26  ;;  %v7541_v54 = vand.u32 2147483647, %v7515_v26  ;;  %vm7537_vm4 = vweird.f32 %v7515_v26  ;;  %v12693_v50 = vld [vmem:[#allocation9 + $0x44] sm:$0xf] }
 0xe92   :  { %v7529_v7 = vor.u32 1.1754944e-38, %v7528_v12  ;;  %vm7527_vm7 = vcmp.eq.f32.partialorder %v7526_v37, 8.507059e+37  ;;  %v11766_v9 = vor.u32 %v12711_v42, %v11765_v63  ;;  %v11773_v52 = vld [vmem:[#allocation9 + $0xc8] sm:$0xf]  ;;  %v12712_v30 = vld [vmem:[#allocation9 + $0xd4] sm:$0xf0] }
 0xe93   :  { %v7544_v5 = vor.u32 1.1754944e-38, %v7543_v16  ;;  %vm7542_vm8 = vcmp.eq.f32.partialorder %v7541_v54, 8.507059e+37  ;;  %v11774_v34 = vor.u32 %v12712_v30, %v11773_v52  ;;  %v11757_v12 = vld [vmem:[#allocation9 + $0xa8] sm:$0xf]  ;;  %v12708_v16 = vld [vmem:[#allocation9 + $0xb4] sm:$0xf0] }
 0xe94   :  { %v13084_v32 = vpop.eup %13083  ;;  %v11758_v37 = vor.u32 %v12708_v16, %v11757_v12  ;;  %v11759_v54 = vld [vmem:[#allocation9 + $0xb8] sm:$0xf0]  ;;  %v11709_v52 = vld [vmem:[#allocation9 + $0x48] sm:$0xf]  ;;  %v12696_v30 = vld [vmem:[#allocation9 + $0x54] sm:$0xf0] }
 0xe95   :  { %v7516_v0 = vadd.f32 1.0, %v13084_v32  ;;  %8110 = vmatpush.bf16.msra.mxu2 %v11774_v34  ;;  %v11710_v34 = vor.u32 %v12696_v30, %v11709_v52  ;;  %v11687_v12 = vld [vmem:[#allocation9 + $0x30] sm:$0xf0]  ;;  %v11693_v16 = vld [vmem:[#allocation9 + $0x28] sm:$0xf] }
 0xe96   :  { %v13086_v27 = vpop.eup %13085 }
 0xe97   :  { %v13088_v29 = vpop.eup %13087  ;;  %v7518_v17 = vmul.f32 %v13086_v27, %v7514_v35  ;;  %13089 = vrcp.f32 %v7516_v0  ;;  %vm7523_vm1 = vweird.f32 %v13086_v27  ;;  %v7558_v4 = vand.u32 2147483648, %v7516_v0  ;;  %v12709_v35 = vld [vmem:[#allocation9 + $0xc4] sm:$0xf] }
 0xe98   :  { %v7533_v24 = vmul.f32 %v13088_v29, %v7515_v26  ;;  %13091 = vtanh.f32 %v7504_v33  ;;  %vm7538_vm2 = vweird.f32 %v13088_v29  ;;  %vm7524_vm5 = vmor %vm7522_vm3, %vm7523_vm1  ;;  %vm7552_vm10 = vweird.f32 %v7516_v0  ;;  %v11767_v26 = vld [vmem:[#allocation9 + $0xd0] sm:$0xf0] }
 0xe99   :  { %v7519_v57 = vsub.f32 1.0, %v7518_v17  ;;  %vm7539_vm6 = vmor %vm7537_vm4, %vm7538_vm2  ;;  %v7556_v13 = vand.u32 2147483647, %v7516_v0  ;;  %v7559_v49 = vor.u32 1.1754944e-38, %v7558_v4  ;;  %v11770_v32 = vor.u32 %v12709_v35, %v11767_v26  ;;  %v12707_v17 = vld [vmem:[#allocation9 + $0xac] sm:$0xf0]  ;;  %8111 = vmatpush.bf16.msra.mxu2 %v11758_v37 }
 0xe9a   :  { %v7534_v8 = vsub.f32 1.0, %v7533_v24  ;;  %v12705_v24 = vld [vmem:[#allocation9 + $0xa4] sm:$0xf]  ;;  %v14107_v4 = vld [vmem:[#allocation16_spill] sm:$0xff]  ;;  %v11702_v35 = vor.u32 %v12695_v53, %v11701_v46 }
 0xe9b   :  { %v7520_v47 = vmul.f32 %v13086_v27, %v7519_v57  ;;  %vm7557_vm12 = vcmp.eq.f32.partialorder %v7556_v13, 8.507059e+37  ;;  %8097 = vmatpush.bf16.msra.mxu1 %v11770_v32  ;;  %v4545_v13 = vadd.f32 %v14107_v4, %v13894_v48  ;;  %v12694_v32 = vld [vmem:[#allocation9 + $0x4c] sm:$0xf] }
 0xe9c   :  { %v7535_v51 = vmul.f32 %v13088_v29, %v7534_v8  ;;  %v11751_v8 = vld [vmem:[#allocation9 + $0xb0] sm:$0xf0]  ;;  %v12686_v4 = vld [vmem:[#allocation9 + $0xc] sm:$0xf] }
 0xe9d   :  { %v13090_v6 = vpop.eup %13089  ;;  %v7521_v44 = vadd.f32 %v13086_v27, %v7520_v47  ;;  %v11754_v47 = vor.u32 %v12705_v24, %v11751_v8  ;;  %v12689_v8 = vld [vmem:[#allocation9 + $0x24] sm:$0xf] }
 0xe9e   :  { %v7548_v14 = vmul.f32 %v13090_v6, %v7516_v0  ;;  %v7536_v60 = vadd.f32 %v13088_v29, %v7535_v51  ;;  %v13092_v21 = vpop.eup %13091  ;;  %vm7553_vm9 = vweird.f32 %v13090_v6  ;;  %v12710_v0 = vld [vmem:[#allocation9 + $0xcc] sm:$0xf] }
 0xe9f   :  { %v7525_v20 = vsel %vm7524_vm5, %v13086_v27, %v7521_v44  ;;  %vm7554_vm11 = vmor %vm7552_vm10, %vm7553_vm9  ;;  %v11775_v27 = vld [vmem:[#allocation9 + $0xd8] sm:$0xf0]  ;;  %v12706_v51 = vld [vmem:[#allocation9 + $0xac] sm:$0xf]  ;;  %8098 = vmatpush.bf16.msra.mxu1 %v11754_v47 }
 0xea0   :  { %v7549_v25 = vsub.f32 1.0, %v7548_v14  ;;  %v7530_v39 = vsel %vm7527_vm7, %v7529_v7, %v7525_v20  ;;  %v7540_v36 = vsel %vm7539_vm6, %v13088_v29, %v7536_v60  ;;  %v11778_v33 = vor.u32 %v12710_v0, %v11775_v27  ;;  %v11749_v29 = vld [vmem:[#allocation9 + $0xa0] sm:$0xf]  ;;  %v12703_v14 = vld [vmem:[#allocation9 + $0x8c] sm:$0xf0] }
 0xea1   :  { %v7545_v62 = vsel %vm7542_vm8, %v7544_v5, %v7540_v36  ;;  %v7564_v22 = vmul.f32 %v13092_v21, %v7530_v39  ;;  %v11750_v57 = vor.u32 %v12707_v17, %v11749_v29  ;;  %v11733_v44 = vld [vmem:[#allocation9 + $0x80] sm:$0xf]  ;;  %v12701_v7 = vld [vmem:[#allocation9 + $0x84] sm:$0xf]  ;;  %v11735_v5 = vld [vmem:[#allocation9 + $0x90] sm:$0xf0] }
 0xea2   :  { %v7550_v55 = vmul.f32 %v13090_v6, %v7549_v25  ;;  %v7563_v43 = vmul.f32 %v7545_v62, %v14001_v2  ;;  %v11781_v2 = vld [vmem:[#allocation9 + $0xe0] sm:$0xf]  ;;  %8123 = vmatpush.bf16.msra.mxu3 %v11778_v33  ;;  %v11734_v60 = vor.u32 %v12703_v14, %v11733_v44  ;;  %v11741_v20 = vld [vmem:[#allocation9 + $0x88] sm:$0xf]  ;;  %v12704_v21 = vld [vmem:[#allocation9 + $0x94] sm:$0xf0]  ;;  %v11738_v25 = vor.u32 %v12701_v7, %v11735_v5 }
 0xea3   :  { %v11782_v18 = vor.u32 %v12715_v38, %v11781_v2  ;;  %v11742_v39 = vor.u32 %v12704_v21, %v11741_v20  ;;  %v12702_v36 = vld [vmem:[#allocation9 + $0x8c] sm:$0xf]  ;;  %v11743_v62 = vld [vmem:[#allocation9 + $0x98] sm:$0xf0]  ;;  %v11685_v27 = vld [vmem:[#allocation9 + $0x20] sm:$0xf] }
 0xea4   :  { %v14013_v23 = vadd.f32 %v7564_v22, %v7563_v43  ;;  %v7551_v41 = vadd.f32 %v13090_v6, %v7550_v55  ;;  %v11746_v22 = vor.u32 %v12702_v36, %v11743_v62  ;;  %8099 = vmatpush.bf16.msra.mxu1 %v11738_v25  ;;  %v11717_v55 = vld [vmem:[#allocation9 + $0x60] sm:$0xf]  ;;  %v12699_v43 = vld [vmem:[#allocation9 + $0x6c] sm:$0xf0]  ;;  %v11711_v0 = vld [vmem:[#allocation9 + $0x58] sm:$0xf0] }
 0xea5   :  { %8083 = vmatpush.bf16.msra.mxu0 %v11782_v18  ;;  %8112 = vmatpush.bf16.msra.mxu2 %v11742_v39  ;;  %v12691_v33 = vld [vmem:[#allocation9 + $0x2c] sm:$0xf0]  ;;  %v14109_v29 = vld [vmem:[#allocation18_spill] sm:$0xff]  ;;  %v11714_v24 = vor.u32 %v12694_v32, %v11711_v0  ;;  %v11695_v44 = vld [vmem:[#allocation9 + $0x38] sm:$0xf0] }
 0xea6   :  { %13093 = vtanh.f32 %v14013_v23  ;;  %v7555_v59 = vsel %vm7554_vm11, %v13090_v6, %v7551_v41  ;;  %v11762_v6 = vor.u32 %v12706_v51, %v11759_v54  ;;  %v12697_v41 = vld [vmem:[#allocation9 + $0x64] sm:$0xf]  ;;  %v4623_v17 = vadd.f32 %v14109_v29, %v13908_v19  ;;  %v12692_v54 = vld [vmem:[#allocation9 + $0x34] sm:$0xf0]  ;;  %v11669_v21 = vld [vmem:[#allocation9] sm:$0xf] }
 0xea7   :  { %v7560_v28 = vsel %vm7557_vm12, %v7559_v49, %v7555_v59  ;;  %v14108_v59 = vld [vmem:[#allocation17_spill] sm:$0xff]  ;;  %v11690_v51 = vor.u32 %v12689_v8, %v11687_v12  ;;  %v11694_v5 = vor.u32 %v12692_v54, %v11693_v16  ;;  %v12687_v25 = vld [vmem:[#allocation9 + $0xc] sm:$0xf0]  ;;  %v12685_v39 = vld [vmem:[#allocation9 + $0x4] sm:$0xf] }
 0xea8   :  { %8124 = vmatpush.bf16.msra.mxu3 %v11762_v6  ;;  %v4584_v49 = vadd.f32 %v14108_v59, %v13897_v1  ;;  %v12690_v6 = vld [vmem:[#allocation9 + $0x2c] sm:$0xf]  ;;  %v11670_v36 = vor.u32 %v12687_v25, %v11669_v21  ;;  %v11671_v62 = vld [vmem:[#allocation9 + $0x10] sm:$0xf0] }
 0xea9   :  { %8084 = vmatpush.bf16.msra.mxu0 %v11766_v9  ;;  %v11703_v9 = vld [vmem:[#allocation9 + $0x50] sm:$0xf0]  ;;  %v11698_v20 = vor.u32 %v12690_v6, %v11695_v44 }
 0xeaa   :  { %v11706_v26 = vor.u32 %v12693_v50, %v11703_v9 }
 0xeac   :  { %v13094_v58 = vpop.eup %13093  ;;  %8125 = vmatpush.bf16.msra.mxu3 %v11746_v22  ;;  %v11677_v22 = vld [vmem:[#allocation9 + $0x8] sm:$0xf] }
 0xead   :  { %v7567_v31 = vmul.f32 %v13094_v58, %v7560_v28  ;;  %8085 = vmatpush.bf16.msra.mxu0 %v11750_v57  ;;  %v11718_v58 = vor.u32 %v12699_v43, %v11717_v55  ;;  %v11719_v28 = vld [vmem:[#allocation9 + $0x70] sm:$0xf0]  ;;  %v11686_v57 = vor.u32 %v12691_v33, %v11685_v27  ;;  %v12688_v55 = vld [vmem:[#allocation9 + $0x14] sm:$0xf0] }
 0xeae   :  { %v11722_v3 = vor.u32 %v12697_v41, %v11719_v28  ;;  %v11674_v41 = vor.u32 %v12685_v39, %v11671_v62  ;;  %v12747_v39 = vld [vmem:[#allocation9 + $0xec] sm:$0xf0] }
 0xeaf   :  { %v7568_v11 = vpack.c.bf16 %v7567_v31, %v7567_v31  ;;  %v11725_v31 = vld [vmem:[#allocation9 + $0x68] sm:$0xf] }
 0xeb0   :  { %8100 = vmatpush.bf16.msra.mxu1 %v11722_v3  ;;  %8126 = vmatpush.bf16.msra.mxu3 %v11730_v56 }
 0xeb1   :  { %7569 = vst [vmem:[#allocation11 + $0x20] sm:$0xf] %v7568_v11  ;;  %7774 = vmatmul.bf16.vlgmr.msrb.gmra.mxu0 %v7568_v11  ;;  %7787 = vmatmul.bf16.vlgmr.msrb.gmra.mxu1 %v7568_v11 }
 0xeb2   :  { %7800 = vmatmul.bf16.vlgmr.msrb.gmra.mxu2 %v7568_v11  ;;  %7813 = vmatmul.bf16.vlgmr.msrb.gmra.mxu3 %v7568_v11  ;;  %v12700_v11 = vld [vmem:[#allocation9 + $0x74] sm:$0xf0] }
 0xeb3   :  { %8086 = vmatpush.bf16.msra.mxu0 %v11734_v60  ;;  %v11726_v18 = vor.u32 %v12700_v11, %v11725_v31 }
 0xeb4   :  { %8101 = vmatpush.bf16.msra.mxu1 %v11706_v26  ;;  %8127 = vmatpush.bf16.msra.mxu3 %v11714_v24 }
 0xeb5   :  { %8113 = vmatpush.bf16.msra.mxu2 %v11726_v18  ;;  %v14110_v18 = vld [vmem:[#allocation19_spill] sm:$0xff] }
 0xeb6   :  { %v4662_v45 = vadd.f32 %v14110_v18, %v13913_v61 }
 0xeb7   :  { %8087 = vmatpush.bf16.msra.mxu0 %v11718_v58 }
 0xeb8   :  { %8102 = vmatpush.bf16.msra.mxu1 %v11690_v51  ;;  %8128 = vmatpush.bf16.msra.mxu3 %v11698_v20 }
 0xeb9   :  { %8114 = vmatpush.bf16.msra.mxu2 %v11710_v34 }
 0xebb   :  { %8088 = vmatpush.bf16.msra.mxu0 %v11702_v35 }
 0xebc   :  { %8103 = vmatpush.bf16.msra.mxu1 %v11674_v41 }
 0xebd   :  { %8115 = vmatpush.bf16.msra.mxu2 %v11694_v5 }
 0xebf   :  { %8089 = vmatpush.bf16.msra.mxu0 %v11686_v57 }
 0xec3   :  { %8090 = vmatpush.bf16.msra.mxu0 %v11670_v36  ;;  %v12745_v36 = vld [vmem:[#allocation9 + $0xe4] sm:$0xf] }
 0xf2e   :  { %v7775_v2 = vpop.f32.mrf.mxu0  ;;  %v7788_v38 = vpop.f32.mrf.mxu1 }
 0xf2f   :  { %v7818_v40 = vadd.f32 %v7775_v2, %v4545_v13  ;;  %v7819_v10 = vadd.f32 %v7788_v38, %v4584_v49  ;;  %v11679_v13 = vld [vmem:[#allocation9 + $0x18] sm:$0xf0]  ;;  %v11678_v49 = vor.u32 %v12688_v55, %v11677_v22  ;;  %v11914_v22 = vld [vmem:[#allocation9 + $0xf0] sm:$0xf0]  ;;  %v11920_v55 = vld [vmem:[#allocation9 + $0xe8] sm:$0xf] }
 0xf30   :  { %v11682_v31 = vor.u32 %v12686_v4, %v11679_v13  ;;  %v11917_v41 = vor.u32 %v12745_v36, %v11914_v22  ;;  %v12746_v13 = vld [vmem:[#allocation9 + $0xec] sm:$0xf] }
 0xf31   :  { %v11664_v63 = vmul.f32 -1.442695, %v7818_v40  ;;  %v11665_v42 = vmul.f32 -1.442695, %v7819_v10  ;;  %8116 = vmatpush.bf16.msra.mxu2 %v11678_v49  ;;  %v12730_v22 = vld [vmem:[#allocation9 + $0x6c] sm:$0xf] }
 0xf32   :  { %8129 = vmatpush.bf16.msra.mxu3 %v11682_v31  ;;  %8413 = vmatpush.bf16.msrb.mxu1 %v11917_v41  ;;  %v12741_v31 = vld [vmem:[#allocation9 + $0xc4] sm:$0xf] }
 0xf33   :  { %13095 = vpow2.f32 %v11664_v63 }
 0xf34   :  { %13097 = vpow2.f32 %v11665_v42 }
 0xf35   :  { %v7801_v47 = vpop.f32.mrf.mxu2  ;;  %v7814_v37 = vpop.f32.mrf.mxu3 }
 0xf36   :  { %v7820_v14 = vadd.f32 %v7801_v47, %v4623_v17  ;;  %v7777_v7 = vpop.f32.mrf.mxu0  ;;  %v7790_v60 = vpop.f32.mrf.mxu1  ;;  %v7821_v10 = vadd.f32 %v7814_v37, %v4662_v45 }
 0xf38   :  { %v11666_v43 = vmul.f32 -1.442695, %v7820_v14 }
 0xf39   :  { %v13096_v59 = vpop.eup %13095 }
 0xf3a   :  { %v13098_v58 = vpop.eup %13097  ;;  %v7831_v28 = vadd.f32 1.0, %v13096_v59  ;;  %13099 = vpow2.f32 %v11666_v43  ;;  %v12748_v43 = vld [vmem:[#allocation9 + $0xf4] sm:$0xf0]  ;;  %v11922_v59 = vld [vmem:[#allocation9 + $0xf8] sm:$0xf0] }
 0xf3b   :  { %v7832_v11 = vadd.f32 1.0, %v13098_v58  ;;  %v11921_v4 = vor.u32 %v12748_v43, %v11920_v55  ;;  %v11925_v49 = vor.u32 %v12746_v13, %v11922_v59  ;;  %v11896_v58 = vld [vmem:[#allocation9 + $0xc0] sm:$0xf]  ;;  %v11858_v55 = vld [vmem:[#allocation9 + $0x78] sm:$0xf0] }
 0xf3c   :  { %13101 = vrcp.f32 %v7831_v28  ;;  %v7845_v42 = vand.u32 2147483648, %v7831_v28  ;;  %v7843_v26 = vand.u32 2147483647, %v7831_v28  ;;  %vm7839_vm15 = vweird.f32 %v7831_v28  ;;  %v11832_v13 = vld [vmem:[#allocation9 + $0x40] sm:$0xf] }
 0xf3d   :  { %13103 = vrcp.f32 %v7832_v11  ;;  %v7803_v2 = vpop.f32.mrf.mxu2  ;;  %v7816_v38 = vpop.f32.mrf.mxu3  ;;  %v7860_v35 = vand.u32 2147483648, %v7832_v11  ;;  %v7858_v30 = vand.u32 2147483647, %v7832_v11  ;;  %vm7854_vm0 = vweird.f32 %v7832_v11  ;;  %8426 = vmatpush.bf16.msrb.mxu2 %v11921_v4  ;;  %8439 = vmatpush.bf16.msrb.mxu3 %v11925_v49  ;;  %v12727_v59 = vld [vmem:[#allocation9 + $0x4c] sm:$0xf0] }
 0xf3e   :  { %v7846_v27 = vor.u32 1.1754944e-38, %v7845_v42  ;;  %vm7844_vm3 = vcmp.eq.f32.partialorder %v7843_v26, 8.507059e+37  ;;  %v11898_v2 = vld [vmem:[#allocation9 + $0xd0] sm:$0xf0]  ;;  %v11904_v38 = vld [vmem:[#allocation9 + $0xc8] sm:$0xf]  ;;  %v11861_v4 = vor.u32 %v12730_v22, %v11858_v55 }
 0xf3f   :  { %v7861_v29 = vor.u32 1.1754944e-38, %v7860_v35  ;;  %vm7859_vm4 = vcmp.eq.f32.partialorder %v7858_v30, 8.507059e+37  ;;  %v11901_v18 = vor.u32 %v12741_v31, %v11898_v2  ;;  %v11888_v42 = vld [vmem:[#allocation9 + $0xa8] sm:$0xf]  ;;  %v12740_v35 = vld [vmem:[#allocation9 + $0xb4] sm:$0xf0]  ;;  %v11833_v31 = vor.u32 %v12727_v59, %v11832_v13 }
 0xf40   :  { %v13100_v3 = vpop.eup %13099  ;;  %v11889_v26 = vor.u32 %v12740_v35, %v11888_v42  ;;  %v11890_v30 = vld [vmem:[#allocation9 + $0xb8] sm:$0xf0]  ;;  %v12725_v49 = vld [vmem:[#allocation9 + $0x44] sm:$0xf]  ;;  %v11818_v42 = vld [vmem:[#allocation9 + $0x30] sm:$0xf0] }
 0xf41   :  { %v7833_v15 = vadd.f32 1.0, %v13100_v3  ;;  %v12744_v3 = vld [vmem:[#allocation9 + $0xd4] sm:$0xf0]  ;;  %8414 = vmatpush.bf16.msrb.mxu1 %v11901_v18  ;;  %v12726_v18 = vld [vmem:[#allocation9 + $0x4c] sm:$0xf] }
 0xf42   :  { %v13102_v40 = vpop.eup %13101  ;;  %v11905_v45 = vor.u32 %v12744_v3, %v11904_v38  ;;  %v11840_v38 = vld [vmem:[#allocation9 + $0x48] sm:$0xf]  ;;  %v12728_v3 = vld [vmem:[#allocation9 + $0x54] sm:$0xf0] }
 0xf43   :  { %v13104_v56 = vpop.eup %13103  ;;  %v7835_v46 = vmul.f32 %v13102_v40, %v7831_v28  ;;  %13105 = vrcp.f32 %v7833_v15  ;;  %vm7840_vm13 = vweird.f32 %v13102_v40  ;;  %v7875_v44 = vand.u32 2147483648, %v7833_v15  ;;  %v12743_v28 = vld [vmem:[#allocation9 + $0xcc] sm:$0xf0]  ;;  %v11824_v35 = vld [vmem:[#allocation9 + $0x28] sm:$0xf] }
 0xf44   :  { %v7850_v53 = vmul.f32 %v13104_v56, %v7832_v11  ;;  %13107 = vtanh.f32 %v7821_v10  ;;  %vm7855_vm14 = vweird.f32 %v13104_v56  ;;  %vm7841_vm1 = vmor %vm7839_vm15, %vm7840_vm13  ;;  %vm7869_vm6 = vweird.f32 %v7833_v15  ;;  %8427 = vmatpush.bf16.msrb.mxu2 %v11905_v45 }
 0xf45   :  { %v7836_v50 = vsub.f32 1.0, %v7835_v46  ;;  %vm7856_vm2 = vmor %vm7854_vm0, %vm7855_vm14  ;;  %v7873_v14 = vand.u32 2147483647, %v7833_v15  ;;  %v7876_v60 = vor.u32 1.1754944e-38, %v7875_v44  ;;  %v11897_v11 = vor.u32 %v12743_v28, %v11896_v58  ;;  %v12739_v46 = vld [vmem:[#allocation9 + $0xac] sm:$0xf0] }
 0xf46   :  { %v7851_v63 = vsub.f32 1.0, %v7850_v53  ;;  %v12737_v53 = vld [vmem:[#allocation9 + $0xa4] sm:$0xf]  ;;  %v14111_v44 = vld [vmem:[#allocation20_spill] sm:$0xff]  ;;  %v11841_v45 = vor.u32 %v12728_v3, %v11840_v38 }
 0xf47   :  { %v7837_v9 = vmul.f32 %v13102_v40, %v7836_v50  ;;  %vm7874_vm8 = vcmp.eq.f32.partialorder %v7873_v14, 8.507059e+37  ;;  %v4548_v14 = vadd.f32 %v14111_v44, %v13894_v48  ;;  %v12718_v44 = vld [vmem:[#allocation9 + $0xc] sm:$0xf] }
 0xf48   :  { %v7852_v52 = vmul.f32 %v13104_v56, %v7851_v63  ;;  %v11882_v63 = vld [vmem:[#allocation9 + $0xb0] sm:$0xf0]  ;;  %8428 = vmatpush.bf16.msrb.mxu2 %v11889_v26 }
 0xf49   :  { %v13106_v32 = vpop.eup %13105  ;;  %v7838_v34 = vadd.f32 %v13102_v40, %v7837_v9  ;;  %v11885_v9 = vor.u32 %v12737_v53, %v11882_v63  ;;  %v12721_v63 = vld [vmem:[#allocation9 + $0x24] sm:$0xf] }
 0xf4a   :  { %v7865_v0 = vmul.f32 %v13106_v32, %v7833_v15  ;;  %v7853_v33 = vadd.f32 %v13104_v56, %v7852_v52  ;;  %v13108_v24 = vpop.eup %13107  ;;  %vm7870_vm5 = vweird.f32 %v13106_v32  ;;  %v12742_v15 = vld [vmem:[#allocation9 + $0xcc] sm:$0xf] }
 0xf4b   :  { %v7842_v17 = vsel %vm7841_vm1, %v13102_v40, %v7838_v34  ;;  %vm7871_vm7 = vmor %vm7869_vm6, %vm7870_vm5  ;;  %v11906_v40 = vld [vmem:[#allocation9 + $0xd8] sm:$0xf0]  ;;  %v12738_v52 = vld [vmem:[#allocation9 + $0xac] sm:$0xf]  ;;  %8415 = vmatpush.bf16.msrb.mxu1 %v11885_v9 }
 0xf4c   :  { %v7866_v57 = vsub.f32 1.0, %v7865_v0  ;;  %v7847_v8 = vsel %vm7844_vm3, %v7846_v27, %v7842_v17  ;;  %v7857_v12 = vsel %vm7856_vm2, %v13104_v56, %v7853_v33  ;;  %v11909_v10 = vor.u32 %v12742_v15, %v11906_v40  ;;  %v11880_v56 = vld [vmem:[#allocation9 + $0xa0] sm:$0xf]  ;;  %v12735_v0 = vld [vmem:[#allocation9 + $0x8c] sm:$0xf0] }
 0xf4d   :  { %v7862_v16 = vsel %vm7859_vm4, %v7861_v29, %v7857_v12  ;;  %v7881_v47 = vmul.f32 %v13108_v24, %v7847_v8  ;;  %v11881_v50 = vor.u32 %v12739_v46, %v11880_v56  ;;  %v11864_v34 = vld [vmem:[#allocation9 + $0x80] sm:$0xf]  ;;  %v12733_v27 = vld [vmem:[#allocation9 + $0x84] sm:$0xf]  ;;  %v11866_v29 = vld [vmem:[#allocation9 + $0x90] sm:$0xf0] }
 0xf4e   :  { %v7867_v37 = vmul.f32 %v13106_v32, %v7866_v57  ;;  %v7880_v51 = vmul.f32 %v7862_v16, %v14013_v23  ;;  %v11912_v23 = vld [vmem:[#allocation9 + $0xe0] sm:$0xf]  ;;  %8440 = vmatpush.bf16.msrb.mxu3 %v11909_v10  ;;  %v11865_v33 = vor.u32 %v12735_v0, %v11864_v34  ;;  %v11872_v17 = vld [vmem:[#allocation9 + $0x88] sm:$0xf]  ;;  %v12736_v24 = vld [vmem:[#allocation9 + $0x94] sm:$0xf0]  ;;  %v11869_v57 = vor.u32 %v12733_v27, %v11866_v29 }
 0xf4f   :  { %v11913_v62 = vor.u32 %v12747_v39, %v11912_v23  ;;  %v11873_v8 = vor.u32 %v12736_v24, %v11872_v17  ;;  %v12734_v12 = vld [vmem:[#allocation9 + $0x8c] sm:$0xf]  ;;  %v11874_v16 = vld [vmem:[#allocation9 + $0x98] sm:$0xf0]  ;;  %v11816_v40 = vld [vmem:[#allocation9 + $0x20] sm:$0xf] }
 0xf50   :  { %v14025_v54 = vadd.f32 %v7881_v47, %v7880_v51  ;;  %v7868_v6 = vadd.f32 %v13106_v32, %v7867_v37  ;;  %v11877_v47 = vor.u32 %v12734_v12, %v11874_v16  ;;  %8416 = vmatpush.bf16.msrb.mxu1 %v11869_v57  ;;  %v11848_v37 = vld [vmem:[#allocation9 + $0x60] sm:$0xf]  ;;  %v12731_v51 = vld [vmem:[#allocation9 + $0x6c] sm:$0xf0]  ;;  %v11842_v15 = vld [vmem:[#allocation9 + $0x58] sm:$0xf0] }
 0xf51   :  { %8400 = vmatpush.bf16.msrb.mxu0 %v11913_v62  ;;  %8429 = vmatpush.bf16.msrb.mxu2 %v11873_v8  ;;  %v12723_v10 = vld [vmem:[#allocation9 + $0x2c] sm:$0xf0]  ;;  %v14113_v56 = vld [vmem:[#allocation22_spill] sm:$0xff]  ;;  %v11845_v53 = vor.u32 %v12726_v18, %v11842_v15  ;;  %v11826_v34 = vld [vmem:[#allocation9 + $0x38] sm:$0xf0] }
 0xf52   :  { %13109 = vtanh.f32 %v14025_v54  ;;  %v7872_v7 = vsel %vm7871_vm7, %v13106_v32, %v7868_v6  ;;  %v11893_v32 = vor.u32 %v12738_v52, %v11890_v30  ;;  %v12729_v6 = vld [vmem:[#allocation9 + $0x64] sm:$0xf]  ;;  %v4626_v46 = vadd.f32 %v14113_v56, %v13908_v19  ;;  %v12724_v30 = vld [vmem:[#allocation9 + $0x34] sm:$0xf0]  ;;  %v11800_v24 = vld [vmem:[#allocation9] sm:$0xf] }
 0xf53   :  { %v7877_v20 = vsel %vm7874_vm8, %v7876_v60, %v7872_v7  ;;  %v14112_v7 = vld [vmem:[#allocation21_spill] sm:$0xff]  ;;  %v11821_v52 = vor.u32 %v12721_v63, %v11818_v42  ;;  %v11825_v29 = vor.u32 %v12724_v30, %v11824_v35  ;;  %v12719_v57 = vld [vmem:[#allocation9 + $0xc] sm:$0xf0]  ;;  %v12717_v8 = vld [vmem:[#allocation9 + $0x4] sm:$0xf] }
 0xf54   :  { %8441 = vmatpush.bf16.msrb.mxu3 %v11893_v32  ;;  %v4587_v60 = vadd.f32 %v14112_v7, %v13897_v1  ;;  %v12722_v32 = vld [vmem:[#allocation9 + $0x2c] sm:$0xf]  ;;  %v11801_v12 = vor.u32 %v12719_v57, %v11800_v24  ;;  %v11802_v16 = vld [vmem:[#allocation9 + $0x10] sm:$0xf0] }
 0xf55   :  { %8401 = vmatpush.bf16.msrb.mxu0 %v11897_v11  ;;  %v11834_v11 = vld [vmem:[#allocation9 + $0x50] sm:$0xf0]  ;;  %v11829_v17 = vor.u32 %v12722_v32, %v11826_v34 }
 0xf56   :  { %v11837_v2 = vor.u32 %v12725_v49, %v11834_v11 }
 0xf58   :  { %v13110_v5 = vpop.eup %13109  ;;  %8442 = vmatpush.bf16.msrb.mxu3 %v11877_v47  ;;  %v11808_v47 = vld [vmem:[#allocation9 + $0x8] sm:$0xf] }
 0xf59   :  { %v7884_v21 = vmul.f32 %v13110_v5, %v7877_v20  ;;  %8402 = vmatpush.bf16.msrb.mxu0 %v11881_v50  ;;  %v11849_v5 = vor.u32 %v12731_v51, %v11848_v37  ;;  %v11850_v20 = vld [vmem:[#allocation9 + $0x70] sm:$0xf0]  ;;  %v11817_v50 = vor.u32 %v12723_v10, %v11816_v40  ;;  %v12720_v37 = vld [vmem:[#allocation9 + $0x14] sm:$0xf0] }
 0xf5a   :  { %v11853_v36 = vor.u32 %v12729_v6, %v11850_v20  ;;  %v11805_v6 = vor.u32 %v12717_v8, %v11802_v16 }
 0xf5b   :  { %v7885_v25 = vpack.c.bf16 %v7884_v21, %v7884_v21  ;;  %v11856_v21 = vld [vmem:[#allocation9 + $0x68] sm:$0xf] }
 0xf5c   :  { %8417 = vmatpush.bf16.msrb.mxu1 %v11853_v36  ;;  %8443 = vmatpush.bf16.msrb.mxu3 %v11861_v4 }
 0xf5d   :  { %7886 = vst [vmem:[#allocation11 + $0x24] sm:$0xf] %v7885_v25  ;;  %8091 = vmatmul.bf16.vlgmr.msra.gmra.mxu0 %v7885_v25  ;;  %8104 = vmatmul.bf16.vlgmr.msra.gmra.mxu1 %v7885_v25 }
 0xf5e   :  { %8117 = vmatmul.bf16.vlgmr.msra.gmra.mxu2 %v7885_v25  ;;  %8130 = vmatmul.bf16.vlgmr.msra.gmra.mxu3 %v7885_v25  ;;  %v12732_v25 = vld [vmem:[#allocation9 + $0x74] sm:$0xf0] }
 0xf5f   :  { %8403 = vmatpush.bf16.msrb.mxu0 %v11865_v33  ;;  %v11857_v62 = vor.u32 %v12732_v25, %v11856_v21 }
 0xf60   :  { %8418 = vmatpush.bf16.msrb.mxu1 %v11837_v2  ;;  %8444 = vmatpush.bf16.msrb.mxu3 %v11845_v53 }
 0xf61   :  { %8430 = vmatpush.bf16.msrb.mxu2 %v11857_v62  ;;  %v14114_v62 = vld [vmem:[#allocation23_spill] sm:$0xff] }
 0xf62   :  { %v4665_v22 = vadd.f32 %v14114_v62, %v13913_v61 }
 0xf63   :  { %8404 = vmatpush.bf16.msrb.mxu0 %v11849_v5 }
 0xf64   :  { %8419 = vmatpush.bf16.msrb.mxu1 %v11821_v52  ;;  %8445 = vmatpush.bf16.msrb.mxu3 %v11829_v17 }
 0xf65   :  { %8431 = vmatpush.bf16.msrb.mxu2 %v11841_v45 }
 0xf67   :  { %8405 = vmatpush.bf16.msrb.mxu0 %v11833_v31 }
 0xf68   :  { %8420 = vmatpush.bf16.msrb.mxu1 %v11805_v6 }
 0xf69   :  { %8432 = vmatpush.bf16.msrb.mxu2 %v11825_v29 }
 0xf6b   :  { %8406 = vmatpush.bf16.msrb.mxu0 %v11817_v50 }
 0xf6f   :  { %8407 = vmatpush.bf16.msrb.mxu0 %v11801_v12  ;;  %v14116_v12 = vld [vmem:[#allocation25_spill] sm:$0xff] }
 0xf70   :  { %v4589_v16 = vadd.f32 %v14116_v12, %v13897_v1 }
 0xfda   :  { %v8092_v23 = vpop.f32.mrf.mxu0  ;;  %v8105_v39 = vpop.f32.mrf.mxu1 }
 0xfdb   :  { %v8135_v43 = vadd.f32 %v8092_v23, %v4548_v14  ;;  %v8136_v41 = vadd.f32 %v8105_v39, %v4587_v60  ;;  %v11810_v14 = vld [vmem:[#allocation9 + $0x18] sm:$0xf0]  ;;  %v11809_v60 = vor.u32 %v12720_v37, %v11808_v47 }
 0xfdc   :  { %v11813_v21 = vor.u32 %v12718_v44, %v11810_v14 }
 0xfdd   :  { %v11795_v58 = vmul.f32 -1.442695, %v8135_v43  ;;  %v11796_v28 = vmul.f32 -1.442695, %v8136_v41  ;;  %8433 = vmatpush.bf16.msrb.mxu2 %v11809_v60 }
 0xfde   :  { %8446 = vmatpush.bf16.msrb.mxu3 %v11813_v21 }
 0xfdf   :  { %13111 = vpow2.f32 %v11795_v58 }
 0xfe0   :  { %13113 = vpow2.f32 %v11796_v28 }
 0xfe1   :  { %v8118_v9 = vpop.f32.mrf.mxu2  ;;  %v8131_v26 = vpop.f32.mrf.mxu3 }
 0xfe2   :  { %v8137_v0 = vadd.f32 %v8118_v9, %v4626_v46  ;;  %v8094_v27 = vpop.f32.mrf.mxu0  ;;  %v8107_v33 = vpop.f32.mrf.mxu1  ;;  %v8138_v41 = vadd.f32 %v8131_v26, %v4665_v22 }
 0xfe4   :  { %v11797_v51 = vmul.f32 -1.442695, %v8137_v0 }
 0xfe5   :  { %v13112_v7 = vpop.eup %13111 }
 0xfe6   :  { %v13114_v5 = vpop.eup %13113  ;;  %v8148_v20 = vadd.f32 1.0, %v13112_v7  ;;  %13115 = vpow2.f32 %v11797_v51  ;;  %v14117_v7 = vld [vmem:[#allocation26_spill] sm:$0xff] }
 0xfe7   :  { %v8149_v25 = vadd.f32 1.0, %v13114_v5  ;;  %v4628_v60 = vadd.f32 %v14117_v7, %v13908_v19 }
 0xfe8   :  { %13117 = vrcp.f32 %v8148_v20  ;;  %v8162_v28 = vand.u32 2147483648, %v8148_v20  ;;  %v8160_v2 = vand.u32 2147483647, %v8148_v20  ;;  %vm8156_vm11 = vweird.f32 %v8148_v20 }
 0xfe9   :  { %13119 = vrcp.f32 %v8149_v25  ;;  %v8120_v23 = vpop.f32.mrf.mxu2  ;;  %v8133_v39 = vpop.f32.mrf.mxu3  ;;  %v8177_v31 = vand.u32 2147483648, %v8149_v25  ;;  %v8175_v3 = vand.u32 2147483647, %v8149_v25  ;;  %vm8171_vm12 = vweird.f32 %v8149_v25 }
 0xfea   :  { %v8163_v40 = vor.u32 1.1754944e-38, %v8162_v28  ;;  %vm8161_vm15 = vcmp.eq.f32.partialorder %v8160_v2, 8.507059e+37 }
 0xfeb   :  { %v8178_v56 = vor.u32 1.1754944e-38, %v8177_v31  ;;  %vm8176_vm0 = vcmp.eq.f32.partialorder %v8175_v3, 8.507059e+37 }
 0xfec   :  { %v13116_v36 = vpop.eup %13115 }
 0xfed   :  { %v8150_v55 = vadd.f32 1.0, %v13116_v36 }
 0xfee   :  { %v13118_v43 = vpop.eup %13117 }
 0xfef   :  { %v13120_v4 = vpop.eup %13119  ;;  %v8152_v13 = vmul.f32 %v13118_v43, %v8148_v20  ;;  %13121 = vrcp.f32 %v8150_v55  ;;  %vm8157_vm9 = vweird.f32 %v13118_v43  ;;  %v8192_v34 = vand.u32 2147483648, %v8150_v55 }
 0xff0   :  { %v8167_v59 = vmul.f32 %v13120_v4, %v8149_v25  ;;  %13123 = vtanh.f32 %v8138_v41  ;;  %vm8172_vm10 = vweird.f32 %v13120_v4  ;;  %vm8158_vm13 = vmor %vm8156_vm11, %vm8157_vm9  ;;  %vm8186_vm2 = vweird.f32 %v8150_v55  ;;  %v14118_v41 = vld [vmem:[#allocation27_spill] sm:$0xff] }
 0xff1   :  { %v8153_v49 = vsub.f32 1.0, %v8152_v13  ;;  %vm8173_vm14 = vmor %vm8171_vm12, %vm8172_vm10  ;;  %v8190_v0 = vand.u32 2147483647, %v8150_v55  ;;  %v8193_v33 = vor.u32 1.1754944e-38, %v8192_v34  ;;  %v4667_v19 = vadd.f32 %v14118_v41, %v13913_v61 }
 0xff2   :  { %v8168_v58 = vsub.f32 1.0, %v8167_v59 }
 0xff3   :  { %v8154_v11 = vmul.f32 %v13118_v43, %v8153_v49  ;;  %vm8191_vm4 = vcmp.eq.f32.partialorder %v8190_v0, 8.507059e+37 }
 0xff4   :  { %v8169_v38 = vmul.f32 %v13120_v4, %v8168_v58 }
 0xff5   :  { %v13122_v18 = vpop.eup %13121  ;;  %v8155_v45 = vadd.f32 %v13118_v43, %v8154_v11 }
 0xff6   :  { %v8182_v15 = vmul.f32 %v13122_v18, %v8150_v55  ;;  %v8170_v10 = vadd.f32 %v13120_v4, %v8169_v38  ;;  %v13124_v53 = vpop.eup %13123  ;;  %vm8187_vm1 = vweird.f32 %v13122_v18 }
 0xff7   :  { %v8159_v46 = vsel %vm8158_vm13, %v13118_v43, %v8155_v45  ;;  %vm8188_vm3 = vmor %vm8186_vm2, %vm8187_vm1 }
 0xff8   :  { %v8183_v50 = vsub.f32 1.0, %v8182_v15  ;;  %v8164_v63 = vsel %vm8161_vm15, %v8163_v40, %v8159_v46  ;;  %v8174_v42 = vsel %vm8173_vm14, %v13120_v4, %v8170_v10 }
 0xff9   :  { %v8179_v35 = vsel %vm8176_vm0, %v8178_v56, %v8174_v42  ;;  %v8198_v9 = vmul.f32 %v13124_v53, %v8164_v63 }
 0xffa   :  { %v8184_v26 = vmul.f32 %v13122_v18, %v8183_v50  ;;  %v8197_v52 = vmul.f32 %v8179_v35, %v14025_v54  ;;  %v14115_v54 = vld [vmem:[#allocation24_spill] sm:$0xff] }
 0xffb   :  { %v4550_v8 = vadd.f32 %v14115_v54, %v13894_v48 }
 0xffc   :  { %v14037_v30 = vadd.f32 %v8198_v9, %v8197_v52  ;;  %v8185_v32 = vadd.f32 %v13122_v18, %v8184_v26 }
 0xffe   :  { %13125 = vtanh.f32 %v14037_v30  ;;  %v8189_v27 = vsel %vm8188_vm3, %v13122_v18, %v8185_v32 }
 0xfff   :  { %v8194_v17 = vsel %vm8191_vm4, %v8193_v33, %v8189_v27 }
0x1004   :  { %v13126_v29 = vpop.eup %13125 }
0x1005   :  { %v8201_v24 = vmul.f32 %v13126_v29, %v8194_v17 }
0x1007   :  { %v8202_v57 = vpack.c.bf16 %v8201_v24, %v8201_v24 }
0x1009   :  { %8203 = vst [vmem:[#allocation11 + $0x28] sm:$0xf] %v8202_v57  ;;  %8408 = vmatmul.bf16.vlgmr.msrb.gmra.mxu0 %v8202_v57  ;;  %8421 = vmatmul.bf16.vlgmr.msrb.gmra.mxu1 %v8202_v57 }
0x100a   :  { %8434 = vmatmul.bf16.vlgmr.msrb.gmra.mxu2 %v8202_v57  ;;  %8447 = vmatmul.bf16.vlgmr.msrb.gmra.mxu3 %v8202_v57 }
0x1086   :  { %v8409_v47 = vpop.f32.mrf.mxu0  ;;  %v8422_v37 = vpop.f32.mrf.mxu1 }
0x1087   :  { %v8452_v51 = vadd.f32 %v8409_v47, %v4550_v8  ;;  %v8453_v6 = vadd.f32 %v8422_v37, %v4589_v16 }
0x1089   :  { %v11926_v44 = vmul.f32 -1.442695, %v8452_v51  ;;  %v11927_v14 = vmul.f32 -1.442695, %v8453_v6 }
0x108b   :  { %13127 = vpow2.f32 %v11926_v44 }
0x108c   :  { %13129 = vpow2.f32 %v11927_v14 }
0x108d   :  { %v8435_v5 = vpop.f32.mrf.mxu2  ;;  %v8448_v20 = vpop.f32.mrf.mxu3 }
0x108e   :  { %v8454_v21 = vadd.f32 %v8435_v5, %v4628_v60  ;;  %v8411_v25 = vpop.f32.mrf.mxu0  ;;  %v8424_v23 = vpop.f32.mrf.mxu1  ;;  %v8455_v59 = vadd.f32 %v8448_v20, %v4667_v19 }
0x1090   :  { %v11928_v48 = vmul.f32 -1.442695, %v8454_v21 }
0x1091   :  { %v13128_v39 = vpop.eup %13127 }
0x1092   :  { %v13130_v36 = vpop.eup %13129  ;;  %v8465_v1 = vadd.f32 1.0, %v13128_v39  ;;  %13131 = vpow2.f32 %v11928_v48 }
0x1093   :  { %v8466_v62 = vadd.f32 1.0, %v13130_v36 }
0x1094   :  { %13133 = vrcp.f32 %v8465_v1  ;;  %v8479_v2 = vand.u32 2147483648, %v8465_v1  ;;  %v8477_v18 = vand.u32 2147483647, %v8465_v1  ;;  %vm8473_vm7 = vweird.f32 %v8465_v1 }
0x1095   :  { %13135 = vrcp.f32 %v8466_v62  ;;  %v8437_v22 = vpop.f32.mrf.mxu2  ;;  %v8450_v55 = vpop.f32.mrf.mxu3  ;;  %v8494_v38 = vand.u32 2147483648, %v8466_v62  ;;  %v8492_v15 = vand.u32 2147483647, %v8466_v62  ;;  %vm8488_vm8 = vweird.f32 %v8466_v62 }
0x1096   :  { %v8480_v56 = vor.u32 1.1754944e-38, %v8479_v2  ;;  %vm8478_vm11 = vcmp.eq.f32.partialorder %v8477_v18, 8.507059e+37 }
0x1097   :  { %v8495_v53 = vor.u32 1.1754944e-38, %v8494_v38  ;;  %vm8493_vm12 = vcmp.eq.f32.partialorder %v8492_v15, 8.507059e+37 }
0x1098   :  { %v13132_v43 = vpop.eup %13131 }
0x1099   :  { %v8467_v4 = vadd.f32 1.0, %v13132_v43 }
0x109a   :  { %v13134_v13 = vpop.eup %13133 }
0x109b   :  { %v13136_v49 = vpop.eup %13135  ;;  %v8469_v58 = vmul.f32 %v13134_v13, %v8465_v1  ;;  %13137 = vrcp.f32 %v8467_v4  ;;  %vm8474_vm5 = vweird.f32 %v13134_v13  ;;  %v8509_v33 = vand.u32 2147483648, %v8467_v4 }
0x109c   :  { %v8484_v28 = vmul.f32 %v13136_v49, %v8466_v62  ;;  %13139 = vtanh.f32 %v8455_v59  ;;  %vm8489_vm6 = vweird.f32 %v13136_v49  ;;  %vm8475_vm9 = vmor %vm8473_vm7, %vm8474_vm5  ;;  %vm8503_vm14 = vweird.f32 %v8467_v4 }
0x109d   :  { %v8470_v31 = vsub.f32 1.0, %v8469_v58  ;;  %vm8490_vm10 = vmor %vm8488_vm8, %vm8489_vm6  ;;  %v8507_v29 = vand.u32 2147483647, %v8467_v4  ;;  %v8510_v24 = vor.u32 1.1754944e-38, %v8509_v33 }
0x109e   :  { %v8485_v11 = vsub.f32 1.0, %v8484_v28 }
0x109f   :  { %v8471_v3 = vmul.f32 %v13134_v13, %v8470_v31  ;;  %vm8508_vm0 = vcmp.eq.f32.partialorder %v8507_v29, 8.507059e+37 }
0x10a0   :  { %v8486_v45 = vmul.f32 %v13136_v49, %v8485_v11 }
0x10a1   :  { %v13138_v40 = vpop.eup %13137  ;;  %v8472_v61 = vadd.f32 %v13134_v13, %v8471_v3 }
0x10a2   :  { %v8499_v10 = vmul.f32 %v13138_v40, %v8467_v4  ;;  %v8487_v46 = vadd.f32 %v13136_v49, %v8486_v45  ;;  %v13140_v63 = vpop.eup %13139  ;;  %vm8504_vm13 = vweird.f32 %v13138_v40 }
0x10a3   :  { %v8476_v50 = vsel %vm8475_vm9, %v13134_v13, %v8472_v61  ;;  %vm8505_vm15 = vmor %vm8503_vm14, %vm8504_vm13 }
0x10a4   :  { %v8500_v42 = vsub.f32 1.0, %v8499_v10  ;;  %v8481_v35 = vsel %vm8478_vm11, %v8480_v56, %v8476_v50  ;;  %v8491_v9 = vsel %vm8490_vm10, %v13136_v49, %v8487_v46 }
0x10a5   :  { %v8496_v26 = vsel %vm8493_vm12, %v8495_v53, %v8491_v9  ;;  %v8515_v52 = vmul.f32 %v13140_v63, %v8481_v35 }
0x10a6   :  { %v8501_v32 = vmul.f32 %v13138_v40, %v8500_v42  ;;  %v8514_v34 = vmul.f32 %v8496_v26, %v14037_v30 }
0x10a8   :  { %v8516_v0 = vadd.f32 %v8515_v52, %v8514_v34  ;;  %v8502_v27 = vadd.f32 %v13138_v40, %v8501_v32 }
0x10aa   :  { %13141 = vtanh.f32 %v8516_v0  ;;  %v8506_v17 = vsel %vm8505_vm15, %v13138_v40, %v8502_v27 }
0x10ab   :  { %v8511_v54 = vsel %vm8508_vm0, %v8510_v24, %v8506_v17 }
0x10b0   :  { %v13142_v57 = vpop.eup %13141 }
0x10b1   :  { %v8518_v30 = vmul.f32 %v13142_v57, %v8511_v54 }
0x10b3   :  { %v8519_v8 = vpack.c.bf16 %v8518_v30, %v8518_v30 }
0x10b5   :  { %8520 = vst [vmem:[#allocation11 + $0x2c] sm:$0xf] %v8519_v8 }
0x10b6   :  { %8533 = dma.vmem_to_hbm [thread:$0]  %s8526_s13, 768, %s8528_s15, [#allocation5], %s13279_s16, %s13279_s16, %s13280_s17  }
0x10b7   :  { %13269 = dma.done.wait [#allocation5], 768  }
0x10b8   :  { %13270 = vsyncadd [#allocation5], 4294966528 }
0x10b9   :  { %8538 = vsyncpa [#allocation4], 1 }
0x10ba   :  { %8539 = vsyncpa [#allocation7], 1 }
0x10bb   :  { %8540 = vsyncpa [#allocation10], 1 }
0x10bc   :  { %8541 = vsyncpa [#allocation5], 1 }

</bundles_post_ra>
